<compile_context>
chip_gen: v5e
topology: v5e:2x2
jax: 0.10.0
libtpu: 0.0.40
codegen_flags: <defaults>
</compile_context>

<pallas_src>
import math
import jax
import jax.numpy as jnp
from jax.experimental import pallas as pl
from jax.experimental.pallas import tpu as pltpu

# --- model hyperparameters (small, consistent with the module) ---
DATA_DIM = 2
KERNEL_SIZE = 16
HIDDEN = 32
OUT_CH = 4
NUM_LAYERS = 3
OMEGA_0 = 10.0
ALPHA = 6.0
BETA = 1.0

# --- packed parameter slab geometry ---
N_FILTERS = NUM_LAYERS + 1
FILT_ROWS = N_FILTERS * HIDDEN                     # 128 fused Gabor channels
LIN_ROW0 = FILT_ROWS                               # hidden-linear rows start
OUT_ROW0 = LIN_ROW0 + NUM_LAYERS * HIDDEN          # output-linear rows start
SLAB_ROWS = ((OUT_ROW0 + OUT_CH + 7) // 8) * 8     # 232 (sublane-aligned)
SLAB_LANES = 128
BIAS_COL = HIDDEN                                  # bias lane for lin/out rows

MAX_TILE = 8192                                    # pixel (lane) DMA tile cap
SUB = 256                                          # in-kernel pixel sub-chunk

_HIGH = jax.lax.Precision.HIGHEST


def _cdiv(a, b):
    return -(-a // b)


def _round_up(a, b):
    return _cdiv(a, b) * b


def magnet_kernel(coords_ref, pslab_ref, out_ref):
    """Fused MAGNet forward for one (sample, pixel-tile) grid step.

    coords_ref: (DATA_DIM, TILE)   pixels on lanes (batch dim squeezed)
    pslab_ref:  (SLAB_ROWS, 128)   packed fw|fb|lw|lb|ow|ob slab (resident)
    out_ref:    (OUT_CH, TILE)
    """
    tile = coords_ref.shape[-1]
    sub = min(SUB, tile)          # tile is 128 or a multiple of SUB
    n_sub = tile // sub

    # Sub-chunk the lane axis so the (128, sub) activations stay in vregs
    # (decouples the big DMA tile from the compute working set).
    @pl.loop(0, n_sub)
    def _(j):
        off = pl.multiple_of(j * sub, sub)
        c = coords_ref[:, pl.ds(off, sub)]                           # (D, sub)

        # Fused Gabor filter bank: one VPU projection (K = DATA_DIM) over all
        # (NUM_LAYERS+1)*HIDDEN = 128 channels, then one long sin stream (EUP).
        acc = pslab_ref[0:FILT_ROWS, 0:1] * c[0:1, :]                # (128, sub)
        for d in range(1, DATA_DIM):
            acc = acc + pslab_ref[0:FILT_ROWS, d:d + 1] * c[d:d + 1, :]
        acc = acc + pslab_ref[0:FILT_ROWS, DATA_DIM:DATA_DIM + 1]    # + bias
        g_all = jnp.sin(acc)                                         # (128, sub)

        # Gated hidden linears on the MXU (overlaps with the VALU/EUP stream).
        h = g_all[0:HIDDEN, :]                                       # (32, sub)
        for i in range(NUM_LAYERS):
            r = LIN_ROW0 + i * HIDDEN
            lw_i = pslab_ref[r:r + HIDDEN, 0:HIDDEN]                 # (32, 32)
            lb_i = pslab_ref[r:r + HIDDEN, BIAS_COL:BIAS_COL + 1]    # (32, 1)
            lin = jnp.dot(lw_i, h, precision=_HIGH,
                          preferred_element_type=jnp.float32) + lb_i
            h = g_all[(i + 1) * HIDDEN:(i + 2) * HIDDEN, :] * lin

        # Output linear.
        ow = pslab_ref[OUT_ROW0:OUT_ROW0 + OUT_CH, 0:HIDDEN]         # (4, 32)
        ob = pslab_ref[OUT_ROW0:OUT_ROW0 + OUT_CH, BIAS_COL:BIAS_COL + 1]
        out = jnp.dot(ow, h, precision=_HIGH,
                      preferred_element_type=jnp.float32) + ob       # (4, sub)
        out_ref[:, pl.ds(off, sub)] = out.astype(out_ref.dtype)


def pack_params(params):
    """Pack all weights/biases into one lane-padded (SLAB_ROWS, 128) f32 slab."""
    fw, fb, lw, lb, ow, ob = params
    slab = jnp.zeros((SLAB_ROWS, SLAB_LANES), jnp.float32)
    slab = slab.at[0:FILT_ROWS, 0:DATA_DIM].set(fw.reshape(FILT_ROWS, DATA_DIM))
    slab = slab.at[0:FILT_ROWS, DATA_DIM].set(fb.reshape(FILT_ROWS))
    for i in range(NUM_LAYERS):
        r = LIN_ROW0 + i * HIDDEN
        slab = slab.at[r:r + HIDDEN, 0:HIDDEN].set(lw[i])
        slab = slab.at[r:r + HIDDEN, BIAS_COL].set(lb[i])
    slab = slab.at[OUT_ROW0:OUT_ROW0 + OUT_CH, 0:HIDDEN].set(ow)
    slab = slab.at[OUT_ROW0:OUT_ROW0 + OUT_CH, BIAS_COL].set(ob)
    return slab


def _num_tensorcores():
    """v7x exposes 2 TensorCores per chip; v5e/v6e have 1 (safe fallback: 1)."""
    try:
        kind = str(getattr(jax.devices()[0], "device_kind", "")).lower()
    except Exception:
        return 1
    return 2 if ("v7" in kind or "7x" in kind) else 1


def _pick_tile(hw, batch, n_cores):
    """Pixel (lane) tile per sample.

    Big tiles amortize the ~0.35us per-grid-step overhead; on multi-
    TensorCore chips (v7x) shrink only as needed so the grid has at least
    `n_cores` steps.  Tiles are 128 or a multiple of SUB so the in-kernel
    sub-chunk loop divides evenly.
    """
    tile = 128 if hw <= 128 else min(MAX_TILE, _round_up(hw, SUB))
    while n_cores > 1 and batch * _cdiv(hw, tile) < n_cores and tile > SUB:
        tile = max(SUB, _round_up(tile // 2, SUB))
    return int(tile)


def magnet_forward(coords_nchw, params):
    """coords_nchw: (B, DATA_DIM, H, W) float32 -> (B, OUT_CH, H, W)."""
    B, C, H, W = coords_nchw.shape
    assert C == DATA_DIM
    hw = H * W

    # NCHW is already channel-major per sample: (B, C, H, W) -> (B, C, H*W)
    # is a free reshape (no HBM transpose).  We grid over (batch, pixel-tile).
    coords_flat = coords_nchw.reshape(B, DATA_DIM, hw)

    n_cores = _num_tensorcores()
    tile = _pick_tile(hw, B, n_cores)
    hw_pad = _cdiv(hw, tile) * tile
    if hw_pad != hw:
        coords_flat = jnp.pad(coords_flat, ((0, 0), (0, 0), (0, hw_pad - hw)))

    pslab = pack_params(params)

    # Advisory cost hint so XLA schedules the surrounding (cheap) ops sanely.
    n_px = B * hw_pad
    flops_per_px = (FILT_ROWS * (2 * DATA_DIM + 1)
                    + NUM_LAYERS * (2 * HIDDEN * HIDDEN + 3 * HIDDEN)
                    + 2 * OUT_CH * HIDDEN + OUT_CH)
    cost = pl.CostEstimate(
        flops=flops_per_px * n_px,
        transcendentals=FILT_ROWS * n_px,
        bytes_accessed=(DATA_DIM + OUT_CH) * 4 * n_px
                       + SLAB_ROWS * SLAB_LANES * 4,
    )

    out_flat = pl.pallas_call(
        magnet_kernel,
        out_shape=jax.ShapeDtypeStruct((B, OUT_CH, hw_pad), jnp.float32),
        grid_spec=pltpu.PrefetchScalarGridSpec(
            num_scalar_prefetch=0,
            grid=(B, hw_pad // tile),
            in_specs=[
                # pixel tile, batch dim squeezed; lane-dense (tile % 128 == 0)
                pl.BlockSpec((None, DATA_DIM, tile), lambda b, i: (b, 0, i)),
                # single packed parameter slab; constant index_map -> fetched
                # once and resident across all grid steps
                pl.BlockSpec((SLAB_ROWS, SLAB_LANES), lambda b, i: (0, 0)),
            ],
            out_specs=pl.BlockSpec((None, OUT_CH, tile), lambda b, i: (b, 0, i)),
        ),
        compiler_params=pltpu.CompilerParams(
            dimension_semantics=("parallel", "parallel")),
        cost_estimate=cost,
    )(coords_flat, pslab)

    # Free reshape back to NCHW (no transpose: channels were never moved).
    return out_flat[:, :, :hw].reshape(B, OUT_CH, H, W)


def magnet_reference(coords_nchw, params):
    """Pure-JAX reference (same math, no Pallas) for a correctness check."""
    B, C, H, W = coords_nchw.shape
    x = jnp.transpose(coords_nchw, (0, 2, 3, 1)).reshape(-1, DATA_DIM)  # (N, 2)
    fw, fb, lw, lb, ow, ob = params

    def filt(layer):
        # K = DATA_DIM projection written elementwise (same association order
        # as the kernel) to keep f32 rounding of the large sin args matched.
        a = x[:, 0:1] * fw[layer][:, 0][None, :]
        for d in range(1, DATA_DIM):
            a = a + x[:, d:d + 1] * fw[layer][:, d][None, :]
        return jnp.sin(a + fb[layer][None, :])

    h = filt(0)
    for i in range(NUM_LAYERS):
        lin = jnp.dot(h, lw[i].T, precision=_HIGH) + lb[i][None, :]
        h = filt(i + 1) * lin
    out = jnp.dot(h, ow.T, precision=_HIGH) + ob[None, :]
    return jnp.transpose(out.reshape(B, H, W, OUT_CH), (0, 3, 1, 2))


def kaiming_uniform(key, shape, fan_in, gain):
    bound = gain * math.sqrt(3.0 / fan_in)
    return jax.random.uniform(key, shape, dtype=jnp.float32,
                              minval=-bound, maxval=bound)


def init_params(key):
    """Deterministic synthetic init mirroring MAGNetBase.__init__.

    Natural (Cout, Cin) layouts throughout (no transposes needed for the
    channel-major kernel layout).
    """
    keys = jax.random.split(key, 2 * (NUM_LAYERS + 1) + NUM_LAYERS + 1)
    ki = iter(range(len(keys)))

    # Gabor filter layers (MAGNetLayer): conv1x1 weight (HIDDEN, DATA_DIM),
    # default conv init scaled by 2*pi*omega_0*gamma, gamma ~ Gamma(alpha/(l+1));
    # bias = 0 (as in MAGNetLayer.__init__).
    fw_list, fb_list = [], []
    for layer in range(NUM_LAYERS + 1):
        alpha_l = ALPHA / (layer + 1)
        gamma = jax.random.gamma(keys[next(ki)], alpha_l,
                                 shape=(HIDDEN, DATA_DIM)) / BETA
        w = kaiming_uniform(keys[next(ki)], (HIDDEN, DATA_DIM),
                            fan_in=DATA_DIM, gain=1.0 / math.sqrt(3.0))
        fw_list.append(w * (2.0 * math.pi * OMEGA_0 * gamma))
        fb_list.append(jnp.zeros((HIDDEN,), jnp.float32))
    fw = jnp.stack(fw_list).astype(jnp.float32)    # (L+1, HIDDEN, DATA_DIM)
    fb = jnp.stack(fb_list)                        # (L+1, HIDDEN)

    # Hidden linears: kaiming_uniform(nonlinearity='linear'); bias = 1.0.
    lw_list, lb_list = [], []
    for _ in range(NUM_LAYERS):
        lw_list.append(kaiming_uniform(keys[next(ki)], (HIDDEN, HIDDEN),
                                       fan_in=HIDDEN, gain=1.0))
        lb_list.append(jnp.ones((HIDDEN,), jnp.float32))
    lw = jnp.stack(lw_list)                        # (L, HIDDEN, HIDDEN)
    lb = jnp.stack(lb_list)                        # (L, HIDDEN)

    # Output linear: kaiming_uniform gain=1; bias = 0.
    ow = kaiming_uniform(keys[next(ki)], (OUT_CH, HIDDEN),
                         fan_in=HIDDEN, gain=1.0)  # (OUT_CH, HIDDEN)
    ob = jnp.zeros((OUT_CH,), jnp.float32)

    return fw, fb, lw, lb, ow, ob


if __name__ == "__main__":
    key = jax.random.PRNGKey(0)
    k_param, k_coords = jax.random.split(key)

    params = init_params(k_param)

    # Coordinate grid input, NCHW, batch=2: (2, DATA_DIM, 16, 16).
    B, H, W = 2, KERNEL_SIZE, KERNEL_SIZE
    ys = jnp.linspace(-1.0, 1.0, H)
    xs = jnp.linspace(-1.0, 1.0, W)
    gy, gx = jnp.meshgrid(ys, xs, indexing="ij")
    grid_coords = jnp.stack([gx, gy], axis=0)          # (DATA_DIM, H, W)
    coords = jnp.broadcast_to(grid_coords[None],
                              (B, DATA_DIM, H, W)).astype(jnp.float32)
    coords = coords + 0.01 * jax.random.normal(k_coords, coords.shape,
                                               dtype=jnp.float32)

    out = magnet_forward(coords, params)
    out = jax.block_until_ready(out)

    ref = magnet_reference(coords, params)
    assert out.shape == (B, OUT_CH, H, W)
    # f32 sin of large (omega_0-scaled) args is ulp-sensitive; 1e-3 covers
    # FMA-vs-dot reassociation differences between kernel and reference.
    assert jnp.allclose(out, ref, atol=1e-3, rtol=1e-3), \
        float(jnp.max(jnp.abs(out - ref)))

    print("KERNEL_OK")
</pallas_src>

<mosaic_0001>
module attributes {stable_mosaic.version = 11 : i64} {
  func.func @magnet_kernel(%arg0: i32, %arg1: i32, %arg2: memref<1x2x256xf32, #tpu.memory_space<vmem>>, %arg3: memref<232x128xf32, #tpu.memory_space<vmem>>, %arg4: memref<1x4x256xf32, #tpu.memory_space<vmem>>) attributes {dimension_semantics = [#tpu.dimension_semantics<parallel>, #tpu.dimension_semantics<parallel>], iteration_bounds = array<i64: 2, 1>, scalar_prefetch = 0 : i64, scratch_operands = 0 : i64, tpu.core_type = #tpu.core_type<tc>, window_params = [{transform_indices = @transform_0, window_bounds = array<i64: 1, 2, 256>}, {pipeline_mode = #tpu.pipeline_mode<synchronous>, transform_indices = @transform_1, window_bounds = array<i64: 232, 128>}, {transform_indices = @transform_2, window_bounds = array<i64: 1, 4, 256>}]} {
    %c0_i32 = arith.constant 0 : i32
    %c1_i32 = arith.constant 1 : i32
    %0 = arith.muli %c0_i32, %c1_i32 : i32
    %c0_i32_0 = arith.constant 0 : i32
    %1 = arith.addi %c0_i32_0, %0 : i32
    %c256_i32 = arith.constant 256 : i32
    %2 = arith.muli %1, %c256_i32 : i32
    %3 = tpu.assume_multiple %2, 256 : i32
    %c0 = arith.constant 0 : index
    %c0_1 = arith.constant 0 : index
    %4 = arith.index_cast %3 : i32 to index
    %5 = vector.load %arg2[%c0, %c0_1, %4] : memref<1x2x256xf32, #tpu.memory_space<vmem>>, vector<1x2x256xf32>
    %6 = vector.shape_cast %5 : vector<1x2x256xf32> to vector<2x256xf32>
    %c0_2 = arith.constant 0 : index
    %c0_3 = arith.constant 0 : index
    %7 = vector.load %arg3[%c0_2, %c0_3] : memref<232x128xf32, #tpu.memory_space<vmem>>, vector<128x1xf32>
    %8 = vector.extract_strided_slice %6 {offsets = [0, 0], sizes = [1, 256], strides = [1, 1]} : vector<2x256xf32> to vector<1x256xf32>
    %9 = vector.broadcast %7 : vector<128x1xf32> to vector<128x256xf32>
    %10 = vector.broadcast %8 : vector<1x256xf32> to vector<128x256xf32>
    %11 = arith.mulf %9, %10 : vector<128x256xf32>
    %c0_4 = arith.constant 0 : index
    %c1 = arith.constant 1 : index
    %12 = vector.load %arg3[%c0_4, %c1] : memref<232x128xf32, #tpu.memory_space<vmem>>, vector<128x1xf32>
    %13 = vector.extract_strided_slice %6 {offsets = [1, 0], sizes = [1, 256], strides = [1, 1]} : vector<2x256xf32> to vector<1x256xf32>
    %14 = vector.broadcast %12 : vector<128x1xf32> to vector<128x256xf32>
    %15 = vector.broadcast %13 : vector<1x256xf32> to vector<128x256xf32>
    %16 = arith.mulf %14, %15 : vector<128x256xf32>
    %17 = arith.addf %11, %16 : vector<128x256xf32>
    %c0_5 = arith.constant 0 : index
    %c2 = arith.constant 2 : index
    %18 = vector.load %arg3[%c0_5, %c2] : memref<232x128xf32, #tpu.memory_space<vmem>>, vector<128x1xf32>
    %19 = vector.broadcast %18 : vector<128x1xf32> to vector<128x256xf32>
    %20 = arith.addf %17, %19 : vector<128x256xf32>
    %21 = math.sin %20 : vector<128x256xf32>
    %22 = vector.extract_strided_slice %21 {offsets = [0, 0], sizes = [32, 256], strides = [1, 1]} : vector<128x256xf32> to vector<32x256xf32>
    %c128 = arith.constant 128 : index
    %c0_6 = arith.constant 0 : index
    %23 = vector.load %arg3[%c128, %c0_6] : memref<232x128xf32, #tpu.memory_space<vmem>>, vector<32x32xf32>
    %c128_7 = arith.constant 128 : index
    %c32 = arith.constant 32 : index
    %24 = vector.load %arg3[%c128_7, %c32] : memref<232x128xf32, #tpu.memory_space<vmem>>, vector<32x1xf32>
    %cst = arith.constant dense<0.000000e+00> : vector<32x256xf32>
    %25 = tpu.matmul %23, %22, %cst {dimension_numbers = #tpu.dot_dimension_numbers<[1], [0], [0], [1], [0, 0, 1, 1], [], []>, precision = #tpu.contract_precision<fp32>} : vector<32x32xf32>, vector<32x256xf32>, vector<32x256xf32> -> vector<32x256xf32>
    %26 = vector.broadcast %24 : vector<32x1xf32> to vector<32x256xf32>
    %27 = arith.addf %25, %26 : vector<32x256xf32>
    %28 = vector.extract_strided_slice %21 {offsets = [32, 0], sizes = [32, 256], strides = [1, 1]} : vector<128x256xf32> to vector<32x256xf32>
    %29 = arith.mulf %28, %27 : vector<32x256xf32>
    %c160 = arith.constant 160 : index
    %c0_8 = arith.constant 0 : index
    %30 = vector.load %arg3[%c160, %c0_8] : memref<232x128xf32, #tpu.memory_space<vmem>>, vector<32x32xf32>
    %c160_9 = arith.constant 160 : index
    %c32_10 = arith.constant 32 : index
    %31 = vector.load %arg3[%c160_9, %c32_10] : memref<232x128xf32, #tpu.memory_space<vmem>>, vector<32x1xf32>
    %cst_11 = arith.constant dense<0.000000e+00> : vector<32x256xf32>
    %32 = tpu.matmul %30, %29, %cst_11 {dimension_numbers = #tpu.dot_dimension_numbers<[1], [0], [0], [1], [0, 0, 1, 1], [], []>, precision = #tpu.contract_precision<fp32>} : vector<32x32xf32>, vector<32x256xf32>, vector<32x256xf32> -> vector<32x256xf32>
    %33 = vector.broadcast %31 : vector<32x1xf32> to vector<32x256xf32>
    %34 = arith.addf %32, %33 : vector<32x256xf32>
    %35 = vector.extract_strided_slice %21 {offsets = [64, 0], sizes = [32, 256], strides = [1, 1]} : vector<128x256xf32> to vector<32x256xf32>
    %36 = arith.mulf %35, %34 : vector<32x256xf32>
    %c192 = arith.constant 192 : index
    %c0_12 = arith.constant 0 : index
    %37 = vector.load %arg3[%c192, %c0_12] : memref<232x128xf32, #tpu.memory_space<vmem>>, vector<32x32xf32>
    %c192_13 = arith.constant 192 : index
    %c32_14 = arith.constant 32 : index
    %38 = vector.load %arg3[%c192_13, %c32_14] : memref<232x128xf32, #tpu.memory_space<vmem>>, vector<32x1xf32>
    %cst_15 = arith.constant dense<0.000000e+00> : vector<32x256xf32>
    %39 = tpu.matmul %37, %36, %cst_15 {dimension_numbers = #tpu.dot_dimension_numbers<[1], [0], [0], [1], [0, 0, 1, 1], [], []>, precision = #tpu.contract_precision<fp32>} : vector<32x32xf32>, vector<32x256xf32>, vector<32x256xf32> -> vector<32x256xf32>
    %40 = vector.broadcast %38 : vector<32x1xf32> to vector<32x256xf32>
    %41 = arith.addf %39, %40 : vector<32x256xf32>
    %42 = vector.extract_strided_slice %21 {offsets = [96, 0], sizes = [32, 256], strides = [1, 1]} : vector<128x256xf32> to vector<32x256xf32>
    %43 = arith.mulf %42, %41 : vector<32x256xf32>
    %c224 = arith.constant 224 : index
    %c0_16 = arith.constant 0 : index
    %44 = vector.load %arg3[%c224, %c0_16] : memref<232x128xf32, #tpu.memory_space<vmem>>, vector<4x32xf32>
    %c224_17 = arith.constant 224 : index
    %c32_18 = arith.constant 32 : index
    %45 = vector.load %arg3[%c224_17, %c32_18] : memref<232x128xf32, #tpu.memory_space<vmem>>, vector<4x1xf32>
    %cst_19 = arith.constant dense<0.000000e+00> : vector<4x256xf32>
    %46 = tpu.matmul %44, %43, %cst_19 {dimension_numbers = #tpu.dot_dimension_numbers<[1], [0], [0], [1], [0, 0, 1, 1], [], []>, precision = #tpu.contract_precision<fp32>} : vector<4x32xf32>, vector<32x256xf32>, vector<4x256xf32> -> vector<4x256xf32>
    %47 = vector.broadcast %45 : vector<4x1xf32> to vector<4x256xf32>
    %48 = arith.addf %46, %47 : vector<4x256xf32>
    %c0_20 = arith.constant 0 : index
    %c0_21 = arith.constant 0 : index
    %49 = arith.index_cast %3 : i32 to index
    %50 = vector.load %arg4[%c0_20, %c0_21, %49] : memref<1x4x256xf32, #tpu.memory_space<vmem>>, vector<1x4x256xf32>
    %51 = vector.shape_cast %50 : vector<1x4x256xf32> to vector<4x256xf32>
    %52 = vector.shape_cast %48 : vector<4x256xf32> to vector<1x4x256xf32>
    tpu.vector_store %arg4[%c0_20, %c0_21, %49], %52 {strides = array<i32>} : memref<1x4x256xf32, #tpu.memory_space<vmem>>, vector<1x4x256xf32>,
    %c1_i32_22 = arith.constant 1 : i32
    return
  }
  func.func @transform_0(%arg0: i32, %arg1: i32) -> (i32, i32, i32) {
    %c0_i32 = arith.constant 0 : i32
    %c0_i32_0 = arith.constant 0 : i32
    return %arg0, %c0_i32, %arg1 : i32, i32, i32
  }
  func.func @transform_1(%arg0: i32, %arg1: i32) -> (i32, i32) {
    %c0_i32 = arith.constant 0 : i32
    %c0_i32_0 = arith.constant 0 : i32
    %c0_i32_1 = arith.constant 0 : i32
    return %c0_i32, %c0_i32_0 : i32, i32
  }
  func.func @transform_2(%arg0: i32, %arg1: i32) -> (i32, i32, i32) {
    %c0_i32 = arith.constant 0 : i32
    %c0_i32_0 = arith.constant 0 : i32
    return %arg0, %c0_i32, %arg1 : i32, i32, i32
  }
}

</mosaic_0001>

<bundles_post_ra>
// kernel: tpu_custom_call.1
= control target key start
LH: loop header
LB: loop body
LE: loop exit
PB: predicated region body
PF: predicated region fallthrough
CT: control target
= control target key end

     0   :  { %7 = vsyncpa [#allocation3], 0  ;;  %s15328_s0 = inlined_call_operand.hbm [shape: f32[2,2,256], index: 0, kind: input, shape index: {}]   ;;  %s15329_s1 = inlined_call_operand.hbm [shape: f32[232,128], index: 1, kind: input, shape index: {}]   ;;  %s15330_s2 = inlined_call_operand.hbm [shape: f32[2,4,256], index: 2, kind: output, shape index: {}]  }
   0x1   :  { %9 = vsyncpa [#allocation3 + $0x1], 0 }
   0x2   :  { %10 = vsyncpa [#allocation6], 0 }
   0x3   :  { %11 = vsyncpa [#allocation4], 0 }
   0x4   :  { %13 = vsyncpa [#allocation4 + $0x1], 0  ;;  %s8235_s9 = smov 0   ;;  %s8237_s10 = smov 0  }
   0x5   :  { %s8239_s11 = smov 0   ;;  %s8241_s12 = smov 0  }
   0x6   :  { %s8243_s13 = smov 0   ;;  %s8245_s14 = smov 0  }
   0x7 LB: > { %s7812_s15 = sadd.s32 4294967295, %s8205_s14   ;;  %p7814_p0 = scmp.ge.s32.totalorder %s8205_s14, 1  ;;  %s8205_s14 = sphi %s8245_s14, %s19_s14   ;;  %s8201_s13 = sphi %s8243_s13, %s16381_s13   ;;  %s8197_s12 = sphi %s8241_s12, %s16380_s12   ;;  %s8193_s11 = sphi %s8239_s11, %s16379_s11   ;;  %s8189_s10 = sphi %s8237_s10, %s16378_s10   ;;  %s8185_s9 = sphi %s8235_s9, %s16377_s9  }
   0x8   : > { %p8267_p1 = scmp.eq.s32.totalorder %s7812_s15, 0  ;;  %p113_p2 = scmp.lt.s32.totalorder %s8205_s14, 3 }
   0x9   : > { %s124_s19 = sshll.u32 %s15329_s1, 4  ;;  %s8207_s21 = smov [#allocation5]   ;;  %s125_s19 = int_to_ptr.hbm [resolvable:$true] %s124_s19 }
   0xa   : > { %p8275_p3 = pnand %p7814_p0, %p113_p2  ;;  %s126_s22 = sshll.u32 %s8207_s21, 4  ;;  %s127_s22 = int_to_ptr.vmem [resolvable:$true] %s126_s22 }
   0xb   : > { %p7816_p6 = scmp.ge.s32.totalorder %s8205_s14, 2  ;;  %s8208_s23 = smov 128  }
   0xc   : > { %p7935_p4 = pneg %p8275_p3  ;;  %s8209_s24 = smov 8  }
   0xd   : > { %s7813_s25 = sadd.s32 4294967294, %s8205_s14   ;;  %s31_s26 = sadd.s32 1, %s8201_s13 }
   0xe   : > { %p7936_p5 = pnand %p7935_p4, %p8267_p1  ;;  %s40_s27 = sadd.s32 1, %s8193_s11 }
   0xf   : > { %p33_p7 = scmp.ge.s32.totalorder %s31_s26, 2  ;;  %p47_p8 = scmp.ne.s32.totalorder %s8193_s11, %s8189_s10 }
  0x10   : > { %7938 = dma.hbm_to_vmem [thread:$0]  (!%p7936_p5), %s125_s19, 3712, %s127_s22, [#allocation6], %s8208_s23, %s8208_s23, %s8209_s24  }
  0x11   : > { %p48_p9 = scmp.eq.s32.totalorder %s8205_s14, 0  ;;  %p53_p10 = scmp.ne.s32.totalorder %s8189_s10, %s8185_s9 }
  0x12   : > { %s16383_s26 = smov (%p33_p7, %s31_s26), 0  ;;  %p100_p13 = scmp.eq.s32.totalorder %s7812_s15, 1 }
  0x13   : > { %p8294_p11 = por %p48_p9, %p47_p8  ;;  %p8300_p12 = por %p8267_p1, %p53_p10 }
  0x14   : > { %s35_s30 = ssub.s32 %s8201_s13, %s16383_s26  ;;  %p106_p2 = scmp.eq.s32.totalorder %s7813_s25, 1 }
  0x15   : > { %p38_p0 = scmp.eq.s32.totalorder %s35_s30, 0  ;;  %p8306_p4 = por %p100_p13, %p47_p8 }
  0x16   : > { %p7948_p5 = scmp.lt.s32.totalorder %s8205_s14, 2  ;;  %p8314_p7 = por %p106_p2, %p53_p10 }
  0x17   : > { %s8312_s4 = scalar_select %p38_p0, %s8193_s11, %s40_s27  }
  0x18   : > { %s140_s6 = sand.u32 1, %s8193_s11   ;;  %s7925_s8 = sshll.u32 %s8201_s13, 2 }
  0x19   : > { %s7817_s7 = sshll.u32 %s140_s6, 2  ;;  %s151_s15 = scalar_lea.hbm %s15328_s0, %s7925_s8 }
  0x1a   : > { %s144_s19 = scalar_lea.vmem [#allocation2], %s7817_s7  ;;  %s153_s22 = sshll.u32 %s151_s15, 4  ;;  %s154_s22 = int_to_ptr.hbm [resolvable:$true] %s153_s22 }
  0x1b   : > { %s155_s21 = sshll.u32 %s144_s19, 4  ;;  %p7940_p8 = pnand %p7948_p5, %p8294_p11  ;;  %s156_s21 = int_to_ptr.vmem [resolvable:$true] %s155_s21 }
  0x1c   : > { %s141_s23 = scalar_lea.sflag [#allocation3], %s140_s6  ;;  %164 = sbr.rel (%p8275_p3) target bundleno = 1785 (0x6f9), region = 28 }
  0x1d   : > { %7942 = dma.hbm_to_vmem [thread:$0]  (!%p7940_p8), %s154_s22, 64, %s156_s21, %s141_s23  }
  0x21   : > { %s8328_s24 = sand.u32 1, %s8189_s10  }
  0x22   : > { %s7821_s25 = sshll.u32 %s8328_s24, 2  ;;  %s167_s27 = scalar_lea.sflag [#allocation3], %s8328_s24 }
  0x23   : > { %s8332_s30 = scalar_lea.vmem [#allocation2], %s7821_s25 }
  0x24   : > { %8172 = dma.done.wait (%p8300_p12), %s167_s27, 64  }
  0x25   : > { %8174 = vsyncadd (%p8300_p12), %s167_s27, 4294967232 }
  0x26   : > { %8176 = dma.done.wait (%p8267_p1), [#allocation6], 3712  }
  0x27   : > { %8178 = vsyncadd (%p8267_p1), [#allocation6], 4294963584  ;;  %v15351_v0 = vmov 0   ;;  %v203_v1 = vld [vmem:[#allocation5 + $0x18] sm:$0xff]  ;;  %v202_v2 = vld [vmem:[#allocation5 + $0x10] sm:$0xff]  ;;  %v15333_v4 = vmov 1  }
  0x28   : > { %8016 = vset.pattern.permute.xlu2 %v15351_v0  ;;  %8014 = vset.pattern.permute.xlu1 %v15351_v0  ;;  %v201_v3 = vld [vmem:[#allocation5 + $0x8] sm:$0xff]  ;;  %v200_v5 = vld [vmem:[#allocation5] sm:$0xff]  ;;  %v15331_v6 = vmov 2   ;;  %v207_v7 = vld [vmem:[#allocation5 + $0x38] sm:$0xff]  ;;  %v15344_v51 = vmov 2102212464  }
  0x29   : > { %8012 = vset.pattern.permute.xlu0 %v15351_v0  ;;  %228 = vperm.xlu1 %8014, %v202_v2   ;;  %v206_v8 = vld [vmem:[#allocation5 + $0x30] sm:$0xff]  ;;  %v205_v9 = vld [vmem:[#allocation5 + $0x28] sm:$0xff]  ;;  %v199_v10 = vld [vmem:[%s8332_s30] sm:$0xf]  ;;  %v15339_v53 = vmov 920167782  }
  0x2a   : > { %233 = vperm.xlu0 %8012, %v203_v1   ;;  %223 = vperm.xlu2 %8016, %v201_v3   ;;  %v298_v12 = vperm.slane %v199_v10, 2  ;;  %v400_v13 = vperm.slane %v199_v10, 3  ;;  %v204_v20 = vld [vmem:[#allocation5 + $0x20] sm:$0xff]  ;;  %v297_v25 = vperm.slane %v199_v10, 0  ;;  %v399_v26 = vperm.slane %v199_v10, 1  ;;  %s7823_s16 = sshll.u32 %s8328_s24, 3 }
  0x2b   : > { %v15349_v59 = vmov 683565275   ;;  %v15342_v61 = vmov 2475754826   ;;  %s7926_s20 = sshll.u32 %s8197_s12, 3  ;;  %s196_s7 = scalar_lea.vmem [#allocation7], %s7823_s16 }
  0x2c   : > { %v8361_v14 = vperm.slane %v298_v12, 0  ;;  %v8363_v15 = vperm.slane %v400_v13, 1  ;;  %v8381_v29 = vperm.slane %v297_v25, 0  ;;  %v8383_v30 = vperm.slane %v399_v26, 1  ;;  %s7713_s6 = scalar_lea.hbm %s15330_s2, %s7926_s20  ;;  %s7715_s8 = sshll.u32 %s196_s7, 4  ;;  %s7716_s8 = int_to_ptr.vmem [resolvable:$true] %s7715_s8 }
  0x2d   : > { %s7717_s17 = sshll.u32 %s7713_s6, 4  ;;  %s7700_s12 = scalar_lea.sflag [#allocation4], %s8328_s24  ;;  %s7718_s17 = int_to_ptr.hbm [resolvable:$true] %s7717_s17 }
  0x2e   : > { %15675 = vst [vmem:[#allocation11_spill] sm:$0xff] %v8361_v14  ;;  %s8133_s18 = sshra.s32 %s7718_s17, 4  ;;  %s8139_s22 = scalar_lea.hbm %s15330_s2, 16  ;;  %s8134_s18 = int_to_ptr.hbm [resolvable:$true] %s8133_s18 }
  0x2f   : > { %15676 = vst [vmem:[#allocation12_spill] sm:$0xff] %v8363_v15  ;;  %s8135_s15 = scalar_lea.hbm %s8134_s18, 8  ;;  %p8140_p10 = scmp.lt.s32.totalorder %s8134_s18, %s15330_s2 }
  0x30   : > { %15677 = vst [vmem:[#allocation13_spill] sm:$0xff] %v8381_v29  ;;  %p8136_p1 = scmp.ne.s32.totalorder %s8134_s18, %s8135_s15  ;;  %p8141_p11 = scmp.lt.s32.totalorder %s8139_s22, %s8135_s15 }
  0x31   : > { %8015 = vset.pattern.permute.xlu1 %v15333_v4  ;;  %15678 = vst [vmem:[#allocation14_spill] sm:$0xff] %v8383_v30 }
  0x32   : > { %8013 = vset.pattern.permute.xlu0 %v15333_v4  ;;  %8017 = vset.pattern.permute.xlu2 %v15333_v4  ;;  %p8137_p3 = pnand %p8136_p1, %p8306_p4  ;;  %p8142_p12 = por %p8141_p11, %p8140_p10 }
  0x33   : > { %348 = vperm.xlu0 %8013, %v203_v1   ;;  %344 = vperm.xlu1 %8015, %v202_v2  }
  0x34   : > { %340 = vperm.xlu2 %8017, %v201_v3   ;;  %p8138_p9 = pneg %p8137_p3 }
  0x36   : > { %p8143_p13 = pnand %p8142_p12, %p8138_p9 }
  0x3b   : > { %336 = vperm.xlu0 %8013, %v200_v5   ;;  %8018 = vset.pattern.permute.xlu1 %v15331_v6 }
  0x3c   : > { %8019 = vset.pattern.permute.xlu2 %v15351_v0  ;;  %482 = vperm.xlu1 %8018, %v203_v1   ;;  %v15337_v1 = vmov 1326507024  }
  0x3d   : > { %218 = vperm.xlu2 %8019, %v200_v5  }
  0x43   : > { %8021 = vset.pattern.permute.xlu0 %v15331_v6 }
  0x44   : > { %470 = vperm.xlu0 %8021, %v200_v5   ;;  %478 = vperm.xlu1 %8018, %v202_v2   ;;  %v15346_v5 = vmov 2131351028  }
  0x45   : > { %8020 = vset.pattern.permute.xlu2 %v15331_v6 }
  0x46   : > { %474 = vperm.xlu2 %8020, %v201_v3  }
  0x4c   : > { %8024 = vset.pattern.permute.xlu0 %v15351_v0  ;;  %8022 = vset.pattern.permute.xlu1 %v15351_v0 }
  0x4d   : > { %253 = vperm.xlu1 %8022, %v207_v7   ;;  %243 = vperm.xlu0 %8024, %v205_v9  }
  0x4e   : > { %8023 = vset.pattern.permute.xlu2 %v15333_v4 }
  0x4f   : > { %364 = vperm.xlu2 %8023, %v207_v7  }
  0x55   : > { %248 = vperm.xlu1 %8022, %v206_v8   ;;  %8029 = vset.pattern.permute.xlu0 %v15331_v6 }
  0x56   : > { %494 = vperm.xlu0 %8029, %v206_v8  }
  0x57   : > { %360 = vperm.xlu2 %8023, %v206_v8  }
  0x5d   : > { %8025 = vset.pattern.permute.xlu1 %v15333_v4 }
  0x5e   : > { %356 = vperm.xlu1 %8025, %v205_v9  }
  0x5f   : > { %8026 = vset.pattern.permute.xlu2 %v15331_v6 }
  0x60   : > { %498 = vperm.xlu2 %8026, %v207_v7  }
  0x66   : > { %8027 = vset.pattern.permute.xlu1 %v15351_v0 }
  0x67   : > { %238 = vperm.xlu1 %8027, %v204_v20  }
  0x68   : > { %8028 = vset.pattern.permute.xlu2 %v15333_v4 }
  0x69   : > { %352 = vperm.xlu2 %8028, %v204_v20  }
  0x6f   : > { %8030 = vset.pattern.permute.xlu1 %v15331_v6 }
  0x70   : > { %490 = vperm.xlu1 %8030, %v205_v9  }
  0x71   : > { %8031 = vset.pattern.permute.xlu2 %v15331_v6 }
  0x72   : > { %486 = vperm.xlu2 %8031, %v204_v20  }
  0x84   : > { %v224_v11 = vpop.permute.xlu2 %223 }
  0x85   : > { %v306_v16 = vmul.f32 %v8361_v14, %v224_v11  ;;  %v305_v31 = vmul.f32 %v8381_v29, %v224_v11 }
  0x8e   : > { %v341_v17 = vpop.permute.xlu2 %340 }
  0x8f   : > { %v408_v18 = vmul.f32 %v8363_v15, %v341_v17  ;;  %v407_v32 = vmul.f32 %v8383_v30, %v341_v17 }
  0x91   : > { %v440_v19 = vadd.f32 %v408_v18, %v306_v16  ;;  %v439_v33 = vadd.f32 %v407_v32, %v305_v31 }
  0x97   : > { %v8379_v28 = vpop.permute.xlu2 %218 }
  0x9b   : > { %v8369_v21 = vpop.permute.xlu1 %228 }
  0x9c   : > { %v308_v24 = vmul.f32 %v8361_v14, %v8369_v21  ;;  %v8390_v38 = vpop.permute.xlu0 %233 }
  0x9d   : > { %v309_v44 = vmul.f32 %v8381_v29, %v8390_v38 }
  0xa0   : > { %v475_v34 = vpop.permute.xlu2 %474 }
  0xa1   : > { %v8387_v35 = vadd.f32 %v475_v34, %v439_v33  ;;  %v8405_v50 = vadd.f32 %v475_v34, %v440_v19 }
  0xa3   : > { %15679 = vst [vmem:[#allocation15_spill] sm:$0xff] %v8387_v35  ;;  %v878_v36 = vand.u32 2139095040, %v8387_v35  ;;  %v15336_v56 = vand.u32 2147483647, %v8387_v35  ;;  %v1033_v58 = vand.u32 2139095040, %v8405_v50 }
  0xa4   : > { %15681 = vst [vmem:[#allocation17_spill] sm:$0xff] %v8405_v50 }
  0xa5   : > { %v8371_v22 = vpop.permute.xlu1 %344  ;;  %v879_v37 = vshrl.u32 %v878_v36, 23  ;;  %v8392_v41 = vpop.permute.xlu0 %348  ;;  %v882_v12 = vand.u32 8388607, %v15336_v56  ;;  %v1034_v16 = vshrl.u32 %v1033_v58, 23 }
  0xa6   : > { %v410_v23 = vmul.f32 %v8363_v15, %v8371_v22  ;;  %v411_v43 = vmul.f32 %v8383_v30, %v8392_v41 }
  0xa7   : > { %v7830_v39 = vadd.s32 4294967169, %v879_v37  ;;  %v883_v25 = vor.u32 8388608, %v882_v12  ;;  %v7833_v32 = vadd.s32 4294967169, %v1034_v16  ;;  %v8479_v12 = vmul.f32 %v8381_v29, %v8369_v21 }
  0xa8   : > { %v8377_v27 = vadd.f32 %v410_v23, %v308_v24  ;;  %v443_v47 = vadd.f32 %v411_v43, %v309_v44 }
  0xa9   : > { %v885_v40 = vadd.s32 1, %v7830_v39  ;;  %v8458_v39 = vshll.u32 %v883_v25, 8 }
  0xab   : > { %vm886_vm0 = vcmp.gt.s32.totalorder %v885_v40, 0  ;;  %v924_v44 = vand.u32 65535, %v8458_v39 }
  0xac   : > { %v887_v42 = vsel %vm886_vm0, %v885_v40, 0  ;;  %v1040_v40 = vadd.s32 1, %v7833_v32 }
  0xad   : > { %v889_v45 = vand.u32 31, %v887_v42  ;;  %v8412_v57 = vshrl.u32 %v887_v42, 5 }
  0xae   : > { %v8398_v46 = vpop.permute.xlu1 %482  ;;  %vm1041_vm6 = vcmp.gt.s32.totalorder %v1040_v40, 0 }
  0xaf   : > { %v8400_v48 = vsub.s32 32, %v889_v45  ;;  %v8403_v49 = vadd.f32 %v8398_v46, %v443_v47  ;;  %v901_v52 = vshll.u32 %v15344_v51, %v889_v45  ;;  %v892_v60 = vshll.u32 %v15349_v59, %v889_v45 }
  0xb0   : > { %v895_v62 = vshll.u32 %v15342_v61, %v889_v45  ;;  %v904_v63 = vshll.u32 %v15339_v53, %v889_v45  ;;  %v898_v8 = vshll.u32 %v15346_v5, %v889_v45  ;;  %vm910_vm1 = vcmp.lt.s32.totalorder %v8412_v57, 4 }
  0xb1   : > { %15680 = vst [vmem:[#allocation16_spill] sm:$0xff] %v8403_v49  ;;  %v902_v54 = vshrl.u32 %v15339_v53, %v8400_v48  ;;  %v1498_v55 = vand.u32 2139095040, %v8403_v49  ;;  %v905_v2 = vshrl.u32 %v15337_v1, %v8400_v48  ;;  %v893_v3 = vshrl.u32 %v15342_v61, %v8400_v48 }
  0xb2   : > { %v896_v7 = vshrl.u32 %v15346_v5, %v8400_v48  ;;  %v899_v9 = vshrl.u32 %v15344_v51, %v8400_v48  ;;  %vm907_vm2 = vcmp.lt.s32.totalorder %v8412_v57, 1  ;;  %vm909_vm3 = vcmp.lt.s32.totalorder %v8412_v57, 3 }
  0xb3   : > { %v903_v10 = vor.u32 %v902_v54, %v901_v52  ;;  %v1499_v11 = vshrl.u32 %v1498_v55, 23  ;;  %v906_v13 = vor.u32 %v905_v2, %v904_v63  ;;  %v8429_v17 = vor.u32 %v893_v3, %v892_v60 }
  0xb4   : > { %v8431_v18 = vor.u32 %v896_v7, %v895_v62  ;;  %v8433_v19 = vor.u32 %v899_v9, %v898_v8  ;;  %vm908_vm4 = vcmp.lt.s32.totalorder %v8412_v57, 2  ;;  %v1042_v54 = vsel %vm1041_vm6, %v1040_v40, 0 }
  0xb5   : > { %v916_v20 = vsel %vm910_vm1, %v903_v10, 920167782  ;;  %v7842_v23 = vadd.s32 4294967169, %v1499_v11  ;;  %v920_v24 = vsel %vm910_vm1, %v906_v13, 1326507024  ;;  %v925_v63 = vshrl.u32 %v8458_v39, 16 }
  0xb6   : > { %v915_v26 = vsel %vm907_vm2, %v8429_v17, %v8431_v18  ;;  %v917_v31 = vsel %vm909_vm3, %v8433_v19, %v916_v20  ;;  %v919_v34 = vsel %vm907_vm2, %v8431_v18, %v8433_v19  ;;  %v921_v36 = vsel %vm909_vm3, %v903_v10, %v920_v24 }
  0xb7   : > { %v1505_v33 = vadd.s32 1, %v7842_v23  ;;  %v918_v37 = vsel %vm908_vm4, %v915_v26, %v917_v31  ;;  %v922_v42 = vsel %vm908_vm4, %v919_v34, %v921_v36  ;;  %v15335_v62 = vand.u32 2147483647, %v8405_v50 }
  0xb8   : > { %v949_v43 = vshrl.u32 %v918_v37, 16  ;;  %v927_v45 = vshrl.u32 %v922_v42, 16  ;;  %v948_v60 = vand.u32 65535, %v918_v37  ;;  %v926_v2 = vand.u32 65535, %v922_v42 }
  0xb9   : > { %vm1506_vm5 = vcmp.gt.s32.totalorder %v1505_v33, 0  ;;  %v8470_v7 = vand.u32 31, %v1042_v54  ;;  %v8483_v13 = vmul.f32 %v8361_v14, %v8390_v38  ;;  %v8487_v16 = vand.u32 8388607, %v15335_v62 }
  0xba   : > { %v1507_v47 = vsel %vm1506_vm5, %v1505_v33, 0  ;;  %v8463_v52 = vmul.u32 %v949_v43, %v924_v44  ;;  %v8465_v58 = vmul.u32 %v927_v45, %v924_v44  ;;  %v950_v10 = vmul.u32 %v948_v60, %v924_v44 }
  0xbb   : > { %v1509_v55 = vand.u32 31, %v1507_v47  ;;  %v8475_v11 = vmul.u32 %v948_v60, %v925_v63  ;;  %v8491_v20 = vmul.f32 %v8363_v15, %v8392_v41  ;;  %v928_v23 = vmul.u32 %v926_v2, %v924_v44 }
  0xbc   : > { %v954_v3 = vshll.u32 %v8463_v52, 16  ;;  %v932_v9 = vshll.u32 %v8465_v58, 16  ;;  %v8493_v24 = vshrl.u32 %v1042_v54, 5  ;;  %v8496_v25 = vsub.s32 32, %v8470_v7 }
  0xbd   : > { %v8472_v8 = vsub.s32 32, %v1509_v55  ;;  %v8498_v21 = vmul.u32 %v926_v2, %v925_v63  ;;  %v953_v26 = vmul.u32 %v949_v43, %v925_v63  ;;  %v956_v41 = vshll.u32 %v8475_v11, 16 }
  0xbe   : > { %vm958_vm7 = vc.u32 %v950_v10, %v954_v3  ;;  %v8500_v38 = vadd.s32 %v954_v3, %v950_v10  ;;  %vm936_vm8 = vc.u32 %v928_v23, %v932_v9  ;;  %v938_v32 = vadd.s32 %v932_v9, %v928_v23 }
  0xbf   : > { %v1522_v31 = vshrl.u32 %v15339_v53, %v8472_v8  ;;  %v1525_v33 = vshrl.u32 %v15337_v1, %v8472_v8  ;;  %v959_v34 = vsel %vm958_vm7, 1, %v15351_v0  ;;  %v15341_v36 = vand.u32 2147483647, %v8403_v49 }
  0xc0   : > { %v8509_v37 = vshrl.u32 %v1507_v47, 5  ;;  %v1521_v40 = vshll.u32 %v15344_v51, %v1509_v55  ;;  %v1513_v42 = vshrl.u32 %v15342_v61, %v8472_v8  ;;  %v1516_v43 = vshrl.u32 %v15346_v5, %v8472_v8 }
  0xc1   : > { %v1519_v44 = vshrl.u32 %v15344_v51, %v8472_v8  ;;  %v1524_v54 = vshll.u32 %v15339_v53, %v1509_v55  ;;  %v934_v60 = vshll.u32 %v8498_v21, 16  ;;  %v937_v2 = vsel %vm936_vm8, 1, %v15351_v0 }
  0xc2   : > { %vm962_vm9 = vc.u32 %v8500_v38, %v956_v41  ;;  %v1523_v47 = vor.u32 %v1522_v31, %v1521_v40  ;;  %v1512_v3 = vshll.u32 %v15349_v59, %v1509_v55  ;;  %v1515_v9 = vshll.u32 %v15342_v61, %v1509_v55 }
  0xc3   : > { %v1518_v10 = vshll.u32 %v15346_v5, %v1509_v55  ;;  %v1526_v23 = vor.u32 %v1525_v33, %v1524_v54  ;;  %v931_v6 = vmul.u32 %v927_v45, %v925_v63  ;;  %vm940_vm10 = vc.u32 %v938_v32, %v934_v60 }
  0xc4   : > { %v961_v4 = vadd.s32 %v959_v34, %v953_v26  ;;  %v1502_v62 = vand.u32 8388607, %v15341_v36  ;;  %v8529_v56 = vor.u32 %v1513_v42, %v1512_v3  ;;  %v8531_v1 = vor.u32 %v1516_v43, %v1515_v9 }
  0xc5   : > { %v8533_v53 = vor.u32 %v1519_v44, %v1518_v10  ;;  %vm1530_vm11 = vcmp.lt.s32.totalorder %v8509_v37, 4  ;;  %v939_v31 = vadd.s32 %v937_v2, %v931_v6  ;;  %v963_v40 = vsel %vm962_vm9, 1, %v15351_v0 }
  0xc6   : > { %v1047_v55 = vshll.u32 %v15349_v59, %v8470_v7  ;;  %v1536_v45 = vsel %vm1530_vm11, %v1523_v47, 920167782  ;;  %v941_v63 = vsel %vm940_vm10, 1, %v15351_v0  ;;  %v1048_v26 = vshrl.u32 %v15342_v61, %v8496_v25 }
  0xc7   : > { %v1050_v32 = vshll.u32 %v15342_v61, %v8470_v7  ;;  %v1540_v33 = vsel %vm1530_vm11, %v1526_v23, 1326507024  ;;  %v1056_v6 = vshll.u32 %v15344_v51, %v8470_v7  ;;  %v15682_v34 = vmov 920167782  }
  0xc8   : > { %v1057_v42 = vshrl.u32 %v15682_v34, %v8496_v25  ;;  %vm1527_vm12 = vcmp.lt.s32.totalorder %v8509_v37, 1  ;;  %vm1529_vm13 = vcmp.lt.s32.totalorder %v8509_v37, 3  ;;  %v965_v43 = vadd.s32 %v963_v40, %v961_v4 }
  0xc9   : > { %v1503_v44 = vor.u32 8388608, %v1502_v62  ;;  %v1535_v54 = vsel %vm1527_vm12, %v8529_v56, %v8531_v1  ;;  %v1537_v60 = vsel %vm1529_vm13, %v8533_v53, %v1536_v45  ;;  %v943_v2 = vadd.s32 %v941_v63, %v939_v31 }
  0xca   : > { %v1051_v3 = vshrl.u32 %v15346_v5, %v8496_v25  ;;  %v1539_v9 = vsel %vm1527_vm12, %v8531_v1, %v8533_v53  ;;  %v1541_v4 = vsel %vm1529_vm13, %v1523_v47, %v1540_v33  ;;  %v955_v62 = vshrl.u32 %v8463_v52, 16 }
  0xcb   : > { %v1059_v10 = vshll.u32 %v15682_v34, %v8470_v7  ;;  %v15683_v23 = vmov 1326507024   ;;  %vm1528_vm14 = vcmp.lt.s32.totalorder %v8509_v37, 2  ;;  %v933_v31 = vshrl.u32 %v8465_v58, 16 }
  0xcc   : > { %v1060_v40 = vshrl.u32 %v15683_v23, %v8496_v25  ;;  %v1053_v45 = vshll.u32 %v15346_v5, %v8470_v7  ;;  %v1054_v63 = vshrl.u32 %v15344_v51, %v8496_v25  ;;  %v8582_v47 = vsel %vm1528_vm14, %v1535_v54, %v1537_v60 }
  0xcd   : > { %v966_v52 = vadd.s32 %v965_v43, %v955_v62  ;;  %v1058_v33 = vor.u32 %v1057_v42, %v1056_v6  ;;  %v8586_v36 = vsel %vm1528_vm14, %v1539_v9, %v1541_v4  ;;  %v8588_v61 = vshll.u32 %v1503_v44, 8 }
  0xce   : > { %v891_v58 = vshrl.u32 %v15349_v59, %v8400_v48  ;;  %v912_v7 = vsel %vm910_vm1, %v8433_v19, 2102212464  ;;  %v944_v51 = vadd.s32 %v943_v2, %v933_v31  ;;  %v8595_v5 = vor.u32 %v1048_v26, %v1047_v55 }
  0xcf   : > { %v957_v54 = vshrl.u32 %v8475_v11, 16  ;;  %v8598_v43 = vor.u32 %v1051_v3, %v1050_v32  ;;  %v1061_v6 = vor.u32 %v1060_v40, %v1059_v10  ;;  %v1569_v42 = vshrl.u32 %v8582_v47, 16 }
  0xd0   : > { %v935_v44 = vshrl.u32 %v8498_v21, 16  ;;  %v8602_v60 = vor.u32 %v1054_v63, %v1053_v45  ;;  %vm1065_vm15 = vcmp.lt.s32.totalorder %v8493_v24, 4  ;;  %v1547_v48 = vshrl.u32 %v8586_v36, 16 }
  0xd1   : > { %v967_v9 = vadd.s32 %v966_v52, %v957_v54  ;;  %v1071_v19 = vsel %vm1065_vm15, %v1058_v33, 920167782  ;;  %v409_v55 = vmul.f32 %v8383_v30, %v8371_v22  ;;  %v1544_v26 = vand.u32 65535, %v8588_v61 }
  0xd2   : > { %v911_v32 = vsel %vm907_vm2, %v891_v58, %v8429_v17  ;;  %v913_v21 = vsel %vm909_vm3, %v8431_v18, %v912_v7  ;;  %v8617_v2 = vadd.s32 %v944_v51, %v935_v44  ;;  %v1038_v3 = vor.u32 8388608, %v8487_v16 }
  0xd3   : > { %vm1062_vm0 = vcmp.lt.s32.totalorder %v8493_v24, 1  ;;  %vm1064_vm1 = vcmp.lt.s32.totalorder %v8493_v24, 3  ;;  %v1075_v22 = vsel %vm1065_vm15, %v1061_v6, 1326507024  ;;  %v8624_v4 = vmul.u32 %v1569_v42, %v1544_v26 }
  0xd4   : > { %15684 = vst [vmem:[#allocation18_spill] sm:$0xff] %v8617_v2  ;;  %v8629_v17 = vadd.s32 %v8500_v38, %v956_v41  ;;  %v1070_v51 = vsel %vm1062_vm0, %v8595_v5, %v8598_v43  ;;  %v1072_v18 = vsel %vm1064_vm1, %v8602_v60, %v1071_v19  ;;  %v8638_v16 = vmul.u32 %v1547_v48, %v1544_v26 }
  0xd5   : > { %v914_v62 = vsel %vm908_vm4, %v911_v32, %v913_v21  ;;  %v971_v10 = vadd.s32 1, %v967_v9  ;;  %vm1063_vm2 = vcmp.lt.s32.totalorder %v8493_v24, 2  ;;  %v1568_v11 = vand.u32 65535, %v8582_v47  ;;  %v8661_v47 = vpop.permute.xlu1 %478 }
  0xd6   : > { %15685 = vst [vmem:[#allocation19_spill] sm:$0xff] %v8629_v17  ;;  %vm970_vm3 = vc.u32 %v8617_v2, %v8629_v17  ;;  %v1074_v38 = vsel %vm1062_vm0, %v8598_v43, %v8602_v60  ;;  %v1076_v41 = vsel %vm1064_vm1, %v1058_v33, %v1075_v22  ;;  %v1546_v40 = vand.u32 65535, %v8586_v36 }
  0xd7   : > { %v8655_v57 = vsel %vm1063_vm2, %v1070_v51, %v1072_v18  ;;  %v8657_v31 = vshll.u32 %v1038_v3, 8  ;;  %v1545_v45 = vshrl.u32 %v8588_v61, 16  ;;  %v1574_v63 = vshll.u32 %v8624_v4, 16 }
  0xd8   : > { %v968_v52 = vmul.u32 %v8458_v39, %v914_v62  ;;  %v444_v58 = vadd.f32 %v8491_v20, %v8483_v13  ;;  %v1552_v33 = vshll.u32 %v8638_v16, 16  ;;  %v441_v36 = vadd.f32 %v409_v55, %v8479_v12 }
  0xd9   : > { %15686 = vst [vmem:[#allocation20_spill] sm:$0xff] %v8657_v31  ;;  %v972_v7 = vsel %vm970_vm3, %v971_v10, %v967_v9  ;;  %v8670_v54 = vsel %vm1063_vm2, %v1074_v38, %v1076_v41  ;;  %v1570_v6 = vmul.u32 %v1568_v11, %v1544_v26  ;;  %v8672_v44 = vmul.u32 %v1568_v11, %v1545_v45 }
  0xda   : > { %v1104_v19 = vshrl.u32 %v8655_v57, 16  ;;  %v1548_v32 = vmul.u32 %v1546_v40, %v1544_v26  ;;  %v8675_v21 = vmul.u32 %v1546_v40, %v1545_v45  ;;  %v8678_v39 = vadd.f32 %v8661_v47, %v441_v36 }
  0xdb   : > { %v1079_v13 = vand.u32 65535, %v8657_v31  ;;  %v8682_v12 = vadd.f32 %v8398_v46, %v444_v58  ;;  %vm1578_vm4 = vc.u32 %v1570_v6, %v1574_v63  ;;  %v8684_v20 = vadd.s32 %v1574_v63, %v1570_v6 }
  0xdc   : > { %15687 = vst [vmem:[#allocation21_spill] sm:$0xff] %v8678_v39  ;;  %v973_v9 = vadd.s32 %v972_v7, %v968_v52  ;;  %v1082_v55 = vshrl.u32 %v8670_v54, 16  ;;  %vm1556_vm5 = vc.u32 %v1548_v32, %v1552_v33  ;;  %v1558_v3 = vadd.s32 %v1552_v33, %v1548_v32 }
  0xdd   : > { %15688 = vst [vmem:[#allocation22_spill] sm:$0xff] %v8682_v12  ;;  %v15348_v26 = vshll.u32 %v8672_v44, 16  ;;  %v8688_v22 = vmul.u32 %v1104_v19, %v1079_v13  ;;  %v1554_v51 = vshll.u32 %v8675_v21, 16  ;;  %v1579_v18 = vsel %vm1578_vm4, 1, %v15351_v0 }
  0xde   : > { %v1188_v62 = vand.u32 2139095040, %v8678_v39  ;;  %v1557_v46 = vsel %vm1556_vm5, 1, %v15351_v0  ;;  %v1573_v10 = vmul.u32 %v1569_v42, %v1545_v45  ;;  %v1653_v11 = vand.u32 2139095040, %v8682_v12 }
  0xdf   : > { %vm1582_vm6 = vc.u32 %v8684_v20, %v15348_v26  ;;  %v974_v38 = vadd.s32 536870912, %v973_v9  ;;  %v8698_v41 = vmul.u32 %v1082_v55, %v1079_v13  ;;  %v1551_v40 = vmul.u32 %v1547_v48, %v1545_v45 }
  0xe0   : > { %vm1560_vm7 = vc.u32 %v1558_v3, %v1554_v51  ;;  %v1103_v63 = vand.u32 65535, %v8655_v57  ;;  %v1581_v52 = vadd.s32 %v1579_v18, %v1573_v10  ;;  %v1081_v58 = vand.u32 65535, %v8670_v54 }
  0xe1   : > { %v1559_v33 = vadd.s32 %v1557_v46, %v1551_v40  ;;  %v1583_v36 = vsel %vm1582_vm6, 1, %v15351_v0  ;;  %v1189_v42 = vshrl.u32 %v1188_v62, 23  ;;  %v1080_v7 = vshrl.u32 %v8657_v31, 16 }
  0xe2   : > { %v1109_v6 = vshll.u32 %v8688_v22, 16  ;;  %v1561_v32 = vsel %vm1560_vm7, 1, %v15351_v0  ;;  %v1654_v26 = vshrl.u32 %v1653_v11, 23  ;;  %v8706_v59 = vshrl.u32 %v974_v38, 30 }
  0xe3   : > { %v1087_v48 = vshll.u32 %v8698_v41, 16  ;;  %v1105_v45 = vmul.u32 %v1103_v63, %v1079_v13  ;;  %v8709_v57 = vmul.u32 %v1103_v63, %v1080_v7  ;;  %v1585_v3 = vadd.s32 %v1583_v36, %v1581_v52 }
  0xe4   : > { %15689 = vst [vmem:[#allocation23_spill] sm:$0xff] %v8706_v59  ;;  %v1083_v54 = vmul.u32 %v1081_v58, %v1079_v13  ;;  %v8711_v51 = vmul.u32 %v1081_v58, %v1080_v7  ;;  %v1563_v18 = vadd.s32 %v1561_v32, %v1559_v33  ;;  %v7836_v62 = vadd.s32 4294967169, %v1189_v42 }
  0xe5   : > { %vm1113_vm8 = vc.u32 %v1105_v45, %v1109_v6  ;;  %v8713_v46 = vadd.s32 %v1109_v6, %v1105_v45  ;;  %v1575_v10 = vshrl.u32 %v8624_v4, 16  ;;  %v7845_v40 = vadd.s32 4294967169, %v1654_v26 }
  0xe6   : > { %v976_v11 = vshll.u32 %v8706_v59, 30  ;;  %vm1091_vm9 = vc.u32 %v1083_v54, %v1087_v48  ;;  %v1093_v38 = vadd.s32 %v1087_v48, %v1083_v54  ;;  %v1553_v0 = vshrl.u32 %v8638_v16, 16  ;;  %v8729_v48 = vpop.permute.xlu0 %336 }
  0xe7   : > { %v1108_v63 = vmul.u32 %v1104_v19, %v1080_v7  ;;  %v1111_v52 = vshll.u32 %v8709_v57, 16  ;;  %v1586_v13 = vadd.s32 %v1585_v3, %v1575_v10  ;;  %v1089_v58 = vshll.u32 %v8711_v51, 16 }
  0xe8   : > { %v15690_v33 = vmov 0   ;;  %v1564_v42 = vadd.s32 %v1563_v18, %v1553_v0  ;;  %v1195_v6 = vadd.s32 1, %v7836_v62  ;;  %v1086_v32 = vmul.u32 %v1082_v55, %v1080_v7 }
  0xe9   : > { %v1114_v36 = vsel %vm1113_vm8, 1, %v15690_v33  ;;  %v1092_v4 = vsel %vm1091_vm9, 1, %v15690_v33  ;;  %v1577_v26 = vshrl.u32 %v8672_v44, 16  ;;  %v1660_v45 = vadd.s32 1, %v7845_v40 }
  0xea   : > { %v8723_v50 = vsub.s32 %v973_v9, %v976_v11  ;;  %vm1095_vm10 = vc.u32 %v1093_v38, %v1089_v58  ;;  %vm1117_vm3 = vc.u32 %v8713_v46, %v1111_v52  ;;  %v1555_v16 = vshrl.u32 %v8675_v21, 16 }
  0xeb   : > { %v1116_v19 = vadd.s32 %v1114_v36, %v1108_v63  ;;  %v1532_v0 = vsel %vm1530_vm11, %v8533_v53, 2102212464  ;;  %v1587_v55 = vadd.s32 %v1586_v13, %v1577_v26  ;;  %v1094_v7 = vadd.s32 %v1092_v4, %v1086_v32 }
  0xec   : > { %15691 = vst [vmem:[#allocation24_spill] sm:$0xff] %v8723_v50  ;;  %v15692_v3 = vmov 683565275   ;;  %v8736_v54 = vadd.s32 %v1564_v42, %v1555_v16  ;;  %vm1196_vm4 = vcmp.gt.s32.totalorder %v1195_v6, 0  ;;  %v303_v18 = vmul.f32 %v8381_v29, %v8379_v28 }
  0xed   : > { %v1511_v9 = vshrl.u32 %v15692_v3, %v8472_v8  ;;  %v1096_v21 = vsel %vm1095_vm10, 1, %v15690_v33  ;;  %v1118_v62 = vsel %vm1117_vm3, 1, %v15690_v33  ;;  %vm1661_vm5 = vcmp.gt.s32.totalorder %v1660_v45, 0 }
  0xee   : > { %v979_v10 = vsub.s32 0, %v8723_v50  ;;  %v1533_v8 = vsel %vm1529_vm13, %v8531_v1, %v1532_v0  ;;  %v15693_v40 = vshll.u32 %v8672_v44, 16  ;;  %vm978_vm11 = vcmp.lt.s32.totalorder %v8723_v50, 0 }
  0xef   : > { %v1531_v53 = vsel %vm1527_vm12, %v1511_v9, %v8529_v56  ;;  %v1046_v38 = vshrl.u32 %v15692_v3, %v8496_v25  ;;  %v1591_v63 = vadd.s32 1, %v1587_v55  ;;  %v1197_v13 = vsel %vm1196_vm4, %v1195_v6, 0  ;;  %v8782_v9 = vpop.permute.xlu0 %470 }
  0xf0   : > { %v8752_v11 = vadd.s32 %v8684_v20, %v15693_v40  ;;  %v1098_v58 = vadd.s32 %v1096_v21, %v1094_v7  ;;  %v1120_v36 = vadd.s32 %v1118_v62, %v1116_v19  ;;  %v1662_v56 = vsel %vm1661_vm5, %v1660_v45, 0 }
  0xf1   : > { %v1067_v1 = vsel %vm1065_vm15, %v8602_v60, 2102212464  ;;  %v405_v44 = vmul.f32 %v8383_v30, %v8729_v48  ;;  %v1534_v20 = vsel %vm1528_vm14, %v1531_v53, %v1533_v8  ;;  %v15355_v25 = vand.u32 2147483647, %v8682_v12 }
  0xf2   : > { %vm1590_vm12 = vc.u32 %v8736_v54, %v8752_v11  ;;  %v980_v42 = vsel %vm978_vm11, %v979_v10, %v8723_v50  ;;  %v1088_v6 = vshrl.u32 %v8698_v41, 16  ;;  %v1110_v32 = vshrl.u32 %v8688_v22, 16 }
  0xf3   : > { %v1199_v4 = vand.u32 31, %v1197_v13  ;;  %v1066_v26 = vsel %vm1062_vm0, %v1046_v38, %v8595_v5  ;;  %v1592_v60 = vsel %vm1590_vm12, %v1591_v63, %v1587_v55  ;;  %v1664_v45 = vand.u32 31, %v1662_v56 }
  0xf4   : > { %v1068_v37 = vsel %vm1064_vm1, %v8598_v43, %v1067_v1  ;;  %v1099_v16 = vadd.s32 %v1098_v58, %v1088_v6  ;;  %v1121_v19 = vadd.s32 %v1120_v36, %v1110_v32  ;;  %v1588_v0 = vmul.u32 %v8588_v61, %v1534_v20 }
  0xf5   : > { %v981_v7 = vclz %v980_v42  ;;  %v1090_v41 = vshrl.u32 %v8711_v51, 16  ;;  %v8780_v22 = vand.u32 8388607, %v15355_v25  ;;  %v1112_v5 = vshrl.u32 %v8709_v57, 16 }
  0xf6   : > { %v8785_v55 = vadd.s32 %v1592_v60, %v1588_v0  ;;  %v8787_v21 = vsub.s32 32, %v1199_v4  ;;  %v437_v43 = vadd.f32 %v405_v44, %v303_v18  ;;  %v8791_v62 = vsel %vm1063_vm2, %v1066_v26, %v1068_v37 }
  0xf7   : > { %15694 = vst [vmem:[#allocation25_spill] sm:$0xff] %v8791_v62  ;;  %v8793_v61 = vsub.s32 32, %v1664_v45  ;;  %v8795_v51 = vadd.s32 %v1099_v16, %v1090_v41  ;;  %v8800_v10 = vadd.s32 %v8713_v46, %v1111_v52  ;;  %v8802_v53 = vadd.s32 %v1121_v19, %v1112_v5 }
  0xf8   : > { %v8805_v8 = vadd.f32 %v8782_v9, %v437_v43  ;;  %v8807_v40 = vadd.s32 4294967294, %v981_v7  ;;  %v8810_v18 = vshrl.u32 %v1662_v56, 5  ;;  %v1667_v38 = vshll.u32 %v15692_v3, %v1664_v45 }
  0xf9   : > { %15695 = vst [vmem:[#allocation26_spill] sm:$0xff] %v8795_v51  ;;  %v1594_v63 = vadd.s32 536870912, %v8785_v55  ;;  %v15698_v58 = vmov 2475754826   ;;  %v15699_v36 = vmov 2131351028   ;;  %v1215_v52 = vshrl.u32 %v15683_v23, %v8787_v21 }
  0xfa   : > { %15696 = vst [vmem:[#allocation27_spill] sm:$0xff] %v8800_v10  ;;  %v1670_v57 = vshll.u32 %v15698_v58, %v1664_v45  ;;  %v1673_v46 = vshll.u32 %v15699_v36, %v1664_v45  ;;  %v1668_v1 = vshrl.u32 %v15698_v58, %v8793_v61  ;;  %v1671_v44 = vshrl.u32 %v15699_v36, %v8793_v61 }
  0xfb   : > { %15697 = vst [vmem:[#allocation28_spill] sm:$0xff] %v8805_v8  ;;  %v15700_v56 = vmov 2102212464   ;;  %v1212_v42 = vshrl.u32 %v15682_v34, %v8787_v21  ;;  %v1680_v6 = vshrl.u32 %v15683_v23, %v8793_v61  ;;  %v1214_v26 = vshll.u32 %v15682_v34, %v1199_v4 }
  0xfc   : > { %v1674_v20 = vshrl.u32 %v15700_v56, %v8793_v61  ;;  %v568_v60 = vand.u32 2139095040, %v8805_v8  ;;  %v8831_v37 = vshrl.u32 %v1197_v13, 5  ;;  %v1206_v16 = vshrl.u32 %v15699_v36, %v8787_v21 }
  0xfd   : > { %v1209_v19 = vshrl.u32 %v15700_v56, %v8787_v21  ;;  %v1211_v0 = vshll.u32 %v15700_v56, %v1199_v4  ;;  %v8838_v7 = vshrl.u32 %v1594_v63, 30  ;;  %v1679_v41 = vshll.u32 %v15682_v34, %v1664_v45 }
  0xfe   : > { %vm1682_vm13 = vcmp.lt.s32.totalorder %v8810_v18, 1  ;;  %v1203_v5 = vshrl.u32 %v15698_v58, %v8787_v21  ;;  %v1216_v43 = vor.u32 %v1215_v52, %v1214_v26  ;;  %v1677_v13 = vshrl.u32 %v15682_v34, %v8793_v61 }
  0xff   : > { %15701 = vst [vmem:[#allocation29_spill] sm:$0xff] %v8838_v7  ;;  %v1205_v25 = vshll.u32 %v15698_v58, %v1199_v4  ;;  %v1208_v24 = vshll.u32 %v15699_v36, %v1199_v4  ;;  %v1213_v32 = vor.u32 %v1212_v42, %v1211_v0  ;;  %v1676_v12 = vshll.u32 %v15700_v56, %v1664_v45 }
 0x100   : > { %v1681_v63 = vor.u32 %v1680_v6, %v1679_v41  ;;  %v1202_v59 = vshll.u32 %v15692_v3, %v1199_v4  ;;  %v569_v29 = vshrl.u32 %v568_v60, 23  ;;  %v15702_v30 = vand.u32 2147483647, %v8678_v39 }
 0x101   : > { %v8852_v50 = vor.u32 %v1206_v16, %v1205_v25  ;;  %v8854_v52 = vor.u32 %v1209_v19, %v1208_v24  ;;  %vm1220_vm14 = vcmp.lt.s32.totalorder %v8831_v37, 4  ;;  %v1596_v26 = vshll.u32 %v8838_v7, 30 }
 0x102   : > { %v1192_v35 = vand.u32 8388607, %v15702_v30  ;;  %v8858_v49 = vor.u32 %v1671_v44, %v1670_v57  ;;  %v8860_v42 = vor.u32 %v1203_v5, %v1202_v59  ;;  %v1230_v45 = vsel %vm1220_vm14, %v1216_v43, 1326507024 }
 0x103   : > { %v8864_v4 = vor.u32 %v1674_v20, %v1673_v46  ;;  %v1678_v6 = vor.u32 %v1677_v13, %v1676_v12  ;;  %vm1685_vm15 = vcmp.lt.s32.totalorder %v8810_v18, 4  ;;  %v1226_v30 = vsel %vm1220_vm14, %v1213_v32, 920167782 }
 0x104   : > { %v1695_v25 = vsel %vm1685_vm15, %v1681_v63, 1326507024  ;;  %vm1217_vm0 = vcmp.lt.s32.totalorder %v8831_v37, 1  ;;  %vm1219_vm1 = vcmp.lt.s32.totalorder %v8831_v37, 3  ;;  %v7824_v59 = vadd.s32 4294967169, %v569_v29 }
 0x105   : > { %v1669_v24 = vor.u32 %v1668_v1, %v1667_v38  ;;  %v1193_v57 = vor.u32 8388608, %v1192_v35  ;;  %v1229_v12 = vsel %vm1217_vm0, %v8852_v50, %v8854_v52  ;;  %v1231_v46 = vsel %vm1219_vm1, %v1213_v32, %v1230_v45 }
 0x106   : > { %v8880_v44 = vsub.s32 %v8785_v55, %v1596_v26  ;;  %vm1684_vm2 = vcmp.lt.s32.totalorder %v8810_v18, 3  ;;  %v1225_v29 = vsel %vm1217_vm0, %v8860_v42, %v8852_v50  ;;  %v1227_v35 = vsel %vm1219_vm1, %v8854_v52, %v1226_v30 }
 0x107   : > { %v1691_v38 = vsel %vm1685_vm15, %v1678_v6, 920167782  ;;  %v1694_v55 = vsel %vm1682_vm13, %v8858_v49, %v8864_v4  ;;  %v1696_v1 = vsel %vm1684_vm2, %v1678_v6, %v1695_v25  ;;  %vm1218_vm6 = vcmp.lt.s32.totalorder %v8831_v37, 2 }
 0x108   : > { %15703 = vst [vmem:[#allocation30_spill] sm:$0xff] %v8880_v44  ;;  %vm1125_vm7 = vc.u32 %v8795_v51, %v8800_v10  ;;  %v1126_v20 = vadd.s32 1, %v8802_v53  ;;  %v8904_v32 = vsel %vm1218_vm6, %v1229_v12, %v1231_v46  ;;  %v575_v60 = vadd.s32 1, %v7824_v59 }
 0x109   : > { %vm1683_vm8 = vcmp.lt.s32.totalorder %v8810_v18, 2  ;;  %v1690_v16 = vsel %vm1682_vm13, %v1669_v24, %v8858_v49  ;;  %v8912_v19 = vsel %vm1218_vm6, %v1225_v29, %v1227_v35  ;;  %v8914_v0 = vshll.u32 %v1193_v57, 8  ;;  %v15749_v18 = vld [vmem:[#allocation20_spill] sm:$0xff] }
 0x10a   : > { %v1599_v41 = vsub.s32 0, %v8880_v44  ;;  %v1692_v5 = vsel %vm1684_vm2, %v8864_v4, %v1691_v38  ;;  %v1697_v43 = vsel %vm1683_vm8, %v1694_v55, %v1696_v1  ;;  %v8924_v13 = vadd.f32 %v8661_v47, %v8377_v27 }
 0x10b   : > { %vm7832_vm9 = vcmp.lt.s32.totalorder %v8807_v40, 0  ;;  %vm1598_vm10 = vcmp.lt.s32.totalorder %v8880_v44, 0  ;;  %v15705_v63 = vor.u32 8388608, %v8780_v22  ;;  %v1237_v45 = vshrl.u32 %v8904_v32, 16 }
 0x10c   : > { %15704 = vst [vmem:[#allocation31_spill] sm:$0xff] %v8924_v13  ;;  %v8935_v6 = vmul.f32 %v8361_v14, %v8379_v28  ;;  %v8939_v30 = vmul.f32 %v8363_v15, %v8729_v48  ;;  %v15369_v27 = vshrl.u32 %v8912_v19, 16  ;;  %vm576_vm3 = vcmp.gt.s32.totalorder %v575_v60, 0 }
 0x10d   : > { %v8930_v26 = vshll.u32 %v15705_v63, 8  ;;  %v1693_v22 = vsel %vm1683_vm8, %v1690_v16, %v1692_v5  ;;  %v1702_v25 = vshrl.u32 %v1697_v43, 16  ;;  %v1234_v59 = vand.u32 65535, %v8914_v0 }
 0x10e   : > { %v8948_v57 = vsel %vm7832_vm9, 0, %v8807_v40  ;;  %v8954_v28 = vsel %vm1125_vm7, %v1126_v20, %v8802_v53  ;;  %v1600_v48 = vsel %vm1598_vm10, %v1599_v41, %v8880_v44  ;;  %v1343_v12 = vand.u32 2139095040, %v8924_v13 }
 0x10f   : > { %15706 = vst [vmem:[#allocation32_spill] sm:$0xff] %v8930_v26  ;;  %v1666_v46 = vshrl.u32 %v15692_v3, %v8793_v61  ;;  %v1699_v29 = vand.u32 65535, %v8930_v26  ;;  %v8961_v35 = vmul.u32 %v1237_v45, %v1234_v59  ;;  %v577_v38 = vsel %vm576_vm3, %v575_v60, 0 }
 0x110   : > { %15707 = vst [vmem:[#allocation33_spill] sm:$0xff] %v8948_v57  ;;  %v8965_v40 = vadd.s32 %v8752_v11, %v8736_v54  ;;  %v1701_v55 = vand.u32 65535, %v1697_v43  ;;  %v1723_v1 = vand.u32 65535, %v1693_v22  ;;  %v8969_v53 = vmul.u32 %v15369_v27, %v1234_v59 }
 0x111   : > { %15708 = vst [vmem:[#allocation34_spill] sm:$0xff] %v8954_v28  ;;  %v1601_v20 = vclz %v1600_v48  ;;  %v8973_v16 = vsel %vm1682_vm13, %v1666_v46, %v1669_v24  ;;  %v8975_v61 = vmul.u32 %v1702_v25, %v1699_v29  ;;  %v1236_v41 = vand.u32 65535, %v8904_v32 }
 0x112   : > { %15709 = vst [vmem:[#allocation35_spill] sm:$0xff] %v8965_v40  ;;  %v1700_v60 = vshrl.u32 %v8930_v26, 16  ;;  %v1258_v54 = vand.u32 65535, %v8912_v19  ;;  %v1344_v11 = vshrl.u32 %v1343_v12, 23  ;;  %v579_v5 = vand.u32 31, %v577_v38 }
 0x113   : > { %15710 = vst [vmem:[#allocation36_spill] sm:$0xff] %v8973_v16  ;;  %v8983_v43 = vsel %vm1685_vm15, %v8864_v4, 2102212464  ;;  %v1724_v63 = vshrl.u32 %v1693_v22, 16  ;;  %v1235_v48 = vshrl.u32 %v8914_v0, 16  ;;  %v1242_v24 = vshll.u32 %v8961_v35, 16 }
 0x114   : > { %v8987_v46 = vmul.u32 %v1701_v55, %v1700_v60  ;;  %v8989_v47 = vmul.u32 %v1723_v1, %v1699_v29  ;;  %v8991_v32 = vmul.u32 %v1723_v1, %v1700_v60  ;;  %v1264_v27 = vshll.u32 %v8969_v53, 16 }
 0x115   : > { %v7843_v12 = vadd.s32 4294967294, %v1601_v20  ;;  %v15381_v10 = vshll.u32 %v8975_v61, 16  ;;  %v1238_v51 = vmul.u32 %v1236_v41, %v1234_v59  ;;  %v8995_v39 = vmul.u32 %v1236_v41, %v1235_v48 }
 0x116   : > { %v1260_v4 = vmul.u32 %v1258_v54, %v1234_v59  ;;  %v8997_v22 = vmul.u32 %v1258_v54, %v1235_v48  ;;  %v7839_v7 = vadd.s32 4294967169, %v1344_v11  ;;  %v8999_v26 = vsub.s32 32, %v579_v5 }
 0x117   : > { %v9001_v57 = vmul.u32 %v1701_v55, %v1699_v29  ;;  %v9003_v28 = vmul.u32 %v1702_v25, %v1700_v60  ;;  %v9005_v1 = vmul.u32 %v1724_v63, %v1699_v29  ;;  %v1248_v62 = vadd.s32 %v1242_v24, %v1238_v51 }
 0x118   : > { %15711 = vst [vmem:[#allocation37_spill] sm:$0xff] %v8999_v26  ;;  %v9007_v31 = vmul.u32 %v1724_v63, %v1700_v60  ;;  %vm1246_vm4 = vc.u32 %v1238_v51, %v1242_v24  ;;  %vm1268_vm5 = vc.u32 %v1260_v4, %v1264_v27  ;;  %v9009_v20 = vadd.s32 %v1264_v27, %v1260_v4 }
 0x119   : > { %vm7844_vm11 = vcmp.lt.s32.totalorder %v7843_v12, 0  ;;  %vm9015_vm12 = vc.u32 %v9001_v57, %v15381_v10  ;;  %v1244_v25 = vshll.u32 %v8995_v39, 16  ;;  %v1241_v29 = vmul.u32 %v1237_v45, %v1235_v48 }
 0x11a   : > { %15712 = vst [vmem:[#allocation38_spill] sm:$0xff] %v9007_v31  ;;  %v15380_v41 = vshll.u32 %v8997_v22, 16  ;;  %v1350_v60 = vadd.s32 1, %v7839_v7  ;;  %v592_v51 = vshrl.u32 %v15682_v34, %v8999_v26  ;;  %v1247_v27 = vsel %vm1246_vm4, 1, %v15690_v33 }
 0x11b   : > { %vm9024_vm13 = vc.u32 %v1248_v62, %v1244_v25  ;;  %v1269_v11 = vsel %vm1268_vm5, 1, %v15690_v33  ;;  %v595_v63 = vshrl.u32 %v15683_v23, %v8999_v26  ;;  %v9039_v24 = vshrl.u32 %v577_v38, 5 }
 0x11c   : > { %vm9034_vm15 = vc.u32 %v9009_v20, %v15380_v41  ;;  %v591_v62 = vshll.u32 %v15700_v56, %v579_v5  ;;  %v583_v4 = vshrl.u32 %v15698_v58, %v8999_v26  ;;  %v586_v25 = vshrl.u32 %v15699_v36, %v8999_v26 }
 0x11d   : > { %v589_v59 = vshrl.u32 %v15700_v56, %v8999_v26  ;;  %v594_v41 = vshll.u32 %v15682_v34, %v579_v5  ;;  %v1249_v10 = vadd.s32 %v1247_v27, %v1241_v29  ;;  %v15719_v17 = vshrl.u32 %v8912_v19, 16 }
 0x11e   : > { %vm1351_vm7 = vcmp.gt.s32.totalorder %v1350_v60, 0  ;;  %v593_v38 = vor.u32 %v592_v51, %v591_v62  ;;  %v582_v7 = vshll.u32 %v15692_v3, %v579_v5  ;;  %v585_v16 = vshll.u32 %v15698_v58, %v579_v5 }
 0x11f   : > { %v1263_v2 = vmul.u32 %v15719_v17, %v1235_v48  ;;  %v588_v44 = vshll.u32 %v15699_v36, %v579_v5  ;;  %v596_v40 = vor.u32 %v595_v63, %v594_v41  ;;  %v1251_v31 = vsel %vm9024_vm13, 1, %v15690_v33 }
 0x120   : > { %v1273_v29 = vsel %vm9034_vm15, 1, %v15690_v33  ;;  %v15720_v17 = vand.u32 2147483647, %v8805_v8  ;;  %v9062_v48 = vor.u32 %v583_v4, %v582_v7  ;;  %v9064_v51 = vor.u32 %v586_v25, %v585_v16 }
 0x121   : > { %v1271_v26 = vadd.s32 %v1269_v11, %v1263_v2  ;;  %v9066_v27 = vor.u32 %v589_v59, %v588_v44  ;;  %vm600_vm9 = vcmp.lt.s32.totalorder %v9039_v24, 4  ;;  %v15388_v5 = vshll.u32 %v9005_v1, 16 }
 0x122   : > { %v572_v19 = vand.u32 8388607, %v15720_v17  ;;  %v15386_v41 = vand.u32 2147483647, %v8924_v13  ;;  %v1352_v2 = vsel %vm1351_vm7, %v1350_v60, 0  ;;  %v9075_v11 = vsel %vm7844_vm11, 0, %v7843_v12 }
 0x123   : > { %v606_v54 = vsel %vm600_vm9, %v593_v38, 920167782  ;;  %v1712_v16 = vsel %vm9015_vm12, 1, %v15690_v33  ;;  %v1222_v44 = vsel %vm1220_vm14, %v8854_v52, 2102212464  ;;  %v1253_v63 = vadd.s32 %v1251_v31, %v1249_v10 }
 0x124   : > { %v610_v59 = vsel %vm600_vm9, %v596_v40, 1326507024  ;;  %v1275_v45 = vadd.s32 %v1273_v29, %v1271_v26  ;;  %vm597_vm10 = vcmp.lt.s32.totalorder %v9039_v24, 1  ;;  %vm599_vm3 = vcmp.lt.s32.totalorder %v9039_v24, 3 }
 0x125   : > { %v1354_v60 = vand.u32 31, %v1352_v2  ;;  %v573_v12 = vor.u32 8388608, %v572_v19  ;;  %v605_v55 = vsel %vm597_vm10, %v9062_v48, %v9064_v51  ;;  %v607_v52 = vsel %vm599_vm3, %v9066_v27, %v606_v54 }
 0x126   : > { %v1201_v40 = vshrl.u32 %v15692_v3, %v8787_v21  ;;  %v1265_v31 = vshrl.u32 %v8969_v53, 16  ;;  %v609_v10 = vsel %vm597_vm10, %v9064_v51, %v9066_v27  ;;  %v611_v26 = vsel %vm599_vm3, %v593_v38, %v610_v59 }
 0x127   : > { %v1609_v7 = vsub.s32 4294967266, %v9075_v11  ;;  %v1243_v62 = vshrl.u32 %v8961_v35, 16  ;;  %v9107_v4 = vand.u32 8388607, %v15386_v41  ;;  %vm598_vm14 = vcmp.lt.s32.totalorder %v9039_v24, 2 }
 0x128   : > { %v1221_v21 = vsel %vm1217_vm0, %v1201_v40, %v8860_v42  ;;  %v1223_v53 = vsel %vm1219_vm1, %v8852_v50, %v1222_v44  ;;  %v1276_v25 = vadd.s32 %v1275_v45, %v1265_v31  ;;  %v9118_v38 = vsel %vm598_vm14, %v605_v55, %v607_v52 }
 0x129   : > { %v1254_v35 = vadd.s32 %v1253_v63, %v1243_v62  ;;  %v9120_v29 = vsub.s32 32, %v1354_v60  ;;  %v9124_v17 = vsel %vm598_vm14, %v609_v10, %v611_v26  ;;  %v9126_v19 = vshll.u32 %v573_v12, 8 }
 0x12a   : > { %v15721_v42 = vshll.u32 %v8975_v61, 16  ;;  %v9132_v50 = vadd.s32 %v1712_v16, %v9003_v28  ;;  %v1267_v59 = vshrl.u32 %v8997_v22, 16  ;;  %v9136_v63 = vadd.s32 127, %v1609_v7  ;;  %v9187_v16 = vpop.permute.xlu1 %253 }
 0x12b   : > { %v9141_v45 = vadd.s32 %v15388_v5, %v8989_v47  ;;  %v1245_v12 = vshrl.u32 %v8995_v39, 16  ;;  %v15387_v55 = vshrl.u32 %v9118_v38, 16  ;;  %v15389_v52 = vshrl.u32 %v9124_v17, 16 }
 0x12c   : > { %v1713_v54 = vadd.s32 %v15721_v42, %v9001_v57  ;;  %v1224_v57 = vsel %vm1218_vm6, %v1221_v21, %v1223_v53  ;;  %v1277_v28 = vadd.s32 %v1276_v25, %v1267_v59  ;;  %v15723_v31 = vshll.u32 %v8997_v22, 16 }
 0x12d   : > { %v9149_v40 = vadd.s32 %v1254_v35, %v1245_v12  ;;  %v1367_v39 = vshrl.u32 %v15682_v34, %v9120_v29  ;;  %v614_v26 = vand.u32 65535, %v9126_v19  ;;  %v9159_v7 = vshrl.u32 %v1352_v2, 5  ;;  %v9181_v12 = vpop.permute.xlu2 %364 }
 0x12e   : > { %v9154_v10 = vadd.s32 %v9009_v20, %v15723_v31  ;;  %v1357_v37 = vshll.u32 %v15692_v3, %v1354_v60  ;;  %v1358_v62 = vshrl.u32 %v15698_v58, %v9120_v29  ;;  %v1370_v21 = vshrl.u32 %v15683_v23, %v9120_v29  ;;  %15725 = vst [vmem:[#allocation41_spill] sm:$0xff] %v9181_v12 }
 0x12f   : > { %15722 = vst [vmem:[#allocation39_spill] sm:$0xff] %v9149_v40  ;;  %v1361_v22 = vshrl.u32 %v15699_v36, %v9120_v29  ;;  %v1364_v20 = vshrl.u32 %v15700_v56, %v9120_v29  ;;  %v1366_v53 = vshll.u32 %v15700_v56, %v1354_v60  ;;  %v9173_v2 = vmul.u32 %v15387_v55, %v614_v26 }
 0x130   : > { %15724 = vst [vmem:[#allocation40_spill] sm:$0xff] %v9154_v10  ;;  %v1281_v25 = vadd.s32 1, %v1277_v28  ;;  %v1360_v35 = vshll.u32 %v15698_v58, %v1354_v60  ;;  %v1369_v42 = vshll.u32 %v15682_v34, %v1354_v60  ;;  %v9179_v59 = vmul.u32 %v15389_v52, %v614_v26 }
 0x131   : > { %vm1280_vm0 = vc.u32 %v9149_v40, %v9154_v10  ;;  %v1363_v31 = vshll.u32 %v15699_v36, %v1354_v60  ;;  %v1368_v41 = vor.u32 %v1367_v39, %v1366_v53  ;;  %v638_v44 = vand.u32 65535, %v9118_v38 }
 0x132   : > { %v15726_v55 = vshll.u32 %v8987_v46, 16  ;;  %v15729_v52 = vshll.u32 %v9005_v1, 16  ;;  %v1278_v60 = vmul.u32 %v8914_v0, %v1224_v57  ;;  %v9203_v39 = vor.u32 %v1358_v62, %v1357_v37 }
 0x133   : > { %v1371_v53 = vor.u32 %v1370_v21, %v1369_v42  ;;  %v616_v8 = vand.u32 65535, %v9124_v17  ;;  %v9206_v10 = vor.u32 %v1361_v22, %v1360_v35  ;;  %v644_v40 = vshll.u32 %v9173_v2, 16  ;;  %v9251_v42 = vpop.permute.xlu1 %248 }
 0x134   : > { %vm9191_vm1 = vc.u32 %v1713_v54, %v15726_v55  ;;  %vm9198_vm6 = vc.u32 %v8989_v47, %v15729_v52  ;;  %v9208_v54 = vor.u32 %v1364_v20, %v1363_v31  ;;  %v615_v55 = vshrl.u32 %v9126_v19, 16 }
 0x135   : > { %v1282_v36 = vsel %vm1280_vm0, %v1281_v25, %v1277_v28  ;;  %vm1372_vm4 = vcmp.lt.s32.totalorder %v9159_v7, 1  ;;  %vm1375_vm5 = vcmp.lt.s32.totalorder %v9159_v7, 4  ;;  %v622_v0 = vshll.u32 %v9179_v59, 16 }
 0x136   : > { %vm1374_vm11 = vcmp.lt.s32.totalorder %v9159_v7, 3  ;;  %v1381_v47 = vsel %vm1375_vm5, %v1368_v41, 920167782  ;;  %v640_v57 = vmul.u32 %v638_v44, %v614_v26  ;;  %v9218_v52 = vmul.u32 %v638_v44, %v615_v55 }
 0x137   : > { %v1385_v37 = vsel %vm1375_vm5, %v1371_v53, 1326507024  ;;  %v438_v28 = vadd.f32 %v8939_v30, %v8935_v6  ;;  %v618_v62 = vmul.u32 %v616_v8, %v614_v26  ;;  %v9224_v21 = vmul.u32 %v616_v8, %v615_v55  ;;  %v9240_v6 = vpop.permute.xlu2 %360 }
 0x138   : > { %v9226_v22 = vadd.s32 %v1282_v36, %v1278_v60  ;;  %v1380_v20 = vsel %vm1372_vm4, %v9203_v39, %v9206_v10  ;;  %vm648_vm12 = vc.u32 %v640_v57, %v644_v40  ;;  %v9232_v25 = vadd.s32 %v644_v40, %v640_v57 }
 0x139   : > { %v1382_v44 = vsel %vm1374_vm11, %v9208_v54, %v1381_v47  ;;  %v9238_v35 = vadd.f32 %v8782_v9, %v438_v28  ;;  %vm626_vm13 = vc.u32 %v618_v62, %v622_v0  ;;  %v628_v8 = vadd.s32 %v622_v0, %v618_v62 }
 0x13a   : > { %v1384_v36 = vsel %vm1372_vm4, %v9206_v10, %v9208_v54  ;;  %v1386_v30 = vsel %vm1374_vm11, %v1368_v41, %v1385_v37  ;;  %v15397_v40 = vshll.u32 %v9218_v52, 16  ;;  %v418_v26 = vmul.f32 %v8363_v15, %v9240_v6 }
 0x13b   : > { %15732 = vst [vmem:[#allocation42_spill] sm:$0xff] %v9238_v35  ;;  %v624_v9 = vshll.u32 %v9224_v21, 16  ;;  %v15733_v31 = vshrl.u32 %v9118_v38, 16  ;;  %v649_v53 = vsel %vm648_vm12, 1, %v15690_v33  ;;  %v316_v0 = vmul.f32 %v8361_v14, %v9251_v42 }
 0x13c   : > { %v627_v47 = vsel %vm626_vm13, 1, %v15690_v33  ;;  %vm652_vm15 = vc.u32 %v9232_v25, %v15397_v40  ;;  %v420_v41 = vmul.f32 %v8363_v15, %v9181_v12  ;;  %v318_v57 = vmul.f32 %v8361_v14, %v9187_v16 }
 0x13d   : > { %v643_v60 = vmul.u32 %v15733_v31, %v615_v55  ;;  %v15734_v38 = vshrl.u32 %v9124_v17, 16  ;;  %vm630_vm7 = vc.u32 %v628_v8, %v624_v9  ;;  %v723_v28 = vand.u32 2139095040, %v9238_v35 }
 0x13e   : > { %v9270_v62 = vadd.f32 %v418_v26, %v316_v0  ;;  %v1716_v31 = vsel %vm9191_vm1, 1, %v15690_v33  ;;  %v1734_v40 = vsel %vm9198_vm6, 1, %v15690_v33  ;;  %vm1373_vm0 = vcmp.lt.s32.totalorder %v9159_v7, 2 }
 0x13f   : > { %v621_v37 = vmul.u32 %v15734_v38, %v615_v55  ;;  %v651_v12 = vadd.s32 %v649_v53, %v643_v60  ;;  %v9281_v17 = vsel %vm1373_vm0, %v1384_v36, %v1386_v30  ;;  %v15736_v55 = vor.u32 8388608, %v9107_v4  ;;  %v15739_v38 = vld [vmem:[#allocation38_spill] sm:$0xff] }
 0x140   : > { %15735 = vst [vmem:[#allocation43_spill] sm:$0xff] %v9270_v62  ;;  %v653_v9 = vsel %vm652_vm15, 1, %v15690_v33  ;;  %v1284_v5 = vadd.s32 536870912, %v9226_v22  ;;  %v9291_v13 = vsel %vm1373_vm0, %v1380_v20, %v1382_v44  ;;  %v631_v0 = vsel %vm630_vm7, 1, %v15690_v33 }
 0x141   : > { %v9285_v8 = vshll.u32 %v15736_v55, 8  ;;  %v629_v26 = vadd.s32 %v627_v47, %v621_v37  ;;  %v9294_v60 = vadd.f32 %v420_v41, %v318_v57  ;;  %v1605_v36 = vsub.s32 32, %v9075_v11 }
 0x142   : > { %v1611_v30 = vshll.u32 %v9136_v63, 23  ;;  %v15738_v4 = vshll.u32 %v8991_v32, 16  ;;  %v724_v53 = vshrl.u32 %v723_v28, 23  ;;  %v9305_v47 = vsel %vm1684_vm2, %v8858_v49, %v8983_v43  ;;  %v15740_v43 = vld [vmem:[#allocation35_spill] sm:$0xff] }
 0x143   : > { %15737 = vst [vmem:[#allocation44_spill] sm:$0xff] %v9294_v60  ;;  %v1718_v20 = vadd.s32 %v1716_v31, %v9132_v50  ;;  %v1392_v44 = vshrl.u32 %v9281_v17, 16  ;;  %v655_v41 = vadd.s32 %v653_v9, %v651_v12  ;;  %v1708_v57 = vshrl.u32 %v8975_v61, 16 }
 0x144   : > { %vm1737_vm1 = vc.u32 %v9141_v45, %v15738_v4  ;;  %v1736_v63 = vadd.s32 %v1734_v40, %v15739_v38  ;;  %v633_v55 = vadd.s32 %v631_v0, %v629_v26  ;;  %v9313_v4 = vshrl.u32 %v1284_v5, 30  ;;  %v15741_v5 = vld [vmem:[#allocation30_spill] sm:$0xff] }
 0x145   : > { %v1738_v28 = vsel %vm1737_vm1, 1, %v15690_v33  ;;  %v1389_v60 = vand.u32 65535, %v9285_v8  ;;  %v645_v49 = vshrl.u32 %v9173_v2, 16  ;;  %v1607_v50 = vshrl.u32 %v15740_v43, %v1605_v36 }
 0x146   : > { %v1612_v31 = vor.u32 4788187, %v1611_v30  ;;  %v623_v12 = vshrl.u32 %v9179_v59, 16  ;;  %v7827_v9 = vadd.s32 4294967169, %v724_v53  ;;  %v9319_v61 = vadd.s32 %v1718_v20, %v1708_v57 }
 0x147   : > { %v1730_v40 = vshrl.u32 %v9005_v1, 16  ;;  %v9322_v38 = vmul.u32 %v1392_v44, %v1389_v60  ;;  %v656_v26 = vadd.s32 %v655_v41, %v645_v49  ;;  %v1606_v0 = vshll.u32 %v15741_v5, %v9075_v11 }
 0x148   : > { %v1413_v37 = vand.u32 65535, %v9291_v13  ;;  %v15742_v2 = vshrl.u32 %v9291_v13, 16  ;;  %v634_v36 = vadd.s32 %v633_v55, %v623_v12  ;;  %v1740_v30 = vadd.s32 %v1738_v28, %v1736_v63 }
 0x149   : > { %v1286_v59 = vshll.u32 %v9313_v4, 30  ;;  %v1391_v53 = vand.u32 65535, %v9281_v17  ;;  %v647_v1 = vshrl.u32 %v9218_v52, 16  ;;  %v1608_v20 = vor.u32 %v1607_v50, %v1606_v0  ;;  %v15743_v17 = vld [vmem:[#allocation37_spill] sm:$0xff] }
 0x14a   : > { %v9329_v62 = vmul.u32 %v15742_v2, %v1389_v60  ;;  %v1613_v57 = vand.u32 2147483647, %v1612_v31  ;;  %v625_v41 = vshrl.u32 %v9224_v21, 16  ;;  %v730_v49 = vadd.s32 1, %v7827_v9 }
 0x14b   : > { %v1390_v11 = vshrl.u32 %v9285_v8, 16  ;;  %v1397_v43 = vshll.u32 %v9322_v38, 16  ;;  %v602_v55 = vsel %vm600_vm9, %v9066_v27, 2102212464  ;;  %v657_v63 = vadd.s32 %v656_v26, %v647_v1 }
 0x14c   : > { %v1415_v28 = vmul.u32 %v1413_v37, %v1389_v60  ;;  %v1419_v12 = vshll.u32 %v9329_v62, 16  ;;  %v581_v5 = vshrl.u32 %v15692_v3, %v15743_v17  ;;  %v9343_v50 = vadd.s32 %v634_v36, %v625_v41 }
 0x14d   : > { %v9346_v21 = vsub.s32 %v9226_v22, %v1286_v59  ;;  %v1393_v31 = vmul.u32 %v1391_v53, %v1389_v60  ;;  %v9348_v9 = vmul.u32 %v1391_v53, %v1390_v11  ;;  %v9350_v0 = vmul.u32 %v1413_v37, %v1390_v11 }
 0x14e   : > { %v601_v27 = vsel %vm597_vm10, %v581_v5, %v9062_v48  ;;  %v603_v26 = vsel %vm599_vm3, %v9064_v51, %v602_v55  ;;  %v15744_v2 = vshll.u32 %v9218_v52, 16  ;;  %vm731_vm2 = vcmp.gt.s32.totalorder %v730_v49, 0  ;;  %v15746_v5 = vld [vmem:[#allocation36_spill] sm:$0xff] }
 0x14f   : > { %v1741_v22 = vadd.s32 %v1740_v30, %v1730_v40  ;;  %vm1401_vm9 = vc.u32 %v1393_v31, %v1397_v43  ;;  %v1403_v60 = vadd.s32 %v1397_v43, %v1393_v31  ;;  %v661_v59 = vadd.s32 1, %v657_v63 }
 0x150   : > { %v9361_v36 = vadd.s32 %v9232_v25, %v15744_v2  ;;  %v1615_v37 = vcvt.s32.f32 %v1608_v20  ;;  %vm1423_vm6 = vc.u32 %v1415_v28, %v1419_v12  ;;  %v9363_v53 = vadd.s32 %v1419_v12, %v1415_v28  ;;  %v15747_v2 = vld [vmem:[#allocation18_spill] sm:$0xff] }
 0x151   : > { %v1289_v48 = vsub.s32 0, %v9346_v21  ;;  %v1399_v51 = vshll.u32 %v9348_v9, 16  ;;  %v604_v52 = vsel %vm598_vm14, %v601_v27, %v603_v26  ;;  %v732_v25 = vsel %vm731_vm2, %v730_v49, 0 }
 0x152   : > { %vm660_vm10 = vc.u32 %v9343_v50, %v9361_v36  ;;  %v1616_v1 = vmul.f32 %v1615_v37, %v1613_v57  ;;  %vm1288_vm3 = vcmp.lt.s32.totalorder %v9346_v21, 0  ;;  %v1402_v40 = vsel %vm1401_vm9, 1, %v15690_v33 }
 0x153   : > { %v15399_v30 = vshll.u32 %v9350_v0, 16  ;;  %v1396_v20 = vmul.u32 %v1392_v44, %v1390_v11  ;;  %vm1405_vm12 = vc.u32 %v1403_v60, %v1399_v51  ;;  %v1424_v41 = vsel %vm1423_vm6, 1, %v15690_v33  ;;  %v15748_v60 = vld [vmem:[#allocation19_spill] sm:$0xff] }
 0x154   : > { %v662_v43 = vsel %vm660_vm10, %v661_v59, %v657_v63  ;;  %v15745_v55 = vshrl.u32 %v9291_v13, 16  ;;  %v658_v24 = vmul.u32 %v9126_v19, %v604_v52  ;;  %v734_v57 = vand.u32 31, %v732_v25  ;;  %v15752_v52 = vld [vmem:[#allocation34_spill] sm:$0xff] }
 0x155   : > { %vm1427_vm14 = vc.u32 %v9363_v53, %v15399_v30  ;;  %v1710_v49 = vshrl.u32 %v8987_v46, 16  ;;  %v1732_v12 = vshrl.u32 %v8991_v32, 16  ;;  %v1290_v44 = vsel %vm1288_vm3, %v1289_v48, %v9346_v21 }
 0x156   : > { %v1418_v28 = vmul.u32 %v15745_v55, %v1390_v11  ;;  %v1404_v17 = vadd.s32 %v1402_v40, %v1396_v20  ;;  %v9388_v13 = vsel %vm1683_vm8, %v15746_v5, %v9305_v47  ;;  %v1406_v11 = vsel %vm1405_vm12, 1, %v15690_v33  ;;  %v15750_v47 = vld [vmem:[#allocation25_spill] sm:$0xff]  ;;  %v15753_v20 = vld [vmem:[#allocation16_spill] sm:$0xff] }
 0x157   : > { %v663_v31 = vadd.s32 %v662_v43, %v658_v24  ;;  %v1617_v27 = vxor.u32 2147483648, %v1616_v1  ;;  %v9392_v19 = vadd.s32 %v9319_v61, %v1710_v49  ;;  %v1742_v46 = vadd.s32 %v1741_v22, %v1732_v12  ;;  %v15755_v43 = vld [vmem:[#allocation33_spill] sm:$0xff] }
 0x158   : > { %v1426_v63 = vadd.s32 %v1424_v41, %v1418_v28  ;;  %v1428_v26 = vsel %vm1427_vm14, 1, %v15690_v33  ;;  %v9397_v59 = vadd.s32 %v15748_v60, %v15747_v2  ;;  %v1291_v37 = vclz %v1290_v44  ;;  %v15756_v28 = vld [vmem:[#allocation32_spill] sm:$0xff] }
 0x159   : > { %v9399_v48 = vsub.s32 32, %v734_v57  ;;  %v15751_v51 = vmul.u32 %v15749_v18, %v15750_v47  ;;  %vm1497_vm8 = vcmp.lt.s32.totalorder %v15753_v20, 0  ;;  %v15754_v61 = vshll.u32 %v8991_v32, 16 }
 0x15a   : > { %v1408_v41 = vadd.s32 %v1406_v11, %v1404_v17  ;;  %v989_v55 = vsub.s32 4294967266, %v15755_v43  ;;  %v1743_v24 = vmul.u32 %v15756_v28, %v9388_v13  ;;  %v1430_v49 = vadd.s32 %v1428_v26, %v1426_v63 }
 0x15b   : > { %v9405_v40 = vadd.s32 %v15752_v52, %v15751_v51  ;;  %v9411_v22 = vadd.s32 %v9141_v45, %v15754_v61  ;;  %v664_v12 = vadd.s32 536870912, %v663_v31  ;;  %v15757_v44 = vand.u32 2147483647, %v15753_v20 }
 0x15c   : > { %v1618_v32 = vsel %vm1497_vm8, %v1617_v27, %v1616_v1  ;;  %v1746_v45 = vadd.s32 1, %v1742_v46  ;;  %v1398_v17 = vshrl.u32 %v9322_v38, 16  ;;  %v7837_v11 = vadd.s32 4294967294, %v1291_v37 }
 0x15d   : > { %vm9418_vm13 = vcmp.le.f32.partialorder %v15757_v44, 0.7853982  ;;  %vm1745_vm15 = vc.u32 %v9392_v19, %v9411_v22  ;;  %v1356_v13 = vshrl.u32 %v15692_v3, %v9120_v29  ;;  %v1420_v63 = vshrl.u32 %v9329_v62, 16 }
 0x15e   : > { %v747_v26 = vshrl.u32 %v15682_v34, %v9399_v48  ;;  %v1377_v2 = vsel %vm1375_vm5, %v9208_v54, 2102212464  ;;  %v1409_v1 = vadd.s32 %v1408_v41, %v1398_v17  ;;  %v15402_v27 = vand.u32 2147483647, %v9238_v35 }
 0x15f   : > { %v750_v60 = vshrl.u32 %v15683_v23, %v9399_v48  ;;  %v1431_v38 = vadd.s32 %v1430_v49, %v1420_v63  ;;  %v9438_v37 = vshrl.u32 %v664_v12, 30  ;;  %v9440_v18 = vshrl.u32 %v732_v25, 5 }
 0x160   : > { %v746_v29 = vshll.u32 %v15700_v56, %v734_v57  ;;  %v738_v62 = vshrl.u32 %v15698_v58, %v9399_v48  ;;  %v15760_v47 = vmov 2131351028   ;;  %v744_v54 = vshrl.u32 %v15700_v56, %v9399_v48 }
 0x161   : > { %v741_v51 = vshrl.u32 %v15760_v47, %v9399_v48  ;;  %v749_v52 = vshll.u32 %v15682_v34, %v734_v57  ;;  %vm7838_vm5 = vcmp.lt.s32.totalorder %v7837_v11, 0  ;;  %v1400_v61 = vshrl.u32 %v9348_v9, 16  ;;  %v9641_v34 = vpop.permute.xlu1 %356 }
 0x162   : > { %v1422_v41 = vshrl.u32 %v9350_v0, 16  ;;  %v748_v25 = vor.u32 %v747_v26, %v746_v29  ;;  %v737_v28 = vshll.u32 %v15692_v3, %v734_v57  ;;  %v740_v49 = vshll.u32 %v15698_v58, %v734_v57 }
 0x163   : > { %v743_v12 = vshll.u32 %v15760_v47, %v734_v57  ;;  %v751_v44 = vor.u32 %v750_v60, %v749_v52  ;;  %v9455_v17 = vadd.s32 %v1409_v1, %v1400_v61  ;;  %v666_v30 = vshll.u32 %v9438_v37, 30  ;;  %v15766_v47 = vld [vmem:[#allocation29_spill] sm:$0xff] }
 0x164   : > { %v1432_v63 = vadd.s32 %v1431_v38, %v1422_v41  ;;  %v727_v56 = vand.u32 8388607, %v15402_v27  ;;  %v9460_v23 = vor.u32 %v738_v62, %v737_v28  ;;  %v9462_v9 = vor.u32 %v741_v51, %v740_v49 }
 0x165   : > { %v9464_v26 = vor.u32 %v744_v54, %v743_v12  ;;  %vm755_vm7 = vcmp.lt.s32.totalorder %v9440_v18, 4  ;;  %v9470_v57 = vsel %vm9418_vm13, %v15753_v20, %v1618_v32  ;;  %v1747_v1 = vsel %vm1745_vm15, %v1746_v45, %v1742_v46  ;;  %v15762_v12 = vld [vmem:[#allocation24_spill] sm:$0xff] }
 0x166   : > { %v1376_v60 = vsel %vm1372_vm4, %v1356_v13, %v9203_v39  ;;  %v761_v38 = vsel %vm755_vm7, %v748_v25, 920167782  ;;  %v9481_v29 = vsel %vm7838_vm5, 0, %v7837_v11  ;;  %v1378_v62 = vsel %vm1374_vm11, %v9206_v10, %v1377_v2 }
 0x167   : > { %v15761_v32 = vshll.u32 %v9350_v0, 16  ;;  %v765_v46 = vsel %vm755_vm7, %v751_v44, 1326507024  ;;  %v1436_v45 = vadd.s32 1, %v1432_v63  ;;  %v9493_v39 = vsub.s32 %v663_v31, %v666_v30 }
 0x168   : > { %vm752_vm4 = vcmp.lt.s32.totalorder %v9440_v18, 1  ;;  %vm754_vm1 = vcmp.lt.s32.totalorder %v9440_v18, 3  ;;  %v728_v11 = vor.u32 8388608, %v727_v56  ;;  %v1379_v30 = vsel %vm1373_vm0, %v1376_v60, %v1378_v62 }
 0x169   : > { %v9489_v51 = vadd.s32 %v9363_v53, %v15761_v32  ;;  %v760_v10 = vsel %vm752_vm4, %v9460_v23, %v9462_v9  ;;  %v762_v0 = vsel %vm754_vm1, %v9464_v26, %v761_v38  ;;  %v985_v53 = vsub.s32 32, %v15755_v43 }
 0x16a   : > { %v764_v31 = vsel %vm752_vm4, %v9462_v9, %v9464_v26  ;;  %v766_v56 = vsel %vm754_vm1, %v748_v25, %v765_v46  ;;  %v990_v13 = vadd.s32 127, %v989_v55  ;;  %v9517_v2 = vmul.f32 %v9470_v57, %v9470_v57 }
 0x16b   : > { %vm1435_vm2 = vc.u32 %v9455_v17, %v9489_v51  ;;  %v9519_v54 = vadd.s32 %v1747_v1, %v1743_v24  ;;  %vm753_vm11 = vcmp.lt.s32.totalorder %v9440_v18, 2  ;;  %v1299_v7 = vsub.s32 4294967266, %v9481_v29 }
 0x16c   : > { %v1437_v52 = vsel %vm1435_vm2, %v1436_v45, %v1432_v63  ;;  %v669_v61 = vsub.s32 0, %v9493_v39  ;;  %v9526_v41 = vsel %vm753_vm11, %v760_v10, %v762_v0  ;;  %v1433_v25 = vmul.u32 %v9285_v8, %v1379_v30 }
 0x16d   : > { %vm668_vm0 = vcmp.lt.s32.totalorder %v9493_v39, 0  ;;  %v9532_v55 = vsel %vm753_vm11, %v764_v31, %v766_v56  ;;  %v9534_v24 = vshll.u32 %v728_v11, 8  ;;  %v987_v28 = vshrl.u32 %v9397_v59, %v985_v53  ;;  %v15764_v31 = vld [vmem:[#allocation39_spill] sm:$0xff]  ;;  %v15765_v56 = vld [vmem:[#allocation40_spill] sm:$0xff] }
 0x16e   : > { %v1129_v49 = vadd.s32 536870912, %v9405_v40  ;;  %v986_v44 = vshll.u32 %v15762_v12, %v15755_v43  ;;  %v1438_v63 = vadd.s32 %v1437_v52, %v1433_v25  ;;  %v794_v1 = vshrl.u32 %v9526_v41, 16 }
 0x16f   : > { %v991_v60 = vshll.u32 %v990_v13, 23  ;;  %v1300_v8 = vadd.s32 127, %v1299_v7  ;;  %v670_v38 = vsel %vm668_vm0, %v669_v61, %v9493_v39  ;;  %v772_v62 = vshrl.u32 %v9532_v55, 16 }
 0x170   : > { %v1631_v32 = vmul.f32 -0.00019511016, %v9517_v2  ;;  %v1749_v46 = vadd.s32 536870912, %v9519_v54  ;;  %v769_v59 = vand.u32 65535, %v9534_v24  ;;  %v988_v45 = vor.u32 %v987_v28, %v986_v44 }
 0x171   : > { %v9546_v11 = vshrl.u32 %v1129_v49, 30  ;;  %v1295_v43 = vsub.s32 32, %v9481_v29  ;;  %v1439_v10 = vadd.s32 536870912, %v1438_v63  ;;  %v671_v0 = vclz %v670_v38 }
 0x172   : > { %v9549_v53 = vmul.u32 %v794_v1, %v769_v59  ;;  %v992_v30 = vor.u32 4788187, %v991_v60  ;;  %v1279_v13 = vadd.s32 %v15765_v56, %v15764_v31  ;;  %v1301_v7 = vshll.u32 %v1300_v8, 23 }
 0x173   : > { %15763 = vst [vmem:[#allocation38_spill] sm:$0xff] %v9546_v11  ;;  %v9553_v52 = vmul.u32 %v772_v62, %v769_v59  ;;  %v1632_v61 = vadd.f32 0.008332121, %v1631_v32  ;;  %v9555_v25 = vshrl.u32 %v1749_v46, 30  ;;  %v793_v28 = vand.u32 65535, %v9526_v41 }
 0x174   : > { %v995_v49 = vcvt.s32.f32 %v988_v45  ;;  %v1131_v12 = vshll.u32 %v9546_v11, 30  ;;  %v1297_v44 = vshrl.u32 %v1279_v13, %v1295_v43  ;;  %v771_v38 = vand.u32 65535, %v9532_v55 }
 0x175   : > { %v9560_v27 = vshrl.u32 %v1439_v10, 30  ;;  %v7825_v60 = vadd.s32 4294967294, %v671_v0  ;;  %v770_v35 = vshrl.u32 %v9534_v24, 16  ;;  %v799_v8 = vshll.u32 %v9549_v53, 16 }
 0x176   : > { %v993_v31 = vand.u32 2147483647, %v992_v30  ;;  %v1296_v32 = vshll.u32 %v9346_v21, %v9481_v29  ;;  %v1302_v46 = vor.u32 4788187, %v1301_v7  ;;  %v777_v41 = vshll.u32 %v9553_v52, 16 }
 0x177   : > { %v1633_v45 = vmul.f32 %v1632_v61, %v9517_v2  ;;  %v1751_v43 = vshll.u32 %v9555_v25, 30  ;;  %v795_v56 = vmul.u32 %v793_v28, %v769_v59  ;;  %v9569_v55 = vmul.u32 %v793_v28, %v770_v35 }
 0x178   : > { %v9572_v10 = vsub.s32 %v9405_v40, %v1131_v12  ;;  %v1298_v0 = vor.u32 %v1297_v44, %v1296_v32  ;;  %v773_v13 = vmul.u32 %v771_v38, %v769_v59  ;;  %v9574_v11 = vmul.u32 %v771_v38, %v770_v35 }
 0x179   : > { %v1441_v30 = vshll.u32 %v9560_v27, 30  ;;  %vm7826_vm9 = vcmp.lt.s32.totalorder %v7825_v60, 0  ;;  %vm803_vm6 = vc.u32 %v795_v56, %v799_v8  ;;  %v9577_v21 = vadd.s32 %v799_v8, %v795_v56 }
 0x17a   : > { %v996_v29 = vmul.f32 %v995_v49, %v993_v31  ;;  %v1303_v7 = vand.u32 2147483647, %v1302_v46  ;;  %vm781_vm10 = vc.u32 %v773_v13, %v777_v41  ;;  %v783_v61 = vadd.s32 %v777_v41, %v773_v13  ;;  %v15767_v13 = vld [vmem:[#allocation15_spill] sm:$0xff] }
 0x17b   : > { %v1619_v28 = vsub.s32 4, %v15766_v47  ;;  %v1634_v58 = vadd.f32 -0.16666654, %v1633_v45  ;;  %v9581_v40 = vsub.s32 %v9519_v54, %v1751_v43  ;;  %v15409_v59 = vshll.u32 %v9569_v55, 16 }
 0x17c   : > { %v1305_v12 = vcvt.s32.f32 %v1298_v0  ;;  %v9584_v44 = vsel %vm7826_vm9, 0, %v7825_v60  ;;  %v779_v38 = vshll.u32 %v9574_v11, 16  ;;  %v804_v8 = vsel %vm803_vm6, 1, %v15690_v33 }
 0x17d   : > { %v9588_v32 = vsub.s32 %v1438_v63, %v1441_v30  ;;  %v782_v49 = vsel %vm781_vm10, 1, %v15690_v33  ;;  %v798_v31 = vmul.u32 %v794_v1, %v770_v35  ;;  %vm807_vm3 = vc.u32 %v9577_v21, %v15409_v59 }
 0x17e   : > { %v997_v54 = vxor.u32 2147483648, %v996_v29  ;;  %v1306_v46 = vmul.f32 %v1305_v12, %v1303_v7  ;;  %v776_v41 = vmul.u32 %v772_v62, %v770_v35  ;;  %vm785_vm12 = vc.u32 %v783_v61, %v779_v38  ;;  %v15768_v38 = vld [vmem:[#allocation21_spill] sm:$0xff] }
 0x17f   : > { %vm1753_vm14 = vcmp.lt.s32.totalorder %v9581_v40, 0  ;;  %v1754_v60 = vsub.s32 0, %v9581_v40  ;;  %v679_v45 = vsub.s32 4294967266, %v9584_v44  ;;  %v806_v43 = vadd.s32 %v804_v8, %v798_v31 }
 0x180   : > { %v1635_v63 = vmul.f32 %v1634_v58, %v9517_v2  ;;  %v784_v56 = vadd.s32 %v782_v49, %v776_v41  ;;  %v808_v1 = vsel %vm807_vm3, 1, %v15690_v33  ;;  %v1624_v0 = vmul.f32 -0.001358992, %v9517_v2 }
 0x181   : > { %vm877_vm15 = vcmp.lt.s32.totalorder %v15767_v13, 0  ;;  %v1620_v35 = vsel %vm1497_vm8, %v1619_v28, %v15766_v47  ;;  %v1444_v62 = vsub.s32 0, %v9588_v32  ;;  %v786_v30 = vsel %vm785_vm12, 1, %v15690_v33 }
 0x182   : > { %v998_v7 = vsel %vm877_vm15, %v997_v54, %v996_v29  ;;  %v1307_v61 = vxor.u32 2147483648, %v1306_v46  ;;  %vm1443_vm5 = vcmp.lt.s32.totalorder %v9588_v32, 0  ;;  %v1755_v12 = vsel %vm1753_vm14, %v1754_v60, %v9581_v40 }
 0x183   : > { %vm1187_vm2 = vcmp.lt.s32.totalorder %v15768_v38, 0  ;;  %v680_v8 = vadd.s32 127, %v679_v45  ;;  %v810_v47 = vadd.s32 %v808_v1, %v806_v43  ;;  %v1636_v28 = vadd.f32 1.0, %v1635_v63 }
 0x184   : > { %v788_v49 = vadd.s32 %v786_v30, %v784_v56  ;;  %v1622_v31 = vsel %vm9418_vm13, 0, %v1620_v35  ;;  %v1625_v41 = vadd.f32 0.041655596, %v1624_v0  ;;  %v15769_v29 = vand.u32 2147483647, %v15768_v38 }
 0x185   : > { %v1445_v58 = vsel %vm1443_vm5, %v1444_v62, %v9588_v32  ;;  %v675_v60 = vsub.s32 32, %v9584_v44  ;;  %v800_v59 = vshrl.u32 %v9549_v53, 16  ;;  %v15772_v45 = vand.u32 2147483647, %v15767_v13 }
 0x186   : > { %vm9618_vm8 = vcmp.le.f32.partialorder %v15769_v29, 0.7853982  ;;  %v1756_v5 = vclz %v1755_v12  ;;  %v1308_v63 = vsel %vm1187_vm2, %v1307_v61, %v1306_v46  ;;  %v778_v56 = vshrl.u32 %v9553_v52, 16  ;;  %v9639_v12 = vpop.permute.xlu0 %243 }
 0x187   : > { %vm9627_vm0 = vcmp.le.f32.partialorder %v15772_v45, 0.7853982  ;;  %v1626_v1 = vmul.f32 %v1625_v41, %v9517_v2  ;;  %v659_v0 = vadd.s32 %v9361_v36, %v9343_v50  ;;  %v681_v35 = vshll.u32 %v680_v8, 23 }
 0x188   : > { %v811_v62 = vadd.s32 %v810_v47, %v800_v59  ;;  %v1639_v53 = vadd.s32 3, %v1622_v31  ;;  %v1637_v30 = vmul.f32 %v1636_v28, %v9470_v57  ;;  %v1446_v29 = vclz %v1445_v58 }
 0x189   : > { %v789_v45 = vadd.s32 %v788_v49, %v778_v56  ;;  %v802_v33 = vshrl.u32 %v9569_v55, 16  ;;  %v677_v46 = vshrl.u32 %v659_v0, %v675_v60  ;;  %v314_v52 = vmul.f32 %v8361_v14, %v9639_v12 }
 0x18a   : > { %v416_v50 = vmul.f32 %v8363_v15, %v9641_v34  ;;  %v1627_v36 = vadd.f32 -0.4999988, %v1626_v1  ;;  %v7846_v59 = vadd.s32 4294967294, %v1756_v5  ;;  %v9650_v57 = vsel %vm9618_vm8, %v15768_v38, %v1308_v63 }
 0x18b   : > { %v757_v58 = vsel %vm755_vm7, %v9464_v26, 2102212464  ;;  %v780_v61 = vshrl.u32 %v9574_v11, 16  ;;  %v676_v8 = vshll.u32 %v9493_v39, %v9584_v44  ;;  %v682_v47 = vor.u32 4788187, %v681_v35 }
 0x18c   : > { %v812_v28 = vadd.s32 %v811_v62, %v802_v33  ;;  %v1640_v49 = vand.u32 3, %v1639_v53  ;;  %v736_v31 = vshrl.u32 %v15692_v3, %v9399_v48  ;;  %v1628_v60 = vmul.f32 %v1627_v36, %v9517_v2 }
 0x18d   : > { %v9660_v41 = vadd.s32 %v789_v45, %v780_v61  ;;  %v1643_v5 = vxor.u32 2147483648, %v1637_v30  ;;  %v9665_v63 = vmul.f32 %v9650_v57, %v9650_v57  ;;  %v7840_v26 = vadd.s32 4294967294, %v1446_v29 }
 0x18e   : > { %v678_v11 = vor.u32 %v677_v46, %v676_v8  ;;  %v9667_v56 = vadd.f32 %v416_v50, %v314_v52  ;;  %v756_v33 = vsel %vm752_vm4, %v736_v31, %v9460_v23  ;;  %v758_v48 = vsel %vm754_vm1, %v9462_v9, %v757_v58 }
 0x18f   : > { %v15776_v39 = vshll.u32 %v9569_v55, 16  ;;  %v1629_v44 = vadd.f32 1.0, %v1628_v60  ;;  %v9683_v1 = vsel %vm9627_vm0, %v15767_v13, %v998_v7  ;;  %v683_v0 = vand.u32 2147483647, %v682_v47 }
 0x190   : > { %15775 = vst [vmem:[#allocation35_spill] sm:$0xff] %v9667_v56  ;;  %v816_v35 = vadd.s32 1, %v812_v28  ;;  %vm1642_vm13 = vcmp.eq.s32.totalorder %v1640_v49, 0  ;;  %vm7847_vm7 = vcmp.lt.s32.totalorder %v7846_v59, 0  ;;  %v1321_v55 = vmul.f32 -0.00019511016, %v9665_v63 }
 0x191   : > { %v9678_v2 = vadd.s32 %v9577_v21, %v15776_v39  ;;  %v1644_v23 = vsel %vm1642_vm13, %v1629_v44, %v1643_v5  ;;  %v1646_v9 = vxor.u32 2147483648, %v1629_v44  ;;  %v685_v62 = vcvt.s32.f32 %v678_v11 }
 0x192   : > { %v759_v21 = vsel %vm753_vm11, %v756_v33, %v758_v48  ;;  %vm1645_vm1 = vcmp.eq.s32.totalorder %v1640_v49, 2  ;;  %vm1133_vm9 = vcmp.lt.s32.totalorder %v9572_v10, 0  ;;  %vm7841_vm6 = vcmp.lt.s32.totalorder %v7840_v26, 0 }
 0x193   : > { %vm815_vm4 = vc.u32 %v9660_v41, %v9678_v2  ;;  %vm1641_vm10 = vcmp.lt.s32.totalorder %v1640_v49, 2  ;;  %v1647_v7 = vsel %vm1645_vm1, %v1646_v9, %v1637_v30  ;;  %v686_v53 = vmul.f32 %v685_v62, %v683_v0 }
 0x194   : > { %v817_v29 = vsel %vm815_vm4, %v816_v35, %v812_v28  ;;  %vm1638_vm3 = vweird.f32 %v15753_v20  ;;  %v1648_v45 = vsel %vm1641_vm10, %v1644_v23, %v1647_v7  ;;  %v9694_v46 = vmul.f32 %v9683_v1, %v9683_v1 }
 0x195   : > { %v1759_v52 = vsel %vm7847_vm7, 0, %v7846_v59  ;;  %v813_v18 = vmul.u32 %v9534_v24, %v759_v21  ;;  %v1649_v50 = vsel %vm1638_vm3, nan, %v1648_v45  ;;  %v15777_v36 = vsub.s32 0, %v9572_v10 }
 0x196   : > { %v1322_v61 = vadd.f32 0.008332121, %v1321_v55  ;;  %v1449_v30 = vsel %vm7841_vm6, 0, %v7840_v26  ;;  %v9701_v8 = vand.u32 4294901760, %v1649_v50  ;;  %v1764_v20 = vsub.s32 4294967266, %v1759_v52  ;;  %v15778_v26 = vld [vmem:[#allocation28_spill] sm:$0xff] }
 0x197   : > { %v1135_v58 = vsel %vm1133_vm9, %v15777_v36, %v9572_v10  ;;  %v818_v47 = vadd.s32 %v817_v29, %v813_v18  ;;  %v687_v28 = vxor.u32 2147483648, %v686_v53  ;;  %v1314_v24 = vmul.f32 -0.001358992, %v9665_v63 }
 0x198   : > { %5571 = vmatpush.msra.mxu0 %v9701_v8  ;;  %5722 = vmatpush.msra.mxu3 %v9701_v8  ;;  %v9706_v59 = vsub.f32 %v1649_v50, %v9701_v8  ;;  %v1011_v49 = vmul.f32 -0.00019511016, %v9694_v46  ;;  %v1136_v31 = vclz %v1135_v58  ;;  %v1454_v60 = vsub.s32 4294967266, %v1449_v30 }
 0x199   : > { %v1323_v5 = vmul.f32 %v1322_v61, %v9665_v63  ;;  %vm567_vm11 = vcmp.lt.s32.totalorder %v15778_v26, 0  ;;  %v819_v11 = vadd.s32 536870912, %v818_v47  ;;  %v1765_v33 = vadd.s32 127, %v1764_v20 }
 0x19a   : > { %5678 = vmatpush.msra.mxu2 %v9706_v59  ;;  %v688_v48 = vsel %vm567_vm11, %v687_v28, %v686_v53  ;;  %v1315_v39 = vadd.f32 0.041655596, %v1314_v24  ;;  %v1012_v44 = vadd.f32 0.008332121, %v1011_v49  ;;  %v7834_v0 = vadd.s32 4294967294, %v1136_v31 }
 0x19b   : > { %v1455_v35 = vadd.s32 127, %v1454_v60  ;;  %v1760_v23 = vsub.s32 32, %v1759_v52  ;;  %v1324_v9 = vadd.f32 -0.16666654, %v1323_v5  ;;  %v15779_v55 = vand.u32 2147483647, %v15778_v26 }
 0x19c   : > { %v1309_v21 = vsub.s32 4, %v9313_v4  ;;  %v1450_v7 = vsub.s32 32, %v1449_v30  ;;  %v9727_v53 = vshrl.u32 %v819_v11, 30  ;;  %v1744_v45 = vadd.s32 %v9411_v22, %v9392_v19 }
 0x19d   : > { %vm9717_vm12 = vcmp.le.f32.partialorder %v15779_v55, 0.7853982  ;;  %v1766_v18 = vshll.u32 %v1765_v33, 23  ;;  %v1316_v50 = vmul.f32 %v1315_v39, %v9665_v63  ;;  %vm7835_vm14 = vcmp.lt.s32.totalorder %v7834_v0, 0  ;;  %v15782_v33 = vld [vmem:[#allocation14_spill] sm:$0xff]  ;;  %v15783_v39 = vld [vmem:[#allocation13_spill] sm:$0xff] }
 0x19e   : > { %v9725_v29 = vsel %vm9717_vm12, %v15778_v26, %v688_v48  ;;  %v1434_v36 = vadd.s32 %v9489_v51, %v9455_v17  ;;  %v1456_v58 = vshll.u32 %v1455_v35, 23  ;;  %v1762_v61 = vshrl.u32 %v1744_v45, %v1760_v23 }
 0x19f   : > { %v1325_v20 = vmul.f32 %v1324_v9, %v9665_v63  ;;  %v9737_v28 = vmul.f32 %v9725_v29, %v9725_v29  ;;  %v1013_v24 = vmul.f32 %v1012_v44, %v9694_v46  ;;  %v1310_v19 = vsel %vm1187_vm2, %v1309_v21, %v9313_v4  ;;  %v15784_v21 = vld [vmem:[#allocation26_spill] sm:$0xff] }
 0x1a0   : > { %v1452_v22 = vshrl.u32 %v1434_v36, %v1450_v7  ;;  %v821_v49 = vshll.u32 %v9727_v53, 30  ;;  %v1139_v31 = vsel %vm7835_vm14, 0, %v7834_v0  ;;  %v1761_v17 = vshll.u32 %v9581_v40, %v1759_v52 }
 0x1a1   : > { %v1767_v51 = vor.u32 4788187, %v1766_v18  ;;  %v1317_v60 = vadd.f32 -0.4999988, %v1316_v50  ;;  %v1451_v5 = vshll.u32 %v9588_v32, %v1449_v30  ;;  %v1457_v11 = vor.u32 4788187, %v1456_v58 }
 0x1a2   : > { %v417_v48 = vmul.f32 %v15782_v33, %v9240_v6  ;;  %v315_v44 = vmul.f32 %v15783_v39, %v9251_v42  ;;  %v1763_v35 = vor.u32 %v1762_v61, %v1761_v17  ;;  %v1326_v23 = vadd.f32 1.0, %v1325_v20  ;;  %v15785_v6 = vld [vmem:[#allocation27_spill] sm:$0xff]  ;;  %v9759_v61 = vpop.permute.xlu0 %494 }
 0x1a3   : > { %v701_v4 = vmul.f32 -0.00019511016, %v9737_v28  ;;  %v1312_v0 = vsel %vm9618_vm8, 0, %v1310_v19  ;;  %v1014_v9 = vadd.f32 -0.16666654, %v1013_v24  ;;  %v1453_v40 = vor.u32 %v1452_v22, %v1451_v5  ;;  %15786 = vst [vmem:[#allocation30_spill] sm:$0xff] %v9759_v61 }
 0x1a4   : > { %v9753_v52 = vsub.s32 %v818_v47, %v821_v49  ;;  %v1140_v55 = vsub.s32 32, %v1139_v31  ;;  %v1768_v32 = vand.u32 2147483647, %v1767_v51  ;;  %v1318_v30 = vmul.f32 %v1317_v60, %v9665_v63  ;;  %v15787_v20 = vld [vmem:[#allocation23_spill] sm:$0xff] }
 0x1a5   : > { %v1124_v7 = vadd.s32 %v15785_v6, %v15784_v21  ;;  %v1458_v45 = vand.u32 2147483647, %v1457_v11  ;;  %v449_v42 = vadd.f32 %v417_v48, %v315_v44  ;;  %v1329_v18 = vadd.s32 3, %v1312_v0 }
 0x1a6   : > { %v1144_v50 = vsub.s32 4294967266, %v1139_v31  ;;  %v1770_v36 = vcvt.s32.f32 %v1763_v35  ;;  %v1327_v58 = vmul.f32 %v1326_v23, %v9650_v57  ;;  %v702_v54 = vadd.f32 0.008332121, %v701_v4  ;;  %v15789_v4 = vld [vmem:[#allocation22_spill] sm:$0xff] }
 0x1a7   : > { %v999_v47 = vsub.s32 4, %v15787_v20  ;;  %v1015_v24 = vmul.f32 %v1014_v9, %v9694_v46  ;;  %v1460_v19 = vcvt.s32.f32 %v1453_v40  ;;  %v824_v63 = vsub.s32 0, %v9753_v52 }
 0x1a8   : > { %v1142_v22 = vshrl.u32 %v1124_v7, %v1140_v55  ;;  %v1771_v49 = vmul.f32 %v1770_v36, %v1768_v32  ;;  %vm823_vm5 = vcmp.lt.s32.totalorder %v9753_v52, 0  ;;  %v1319_v17 = vadd.f32 1.0, %v1318_v30 }
 0x1a9   : > { %v1461_v51 = vmul.f32 %v1460_v19, %v1458_v45  ;;  %v9766_v60 = vadd.f32 %v9759_v61, %v449_v42  ;;  %v1330_v57 = vand.u32 3, %v1329_v18  ;;  %v1141_v5 = vshll.u32 %v9572_v10, %v1139_v31 }
 0x1aa   : > { %v9769_v11 = vadd.s32 127, %v1144_v50  ;;  %v703_v48 = vmul.f32 %v702_v54, %v9737_v28  ;;  %v1333_v44 = vxor.u32 2147483648, %v1327_v58  ;;  %v1000_v35 = vsel %vm877_vm15, %v999_v47, %v15787_v20  ;;  %v15793_v20 = vld [vmem:[#allocation31_spill] sm:$0xff] }
 0x1ab   : > { %15788 = vst [vmem:[#allocation37_spill] sm:$0xff] %v9766_v60  ;;  %v1016_v23 = vadd.f32 1.0, %v1015_v24  ;;  %vm1652_vm2 = vcmp.lt.s32.totalorder %v15789_v4, 0  ;;  %v825_v0 = vsel %vm823_vm5, %v824_v63, %v9753_v52  ;;  %v9777_v9 = vor.u32 %v1142_v22, %v1141_v5 }
 0x1ac   : > { %v15790_v40 = vand.u32 2147483647, %v15789_v4  ;;  %v1772_v31 = vxor.u32 2147483648, %v1771_v49  ;;  %v1336_v55 = vxor.u32 2147483648, %v1319_v17  ;;  %v1462_v32 = vxor.u32 2147483648, %v1461_v51 }
 0x1ad   : > { %v2428_v30 = vand.u32 2139095040, %v9766_v60  ;;  %vm1332_vm13 = vcmp.eq.s32.totalorder %v1330_v57, 0  ;;  %v15412_v21 = vand.u32 4294901760, %v9706_v59  ;;  %v704_v7 = vadd.f32 -0.16666654, %v703_v48 }
 0x1ae   : > { %vm9781_vm8 = vcmp.le.f32.partialorder %v15790_v40, 0.7853982  ;;  %v826_v45 = vclz %v825_v0  ;;  %v1334_v42 = vsel %vm1332_vm13, %v1319_v17, %v1333_v44  ;;  %v9789_v18 = vmul.f32 %v1016_v23, %v9683_v1 }
 0x1af   : > { %v1774_v50 = vsub.s32 4, %v9555_v25  ;;  %v689_v36 = vsub.s32 4, %v9438_v37  ;;  %vm1335_vm15 = vcmp.eq.s32.totalorder %v1330_v57, 2  ;;  %v1773_v54 = vsel %vm1652_vm2, %v1772_v31, %v1771_v49 }
 0x1b0   : > { %vm1342_vm7 = vcmp.lt.s32.totalorder %v15793_v20, 0  ;;  %vm1331_vm4 = vcmp.lt.s32.totalorder %v1330_v57, 2  ;;  %v1337_v47 = vsel %vm1335_vm15, %v1336_v55, %v1327_v58  ;;  %v2429_v19 = vshrl.u32 %v2428_v30, 23  ;;  %v9808_v57 = vpop.permute.xlu2 %498 }
 0x1b1   : > { %v1463_v24 = vsel %vm1342_vm7, %v1462_v32, %v1461_v51  ;;  %v1338_v63 = vsel %vm1331_vm4, %v1334_v42, %v1337_v47  ;;  %v5626_v1 = vsub.f32 %v9706_v59, %v15412_v21  ;;  %v15794_v22 = vand.u32 2147483647, %v15793_v20  ;;  %15797 = vst [vmem:[#allocation36_spill] sm:$0xff] %v9808_v57  ;;  %v9856_v47 = vld [vmem:[#allocation5 + $0x80] sm:$0xff] }
 0x1b2   : > { %v705_v49 = vmul.f32 %v704_v7, %v9737_v28  ;;  %v7828_v5 = vadd.s32 4294967294, %v826_v45  ;;  %v1002_v58 = vsel %vm9627_vm0, 0, %v1000_v35  ;;  %v9815_v51 = vsel %vm1652_vm2, %v1774_v50, %v9555_v25 }
 0x1b3   : > { %vm9803_vm1 = vcmp.le.f32.partialorder %v15794_v22, 0.7853982  ;;  %v1464_v48 = vsub.s32 4, %v9560_v27  ;;  %v690_v44 = vsel %vm567_vm11, %v689_v36, %v9438_v37  ;;  %vm1328_vm9 = vweird.f32 %v15768_v38 }
 0x1b4   : > { %v9825_v23 = vsel %vm9781_vm8, %v15789_v4, %v1773_v54  ;;  %v9830_v43 = vsel %vm9803_vm1, %v15793_v20, %v1463_v24  ;;  %v1339_v25 = vsel %vm1328_vm9, nan, %v1338_v63  ;;  %v5627_v35 = vand.u32 4294901760, %v5626_v1  ;;  %v9866_v1 = vpop.permute.xlu1 %238 }
 0x1b5   : > { %v7860_v0 = vadd.s32 4294967169, %v2429_v19  ;;  %v9832_v40 = vand.u32 4294901760, %v1339_v25  ;;  %v1004_v31 = vmul.f32 -0.001358992, %v9694_v46  ;;  %v1019_v37 = vadd.s32 3, %v1002_v58 }
 0x1b6   : > { %v706_v55 = vadd.f32 1.0, %v705_v49  ;;  %vm7829_vm0 = vcmp.lt.s32.totalorder %v7828_v5, 0  ;;  %5628 = vmatpush.msra.mxu1 %v5627_v35  ;;  %v692_v38 = vsel %vm9717_vm12, 0, %v690_v44  ;;  %v694_v32 = vmul.f32 -0.001358992, %v9737_v28 }
 0x1b7   : > { %v9840_v30 = vmul.f32 %v9825_v23, %v9825_v23  ;;  %v9845_v7 = vsel %vm1342_vm7, %v1464_v48, %v9560_v27  ;;  %5573 = vmatpush.msra.mxu0 %v9832_v40  ;;  %5724 = vmatpush.msra.mxu3 %v9832_v40  ;;  %v1005_v45 = vadd.f32 0.041655596, %v1004_v31  ;;  %v9850_v42 = vsub.f32 %v1339_v25, %v9832_v40  ;;  %v15798_v27 = vld [vmem:[#allocation41_spill] sm:$0xff] }
 0x1b8   : > { %v9854_v62 = vmul.f32 %v9830_v43, %v9830_v43  ;;  %v1020_v50 = vand.u32 3, %v1019_v37  ;;  %v695_v36 = vadd.f32 0.041655596, %v694_v32  ;;  %v709_v54 = vadd.s32 3, %v692_v38 }
 0x1b9   : > { %v9858_v24 = vsel %vm7829_vm0, 0, %v7828_v5  ;;  %v9862_v19 = vmul.f32 %v15782_v33, %v15798_v27  ;;  %v9864_v63 = vadd.s32 1, %v7860_v0  ;;  %v1006_v22 = vmul.f32 %v1005_v45, %v9694_v46  ;;  %5681 = vmatpush.msra.mxu2 %v9850_v42  ;;  %v9875_v5 = vpop.permute.xlu2 %352 }
 0x1ba   : > { %v707_v49 = vmul.f32 %v706_v55, %v9725_v29  ;;  %v9873_v58 = vmul.f32 %v8361_v14, %v9866_v1  ;;  %v696_v48 = vmul.f32 %v695_v36, %v9737_v28  ;;  %vm15592_vm6 = vcmask 261120  }
 0x1bb   : > { %v9880_v44 = vmul.f32 %v8363_v15, %v9875_v5  ;;  %v1007_v25 = vadd.f32 -0.4999988, %v1006_v22  ;;  %v5550_v35 = vsel %vm15592_vm6, %v9856_v47, 0  ;;  %v1779_v0 = vmul.f32 -0.001358992, %v9840_v30 }
 0x1bc   : > { %vm1018_vm10 = vweird.f32 %v15767_v13  ;;  %vm1021_vm3 = vcmp.lt.s32.totalorder %v1020_v50, 2  ;;  %v1023_v29 = vxor.u32 2147483648, %v9789_v18  ;;  %v697_v31 = vadd.f32 -0.4999988, %v696_v48 }
 0x1bd   : > { %v710_v37 = vand.u32 3, %v709_v54  ;;  %v1008_v55 = vmul.f32 %v1007_v25, %v9694_v46  ;;  %vm708_vm11 = vweird.f32 %v15778_v26  ;;  %v9889_v38 = vand.u32 4294901760, %v5550_v35 }
 0x1be   : > { %v1780_v32 = vadd.f32 0.041655596, %v1779_v0  ;;  %v1786_v45 = vmul.f32 -0.00019511016, %v9840_v30  ;;  %vm1022_vm12 = vcmp.eq.s32.totalorder %v1020_v50, 0  ;;  %v698_v36 = vmul.f32 %v697_v31, %v9737_v28 }
 0x1bf   : > { %v713_v27 = vxor.u32 2147483648, %v707_v49  ;;  %v1009_v21 = vadd.f32 1.0, %v1008_v55  ;;  %v9895_v6 = vsub.f32 %v5550_v35, %v9889_v38  ;;  %vm1025_vm14 = vcmp.eq.s32.totalorder %v1020_v50, 2 }
 0x1c0   : > { %v1781_v54 = vmul.f32 %v1780_v32, %v9840_v30  ;;  %v1787_v46 = vadd.f32 0.008332121, %v1786_v45  ;;  %v699_v48 = vadd.f32 1.0, %v698_v36  ;;  %vm712_vm5 = vcmp.eq.s32.totalorder %v710_v37, 0 }
 0x1c1   : > { %15799 = vst [vmem:[#allocation18_spill] sm:$0xff] %v9895_v6  ;;  %v1777_v25 = vsel %vm9781_vm8, 0, %v9815_v51  ;;  %v1024_v0 = vsel %vm1022_vm12, %v1009_v21, %v1023_v29  ;;  %v1026_v56 = vxor.u32 2147483648, %v1009_v21  ;;  %v9902_v28 = vand.u32 4294901760, %v9895_v6 }
 0x1c2   : > { %v1782_v31 = vadd.f32 -0.4999988, %v1781_v54  ;;  %v714_v55 = vsel %vm712_vm5, %v699_v48, %v713_v27  ;;  %v716_v22 = vxor.u32 2147483648, %v699_v48  ;;  %v1788_v35 = vmul.f32 %v1787_v46, %v9840_v30 }
 0x1c3   : > { %15800 = vst [vmem:[#allocation19_spill] sm:$0xff] %v9902_v28  ;;  %v15801_v32 = vand.u32 4294901760, %v9850_v42  ;;  %v1027_v36 = vsel %vm1025_vm14, %v1026_v56, %v9789_v18  ;;  %vm715_vm2 = vcmp.eq.s32.totalorder %v710_v37, 2  ;;  %v5581_v10 = vsub.f32 %v9895_v6, %v9902_v28 }
 0x1c4   : > { %v1783_v21 = vmul.f32 %v1782_v31, %v9840_v30  ;;  %v1028_v51 = vsel %vm1021_vm3, %v1024_v0, %v1027_v36  ;;  %vm711_vm8 = vcmp.lt.s32.totalorder %v710_v37, 2  ;;  %v717_v29 = vsel %vm715_vm2, %v716_v22, %v707_v49 }
 0x1c5   : > { %v5632_v45 = vsub.f32 %v9850_v42, %v15801_v32  ;;  %v1789_v27 = vadd.f32 -0.16666654, %v1788_v35  ;;  %v1029_v54 = vsel %vm1018_vm10, nan, %v1028_v51  ;;  %v718_v46 = vsel %vm711_vm8, %v714_v55, %v717_v29 }
 0x1c6   : > { %v1784_v48 = vadd.f32 1.0, %v1783_v21  ;;  %v1794_v61 = vadd.s32 3, %v1777_v25  ;;  %v9915_v32 = vand.u32 4294901760, %v1029_v54  ;;  %v719_v56 = vsel %vm708_vm11, nan, %v718_v46 }
 0x1c7   : > { %v1790_v18 = vmul.f32 %v1789_v27, %v9840_v30  ;;  %v5633_v14 = vand.u32 4294901760, %v5632_v45  ;;  %v9920_v31 = vand.u32 4294901760, %v719_v56  ;;  %v9922_v50 = vand.u32 4294901760, %v5581_v10 }
 0x1c8   : > { %v1469_v49 = vmul.f32 -0.001358992, %v9854_v62  ;;  %v1476_v13 = vmul.f32 -0.00019511016, %v9854_v62  ;;  %v834_v37 = vsub.s32 4294967266, %v9858_v24  ;;  %v317_v22 = vmul.f32 %v15783_v39, %v9187_v16  ;;  %5575 = vmatpush.msra.mxu0 %v9915_v32  ;;  %5726 = vmatpush.msra.mxu3 %v9915_v32 }
 0x1c9   : > { %v9932_v26 = vsub.f32 %v1029_v54, %v9915_v32  ;;  %v1791_v30 = vadd.f32 1.0, %v1790_v18  ;;  %vm2436_vm13 = vcmp.gt.s32.totalorder %v9864_v63, 0  ;;  %v1795_v25 = vand.u32 3, %v1794_v61  ;;  %5634 = vmatpush.msra.mxu1 %v5633_v14 }
 0x1ca   : > { %v1470_v0 = vadd.f32 0.041655596, %v1469_v49  ;;  %v1477_v55 = vadd.f32 0.008332121, %v1476_v13  ;;  %5577 = vmatpush.msra.mxu0 %v9920_v31  ;;  %v1801_v35 = vxor.u32 2147483648, %v1784_v48  ;;  %v9939_v45 = vsub.f32 %v719_v56, %v9920_v31  ;;  %5728 = vmatpush.msra.mxu3 %v9920_v31 }
 0x1cb   : > { %5684 = vmatpush.msra.mxu2 %v9932_v26  ;;  %v1792_v16 = vmul.f32 %v1791_v30, %v9825_v23  ;;  %v9943_v36 = vadd.f32 %v9880_v44, %v9873_v58  ;;  %v15803_v10 = vshll.u32 %v9769_v11, 23  ;;  %5583 = vmatmul.f32.vlgmr.msra.gmra.mxu0 %v9922_v50  ;;  %v1467_v14 = vsel %vm9803_vm1, 0, %v9845_v7 }
 0x1cc   : > { %v1471_v23 = vmul.f32 %v1470_v0, %v9854_v62  ;;  %v1478_v21 = vmul.f32 %v1477_v55, %v9854_v62  ;;  %v835_v51 = vadd.s32 127, %v834_v37  ;;  %v2437_v58 = vsel %vm2436_vm13, %v9864_v63, 0  ;;  %5732 = vmatmul.f32.vlgmr.msra.gmra.mxu3 %v9902_v28 }
 0x1cd   : > { %15802 = vst [vmem:[#allocation20_spill] sm:$0xff] %v9943_v36  ;;  %v1147_v61 = vor.u32 4788187, %v15803_v10  ;;  %v451_v11 = vadd.f32 %v9862_v19, %v317_v22  ;;  %v15804_v44 = vand.u32 4294901760, %v9706_v59  ;;  %v1798_v29 = vxor.u32 2147483648, %v1792_v16  ;;  %5687 = vmatpush.msra.mxu2 %v9939_v45 }
 0x1ce   : > { %vm1797_vm15 = vcmp.eq.s32.totalorder %v1795_v25, 0  ;;  %vm1800_vm7 = vcmp.eq.s32.totalorder %v1795_v25, 2  ;;  %5690 = vmatmul.f32.vlgmr.msra.gmra.mxu2 %v9895_v6  ;;  %v1472_v17 = vadd.f32 -0.4999988, %v1471_v23  ;;  %v1479_v7 = vadd.f32 -0.16666654, %v1478_v21 }
 0x1cf   : > { %5769 = vmatpush.msrb.mxu0 %v15804_v44  ;;  %vm1796_vm4 = vcmp.lt.s32.totalorder %v1795_v25, 2  ;;  %v1799_v27 = vsel %vm1797_vm15, %v1784_v48, %v1798_v29  ;;  %v1802_v54 = vsel %vm1800_vm7, %v1801_v35, %v1792_v16  ;;  %v15805_v63 = vand.u32 4294901760, %v9850_v42 }
 0x1d0   : > { %v1484_v19 = vadd.s32 3, %v1467_v14  ;;  %vm1793_vm1 = vweird.f32 %v15789_v4  ;;  %v1803_v59 = vsel %vm1796_vm4, %v1799_v27, %v1802_v54  ;;  %v1473_v46 = vmul.f32 %v1472_v17, %v9854_v62 }
 0x1d1   : > { %5773 = vmatpush.msrb.mxu0 %v15805_v63  ;;  %v1480_v56 = vmul.f32 %v1479_v7, %v9854_v62  ;;  %v1148_v18 = vand.u32 2147483647, %v1147_v61  ;;  %v1150_v49 = vcvt.s32.f32 %v9777_v9  ;;  %v830_v13 = vsub.s32 32, %v9858_v24 }
 0x1d2   : > { %v1804_v37 = vsel %vm1793_vm1, nan, %v1803_v59  ;;  %v2439_v22 = vand.u32 31, %v2437_v58  ;;  %v1474_v30 = vadd.f32 1.0, %v1473_v46  ;;  %v814_v25 = vadd.s32 %v9678_v2, %v9660_v41 }
 0x1d3   : > { %v9970_v48 = vand.u32 4294901760, %v1804_v37  ;;  %v1481_v42 = vadd.f32 1.0, %v1480_v56  ;;  %v836_v4 = vshll.u32 %v835_v51, 23  ;;  %v9975_v0 = vadd.f32 %v9808_v57, %v451_v11 }
 0x1d4   : > { %v1485_v55 = vand.u32 3, %v1484_v19  ;;  %v1491_v16 = vxor.u32 2147483648, %v1474_v30  ;;  %v1151_v35 = vmul.f32 %v1150_v49, %v1148_v18  ;;  %v832_v10 = vshrl.u32 %v814_v25, %v830_v13 }
 0x1d5   : > { %15806 = vst [vmem:[#allocation25_spill] sm:$0xff] %v9975_v0  ;;  %v9978_v62 = vsub.f32 %v1804_v37, %v9970_v48  ;;  %5849 = vmatpush.msrb.mxu2 %v9970_v48  ;;  %v1482_v9 = vmul.f32 %v1481_v42, %v9830_v43  ;;  %v831_v61 = vshll.u32 %v9753_v52, %v9858_v24  ;;  %v9984_v14 = vsub.s32 32, %v2439_v22 }
 0x1d6   : > { %v837_v23 = vor.u32 4788187, %v836_v4  ;;  %v2738_v21 = vand.u32 2139095040, %v9975_v0  ;;  %vm1487_vm9 = vcmp.eq.s32.totalorder %v1485_v55, 0  ;;  %vm1490_vm0 = vcmp.eq.s32.totalorder %v1485_v55, 2 }
 0x1d7   : > { %v15419_v41 = vand.u32 4294901760, %v9978_v62  ;;  %v1488_v2 = vxor.u32 2147483648, %v1482_v9  ;;  %vm1486_vm10 = vcmp.lt.s32.totalorder %v1485_v55, 2  ;;  %v1492_v11 = vsel %vm1490_vm0, %v1491_v16, %v1482_v9 }
 0x1d8   : > { %v833_v44 = vor.u32 %v832_v10, %v831_v61  ;;  %vm1483_vm3 = vweird.f32 %v15793_v20  ;;  %v15807_v24 = vmov 920167782   ;;  %v15808_v17 = vmov 1326507024  }
 0x1d9   : > { %v5904_v43 = vsub.f32 %v9978_v62, %v15419_v41  ;;  %v1489_v51 = vsel %vm1487_vm9, %v1474_v30, %v1488_v2  ;;  %v2454_v29 = vshll.u32 %v15807_v24, %v2439_v22  ;;  %v2455_v7 = vshrl.u32 %v15808_v17, %v9984_v14 }
 0x1da   : > { %v1493_v52 = vsel %vm1486_vm10, %v1489_v51, %v1492_v11  ;;  %v15417_v63 = vand.u32 2147483647, %v9766_v60  ;;  %v9996_v19 = vshrl.u32 %v2437_v58, 5  ;;  %v1152_v46 = vxor.u32 2147483648, %v1151_v35 }
 0x1db   : > { %v5905_v27 = vand.u32 4294901760, %v5904_v43  ;;  %v1494_v54 = vsel %vm1483_vm3, nan, %v1493_v52  ;;  %v838_v56 = vand.u32 2147483647, %v837_v23  ;;  %v15809_v18 = vmov 2475754826  }
 0x1dc   : > { %v9998_v59 = vand.u32 4294901760, %v1494_v54  ;;  %v2445_v49 = vshll.u32 %v15809_v18, %v2439_v22  ;;  %v2739_v13 = vshrl.u32 %v2738_v21, 23  ;;  %v15810_v20 = vmov 2131351028  }
 0x1dd   : > { %5906 = vmatpush.msrb.mxu3 %v5905_v27  ;;  %v2446_v37 = vshrl.u32 %v15810_v20, %v9984_v14  ;;  %v2448_v30 = vshll.u32 %v15810_v20, %v2439_v22  ;;  %v15811_v42 = vmov 2102212464   ;;  %v840_v58 = vcvt.s32.f32 %v833_v44 }
 0x1de   : > { %v2449_v25 = vshrl.u32 %v15811_v42, %v9984_v14  ;;  %v10007_v4 = vsub.f32 %v1494_v54, %v9998_v59  ;;  %5851 = vmatpush.msrb.mxu2 %v9998_v59  ;;  %v2451_v55 = vshll.u32 %v15811_v42, %v2439_v22  ;;  %v2452_v9 = vshrl.u32 %v15807_v24, %v9984_v14 }
 0x1df   : > { %v2456_v16 = vor.u32 %v2455_v7, %v2454_v29  ;;  %v313_v10 = vmul.f32 %v15783_v39, %v9639_v12  ;;  %v2432_v61 = vand.u32 8388607, %v15417_v63  ;;  %vm2460_vm11 = vcmp.lt.s32.totalorder %v9996_v19, 4  ;;  %v15812_v7 = vld [vmem:[#allocation17_spill] sm:$0xff] }
 0x1e0   : > { %v15418_v2 = vand.u32 4294901760, %v10007_v4  ;;  %v841_v23 = vmul.f32 %v840_v58, %v838_v56  ;;  %v2442_v21 = vshll.u32 %v15692_v3, %v2439_v22  ;;  %v2443_v43 = vshrl.u32 %v15809_v18, %v9984_v14 }
 0x1e1   : > { %v7866_v51 = vadd.s32 4294967169, %v2739_v13  ;;  %v2447_v11 = vor.u32 %v2446_v37, %v2445_v49  ;;  %v2450_v44 = vor.u32 %v2449_v25, %v2448_v30  ;;  %v415_v52 = vmul.f32 %v15782_v33, %v9641_v34 }
 0x1e2   : > { %v5910_v12 = vsub.f32 %v10007_v4, %v15418_v2  ;;  %v2453_v29 = vor.u32 %v2452_v9, %v2451_v55  ;;  %vm2457_vm12 = vcmp.lt.s32.totalorder %v9996_v19, 1  ;;  %vm2459_vm14 = vcmp.lt.s32.totalorder %v9996_v19, 3 }
 0x1e3   : > { %v2470_v22 = vsel %vm2460_vm11, %v2456_v16, 1326507024  ;;  %vm1032_vm5 = vcmp.lt.s32.totalorder %v15812_v7, 0  ;;  %v2433_v27 = vor.u32 8388608, %v2432_v61  ;;  %vm2458_vm2 = vcmp.lt.s32.totalorder %v9996_v19, 2  ;;  %v10050_v16 = vpop.permute.xlu1 %490 }
 0x1e4   : > { %v5911_v54 = vand.u32 4294901760, %v5910_v12  ;;  %v1153_v56 = vsel %vm1032_vm5, %v1152_v46, %v1151_v35  ;;  %v15416_v34 = vand.u32 2147483647, %v9975_v0  ;;  %v2745_v49 = vadd.s32 1, %v7866_v51  ;;  %15816 = vst [vmem:[#allocation34_spill] sm:$0xff] %v10050_v16  ;;  %v15819_v12 = vld [vmem:[#allocation42_spill] sm:$0xff] }
 0x1e5   : > { %v2444_v13 = vor.u32 %v2443_v43, %v2442_v21  ;;  %v2469_v37 = vsel %vm2457_vm12, %v2447_v11, %v2450_v44  ;;  %v2471_v30 = vsel %vm2459_vm14, %v2453_v29, %v2470_v22  ;;  %v447_v25 = vadd.f32 %v415_v52, %v313_v10  ;;  %v15818_v43 = vld [vmem:[#allocation38_spill] sm:$0xff] }
 0x1e6   : > { %5912 = vmatpush.msrb.mxu3 %v5911_v54  ;;  %v15813_v58 = vand.u32 2147483647, %v15812_v7  ;;  %v842_v35 = vxor.u32 2147483648, %v841_v23  ;;  %v2441_v46 = vshrl.u32 %v15692_v3, %v9984_v14  ;;  %v2466_v9 = vsel %vm2460_vm11, %v2453_v29, 920167782 }
 0x1e7   : > { %v2462_v61 = vsel %vm2460_vm11, %v2450_v44, 2102212464  ;;  %v10059_v21 = vshll.u32 %v2433_v27, 8  ;;  %v1154_v51 = vsub.s32 4, %v15818_v43  ;;  %v2472_v14 = vsel %vm2458_vm2, %v2469_v37, %v2471_v30 }
 0x1e8   : > { %vm10042_vm8 = vcmp.le.f32.partialorder %v15813_v58, 0.7853982  ;;  %v2742_v52 = vand.u32 8388607, %v15416_v34  ;;  %vm2746_vm13 = vcmp.gt.s32.totalorder %v2745_v49, 0  ;;  %vm722_vm15 = vcmp.lt.s32.totalorder %v15819_v12, 0 }
 0x1e9   : > { %v10055_v10 = vsel %vm10042_vm8, %v15812_v7, %v1153_v56  ;;  %15817 = vst [vmem:[#allocation16_spill] sm:$0xff] %v10059_v21  ;;  %v2465_v29 = vsel %vm2457_vm12, %v2444_v13, %v2447_v11  ;;  %v2467_v22 = vsel %vm2459_vm14, %v2450_v44, %v2466_v9  ;;  %v10072_v27 = vadd.f32 %v10050_v16, %v447_v25 }
 0x1ea   : > { %v10076_v54 = vmul.f32 %v10055_v10, %v10055_v10  ;;  %v843_v56 = vsel %vm722_vm15, %v842_v35, %v841_v23  ;;  %v2461_v37 = vsel %vm2457_vm12, %v2441_v46, %v2444_v13  ;;  %v2463_v30 = vsel %vm2459_vm14, %v2447_v11, %v2462_v61 }
 0x1eb   : > { %15820 = vst [vmem:[#allocation33_spill] sm:$0xff] %v10072_v27  ;;  %v15821_v58 = vand.u32 2147483647, %v15819_v12  ;;  %v2474_v25 = vand.u32 65535, %v10059_v21  ;;  %v2477_v9 = vshrl.u32 %v2472_v14, 16  ;;  %v2747_v34 = vsel %vm2746_vm13, %v2745_v49, 0 }
 0x1ec   : > { %v844_v63 = vsub.s32 4, %v9727_v53  ;;  %v2468_v23 = vsel %vm2458_vm2, %v2465_v29, %v2467_v22  ;;  %v2475_v13 = vshrl.u32 %v10059_v21, 16  ;;  %v2743_v35 = vor.u32 8388608, %v2742_v52 }
 0x1ed   : > { %vm10086_vm7 = vcmp.le.f32.partialorder %v15821_v58, 0.7853982  ;;  %v10102_v46 = vsel %vm2458_vm2, %v2461_v37, %v2463_v30  ;;  %v2476_v61 = vand.u32 65535, %v2472_v14  ;;  %v2118_v49 = vand.u32 2139095040, %v10072_v27 }
 0x1ee   : > { %v10098_v11 = vsel %vm10086_vm7, %v15819_v12, %v843_v56  ;;  %15824 = vst [vmem:[#allocation32_spill] sm:$0xff] %v10102_v46  ;;  %v1155_v58 = vsel %vm1032_vm5, %v1154_v51, %v15818_v43  ;;  %v2498_v29 = vand.u32 65535, %v2468_v23  ;;  %v2749_v22 = vand.u32 31, %v2747_v34 }
 0x1ef   : > { %v10108_v2 = vmul.u32 %v2477_v9, %v2474_v25  ;;  %v2499_v52 = vshrl.u32 %v2468_v23, 16  ;;  %v5637_v41 = vand.u32 4294901760, %v9932_v26  ;;  %v1159_v56 = vmul.f32 -0.001358992, %v10076_v54 }
 0x1f0   : > { %v10115_v19 = vsel %vm722_vm15, %v844_v63, %v9727_v53  ;;  %v10119_v14 = vmul.f32 %v10098_v11, %v10098_v11  ;;  %v10123_v51 = vshll.u32 %v2743_v35, 8  ;;  %v10125_v37 = vmul.u32 %v2476_v61, %v2474_v25 }
 0x1f1   : > { %v10127_v30 = vmul.u32 %v2476_v61, %v2475_v13  ;;  %v2119_v23 = vshrl.u32 %v2118_v49, 23  ;;  %5777 = vmatpush.msrb.mxu0 %v5637_v41  ;;  %v5638_v57 = vsub.f32 %v9932_v26, %v5637_v41  ;;  %v10130_v36 = vmul.u32 %v2477_v9, %v2475_v13 }
 0x1f2   : > { %v10132_v53 = vmul.u32 %v2498_v29, %v2474_v25  ;;  %v10134_v63 = vsub.s32 32, %v2749_v22  ;;  %v1160_v16 = vadd.f32 0.041655596, %v1159_v56  ;;  %v10137_v43 = vmul.u32 %v2499_v52, %v2474_v25 }
 0x1f3   : > { %v10139_v35 = vmul.u32 %v2498_v29, %v2475_v13  ;;  %v10141_v0 = vmul.u32 %v2499_v52, %v2475_v13  ;;  %v10143_v61 = vshrl.u32 %v2747_v34, 5  ;;  %v10146_v49 = vand.u32 65535, %v10123_v51 }
 0x1f4   : > { %15825 = vst [vmem:[#allocation24_spill] sm:$0xff] %v10132_v53  ;;  %v5639_v26 = vand.u32 4294901760, %v5638_v57  ;;  %v1161_v41 = vmul.f32 %v1160_v16, %v10076_v54  ;;  %v10150_v9 = vshll.u32 %v15692_v3, %v2749_v22  ;;  %v2755_v56 = vshll.u32 %v15809_v18, %v2749_v22 }
 0x1f5   : > { %15826 = vst [vmem:[#allocation39_spill] sm:$0xff] %v10139_v35  ;;  %v2758_v25 = vshll.u32 %v15810_v20, %v2749_v22  ;;  %v7854_v15 = vadd.s32 4294967169, %v2119_v23  ;;  %v2756_v13 = vshrl.u32 %v15810_v20, %v10134_v63  ;;  %v2759_v34 = vshrl.u32 %v15811_v42, %v10134_v63 }
 0x1f6   : > { %15827 = vst [vmem:[#allocation40_spill] sm:$0xff] %v10141_v0  ;;  %v2761_v29 = vshll.u32 %v15811_v42, %v2749_v22  ;;  %v10160_v57 = vshll.u32 %v15807_v24, %v2749_v22  ;;  %5640 = vmatpush.msra.mxu1 %v5639_v26  ;;  %v2762_v16 = vshrl.u32 %v15807_v24, %v10134_v63  ;;  %v1162_v52 = vadd.f32 -0.4999988, %v1161_v41 }
 0x1f7   : > { %v1166_v60 = vmul.f32 -0.00019511016, %v10076_v54  ;;  %v5643_v23 = vand.u32 4294901760, %v9939_v45  ;;  %v10168_v6 = vshrl.u32 %v15808_v17, %v10134_v63  ;;  %v311_v28 = vmul.f32 %v15783_v39, %v9866_v1 }
 0x1f8   : > { %v413_v22 = vmul.f32 %v15782_v33, %v9875_v5  ;;  %v849_v26 = vmul.f32 -0.001358992, %v10119_v14  ;;  %v2125_v46 = vadd.s32 1, %v7854_v15  ;;  %v1157_v41 = vsel %vm10042_vm8, 0, %v1155_v58 }
 0x1f9   : > { %v1167_v21 = vadd.f32 0.008332121, %v1166_v60  ;;  %5781 = vmatpush.msrb.mxu0 %v5643_v23  ;;  %v5644_v0 = vsub.f32 %v9939_v45, %v5643_v23  ;;  %v10180_v53 = vshrl.u32 %v15809_v18, %v10134_v63  ;;  %v1163_v35 = vmul.f32 %v1162_v52, %v10076_v54  ;;  %v5526_v45 = vld [vmem:[#allocation5 + $0x88] sm:$0xff] }
 0x1fa   : > { %v850_v1 = vadd.f32 0.041655596, %v849_v26  ;;  %v856_v39 = vmul.f32 -0.00019511016, %v10119_v14  ;;  %v10185_v5 = vor.u32 %v2756_v13, %v2755_v56  ;;  %v10187_v15 = vor.u32 %v2759_v34, %v2758_v25  ;;  %v10195_v26 = vpop.permute.xlu2 %486  ;;  %v5528_v34 = vld [vmem:[#allocation5 + $0x98] sm:$0xff] }
 0x1fb   : > { %5956 = vmatpush.msra.mxu0 %v9978_v62  ;;  %v10189_v55 = vor.u32 %v2762_v16, %v2761_v29  ;;  %v1168_v60 = vmul.f32 %v1167_v21, %v10076_v54  ;;  %v2766_v58 = vor.u32 %v10168_v6, %v10160_v57  ;;  %v445_v23 = vadd.f32 %v413_v22, %v311_v28 }
 0x1fc   : > { %v1174_v33 = vadd.s32 3, %v1157_v41  ;;  %v5645_v52 = vand.u32 4294901760, %v5644_v0  ;;  %vm2126_vm4 = vcmp.gt.s32.totalorder %v2125_v46, 0  ;;  %15828 = vst [vmem:[#allocation29_spill] sm:$0xff] %v10195_v26  ;;  %v851_v25 = vmul.f32 %v850_v1, %v10119_v14 }
 0x1fd   : > { %5959 = vmatpush.msra.mxu0 %v10007_v4  ;;  %v1169_v56 = vadd.f32 -0.16666654, %v1168_v60  ;;  %v857_v13 = vadd.f32 0.008332121, %v856_v39  ;;  %v1164_v29 = vadd.f32 1.0, %v1163_v35  ;;  %v847_v21 = vsel %vm10086_vm7, 0, %v10115_v19 }
 0x1fe   : > { %5646 = vmatpush.msra.mxu1 %v5645_v52  ;;  %v5552_v28 = vsel %vm15592_vm6, %v5526_v45, 0  ;;  %v852_v16 = vadd.f32 -0.4999988, %v851_v25  ;;  %v15436_v41 = vmov 32   ;;  %v5527_v39 = vld [vmem:[#allocation5 + $0x90] sm:$0xff]  ;;  %v10209_v35 = vsel %vm2126_vm4, %v2125_v46, 0 }
 0x1ff   : > { %v1170_v0 = vmul.f32 %v1169_v56, %v10076_v54  ;;  %v858_v22 = vmul.f32 %v857_v13, %v10119_v14  ;;  %8032 = vset.pattern.permute.xlu1 %v15436_v41  ;;  %v10205_v60 = vand.u32 4294901760, %v5552_v28  ;;  %5648 = vmatmul.f32.vlgmr.msra.gmra.mxu1 %v9889_v38  ;;  %v10212_v44 = vadd.f32 %v10195_v26, %v445_v23 }
 0x200   : > { %v1175_v19 = vand.u32 3, %v1174_v33  ;;  %5812 = vmatpush.msrb.mxu1 %v9701_v8  ;;  %5546 = vperm.xlu1 %8032, %v5528_v34   ;;  %v5554_v54 = vsel %vm15592_vm6, %v5527_v39, 0  ;;  %v853_v52 = vmul.f32 %v852_v16, %v10119_v14  ;;  %vm2770_vm1 = vcmp.lt.s32.totalorder %v10143_v61, 4 }
 0x201   : > { %15829 = vst [vmem:[#allocation15_spill] sm:$0xff] %v10212_v44  ;;  %v1171_v1 = vadd.f32 1.0, %v1170_v0  ;;  %v859_v56 = vadd.f32 -0.16666654, %v858_v22  ;;  %v10218_v25 = vsub.f32 %v5552_v28, %v10205_v60  ;;  %8034 = vset.pattern.permute.xlu0 %v15436_v41  ;;  %8033 = vset.pattern.permute.xlu2 %v15436_v41  ;;  %v1181_v46 = vxor.u32 2147483648, %v1164_v29 }
 0x202   : > { %v864_v33 = vadd.s32 3, %v847_v21  ;;  %v5556_v8 = vsel %vm15592_vm6, %v5528_v34, 0  ;;  %5814 = vmatpush.msrb.mxu1 %v9832_v40  ;;  %5536 = vperm.xlu0 %8034, %v5526_v45   ;;  %vm2767_vm9 = vcmp.lt.s32.totalorder %v10143_v61, 1  ;;  %vm2769_vm0 = vcmp.lt.s32.totalorder %v10143_v61, 3 }
 0x203   : > { %v1172_v23 = vmul.f32 %v1171_v1, %v10055_v10  ;;  %v854_v13 = vadd.f32 1.0, %v853_v52  ;;  %v860_v28 = vmul.f32 %v859_v56, %v10119_v14  ;;  %v10230_v0 = vand.u32 4294901760, %v10218_v25  ;;  %5695 = vmatmul.f32.gmra.mxu2 %v10218_v25  ;;  %5541 = vperm.xlu2 %8033, %v5527_v39  }
 0x204   : > { %v10234_v34 = vand.u32 31, %v10209_v35  ;;  %v1808_v40 = vand.u32 2139095040, %v10212_v44  ;;  %vm1176_vm10 = vcmp.lt.s32.totalorder %v1175_v19, 2  ;;  %5816 = vmatpush.msrb.mxu1 %v9915_v32  ;;  %v10238_v45 = vand.u32 4294901760, %v5554_v54 }
 0x205   : > { %vm1177_vm3 = vcmp.eq.s32.totalorder %v1175_v19, 0  ;;  %v1178_v10 = vxor.u32 2147483648, %v1172_v23  ;;  %vm1180_vm11 = vcmp.eq.s32.totalorder %v1175_v19, 2  ;;  %v861_v14 = vadd.f32 1.0, %v860_v28  ;;  %5738 = vmatmul.f32.gmra.mxu3 %v10230_v0 }
 0x206   : > { %v865_v21 = vand.u32 3, %v864_v33  ;;  %v5589_v16 = vsub.f32 %v10218_v25, %v10230_v0  ;;  %v10243_v22 = vand.u32 4294901760, %v5556_v8  ;;  %5818 = vmatpush.msrb.mxu1 %v9920_v31  ;;  %v10247_v39 = vsub.f32 %v5554_v54, %v10238_v45 }
 0x207   : > { %v1179_v32 = vsel %vm1177_vm3, %v1164_v29, %v1178_v10  ;;  %v1182_v1 = vsel %vm1180_vm11, %v1181_v46, %v1172_v23  ;;  %v862_v52 = vmul.f32 %v861_v14, %v10098_v11  ;;  %v871_v56 = vxor.u32 2147483648, %v854_v13  ;;  %5652 = vmatmul.f32.gmra.mxu1 %v10205_v60 }
 0x208   : > { %15830 = vst [vmem:[#allocation21_spill] sm:$0xff] %v10247_v39  ;;  %6000 = vmatpush.msra.mxu1 %v9970_v48  ;;  %vm1173_vm12 = vweird.f32 %v15812_v7  ;;  %v1183_v33 = vsel %vm1176_vm10, %v1179_v32, %v1182_v1  ;;  %v10253_v28 = vand.u32 4294901760, %v5589_v16  ;;  %v10256_v41 = vand.u32 4294901760, %v10247_v39  ;;  %5531 = vperm.xlu1 %8032, %v9856_v47  }
 0x209   : > { %v2780_v31 = vsel %vm2770_vm1, %v2766_v58, 1326507024  ;;  %v1809_v11 = vshrl.u32 %v1808_v40, 23  ;;  %v1184_v29 = vsel %vm1173_vm12, nan, %v1183_v33  ;;  %v868_v7 = vxor.u32 2147483648, %v862_v52 }
 0x20a   : > { %15831 = vst [vmem:[#allocation28_spill] sm:$0xff] %v10256_v41  ;;  %6002 = vmatpush.msra.mxu1 %v9998_v59  ;;  %v10266_v19 = vand.u32 4294901760, %v1184_v29  ;;  %vm867_vm14 = vcmp.eq.s32.totalorder %v865_v21, 0  ;;  %vm870_vm5 = vcmp.eq.s32.totalorder %v865_v21, 2  ;;  %5591 = vmatmul.f32.gmra.mxu0 %v10253_v28  ;;  %v10270_v54 = vsub.f32 %v5556_v8, %v10243_v22 }
 0x20b   : > { %v15832_v47 = vmov 1   ;;  %vm866_vm2 = vcmp.lt.s32.totalorder %v865_v21, 2  ;;  %v869_v6 = vsel %vm867_vm14, %v854_v13, %v868_v7  ;;  %v872_v57 = vsel %vm870_vm5, %v871_v56, %v862_v52  ;;  %5700 = vmatmul.f32.gmra.mxu2 %v10247_v39 }
 0x20c   : > { %8037 = vset.pattern.permute.xlu0 %v15832_v47  ;;  %v5597_v58 = vsub.f32 %v10247_v39, %v10256_v41  ;;  %v15833_v46 = vmov 0   ;;  %v10278_v23 = vsub.s32 32, %v10234_v34  ;;  %v5914_v40 = vsub.f32 %v1184_v29, %v10266_v19  ;;  %5853 = vmatpush.msrb.mxu2 %v10266_v19 }
 0x20d   : > { %8035 = vset.pattern.permute.xlu2 %v15833_v46  ;;  %vm863_vm8 = vweird.f32 %v15819_v12  ;;  %v873_v8 = vsel %vm866_vm2, %v869_v6, %v872_v57  ;;  %6004 = vmatpush.msra.mxu1 %v10266_v19  ;;  %v2751_v13 = vshrl.u32 %v15692_v3, %v10134_v63  ;;  %vm2768_vm13 = vcmp.lt.s32.totalorder %v10143_v61, 2 }
 0x20e   : > { %v7848_v10 = vadd.s32 4294967169, %v1809_v11  ;;  %v874_v14 = vsel %vm863_vm8, nan, %v873_v8  ;;  %5744 = vmatmul.f32.gmra.mxu3 %v10256_v41  ;;  %v2779_v21 = vsel %vm2767_vm9, %v10185_v5, %v10187_v15  ;;  %v2781_v12 = vsel %vm2769_vm0, %v10189_v55, %v2780_v31  ;;  %5962 = vmatpush.msra.mxu0 %v5914_v40 }
 0x20f   : > { %v5915_v16 = vand.u32 4294901760, %v5914_v40  ;;  %v10295_v32 = vand.u32 4294901760, %v874_v14  ;;  %v2754_v63 = vor.u32 %v10180_v53, %v10150_v9  ;;  %v2144_v1 = vshll.u32 %v15807_v24, %v10234_v34  ;;  %5656 = vmatmul.f32.gmra.mxu1 %v10238_v45 }
 0x210   : > { %v10301_v52 = vand.u32 4294901760, %v5597_v58  ;;  %v10304_v56 = vand.u32 4294901760, %v10270_v54  ;;  %v2145_v31 = vshrl.u32 %v15808_v17, %v10278_v23  ;;  %v15834_v53 = vshll.u32 %v10108_v2, 16  ;;  %8036 = vset.pattern.permute.xlu1 %v15832_v47 }
 0x211   : > { %v5916_v11 = vsub.f32 %v5914_v40, %v5915_v16  ;;  %v5920_v29 = vsub.f32 %v874_v14, %v10295_v32  ;;  %5855 = vmatpush.msrb.mxu2 %v10295_v32  ;;  %6006 = vmatpush.msra.mxu1 %v10295_v32  ;;  %v2772_v7 = vsel %vm2770_vm1, %v10187_v15, 2102212464  ;;  %v10324_v6 = vsel %vm2768_vm13, %v2779_v21, %v2781_v12 }
 0x212   : > { %vm10315_vm15 = vc.u32 %v10125_v37, %v15834_v53  ;;  %v10327_v57 = vshrl.u32 %v10209_v35, 5  ;;  %v1815_v58 = vadd.s32 1, %v7848_v10  ;;  %v15837_v40 = vand.u32 4294901760, %v9978_v62  ;;  %5599 = vmatmul.f32.gmra.mxu0 %v10301_v52 }
 0x213   : > { %v2135_v8 = vshll.u32 %v15809_v18, %v10234_v34  ;;  %v2138_v14 = vshll.u32 %v15810_v20, %v10234_v34  ;;  %v5917_v53 = vand.u32 4294901760, %v5916_v11  ;;  %v5921_v33 = vand.u32 4294901760, %v5920_v29  ;;  %5965 = vmatpush.msra.mxu0 %v5920_v29  ;;  %5705 = vmatmul.f32.gmra.mxu2 %v10270_v54 }
 0x214   : > { %6047 = vmatpush.msra.mxu2 %v15837_v40  ;;  %v2776_v35 = vsel %vm2770_vm1, %v10189_v55, 920167782  ;;  %v2136_v62 = vshrl.u32 %v15810_v20, %v10278_v23  ;;  %v2139_v10 = vshrl.u32 %v15811_v42, %v10278_v23  ;;  %v15838_v21 = vand.u32 4294901760, %v10007_v4 }
 0x215   : > { %v5605_v12 = vsub.f32 %v10270_v54, %v10304_v56  ;;  %v15839_v40 = vand.u32 2147483647, %v10072_v27  ;;  %v2146_v55 = vor.u32 %v2145_v31, %v2144_v1  ;;  %5918 = vmatpush.msrb.mxu3 %v5917_v53  ;;  %v5922_v39 = vsub.f32 %v5920_v29, %v5921_v33 }
 0x216   : > { %6051 = vmatpush.msra.mxu2 %v15838_v21  ;;  %v2141_v41 = vshll.u32 %v15811_v42, %v10234_v34  ;;  %v2142_v4 = vshrl.u32 %v15807_v24, %v10278_v23  ;;  %vm2150_vm7 = vcmp.lt.s32.totalorder %v10327_v57, 4  ;;  %vm1816_vm4 = vcmp.gt.s32.totalorder %v1815_v58, 0  ;;  %5750 = vmatmul.f32.gmra.mxu3 %v10304_v56 }
 0x217   : > { %v2122_v26 = vand.u32 8388607, %v15839_v40  ;;  %v2771_v21 = vsel %vm2767_vm9, %v2751_v13, %v2754_v63  ;;  %v2773_v1 = vsel %vm2769_vm0, %v10185_v5, %v2772_v7  ;;  %v2775_v31 = vsel %vm2767_vm9, %v2754_v63, %v10185_v5  ;;  %5660 = vmatmul.f32.gmra.mxu1 %v10243_v22 }
 0x218   : > { %6055 = vmatpush.msra.mxu2 %v5915_v16  ;;  %v5923_v29 = vand.u32 4294901760, %v5922_v39  ;;  %v2777_v53 = vsel %vm2769_vm0, %v10187_v15, %v2776_v35  ;;  %v2137_v40 = vor.u32 %v2136_v62, %v2135_v8  ;;  %v2140_v16 = vor.u32 %v2139_v10, %v2138_v14 }
 0x219   : > { %v10370_v11 = vand.u32 4294901760, %v5605_v12  ;;  %vm2147_vm1 = vcmp.lt.s32.totalorder %v10327_v57, 1  ;;  %vm2149_vm10 = vcmp.lt.s32.totalorder %v10327_v57, 3  ;;  %v2160_v13 = vsel %vm2150_vm7, %v2146_v55, 1326507024 }
 0x21a   : > { %6059 = vmatpush.msra.mxu2 %v5921_v33  ;;  %v10376_v7 = vsel %vm1816_vm4, %v1815_v58, 0  ;;  %5924 = vmatpush.msrb.mxu3 %v5923_v29  ;;  %v2786_v5 = vand.u32 65535, %v10324_v6  ;;  %v15840_v15 = vshrl.u32 %v10324_v6, 16  ;;  %v2123_v63 = vor.u32 8388608, %v2122_v26 }
 0x21b   : > { %v2143_v33 = vor.u32 %v2142_v4, %v2141_v41  ;;  %v15841_v58 = vshll.u32 %v10108_v2, 16  ;;  %v2132_v35 = vshll.u32 %v15692_v3, %v10234_v34  ;;  %v2133_v62 = vshrl.u32 %v15809_v18, %v10278_v23  ;;  %5607 = vmatmul.f32.gmra.mxu0 %v10370_v11  ;;  %5861 = vmatmul.f32.vlgmr.msrb.gmra.mxu2 %v9922_v50 }
 0x21c   : > { %v10382_v39 = vmul.u32 %v15840_v15, %v10146_v49  ;;  %6090 = vmatpush.msra.mxu3 %v9970_v48  ;;  %vm2148_vm9 = vcmp.lt.s32.totalorder %v10327_v57, 2  ;;  %v2159_v48 = vsel %vm2147_vm1, %v2137_v40, %v2140_v16  ;;  %v10402_v41 = vand.u32 31, %v10376_v7 }
 0x21d   : > { %v10390_v14 = vadd.s32 %v15841_v58, %v10125_v37  ;;  %v2161_v26 = vsel %vm2149_vm10, %v2143_v33, %v2160_v13  ;;  %v10406_v37 = vld [vmem:[#allocation5 + $0x58] sm:$0xff]  ;;  %v2487_v34 = vsel %vm10315_vm15, 1, %v15833_v46  ;;  %v10413_v10 = vsel %vm2768_vm13, %v2771_v21, %v2773_v1 }
 0x21e   : > { %6092 = vmatpush.msra.mxu3 %v9998_v59  ;;  %v2778_v12 = vsel %vm2768_vm13, %v2775_v31, %v2777_v53  ;;  %v2785_v55 = vshrl.u32 %v10123_v51, 16  ;;  %380 = vperm.xlu1 %8036, %v10406_v37   ;;  %v2788_v59 = vmul.u32 %v2786_v5, %v10146_v49  ;;  %v2792_v4 = vshll.u32 %v10382_v39, 16 }
 0x21f   : > { %v2808_v29 = vand.u32 65535, %v2778_v12  ;;  %v10422_v9 = vshll.u32 %v2123_v63, 8  ;;  %273 = vperm.xlu2 %8035, %v10406_v37   ;;  %v2131_v61 = vshrl.u32 %v15692_v3, %v10278_v23  ;;  %v2134_v21 = vor.u32 %v2133_v62, %v2132_v35  ;;  %5926 = vmatmul.f32.vlgmr.msrb.gmra.mxu3 %v9889_v38 }
 0x220   : > { %6094 = vmatpush.msra.mxu3 %v10266_v19  ;;  %v2152_v50 = vsel %vm2150_vm7, %v2140_v16, 2102212464  ;;  %v10432_v1 = vsel %vm2148_vm9, %v2159_v48, %v2161_v26  ;;  %v2809_v31 = vshrl.u32 %v2778_v12, 16  ;;  %v2156_v53 = vsel %vm2150_vm7, %v2143_v33, 920167782  ;;  %5820 = vmatmul.f32.vlgmr.msrb.gmra.mxu1 %v9889_v38 }
 0x221   : > { %v15441_v19 = vand.u32 2147483647, %v10212_v44  ;;  %v10439_v13 = vsub.s32 32, %v10402_v41  ;;  %v10443_v23 = vadd.s32 %v2487_v34, %v10130_v36  ;;  %v10445_v15 = vmul.u32 %v2786_v5, %v2785_v55 }
 0x222   : > { %6096 = vmatpush.msra.mxu3 %v10295_v32  ;;  %v15842_v63 = vshrl.u32 %v10324_v6, 16  ;;  %vm2796_vm0 = vc.u32 %v2788_v59, %v2792_v4  ;;  %v10452_v33 = vmul.u32 %v2808_v29, %v10146_v49  ;;  %v2164_v62 = vand.u32 65535, %v10422_v9 }
 0x223   : > { %v2167_v48 = vshrl.u32 %v10432_v1, 16  ;;  %v2151_v36 = vsel %vm2147_vm1, %v2131_v61, %v2134_v21  ;;  %v2153_v32 = vsel %vm2149_vm10, %v2137_v40, %v2152_v50  ;;  %v2155_v6 = vsel %vm2147_vm1, %v2134_v21, %v2137_v40  ;;  %5783 = vmatmul.f32.vlgmr.msrb.gmra.mxu0 %v9889_v38  ;;  %v10475_v50 = vld [vmem:[#allocation5 + $0x48] sm:$0xff]  ;;  %5869 = vmatmul.f32.gmra.mxu2 %v10253_v28 }
 0x224   : > { %v2791_v58 = vmul.u32 %v15842_v63, %v2785_v55  ;;  %v2157_v5 = vsel %vm2149_vm10, %v2140_v16, %v2156_v53  ;;  %v10466_v26 = vmul.u32 %v2809_v31, %v10146_v49  ;;  %v1812_v34 = vand.u32 8388607, %v15441_v19 }
 0x225   : > { %v1834_v12 = vshll.u32 %v15807_v24, %v10402_v41  ;;  %v1835_v61 = vshrl.u32 %v15808_v17, %v10439_v13  ;;  %v2797_v40 = vsel %vm2796_vm0, 1, %v15833_v46  ;;  %v10478_v21 = vmul.u32 %v2808_v29, %v2785_v55 }
 0x226   : > { %v10480_v16 = vmul.u32 %v2809_v31, %v2785_v55  ;;  %v10483_v49 = vshrl.u32 %v10376_v7, 5  ;;  %8038 = vset.pattern.permute.xlu1 %v15833_v46  ;;  %v10489_v53 = vsel %vm2148_vm9, %v2151_v36, %v2153_v32  ;;  %v2158_v63 = vsel %vm2148_vm9, %v2155_v6, %v2157_v5 }
 0x227   : > { %v2166_v19 = vand.u32 65535, %v10432_v1  ;;  %v10494_v29 = vmul.u32 %v2167_v48, %v2164_v62  ;;  %263 = vperm.xlu1 %8038, %v10475_v50   ;;  %v1825_v7 = vshll.u32 %v15809_v18, %v10402_v41  ;;  %v1826_v28 = vshrl.u32 %v15810_v20, %v10439_v13  ;;  %5930 = vmatmul.f32.gmra.mxu3 %v10205_v60 }
 0x228   : > { %v1828_v55 = vshll.u32 %v15810_v20, %v10402_v41  ;;  %v1829_v31 = vshrl.u32 %v15811_v42, %v10439_v13  ;;  %v2794_v57 = vshll.u32 %v10445_v15, 16  ;;  %v2798_v1 = vadd.s32 %v2792_v4, %v2788_v59  ;;  %5824 = vmatmul.f32.gmra.mxu1 %v10205_v60 }
 0x229   : > { %v1813_v36 = vor.u32 8388608, %v1812_v34  ;;  %v1836_v32 = vor.u32 %v1835_v61, %v1834_v12  ;;  %v2165_v6 = vshrl.u32 %v10422_v9, 16  ;;  %v1831_v5 = vshll.u32 %v15811_v42, %v10402_v41  ;;  %v15847_v42 = vld [vmem:[#allocation24_spill] sm:$0xff] }
 0x22a   : > { %v1832_v35 = vshrl.u32 %v15807_v24, %v10439_v13  ;;  %vm1840_vm3 = vcmp.lt.s32.totalorder %v10483_v49, 4  ;;  %v10513_v8 = vadd.s32 %v2797_v40, %v2791_v58  ;;  %v2188_v20 = vand.u32 65535, %v2158_v63 }
 0x22b   : > { %v2189_v17 = vshrl.u32 %v2158_v63, 16  ;;  %v10518_v59 = vmul.u32 %v2166_v19, %v2164_v62  ;;  %v15449_v4 = vshll.u32 %v10494_v29, 16  ;;  %v10521_v34 = vor.u32 %v1826_v28, %v1825_v7  ;;  %5787 = vmatmul.f32.gmra.mxu0 %v10205_v60  ;;  %5877 = vmatmul.f32.gmra.mxu2 %v10301_v52 }
 0x22c   : > { %v10523_v12 = vor.u32 %v1829_v31, %v1828_v55  ;;  %vm1837_vm11 = vcmp.lt.s32.totalorder %v10483_v49, 1  ;;  %vm1839_vm12 = vcmp.lt.s32.totalorder %v10483_v49, 3  ;;  %v1850_v58 = vsel %vm1840_vm3, %v1836_v32, 1326507024 }
 0x22d   : > { %v10529_v61 = vshll.u32 %v1813_v36, 8  ;;  %v10532_v40 = vmul.u32 %v2166_v19, %v2165_v6  ;;  %v1822_v63 = vshll.u32 %v15692_v3, %v10402_v41  ;;  %v1823_v7 = vshrl.u32 %v15809_v18, %v10439_v13 }
 0x22e   : > { %v1833_v28 = vor.u32 %v1832_v35, %v1831_v5  ;;  %v10539_v55 = vmul.u32 %v2167_v48, %v2165_v6  ;;  %v10541_v31 = vmul.u32 %v2188_v20, %v2164_v62  ;;  %v10543_v32 = vmul.u32 %v2189_v17, %v2164_v62 }
 0x22f   : > { %vm1838_vm14 = vcmp.lt.s32.totalorder %v10483_v49, 2  ;;  %v15843_v36 = vmov 2   ;;  %v1849_v41 = vsel %vm1837_vm11, %v10521_v34, %v10523_v12  ;;  %5934 = vmatmul.f32.gmra.mxu3 %v10238_v45  ;;  %v2504_v52 = vshll.u32 %v10137_v43, 16 }
 0x230   : > { %8040 = vset.pattern.permute.xlu1 %v15843_v36  ;;  %v1851_v19 = vsel %vm1839_vm12, %v1833_v28, %v1850_v58  ;;  %v2814_v35 = vshll.u32 %v10466_v26, 16  ;;  %vm10560_vm5 = vc.u32 %v10518_v59, %v15449_v4  ;;  %v10564_v48 = vmul.u32 %v2188_v20, %v2165_v6  ;;  %5828 = vmatmul.f32.gmra.mxu1 %v10238_v45 }
 0x231   : > { %514 = vperm.xlu1 %8040, %v10406_v37   ;;  %v10566_v5 = vmul.u32 %v2189_v17, %v2165_v6  ;;  %v10569_v58 = vand.u32 65535, %v10529_v61  ;;  %v10571_v44 = vor.u32 %v1823_v7, %v1822_v63  ;;  %v15846_v37 = vld [vmem:[#allocation39_spill] sm:$0xff]  ;;  %vm2508_vm2 = vc.u32 %v15847_v42, %v2504_v52  ;;  %v15848_v6 = vld [vmem:[#allocation40_spill] sm:$0xff] }
 0x232   : > { %v2506_v18 = vshll.u32 %v15846_v37, 16  ;;  %v2510_v24 = vadd.s32 %v2504_v52, %v15847_v42  ;;  %v1846_v4 = vsel %vm1840_vm3, %v1833_v28, 920167782  ;;  %v10580_v20 = vsel %vm1838_vm14, %v1849_v41, %v1851_v19  ;;  %v210_v28 = vld [vmem:[#allocation5 + $0x50] sm:$0xff] }
 0x233   : > { %v2509_v17 = vsel %vm2508_vm2, 1, %v15833_v46  ;;  %vm2818_vm8 = vc.u32 %v10452_v33, %v2814_v35  ;;  %v2816_v7 = vshll.u32 %v10478_v21, 16  ;;  %v2820_v42 = vadd.s32 %v2814_v35, %v10452_v33  ;;  %5791 = vmatmul.f32.gmra.mxu0 %v10238_v45  ;;  %5885 = vmatmul.f32.gmra.mxu2 %v10370_v11 }
 0x234   : > { %v2511_v63 = vadd.s32 %v2509_v17, %v15848_v6  ;;  %vm2512_vm13 = vc.u32 %v2510_v24, %v2506_v18  ;;  %v15849_v52 = vshll.u32 %v10127_v30, 16  ;;  %vm2800_vm7 = vc.u32 %v2798_v1, %v2794_v57  ;;  %376 = vperm.xlu0 %8037, %v210_v28   ;;  %268 = vperm.xlu2 %8035, %v210_v28  }
 0x235   : > { %v2513_v41 = vsel %vm2512_vm13, 1, %v15833_v46  ;;  %v2819_v19 = vsel %vm2818_vm8, 1, %v15833_v46  ;;  %v2505_v6 = vshrl.u32 %v10137_v43, 16  ;;  %v2801_v35 = vsel %vm2800_vm7, 1, %v15833_v46 }
 0x236   : > { %vm2490_vm15 = vc.u32 %v10390_v14, %v15849_v52  ;;  %v2515_v33 = vadd.s32 %v2513_v41, %v2511_v63  ;;  %v2483_v27 = vshrl.u32 %v10108_v2, 16  ;;  %v2793_v52 = vshrl.u32 %v10382_v39, 16 }
 0x237   : > { %v2491_v17 = vsel %vm2490_vm15, 1, %v15833_v46  ;;  %v2803_v57 = vadd.s32 %v2801_v35, %v10513_v8  ;;  %v1845_v11 = vsel %vm1837_vm11, %v10571_v44, %v10521_v34  ;;  %5938 = vmatmul.f32.gmra.mxu3 %v10243_v22  ;;  %v2507_v43 = vshrl.u32 %v15846_v37, 16 }
 0x238   : > { %v2493_v14 = vadd.s32 %v2491_v17, %v10443_v23  ;;  %v2516_v1 = vadd.s32 %v2515_v33, %v2505_v6  ;;  %v2821_v63 = vadd.s32 %v2819_v19, %v10480_v16  ;;  %v1847_v2 = vsel %vm1839_vm12, %v10523_v12, %v1846_v4  ;;  %5832 = vmatmul.f32.gmra.mxu1 %v10243_v22 }
 0x239   : > { %510 = vperm.xlu1 %8040, %v210_v28   ;;  %v1857_v39 = vshrl.u32 %v10580_v20, 16  ;;  %v2485_v8 = vshrl.u32 %v10127_v30, 16  ;;  %v2795_v17 = vshrl.u32 %v10445_v15, 16  ;;  %v2815_v35 = vshrl.u32 %v10466_v26, 16 }
 0x23a   : > { %v2494_v23 = vadd.s32 %v2493_v14, %v2483_v27  ;;  %v2517_v41 = vadd.s32 %v2516_v1, %v2507_v43  ;;  %vm2822_vm4 = vc.u32 %v2820_v42, %v2816_v7  ;;  %v10619_v16 = vadd.s32 %v2510_v24, %v2506_v18  ;;  %v208_v24 = vld [vmem:[#allocation5 + $0x40] sm:$0xff] }
 0x23b   : > { %v2804_v28 = vadd.s32 %v2803_v57, %v2793_v52  ;;  %v2823_v4 = vsel %vm2822_vm4, 1, %v15833_v46  ;;  %v2177_v30 = vsel %vm10560_vm5, 1, %v15833_v46  ;;  %v2817_v19 = vshrl.u32 %v10478_v21, 16  ;;  %5795 = vmatmul.f32.gmra.mxu0 %v10243_v22  ;;  %6061 = vmatmul.f32.vlgmr.msra.gmra.mxu2 %v9889_v38  ;;  %v15851_v52 = vld [vmem:[#allocation16_spill] sm:$0xff] }
 0x23c   : > { %v10617_v37 = vadd.s32 %v2494_v23, %v2485_v8  ;;  %v2521_v27 = vadd.s32 1, %v2517_v41  ;;  %v2825_v15 = vadd.s32 %v2823_v4, %v2821_v63  ;;  %v1821_v26 = vshrl.u32 %v15692_v3, %v10439_v13  ;;  %368 = vperm.xlu0 %8037, %v208_v24   ;;  %8039 = vset.pattern.permute.xlu2 %v15832_v47  ;;  %v15852_v57 = vld [vmem:[#allocation32_spill] sm:$0xff]  ;;  %v15855_v4 = vld [vmem:[#allocation19_spill] sm:$0xff] }
 0x23d   : > { %v1856_v6 = vand.u32 65535, %v10580_v20  ;;  %v10630_v33 = vmul.u32 %v1857_v39, %v10569_v58  ;;  %v2174_v18 = vshll.u32 %v10532_v40, 16  ;;  %v1848_v21 = vsel %vm1838_vm14, %v1845_v11, %v1847_v2  ;;  %372 = vperm.xlu2 %8039, %v10475_v50  }
 0x23e   : > { %vm2520_vm1 = vc.u32 %v10617_v37, %v10619_v16  ;;  %v2826_v62 = vadd.s32 %v2825_v15, %v2815_v35  ;;  %v15850_v20 = vshll.u32 %v10494_v29, 16  ;;  %v15853_v43 = vmul.u32 %v15851_v52, %v15852_v57 }
 0x23f   : > { %v2522_v13 = vsel %vm2520_vm1, %v2521_v27, %v2517_v41  ;;  %v10648_v63 = vadd.s32 %v2804_v28, %v2795_v17  ;;  %v10650_v8 = vadd.s32 %v2820_v42, %v2816_v7  ;;  %v2179_v11 = vadd.s32 %v2177_v30, %v10539_v55  ;;  %6098 = vmatmul.f32.vlgmr.msra.gmra.mxu3 %v9889_v38 }
 0x240   : > { %v2178_v14 = vadd.s32 %v15850_v20, %v10518_v59  ;;  %v10646_v1 = vadd.s32 %v2522_v13, %v15853_v43  ;;  %v1842_v2 = vsel %vm1840_vm3, %v10523_v12, 2102212464  ;;  %v1855_v23 = vshrl.u32 %v10529_v61, 16  ;;  %6010 = vmatmul.f32.vlgmr.msra.gmra.mxu1 %v15855_v4 }
 0x241   : > { %v2827_v59 = vadd.s32 %v2826_v62, %v2817_v19  ;;  %v1858_v41 = vmul.u32 %v1856_v6, %v10569_v58  ;;  %v1862_v17 = vshll.u32 %v10630_v33, 16  ;;  %v1879_v35 = vshrl.u32 %v1848_v21, 16 }
 0x242   : > { %v2194_v7 = vshll.u32 %v10543_v32, 16  ;;  %v15854_v42 = vmov 32   ;;  %v10666_v12 = vsel %vm1837_vm11, %v1821_v26, %v10571_v44  ;;  %v1878_v55 = vand.u32 65535, %v1848_v21 }
 0x243   : > { %8044 = vset.pattern.permute.xlu1 %v15854_v42  ;;  %v2524_v38 = vadd.s32 536870912, %v10646_v1  ;;  %v2831_v28 = vadd.s32 1, %v2827_v59  ;;  %v2196_v30 = vshll.u32 %v10564_v48, 16  ;;  %vm2830_vm9 = vc.u32 %v10648_v63, %v10650_v8  ;;  %6065 = vmatmul.f32.gmra.mxu2 %v10205_v60 }
 0x244   : > { %vm2198_vm10 = vc.u32 %v10541_v31, %v2194_v7  ;;  %v2200_v27 = vadd.s32 %v2194_v7, %v10541_v31  ;;  %v1843_v44 = vsel %vm1839_vm12, %v10521_v34, %v1842_v2  ;;  %v10678_v19 = vmul.u32 %v1856_v6, %v1855_v23  ;;  %v15858_v31 = vld [vmem:[#allocation18_spill] sm:$0xff]  ;;  %8043 = vset.pattern.permute.xlu0 %v15843_v36 }
 0x245   : > { %v1861_v15 = vmul.u32 %v1857_v39, %v1855_v23  ;;  %v2199_v26 = vsel %vm2198_vm10, 1, %v15833_v46  ;;  %vm10681_vm0 = vc.u32 %v1858_v41, %v1862_v17  ;;  %v10686_v13 = vmul.u32 %v1879_v35, %v10569_v58  ;;  %5968 = vmatmul.f32.vlgmr.msra.gmra.mxu0 %v15858_v31  ;;  %502 = vperm.xlu0 %8043, %v208_v24  }
 0x246   : > { %v2201_v62 = vadd.s32 %v2199_v26, %v10566_v5  ;;  %vm2202_vm3 = vc.u32 %v2200_v27, %v2196_v30  ;;  %vm2180_vm11 = vc.u32 %v2178_v14, %v2174_v18  ;;  %v10693_v39 = vshrl.u32 %v2524_v38, 30  ;;  %8041 = vset.pattern.permute.xlu2 %v15833_v46 }
 0x247   : > { %v2203_v34 = vsel %vm2202_vm3, 1, %v15833_v46  ;;  %v2832_v6 = vsel %vm2830_vm9, %v2831_v28, %v2827_v59  ;;  %v1880_v20 = vmul.u32 %v1878_v55, %v10569_v58  ;;  %v2181_v52 = vsel %vm2180_vm11, 1, %v15833_v46  ;;  %6102 = vmatmul.f32.gmra.mxu3 %v10205_v60  ;;  %258 = vperm.xlu2 %8041, %v208_v24  }
 0x248   : > { %v2195_v57 = vshrl.u32 %v10543_v32, 16  ;;  %v2205_v43 = vadd.s32 %v2203_v34, %v2201_v62  ;;  %v1867_v5 = vsel %vm10681_vm0, 1, %v15833_v46  ;;  %v1882_v2 = vmul.u32 %v1878_v55, %v1855_v23  ;;  %6016 = vmatmul.f32.gmra.mxu1 %v10230_v0 }
 0x249   : > { %v2173_v18 = vshrl.u32 %v10494_v29, 16  ;;  %v2183_v14 = vadd.s32 %v2181_v52, %v2179_v11  ;;  %v1883_v59 = vmul.u32 %v1879_v35, %v1855_v23  ;;  %v2197_v58 = vshrl.u32 %v10564_v48, 16 }
 0x24a   : > { %v2206_v7 = vadd.s32 %v2205_v43, %v2195_v57  ;;  %v15859_v32 = vmul.u32 %v10123_v51, %v10413_v10  ;;  %v1884_v28 = vshll.u32 %v10686_v13, 16  ;;  %v2175_v55 = vshrl.u32 %v10532_v40, 16 }
 0x24b   : > { %v2184_v60 = vadd.s32 %v2183_v14, %v2173_v18  ;;  %v2526_v4 = vshll.u32 %v10693_v39, 30  ;;  %v1864_v29 = vshll.u32 %v10678_v19, 16  ;;  %v1868_v11 = vadd.s32 %v1862_v17, %v1858_v41  ;;  %6069 = vmatmul.f32.gmra.mxu2 %v10238_v45 }
 0x24c   : > { %v10708_v38 = vadd.s32 %v2832_v6, %v15859_v32  ;;  %v1869_v23 = vadd.s32 %v1867_v5, %v1861_v15  ;;  %v2207_v48 = vadd.s32 %v2206_v7, %v2197_v58  ;;  %v1886_v24 = vshll.u32 %v1882_v2, 16 }
 0x24d   : > { %vm1888_vm12 = vc.u32 %v1880_v20, %v1884_v28  ;;  %v1890_v35 = vadd.s32 %v1884_v28, %v1880_v20  ;;  %v10715_v51 = vadd.s32 %v2184_v60, %v2175_v55  ;;  %5973 = vmatmul.f32.gmra.mxu0 %v10218_v25  ;;  %v10719_v40 = vadd.s32 %v2200_v27, %v2196_v30 }
 0x24e   : > { %v1889_v10 = vsel %vm1888_vm12, 1, %v15833_v46  ;;  %v2211_v26 = vadd.s32 1, %v2207_v48  ;;  %v2834_v21 = vadd.s32 536870912, %v10708_v38  ;;  %v10724_v0 = vsub.s32 %v10646_v1, %v2526_v4  ;;  %8046 = vset.pattern.permute.xlu0 %v15833_v46 }
 0x24f   : > { %v1891_v41 = vadd.s32 %v1889_v10, %v1883_v59  ;;  %vm1892_vm5 = vc.u32 %v1890_v35, %v1886_v24  ;;  %v1844_v17 = vsel %vm1838_vm14, %v10666_v12, %v1843_v44  ;;  %vm1870_vm2 = vc.u32 %v1868_v11, %v1864_v29  ;;  %6106 = vmatmul.f32.gmra.mxu3 %v10238_v45 }
 0x250   : > { %v1893_v25 = vsel %vm1892_vm5, 1, %v15833_v46  ;;  %vm2210_vm8 = vc.u32 %v10715_v51, %v10719_v40  ;;  %v1871_v30 = vsel %vm1870_vm2, 1, %v15833_v46  ;;  %v1885_v27 = vshrl.u32 %v10686_v13, 16  ;;  %8042 = vset.pattern.permute.xlu2 %v15843_v36  ;;  %v15861_v13 = vld [vmem:[#allocation28_spill] sm:$0xff] }
 0x251   : > { %v1895_v1 = vadd.s32 %v1893_v25, %v1891_v41  ;;  %v2212_v15 = vsel %vm2210_vm8, %v2211_v26, %v2207_v48  ;;  %v1863_v49 = vshrl.u32 %v10630_v33, 16  ;;  %v1873_v12 = vadd.s32 %v1871_v30, %v1869_v23  ;;  %506 = vperm.xlu2 %8042, %v10475_v50   ;;  %6022 = vmatmul.f32.gmra.mxu1 %v15861_v13 }
 0x252   : > { %v15860_v44 = vmul.u32 %v10422_v9, %v10489_v53  ;;  %v10741_v62 = vshrl.u32 %v2834_v21, 30  ;;  %v1887_v45 = vshrl.u32 %v1882_v2, 16  ;;  %v2529_v6 = vsub.s32 0, %v10724_v0  ;;  %v15862_v53 = vld [vmem:[#allocation21_spill] sm:$0xff] }
 0x253   : > { %v1896_v34 = vadd.s32 %v1895_v1, %v1885_v27  ;;  %v1865_v20 = vshrl.u32 %v10678_v19, 16  ;;  %v1874_v52 = vadd.s32 %v1873_v12, %v1863_v49  ;;  %vm2528_vm14 = vcmp.lt.s32.totalorder %v10724_v0, 0  ;;  %6073 = vmatmul.f32.gmra.mxu2 %v10243_v22 }
 0x254   : > { %v2213_v31 = vadd.s32 %v2212_v15, %v15860_v44  ;;  %v1898_v33 = vmul.u32 %v10529_v61, %v1844_v17  ;;  %v10752_v50 = vadd.s32 %v1890_v35, %v1886_v24  ;;  %v2836_v2 = vshll.u32 %v10741_v62, 30 }
 0x255   : > { %v1897_v9 = vadd.s32 %v1896_v34, %v1887_v45  ;;  %5978 = vmatmul.f32.gmra.mxu0 %v15862_v53  ;;  %v10750_v43 = vadd.s32 %v1874_v52, %v1865_v20  ;;  %v2530_v18 = vsel %vm2528_vm14, %v2529_v6, %v10724_v0  ;;  %v2519_v25 = vadd.s32 %v10619_v16, %v10617_v37 }
 0x256   : > { %v2214_v57 = vadd.s32 536870912, %v2213_v31  ;;  %v2531_v58 = vclz %v2530_v18  ;;  %v10764_v7 = vsub.s32 %v10708_v38, %v2836_v2  ;;  %v2829_v37 = vadd.s32 %v10650_v8, %v10648_v63 }
 0x257   : > { %v1901_v19 = vadd.s32 1, %v1897_v9  ;;  %vm1900_vm13 = vc.u32 %v10750_v43, %v10752_v50  ;;  %6110 = vmatmul.f32.gmra.mxu3 %v10243_v22  ;;  %v1899_v2 = vadd.s32 %v10752_v50, %v10750_v43  ;;  %v10799_v43 = vpop.f32.mrf.mxu0 }
 0x258   : > { %v10754_v5 = vshrl.u32 %v2214_v57, 30  ;;  %v7861_v60 = vadd.s32 4294967294, %v2531_v58  ;;  %v2839_v22 = vsub.s32 0, %v10764_v7  ;;  %vm2838_vm15 = vcmp.lt.s32.totalorder %v10764_v7, 0 }
 0x259   : > { %v1902_v14 = vsel %vm1900_vm13, %v1901_v19, %v1897_v9  ;;  %8045 = vset.pattern.permute.xlu2 %v15854_v42  ;;  %6028 = vmatmul.f32.gmra.mxu1 %v10304_v56 }
 0x25a   : > { %v2216_v61 = vshll.u32 %v10754_v5, 30  ;;  %v1903_v59 = vadd.s32 %v1902_v14, %v1898_v33  ;;  %vm7862_vm4 = vcmp.lt.s32.totalorder %v7861_v60, 0  ;;  %v2840_v56 = vsel %vm2838_vm15, %v2839_v22, %v10764_v7 }
 0x25b   : > { %v2534_v23 = vsel %vm7862_vm4, 0, %v7861_v60  ;;  %v2841_v48 = vclz %v2840_v56  ;;  %v15863_v56 = vld [vmem:[#allocation37_spill] sm:$0xff] }
 0x25c   : > { %v1904_v32 = vadd.s32 536870912, %v1903_v59  ;;  %v10768_v28 = vsub.s32 %v2213_v31, %v2216_v61  ;;  %v2539_v26 = vsub.s32 4294967266, %v2534_v23  ;;  %v2535_v30 = vsub.s32 32, %v2534_v23 }
 0x25d   : > { %5983 = vmatmul.f32.gmra.mxu0 %v10270_v54  ;;  %v7867_v21 = vadd.s32 4294967294, %v2841_v48  ;;  %v2536_v1 = vshll.u32 %v10724_v0, %v2534_v23  ;;  %v2209_v0 = vadd.s32 %v10719_v40, %v10715_v51  ;;  %vm2427_vm3 = vcmp.lt.s32.totalorder %v15863_v56, 0 }
 0x25e   : > { %v10771_v55 = vshrl.u32 %v1904_v32, 30  ;;  %v2219_v38 = vsub.s32 0, %v10768_v28  ;;  %vm2218_vm7 = vcmp.lt.s32.totalorder %v10768_v28, 0  ;;  %v2540_v27 = vadd.s32 127, %v2539_v26 }
 0x25f   : > { %vm7868_vm10 = vcmp.lt.s32.totalorder %v7867_v21, 0  ;;  %v2537_v15 = vshrl.u32 %v2519_v25, %v2535_v30 }
 0x260   : > { %v1906_v4 = vshll.u32 %v10771_v55, 30  ;;  %v2220_v11 = vsel %vm2218_vm7, %v2219_v38, %v10768_v28  ;;  %v2541_v49 = vshll.u32 %v2540_v27, 23  ;;  %v2844_v12 = vsel %vm7868_vm10, 0, %v7867_v21 }
 0x261   : > { %v2221_v35 = vclz %v2220_v11  ;;  %v2849_v45 = vsub.s32 4294967266, %v2844_v12  ;;  %v2538_v34 = vor.u32 %v2537_v15, %v2536_v1  ;;  %v2845_v16 = vsub.s32 32, %v2844_v12 }
 0x262   : > { %v10778_v29 = vsub.s32 %v1903_v59, %v1906_v4  ;;  %v2542_v6 = vor.u32 4788187, %v2541_v49  ;;  %v2846_v61 = vshll.u32 %v10764_v7, %v2844_v12 }
 0x263   : > { %v7855_v41 = vadd.s32 4294967294, %v2221_v35  ;;  %v2850_v52 = vadd.s32 127, %v2849_v45  ;;  %v2545_v33 = vcvt.s32.f32 %v2538_v34  ;;  %v2847_v14 = vshrl.u32 %v2829_v37, %v2845_v16  ;;  %v15871_v37 = vld [vmem:[#allocation15_spill] sm:$0xff] }
 0x264   : > { %v1909_v54 = vsub.s32 0, %v10778_v29  ;;  %vm1908_vm1 = vcmp.lt.s32.totalorder %v10778_v29, 0  ;;  %v2543_v57 = vand.u32 2147483647, %v2542_v6  ;;  %v15870_v6 = vld [vmem:[#allocation33_spill] sm:$0xff]  ;;  %vm1807_vm2 = vcmp.lt.s32.totalorder %v15871_v37, 0 }
 0x265   : > { %vm7856_vm9 = vcmp.lt.s32.totalorder %v7855_v41, 0  ;;  %v2851_v59 = vshll.u32 %v2850_v52, 23  ;;  %v2848_v4 = vor.u32 %v2847_v14, %v2846_v61  ;;  %vm2117_vm5 = vcmp.lt.s32.totalorder %v15870_v6, 0 }
 0x266   : > { %v1910_v24 = vsel %vm1908_vm1, %v1909_v54, %v10778_v29  ;;  %v2224_v44 = vsel %vm7856_vm9, 0, %v7855_v41  ;;  %v2546_v58 = vmul.f32 %v2545_v33, %v2543_v57  ;;  %vm2568_vm1 = vweird.f32 %v15863_v56 }
 0x267   : > { %v1911_v10 = vclz %v1910_v24  ;;  %v2229_v13 = vsub.s32 4294967266, %v2224_v44  ;;  %v2225_v9 = vsub.s32 32, %v2224_v44  ;;  %v2226_v63 = vshll.u32 %v10768_v28, %v2224_v44 }
 0x268   : > { %v2852_v38 = vor.u32 4788187, %v2851_v59  ;;  %v2547_v50 = vxor.u32 2147483648, %v2546_v58  ;;  %v2855_v24 = vcvt.s32.f32 %v2848_v4  ;;  %v10877_v4 = vpop.f32.mrf.mxu2 }
 0x269   : > { %v7849_v17 = vadd.s32 4294967294, %v1911_v10  ;;  %v2230_v53 = vadd.s32 127, %v2229_v13  ;;  %v2227_v8 = vshrl.u32 %v2209_v0, %v2225_v9  ;;  %v15875_v0 = vand.u32 2147483647, %v15870_v6 }
 0x26a   : > { %v2853_v48 = vand.u32 2147483647, %v2852_v38  ;;  %v2548_v10 = vsel %vm2427_vm3, %v2547_v50, %v2546_v58  ;;  %v10879_v38 = vpop.permute.xlu2 %5541 }
 0x26b   : > { %vm7850_vm0 = vcmp.lt.s32.totalorder %v7849_v17, 0  ;;  %v2231_v32 = vshll.u32 %v2230_v53, 23  ;;  %v2228_v7 = vor.u32 %v2227_v8, %v2226_v63  ;;  %vm10840_vm14 = vcmp.le.f32.partialorder %v15875_v0, 0.7853982  ;;  %15882 = vst [vmem:[#allocation22_spill] sm:$0xff] %v10879_v38  ;;  %v15885_v0 = vld [vmem:[#allocation12_spill] sm:$0xff] }
 0x26c   : > { %v1914_v31 = vsel %vm7850_vm0, 0, %v7849_v17  ;;  %v2856_v30 = vmul.f32 %v2855_v24, %v2853_v48 }
 0x26d   : > { %v1919_v20 = vsub.s32 4294967266, %v1914_v31  ;;  %v1915_v19 = vsub.s32 32, %v1914_v31  ;;  %v1916_v60 = vshll.u32 %v10778_v29, %v1914_v31  ;;  %v2232_v54 = vor.u32 4788187, %v2231_v32  ;;  %v15868_v31 = vld [vmem:[#allocation25_spill] sm:$0xff] }
 0x26e   : > { %v15865_v29 = vand.u32 2147483647, %v15863_v56  ;;  %v2235_v21 = vcvt.s32.f32 %v2228_v7  ;;  %v2857_v44 = vxor.u32 2147483648, %v2856_v30  ;;  %vm2737_vm12 = vcmp.lt.s32.totalorder %v15868_v31, 0 }
 0x26f   : > { %v1920_v18 = vadd.s32 127, %v1919_v20  ;;  %v1917_v22 = vshrl.u32 %v1899_v2, %v1915_v19  ;;  %v2233_v26 = vand.u32 2147483647, %v2232_v54  ;;  %v15872_v16 = vand.u32 2147483647, %v15868_v31 }
 0x270   : > { %vm10806_vm11 = vcmp.le.f32.partialorder %v15865_v29, 0.7853982  ;;  %v2858_v57 = vsel %vm2737_vm12, %v2857_v44, %v2856_v30  ;;  %v15878_v19 = vand.u32 2147483647, %v15871_v37  ;;  %v2549_v54 = vsub.s32 4, %v10693_v39  ;;  %v10893_v29 = vpop.f32.mrf.mxu3 }
 0x271   : > { %v1921_v51 = vshll.u32 %v1920_v18, 23  ;;  %v1918_v28 = vor.u32 %v1917_v22, %v1916_v60  ;;  %v10815_v25 = vsel %vm10806_vm11, %v15863_v56, %v2548_v10  ;;  %v2236_v1 = vmul.f32 %v2235_v21, %v2233_v26 }
 0x272   : > { %v10802_v11 = vpop.permute.xlu1 %5546  ;;  %v2553_v12 = vmul.f32 %v10815_v25, %v10815_v25  ;;  %vm10830_vm8 = vcmp.le.f32.partialorder %v15872_v16, 0.7853982  ;;  %vm10848_vm13 = vcmp.le.f32.partialorder %v15878_v19, 0.7853982  ;;  %vm2878_vm10 = vweird.f32 %v15868_v31 }
 0x273   : > { %15864 = vst [vmem:[#allocation26_spill] sm:$0xff] %v10802_v11  ;;  %v1922_v23 = vor.u32 4788187, %v1921_v51  ;;  %v1925_v17 = vcvt.s32.f32 %v1918_v28  ;;  %v2237_v34 = vxor.u32 2147483648, %v2236_v1  ;;  %v10857_v59 = vsel %vm10830_vm8, %v15868_v31, %v2858_v57 }
 0x274   : > { %v2561_v20 = vmul.f32 -0.00019511016, %v2553_v12  ;;  %v2554_v2 = vmul.f32 -0.001358992, %v2553_v12  ;;  %v10875_v22 = vmul.f32 %v10857_v59, %v10857_v59 }
 0x275   : > { %v1923_v41 = vand.u32 2147483647, %v1922_v23  ;;  %v2238_v53 = vsel %vm2117_vm5, %v2237_v34, %v2236_v1 }
 0x276   : > { %v2562_v14 = vadd.f32 0.008332121, %v2561_v20  ;;  %v10864_v63 = vsel %vm10840_vm14, %v15870_v6, %v2238_v53  ;;  %v2555_v60 = vadd.f32 0.041655596, %v2554_v2  ;;  %v2871_v48 = vmul.f32 -0.00019511016, %v10875_v22 }
 0x277   : > { %v1926_v49 = vmul.f32 %v1925_v17, %v1923_v41  ;;  %v10883_v50 = vmul.f32 %v10864_v63, %v10864_v63  ;;  %v2550_v41 = vsel %vm2427_vm3, %v2549_v54, %v10693_v39  ;;  %v2864_v1 = vmul.f32 -0.001358992, %v10875_v22  ;;  %v15886_v39 = vld [vmem:[#allocation11_spill] sm:$0xff] }
 0x278   : > { %v2563_v51 = vmul.f32 %v2562_v14, %v2553_v12  ;;  %v2556_v23 = vmul.f32 %v2555_v60, %v2553_v12  ;;  %v2552_v16 = vsel %vm10806_vm11, 0, %v2550_v41  ;;  %v2859_v41 = vsub.s32 4, %v10741_v62 }
 0x279   : > { %v1927_v13 = vxor.u32 2147483648, %v1926_v49  ;;  %v2251_v26 = vmul.f32 -0.00019511016, %v10883_v50  ;;  %v2244_v34 = vmul.f32 -0.001358992, %v10883_v50  ;;  %v10906_v20 = vpop.permute.xlu2 %273  ;;  %v2569_v35 = vadd.s32 3, %v2552_v16 }
 0x27a   : > { %v10824_v45 = vpop.permute.xlu1 %5531  ;;  %v2564_v24 = vadd.f32 -0.16666654, %v2563_v51  ;;  %v2557_v30 = vadd.f32 -0.4999988, %v2556_v23  ;;  %15884 = vst [vmem:[#allocation41_spill] sm:$0xff] %v10906_v20  ;;  %v326_v2 = vmul.f32 %v15886_v39, %v10906_v20  ;;  %v1929_v16 = vsub.s32 4, %v10771_v55 }
 0x27b   : > { %15869 = vst [vmem:[#allocation27_spill] sm:$0xff] %v10824_v45  ;;  %v1928_v61 = vsel %vm1807_vm2, %v1927_v13, %v1926_v49  ;;  %v2872_v49 = vadd.f32 0.008332121, %v2871_v48  ;;  %v2252_v13 = vadd.f32 0.008332121, %v2251_v26 }
 0x27c   : > { %v10797_v40 = vpop.f32.mrf.mxu1  ;;  %v10871_v32 = vsel %vm10848_vm13, %v15871_v37, %v1928_v61  ;;  %v2565_v44 = vmul.f32 %v2564_v24, %v2553_v12  ;;  %v2558_v60 = vmul.f32 %v2557_v30, %v2553_v12  ;;  %v2865_v51 = vadd.f32 0.041655596, %v2864_v1 }
 0x27d   : > { %v10887_v7 = vmul.f32 %v10871_v32, %v10871_v32  ;;  %v2873_v54 = vmul.f32 %v2872_v49, %v10875_v22  ;;  %v2245_v24 = vadd.f32 0.041655596, %v2244_v34  ;;  %v2253_v26 = vmul.f32 %v2252_v13, %v10883_v50 }
 0x27e   : > { %v2566_v23 = vadd.f32 1.0, %v2565_v44  ;;  %v2866_v12 = vmul.f32 %v2865_v51, %v10875_v22  ;;  %v2239_v49 = vsub.s32 4, %v10754_v5  ;;  %v2570_v34 = vand.u32 3, %v2569_v35  ;;  %v15892_v51 = vld [vmem:[#allocation35_spill] sm:$0xff] }
 0x27f   : > { %v1941_v21 = vmul.f32 -0.00019511016, %v10887_v7  ;;  %v1934_v61 = vmul.f32 -0.001358992, %v10887_v7  ;;  %v2874_v30 = vadd.f32 -0.16666654, %v2873_v54 }
 0x280   : > { %v2567_v44 = vmul.f32 %v2566_v23, %v10815_v25  ;;  %v15893_v54 = vld [vmem:[#allocation34_spill] sm:$0xff]  ;;  %v2860_v25 = vsel %vm2737_vm12, %v2859_v41, %v10741_v62  ;;  %v15896_v23 = vld [vmem:[#allocation29_spill] sm:$0xff]  ;;  %vm2571_vm15 = vcmp.lt.s32.totalorder %v2570_v34, 2  ;;  %vm2572_vm7 = vcmp.eq.s32.totalorder %v2570_v34, 0 }
 0x281   : > { %v1942_v57 = vadd.f32 0.008332121, %v1941_v21  ;;  %v1935_v20 = vadd.f32 0.041655596, %v1934_v61  ;;  %v15890_v61 = vld [vmem:[#allocation30_spill] sm:$0xff]  ;;  %v10943_v47 = vadd.f32 %v15893_v54, %v15892_v51  ;;  %vm2575_vm4 = vcmp.eq.s32.totalorder %v2570_v34, 2 }
 0x282   : > { %v2573_v51 = vxor.u32 2147483648, %v2567_v44 }
 0x283   : > { %v1943_v21 = vmul.f32 %v1942_v57, %v10887_v7  ;;  %v2246_v57 = vmul.f32 %v2245_v24, %v10883_v50  ;;  %15894 = vst [vmem:[#allocation39_spill] sm:$0xff] %v10943_v47  ;;  %v1936_v24 = vmul.f32 %v1935_v20, %v10887_v7  ;;  %v1930_v20 = vsel %vm1807_vm2, %v1929_v16, %v10771_v55 }
 0x284   : > { %v10817_v27 = vpop.f32.mrf.mxu1 }
 0x285   : > { %v1944_v46 = vadd.f32 -0.16666654, %v1943_v21  ;;  %v2240_v21 = vsel %vm2117_vm5, %v2239_v49, %v10754_v5  ;;  %v1937_v49 = vadd.f32 -0.4999988, %v1936_v24 }
 0x286   : > { %v10914_v19 = vpop.f32.mrf.mxu2 }
 0x287   : > { %v10819_v15 = vpop.f32.mrf.mxu0  ;;  %v1945_v5 = vmul.f32 %v1944_v46, %v10887_v7  ;;  %v5585_v46 = vadd.f32 %v10799_v43, %v10824_v45 }
 0x288   : > { %v10925_v36 = vpop.f32.mrf.mxu3 }
 0x28c   : > { %v10836_v33 = vpop.f32.mrf.mxu1 }
 0x28e   : > { %v5701_v41 = vpop.f32.mrf.mxu2 }
 0x28f   : > { %v10859_v58 = vpop.f32.mrf.mxu0 }
 0x290   : > { %v10866_v8 = vpop.permute.xlu1 %380 }
 0x291   : > { %15881 = vst [vmem:[#allocation23_spill] sm:$0xff] %v10866_v8  ;;  %v428_v53 = vmul.f32 %v15885_v0, %v10866_v8  ;;  %v2559_v8 = vadd.f32 1.0, %v2558_v60 }
 0x293   : > { %v460_v42 = vadd.f32 %v428_v53, %v326_v2  ;;  %v2254_v53 = vadd.f32 -0.16666654, %v2253_v26  ;;  %v15889_v2 = vld [vmem:[#allocation43_spill] sm:$0xff]  ;;  %v2576_v62 = vxor.u32 2147483648, %v2559_v8  ;;  %v2574_v24 = vsel %vm2572_vm7, %v2559_v8, %v2573_v51 }
 0x294   : > { %v10890_v28 = vpop.f32.mrf.mxu1  ;;  %v10939_v60 = vadd.f32 %v15890_v61, %v15889_v2  ;;  %v2875_v2 = vmul.f32 %v2874_v30, %v10875_v22  ;;  %v10956_v61 = vpop.permute.xlu0 %5536  ;;  %v2862_v30 = vsel %vm10830_vm8, 0, %v2860_v25 }
 0x295   : > { %15898 = vst [vmem:[#allocation40_spill] sm:$0xff] %v10956_v61  ;;  %v5593_v16 = vadd.f32 %v10819_v15, %v10956_v61  ;;  %v2577_v15 = vsel %vm2575_vm4, %v2576_v62, %v2567_v44 }
 0x296   : > { %15891 = vst [vmem:[#allocation42_spill] sm:$0xff] %v10939_v60  ;;  %v2876_v55 = vadd.f32 1.0, %v2875_v2  ;;  %v2583_v56 = vand.u32 2139095040, %v10939_v60 }
 0x298   : > { %v10895_v10 = vpop.f32.mrf.mxu0 }
 0x299   : > { %v10902_v17 = vpop.permute.xlu1 %263  ;;  %v5609_v52 = vadd.f32 %v10895_v10, %v10802_v11  ;;  %v1938_v10 = vmul.f32 %v1937_v49, %v10887_v7  ;;  %v5654_v11 = vadd.f32 %v10817_v27, %v5593_v16  ;;  %v2578_v7 = vsel %vm2571_vm15, %v2574_v24, %v2577_v15  ;;  %v5706_v27 = vpop.f32.mrf.mxu2 }
 0x29a   : > { %15883 = vst [vmem:[#allocation31_spill] sm:$0xff] %v10902_v17  ;;  %vm1948_vm15 = vweird.f32 %v15871_v37 }
 0x29d   : > { %v10917_v14 = vpop.f32.mrf.mxu1 }
 0x2a0   : > { %v10920_v48 = vpop.f32.mrf.mxu0 }
 0x2a3   : > { %v10928_v1 = vpop.permute.xlu1 %514 }
 0x2a4   : > { %15887 = vst [vmem:[#allocation17_spill] sm:$0xff] %v10928_v1  ;;  %v10933_v13 = vadd.f32 %v10928_v1, %v460_v42  ;;  %v15895_v42 = vld [vmem:[#allocation20_spill] sm:$0xff]  ;;  %v2242_v1 = vsel %vm10840_vm14, 0, %v2240_v21 }
 0x2a5   : > { %v10950_v35 = vadd.f32 %v15896_v23, %v15895_v42  ;;  %v10953_v26 = vpop.f32.mrf.mxu1  ;;  %v2247_v42 = vadd.f32 -0.4999988, %v2246_v57  ;;  %v5601_v23 = vadd.f32 %v10859_v58, %v10879_v38  ;;  %v1932_v58 = vsel %vm10848_vm13, 0, %v1930_v20 }
 0x2a6   : > { %15888 = vst [vmem:[#allocation38_spill] sm:$0xff] %v10933_v13  ;;  %v2867_v13 = vadd.f32 -0.4999988, %v2866_v12  ;;  %v2255_v12 = vmul.f32 %v2254_v53, %v10883_v50  ;;  %v2879_v57 = vadd.s32 3, %v2862_v30  ;;  %v5745_v53 = vpop.f32.mrf.mxu3  ;;  %v2259_v2 = vadd.s32 3, %v2242_v1 }
 0x2a7   : > { %15897 = vst [vmem:[#allocation24_spill] sm:$0xff] %v10950_v35  ;;  %v2248_v9 = vmul.f32 %v2247_v42, %v10883_v50  ;;  %v1949_v21 = vadd.s32 3, %v1932_v58  ;;  %v2877_v30 = vmul.f32 %v2876_v55, %v10857_v59  ;;  %v1963_v43 = vand.u32 2139095040, %v10950_v35 }
 0x2a8   : > { %v10961_v54 = vpop.f32.mrf.mxu0  ;;  %v2868_v0 = vmul.f32 %v2867_v13, %v10875_v22  ;;  %v2256_v25 = vadd.f32 1.0, %v2255_v12  ;;  %v5658_v22 = vadd.f32 %v10836_v33, %v5601_v23  ;;  %v1946_v13 = vadd.f32 1.0, %v1945_v5 }
 0x2a9   : > { %v5662_v50 = vadd.f32 %v10890_v28, %v5609_v52  ;;  %v2880_v8 = vand.u32 3, %v2879_v57  ;;  %v5650_v33 = vadd.f32 %v10797_v40, %v5585_v46  ;;  %v2249_v1 = vadd.f32 1.0, %v2248_v9 }
 0x2aa   : > { %v2869_v20 = vadd.f32 1.0, %v2868_v0  ;;  %v2257_v44 = vmul.f32 %v2256_v25, %v10864_v63  ;;  %v5702_v62 = vadd.f32 %v5701_v41, %v5658_v22  ;;  %v1947_v0 = vmul.f32 %v1946_v13, %v10871_v32 }
 0x2ab   : > { %v2260_v42 = vand.u32 3, %v2259_v2  ;;  %v1939_v59 = vadd.f32 1.0, %v1938_v10  ;;  %v1950_v28 = vand.u32 3, %v1949_v21  ;;  %v2883_v12 = vxor.u32 2147483648, %v2877_v30 }
 0x2ac   : > { %v2886_v23 = vxor.u32 2147483648, %v2869_v20  ;;  %v5697_v40 = vadd.f32 %v10914_v19, %v5654_v11  ;;  %v5707_v5 = vadd.f32 %v5706_v27, %v5662_v50  ;;  %vm2882_vm9 = vcmp.eq.s32.totalorder %v2880_v8, 0 }
 0x2ad   : > { %v5829_v18 = vpop.f32.mrf.mxu1  ;;  %vm2885_vm0 = vcmp.eq.s32.totalorder %v2880_v8, 2  ;;  %v5692_v63 = vadd.f32 %v10877_v4, %v5650_v33  ;;  %v2263_v34 = vxor.u32 2147483648, %v2257_v44  ;;  %v2266_v41 = vxor.u32 2147483648, %v2249_v1 }
 0x2ae   : > { %vm2881_vm3 = vcmp.lt.s32.totalorder %v2880_v8, 2  ;;  %v5746_v32 = vadd.f32 %v5745_v53, %v5702_v62  ;;  %v1953_v49 = vxor.u32 2147483648, %v1947_v0  ;;  %vm2262_vm11 = vcmp.eq.s32.totalorder %v2260_v42, 0  ;;  %v5751_v55 = vpop.f32.mrf.mxu3 }
 0x2af   : > { %vm2265_vm12 = vcmp.eq.s32.totalorder %v2260_v42, 2  ;;  %vm1952_vm5 = vcmp.eq.s32.totalorder %v1950_v28, 0  ;;  %v1956_v16 = vxor.u32 2147483648, %v1939_v59  ;;  %v2884_v52 = vsel %vm2882_vm9, %v2869_v20, %v2883_v12 }
 0x2b0   : > { %v5792_v51 = vpop.f32.mrf.mxu0  ;;  %v2887_v58 = vsel %vm2885_vm0, %v2886_v23, %v2877_v30  ;;  %v5740_v57 = vadd.f32 %v10925_v36, %v5697_v40  ;;  %v5752_v11 = vadd.f32 %v5751_v55, %v5707_v5  ;;  %vm1955_vm2 = vcmp.eq.s32.totalorder %v1950_v28, 2  ;;  %v15903_v55 = vld [vmem:[#allocation44_spill] sm:$0xff] }
 0x2b1   : > { %v5793_v19 = vadd.f32 %v5792_v51, %v5746_v32  ;;  %v5734_v46 = vadd.f32 %v10893_v29, %v5692_v63  ;;  %vm2261_vm8 = vcmp.lt.s32.totalorder %v2260_v42, 2  ;;  %v2264_v4 = vsel %vm2262_vm11, %v2249_v1, %v2263_v34 }
 0x2b2   : > { %v2267_v9 = vsel %vm2265_vm12, %v2266_v41, %v2257_v44  ;;  %v5789_v24 = vadd.f32 %v10961_v54, %v5740_v57  ;;  %v2888_v2 = vsel %vm2881_vm3, %v2884_v52, %v2887_v58  ;;  %vm1951_vm14 = vcmp.lt.s32.totalorder %v1950_v28, 2 }
 0x2b3   : > { %v5830_v13 = vadd.f32 %v5829_v18, %v5793_v19  ;;  %v1954_v15 = vsel %vm1952_vm5, %v1939_v59, %v1953_v49  ;;  %v1957_v36 = vsel %vm1955_vm2, %v1956_v16, %v1947_v0  ;;  %vm2258_vm13 = vweird.f32 %v15870_v6  ;;  %v15904_v16 = vld [vmem:[#allocation36_spill] sm:$0xff] }
 0x2b4   : > { %v5785_v10 = vadd.f32 %v10920_v48, %v5734_v46  ;;  %v2268_v29 = vsel %vm2261_vm8, %v2264_v4, %v2267_v9  ;;  %v5826_v21 = vadd.f32 %v10953_v26, %v5789_v24  ;;  %v2273_v30 = vand.u32 2139095040, %v10943_v47 }
 0x2b5   : > { %v5833_v53 = vpop.f32.mrf.mxu1  ;;  %v2579_v54 = vsel %vm2568_vm1, nan, %v2578_v7  ;;  %v2889_v18 = vsel %vm2878_vm10, nan, %v2888_v2  ;;  %v1958_v50 = vsel %vm1951_vm14, %v1954_v15, %v1957_v36  ;;  %v1964_v48 = vshrl.u32 %v1963_v43, 23 }
 0x2b6   : > { %v5822_v8 = vadd.f32 %v10917_v14, %v5785_v10  ;;  %v6118_v6 = vmul.f32 %v5830_v13, %v2579_v54  ;;  %v2269_v26 = vsel %vm2258_vm13, nan, %v2268_v29  ;;  %v2274_v37 = vshrl.u32 %v2273_v30, 23 }
 0x2b7   : > { %v11016_v51 = vmul.f32 %v5826_v21, %v2269_v26  ;;  %v1959_v44 = vsel %vm1948_vm15, nan, %v1958_v50  ;;  %v7851_v62 = vadd.s32 4294967169, %v1964_v48  ;;  %v2584_v42 = vshrl.u32 %v2583_v56, 23 }
 0x2b8   : > { %v5796_v25 = vpop.f32.mrf.mxu0  ;;  %v11021_v7 = vmul.f32 %v5822_v8, %v1959_v44  ;;  %v11023_v31 = vand.u32 4294901760, %v6118_v6  ;;  %v7857_v0 = vadd.s32 4294967169, %v2274_v37  ;;  %v15462_v23 = vand.u32 2147483647, %v10939_v60 }
 0x2b9   : > { %v5797_v22 = vadd.f32 %v5796_v25, %v5752_v11  ;;  %v11031_v43 = vand.u32 4294901760, %v11016_v51  ;;  %v1970_v59 = vadd.s32 1, %v7851_v62  ;;  %v7863_v12 = vadd.s32 4294967169, %v2584_v42 }
 0x2ba   : > { %15900 = vst [vmem:[#allocation32_spill] sm:$0xff] %v11023_v31  ;;  %v11037_v27 = vand.u32 4294901760, %v11021_v7  ;;  %v2280_v28 = vadd.s32 1, %v7857_v0  ;;  %v2587_v63 = vand.u32 8388607, %v15462_v23  ;;  %v11048_v52 = vadd.f32 %v15904_v16, %v15903_v55 }
 0x2bb   : > { %v5834_v20 = vadd.f32 %v5833_v53, %v5797_v22  ;;  %15901 = vst [vmem:[#allocation19_spill] sm:$0xff] %v11031_v43  ;;  %vm1971_vm7 = vcmp.gt.s32.totalorder %v1970_v59, 0  ;;  %v2590_v40 = vadd.s32 1, %v7863_v12  ;;  %v15461_v57 = vand.u32 2147483647, %v10943_v47 }
 0x2bc   : > { %15902 = vst [vmem:[#allocation18_spill] sm:$0xff] %v11037_v27  ;;  %vm2281_vm4 = vcmp.gt.s32.totalorder %v2280_v28, 0  ;;  %v1972_v5 = vsel %vm1971_vm7, %v1970_v59, 0  ;;  %v2588_v49 = vor.u32 8388608, %v2587_v63  ;;  %v11058_v46 = vsub.f32 %v6118_v6, %v11023_v31 }
 0x2bd   : > { %v6120_v33 = vmul.f32 %v5834_v20, %v2889_v18  ;;  %v2282_v34 = vsel %vm2281_vm4, %v2280_v28, 0  ;;  %v1974_v41 = vand.u32 31, %v1972_v5  ;;  %vm2591_vm1 = vcmp.gt.s32.totalorder %v2590_v40, 0 }
 0x2be   : > { %v2284_v32 = vand.u32 31, %v2282_v34  ;;  %v11050_v58 = vsel %vm2591_vm1, %v2590_v40, 0  ;;  %v11063_v9 = vshll.u32 %v2588_v49, 8  ;;  %v2893_v25 = vand.u32 2139095040, %v11048_v52 }
 0x2bf   : > { %v11018_v1 = vand.u32 4294901760, %v6120_v33  ;;  %v11053_v11 = vsub.s32 32, %v1974_v41  ;;  %v11061_v4 = vand.u32 31, %v11050_v58  ;;  %v11068_v53 = vand.u32 8388607, %v15461_v57 }
 0x2c0   : > { %v11055_v19 = vsub.s32 32, %v2284_v32  ;;  %15905 = vst [vmem:[#allocation28_spill] sm:$0xff] %v11063_v9  ;;  %v11070_v24 = vshrl.u32 %v2282_v34, 5  ;;  %v15907_v22 = vmov 920167782   ;;  %v11077_v10 = vshrl.u32 %v1972_v5, 5 }
 0x2c1   : > { %15899 = vst [vmem:[#allocation16_spill] sm:$0xff] %v11018_v1  ;;  %v11026_v14 = vsub.f32 %v6120_v33, %v11018_v1  ;;  %6167 = vmatpush.msrb.mxu0 %v11018_v1  ;;  %6318 = vmatpush.msrb.mxu3 %v11018_v1  ;;  %v1989_v13 = vshll.u32 %v15907_v22, %v1974_v41  ;;  %v15908_v2 = vmov 1326507024   ;;  %v15463_v36 = vand.u32 2147483647, %v10950_v35 }
 0x2c2   : > { %15906 = vst [vmem:[#allocation21_spill] sm:$0xff] %v11070_v24  ;;  %v1990_v15 = vshrl.u32 %v15908_v2, %v11053_v11  ;;  %v15909_v29 = vmov 2102212464   ;;  %v1987_v20 = vshrl.u32 %v15907_v22, %v11053_v11  ;;  %v2287_v30 = vshll.u32 %v15692_v3, %v2284_v32 }
 0x2c3   : > { %6169 = vmatpush.msrb.mxu0 %v11023_v31  ;;  %6274 = vmatpush.msrb.mxu2 %v11026_v14  ;;  %v1986_v21 = vshll.u32 %v15909_v29, %v1974_v41  ;;  %v15910_v54 = vmov 2475754826   ;;  %v2299_v50 = vshll.u32 %v15907_v22, %v2284_v32  ;;  %v2300_v8 = vshrl.u32 %v15908_v2, %v11055_v19 }
 0x2c4   : > { %6320 = vmatpush.msrb.mxu3 %v11023_v31  ;;  %v2290_v18 = vshll.u32 %v15910_v54, %v2284_v32  ;;  %v1980_v6 = vshll.u32 %v15910_v54, %v1974_v41  ;;  %v15911_v33 = vmov 2131351028   ;;  %v1984_v37 = vshrl.u32 %v15909_v29, %v11053_v11 }
 0x2c5   : > { %6171 = vmatpush.msrb.mxu0 %v11031_v43  ;;  %6277 = vmatpush.msrb.mxu2 %v11058_v46  ;;  %v1981_v48 = vshrl.u32 %v15911_v33, %v11053_v11  ;;  %v1983_v26 = vshll.u32 %v15911_v33, %v1974_v41  ;;  %v2288_v44 = vshrl.u32 %v15910_v54, %v11055_v19  ;;  %v1967_v59 = vand.u32 8388607, %v15463_v36 }
 0x2c6   : > { %6322 = vmatpush.msrb.mxu3 %v11031_v43  ;;  %v1977_v56 = vshll.u32 %v15692_v3, %v1974_v41  ;;  %v1978_v62 = vshrl.u32 %v15910_v54, %v11053_v11  ;;  %v1991_v0 = vor.u32 %v1990_v15, %v1989_v13  ;;  %v2291_v42 = vshrl.u32 %v15911_v33, %v11055_v19 }
 0x2c7   : > { %6173 = vmatpush.msrb.mxu0 %v11037_v27  ;;  %v1988_v28 = vor.u32 %v1987_v20, %v1986_v21  ;;  %vm1995_vm10 = vcmp.lt.s32.totalorder %v11077_v10, 4  ;;  %v2293_v12 = vshll.u32 %v15911_v33, %v2284_v32  ;;  %v2294_v40 = vshrl.u32 %v15909_v29, %v11055_v19 }
 0x2c8   : > { %6324 = vmatpush.msrb.mxu3 %v11037_v27  ;;  %v2296_v5 = vshll.u32 %v15909_v29, %v2284_v32  ;;  %v2297_v63 = vshrl.u32 %v15907_v22, %v11055_v19  ;;  %v2301_v34 = vor.u32 %v2300_v8, %v2299_v50  ;;  %vm2305_vm9 = vcmp.lt.s32.totalorder %v11070_v24, 4 }
 0x2c9   : > { %v11110_v41 = vor.u32 %v1981_v48, %v1980_v6  ;;  %v11112_v49 = vor.u32 %v1984_v37, %v1983_v26  ;;  %v11114_v55 = vor.u32 %v1978_v62, %v1977_v56  ;;  %vm1992_vm0 = vcmp.lt.s32.totalorder %v11077_v10, 1 }
 0x2ca   : > { %vm1994_vm3 = vcmp.lt.s32.totalorder %v11077_v10, 3  ;;  %v2005_v16 = vsel %vm1995_vm10, %v1991_v0, 1326507024  ;;  %v2894_v32 = vshrl.u32 %v2893_v25, 23  ;;  %v11120_v13 = vor.u32 %v2291_v42, %v2290_v18 }
 0x2cb   : > { %v1968_v15 = vor.u32 8388608, %v1967_v59  ;;  %v2001_v21 = vsel %vm1995_vm10, %v1988_v28, 920167782  ;;  %v11124_v20 = vor.u32 %v2294_v40, %v2293_v12  ;;  %v2298_v50 = vor.u32 %v2297_v63, %v2296_v5 }
 0x2cc   : > { %15912 = vst [vmem:[#allocation37_spill] sm:$0xff] %v11120_v13  ;;  %vm2302_vm11 = vcmp.lt.s32.totalorder %v11070_v24, 1  ;;  %vm2304_vm12 = vcmp.lt.s32.totalorder %v11070_v24, 3  ;;  %v2315_v8 = vsel %vm2305_vm9, %v2301_v34, 1326507024  ;;  %vm1993_vm5 = vcmp.lt.s32.totalorder %v11077_v10, 2 }
 0x2cd   : > { %15913 = vst [vmem:[#allocation25_spill] sm:$0xff] %v11124_v20  ;;  %v2004_v25 = vsel %vm1992_vm0, %v11110_v41, %v11112_v49  ;;  %v2006_v18 = vsel %vm1994_vm3, %v1988_v28, %v2005_v16  ;;  %v2278_v6 = vor.u32 8388608, %v11068_v53  ;;  %v11138_v48 = vor.u32 %v2288_v44, %v2287_v30 }
 0x2ce   : > { %v2000_v26 = vsel %vm1992_vm0, %v11114_v55, %v11110_v41  ;;  %v2002_v37 = vsel %vm1994_vm3, %v11112_v49, %v2001_v21  ;;  %v7869_v56 = vadd.s32 4294967169, %v2894_v32  ;;  %vm2303_vm2 = vcmp.lt.s32.totalorder %v11070_v24, 2  ;;  %v15926_v24 = vld [vmem:[#allocation12_spill] sm:$0xff] }
 0x2cf   : > { %15914 = vst [vmem:[#allocation33_spill] sm:$0xff] %v11138_v48  ;;  %v11148_v62 = vshll.u32 %v1968_v15, 8  ;;  %v2311_v0 = vsel %vm2305_vm9, %v2298_v50, 920167782  ;;  %v2314_v53 = vsel %vm2302_vm11, %v11120_v13, %v11124_v20  ;;  %v2316_v30 = vsel %vm2304_vm12, %v2298_v50, %v2315_v8 }
 0x2d0   : > { %v11160_v44 = vsel %vm1993_vm5, %v2004_v25, %v2006_v18  ;;  %v11163_v42 = vsub.s32 32, %v11061_v4  ;;  %v2003_v59 = vsel %vm1993_vm5, %v2000_v26, %v2002_v37  ;;  %v11168_v28 = vand.u32 65535, %v11063_v9 }
 0x2d1   : > { %15915 = vst [vmem:[#allocation15_spill] sm:$0xff] %v11148_v62  ;;  %v2310_v12 = vsel %vm2302_vm11, %v11138_v48, %v11120_v13  ;;  %v11174_v40 = vshll.u32 %v2278_v6, 8  ;;  %v2312_v5 = vsel %vm2304_vm12, %v11124_v20, %v2311_v0  ;;  %v11181_v63 = vsel %vm2303_vm2, %v2314_v53, %v2316_v30  ;;  %v11210_v0 = vpop.permute.xlu2 %268 }
 0x2d2   : > { %15916 = vst [vmem:[#allocation43_spill] sm:$0xff] %v11168_v28  ;;  %v2009_v34 = vand.u32 65535, %v11148_v62  ;;  %v15468_v16 = vshrl.u32 %v11160_v44, 16  ;;  %v11186_v32 = vshrl.u32 %v11050_v58, 5  ;;  %v2600_v15 = vshll.u32 %v15910_v54, %v11061_v4  ;;  %v11249_v28 = vld [vmem:[#allocation5 + $0xa0] sm:$0xff] }
 0x2d3   : > { %15917 = vst [vmem:[#allocation30_spill] sm:$0xff] %v11174_v40  ;;  %v2900_v21 = vadd.s32 1, %v7869_v56  ;;  %v2034_v50 = vshrl.u32 %v2003_v59, 16  ;;  %v2601_v8 = vshrl.u32 %v15911_v33, %v11163_v42  ;;  %v2603_v25 = vshll.u32 %v15911_v33, %v11061_v4 }
 0x2d4   : > { %v2604_v18 = vshrl.u32 %v15909_v29, %v11163_v42  ;;  %v11198_v6 = vshll.u32 %v15907_v22, %v11061_v4  ;;  %v11202_v58 = vshrl.u32 %v15908_v2, %v11163_v42  ;;  %v11206_v26 = vsel %vm2303_vm2, %v2310_v12, %v2312_v5  ;;  %15918 = vst [vmem:[#allocation35_spill] sm:$0xff] %v11210_v0 }
 0x2d5   : > { %v2319_v37 = vand.u32 65535, %v11174_v40  ;;  %v11214_v53 = vshll.u32 %v15909_v29, %v11061_v4  ;;  %v2010_v30 = vshrl.u32 %v11148_v62, 16  ;;  %v2011_v57 = vand.u32 65535, %v11160_v44  ;;  %15920 = vst [vmem:[#allocation34_spill] sm:$0xff] %v11249_v28 }
 0x2d6   : > { %v11220_v23 = vmul.u32 %v15468_v16, %v2009_v34  ;;  %vm2901_vm8 = vcmp.gt.s32.totalorder %v2900_v21, 0  ;;  %v2321_v12 = vand.u32 65535, %v11181_v63  ;;  %v2033_v5 = vand.u32 65535, %v2003_v59 }
 0x2d7   : > { %v11223_v36 = vmul.u32 %v2034_v50, %v2009_v34  ;;  %v11227_v56 = vshrl.u32 %v15907_v22, %v11163_v42  ;;  %v11230_v0 = vshrl.u32 %v11174_v40, 16  ;;  %v2343_v38 = vand.u32 65535, %v11206_v26 }
 0x2d8   : > { %v15482_v61 = vshrl.u32 %v11206_v26, 16  ;;  %v11234_v45 = vor.u32 %v2601_v8, %v2600_v15  ;;  %v11236_v16 = vor.u32 %v2604_v18, %v2603_v25  ;;  %v15919_v47 = vshrl.u32 %v11181_v63, 16 }
 0x2d9   : > { %v11244_v35 = vsel %vm2901_vm8, %v2900_v21, 0  ;;  %v2013_v31 = vmul.u32 %v2011_v57, %v2009_v34  ;;  %v11246_v1 = vmul.u32 %v2011_v57, %v2010_v30  ;;  %v2017_v40 = vshll.u32 %v11220_v23, 16 }
 0x2da   : > { %v11242_v60 = vmul.u32 %v15919_v47, %v2319_v37  ;;  %v2323_v15 = vmul.u32 %v2321_v12, %v2319_v37  ;;  %v2035_v8 = vmul.u32 %v2033_v5, %v2009_v34  ;;  %v11251_v25 = vmul.u32 %v2033_v5, %v2010_v30 }
 0x2db   : > { %v2039_v18 = vshll.u32 %v11223_v36, 16  ;;  %v11255_v59 = vmul.u32 %v2321_v12, %v11230_v0  ;;  %v2345_v47 = vmul.u32 %v2343_v38, %v2319_v37  ;;  %v11259_v21 = vmul.u32 %v15482_v61, %v2319_v37 }
 0x2dc   : > { %v6232_v57 = vsub.f32 %v11016_v51, %v11031_v43  ;;  %vm2615_vm14 = vcmp.lt.s32.totalorder %v11186_v32, 4  ;;  %v2327_v9 = vshll.u32 %v11242_v60, 16  ;;  %v11266_v34 = vmul.u32 %v2343_v38, %v11230_v0  ;;  %v11276_v43 = vpop.permute.xlu2 %372 }
 0x2dd   : > { %15921 = vst [vmem:[#allocation20_spill] sm:$0xff] %v11255_v59  ;;  %v6146_v5 = vsel %vm15592_vm6, %v11249_v28, 0  ;;  %v6221_v12 = vand.u32 4294901760, %v11026_v14  ;;  %v2019_v13 = vshll.u32 %v11246_v1, 16  ;;  %vm11272_vm13 = vc.u32 %v2013_v31, %v2017_v40 }
 0x2de   : > { %v2023_v61 = vadd.s32 %v2017_v40, %v2013_v31  ;;  %v2038_v51 = vmul.u32 %v2034_v50, %v2010_v30  ;;  %6280 = vmatpush.msrb.mxu2 %v6232_v57  ;;  %15924 = vst [vmem:[#allocation29_spill] sm:$0xff] %v11276_v43  ;;  %vm2043_vm15 = vc.u32 %v2035_v8, %v2039_v18  ;;  %v11281_v48 = vand.u32 4294901760, %v6146_v5 }
 0x2df   : > { %v11279_v38 = vadd.s32 %v2039_v18, %v2035_v8  ;;  %6365 = vmatpush.msra.mxu0 %v6221_v12  ;;  %v322_v28 = vmul.f32 %v15886_v39, %v10902_v17  ;;  %v424_v20 = vmul.f32 %v15926_v24, %v11276_v43  ;;  %v6222_v31 = vsub.f32 %v11026_v14, %v6221_v12 }
 0x2e0   : > { %15925 = vst [vmem:[#allocation44_spill] sm:$0xff] %v11281_v48  ;;  %v11290_v40 = vsub.f32 %v11021_v7, %v11037_v27  ;;  %vm2612_vm7 = vcmp.lt.s32.totalorder %v11186_v32, 1  ;;  %vm2614_vm4 = vcmp.lt.s32.totalorder %v11186_v32, 3  ;;  %v15928_v50 = vshrl.u32 %v11160_v44, 16 }
 0x2e1   : > { %v15929_v18 = vmov 0   ;;  %v11300_v17 = vsub.f32 %v6146_v5, %v11281_v48  ;;  %v6227_v14 = vand.u32 4294901760, %v11058_v46  ;;  %v6223_v7 = vand.u32 4294901760, %v6222_v31 }
 0x2e2   : > { %15927 = vst [vmem:[#allocation36_spill] sm:$0xff] %v11290_v40  ;;  %v2016_v8 = vmul.u32 %v15928_v50, %v2010_v30  ;;  %v2022_v62 = vsel %vm11272_vm13, 1, %v15929_v18  ;;  %v2044_v12 = vsel %vm2043_vm15, 1, %v15929_v18  ;;  %6283 = vmatpush.msrb.mxu2 %v11290_v40  ;;  %v6233_v43 = vand.u32 4294901760, %v6232_v57 }
 0x2e3   : > { %15930 = vst [vmem:[#allocation45_spill] sm:$0xff] %v11300_v17  ;;  %v2349_v24 = vshll.u32 %v11259_v21, 16  ;;  %v2329_v44 = vshll.u32 %v11255_v59, 16  ;;  %v15931_v30 = vshll.u32 %v11251_v25, 16  ;;  %v11315_v5 = vand.u32 4294901760, %v11300_v17  ;;  %6369 = vmatpush.msra.mxu0 %v6227_v14  ;;  %6286 = vmatmul.f32.vlgmr.msrb.gmra.mxu2 %v11300_v17 }
 0x2e4   : > { %v6228_v31 = vsub.f32 %v11058_v46, %v6227_v14  ;;  %vm11319_vm8 = vc.u32 %v2323_v15, %v2327_v9  ;;  %vm2025_vm13 = vc.u32 %v2023_v61, %v2019_v13  ;;  %6224 = vmatpush.msrb.mxu1 %v6223_v7  ;;  %v6234_v39 = vsub.f32 %v6232_v57, %v6233_v43 }
 0x2e5   : > { %vm11310_vm1 = vc.u32 %v11279_v38, %v15931_v30  ;;  %v11323_v27 = vadd.f32 %v424_v20, %v322_v28  ;;  %v2024_v30 = vadd.s32 %v2022_v62, %v2016_v8  ;;  %v2046_v48 = vadd.s32 %v2044_v12, %v2038_v51  ;;  %6373 = vmatpush.msra.mxu0 %v6233_v43 }
 0x2e6   : > { %v6177_v40 = vsub.f32 %v11300_v17, %v11315_v5  ;;  %v6229_v59 = vand.u32 4294901760, %v6228_v31  ;;  %6328 = vmatmul.f32.vlgmr.msrb.gmra.mxu3 %v11315_v5  ;;  %v2048_v46 = vsel %vm11310_vm1, 1, %v15929_v18  ;;  %v2351_v14 = vshll.u32 %v11266_v34, 16 }
 0x2e7   : > { %15936 = vst [vmem:[#allocation46_spill] sm:$0xff] %v11323_v27  ;;  %vm11332_vm15 = vc.u32 %v2345_v47, %v2349_v24  ;;  %v11336_v13 = vadd.s32 %v2349_v24, %v2345_v47  ;;  %v2333_v20 = vadd.s32 %v2327_v9, %v2323_v15  ;;  %v2026_v62 = vsel %vm2025_vm13, 1, %v15929_v18 }
 0x2e8   : > { %v11339_v28 = vand.u32 4294901760, %v6177_v40  ;;  %6230 = vmatpush.msrb.mxu1 %v6229_v59  ;;  %v6235_v43 = vand.u32 4294901760, %v6234_v39  ;;  %v2608_v57 = vor.u32 %v11227_v56, %v11214_v53  ;;  %v15939_v51 = vor.u32 %v11202_v58, %v11198_v6 }
 0x2e9   : > { %v11349_v12 = vand.u32 31, %v11244_v35  ;;  %v15940_v9 = vshrl.u32 %v11206_v26, 16  ;;  %v15941_v59 = vshrl.u32 %v11181_v63, 16  ;;  %v2040_v15 = vshrl.u32 %v11223_v36, 16 }
 0x2ea   : > { %v2625_v8 = vsel %vm2615_vm14, %v15939_v51, 1326507024  ;;  %v2050_v56 = vadd.s32 %v2048_v46, %v2046_v48  ;;  %6179 = vmatmul.f32.vlgmr.msrb.gmra.mxu0 %v11339_v28  ;;  %6236 = vmatpush.msrb.mxu1 %v6235_v43  ;;  %v2354_v6 = vsel %vm11332_vm15, 1, %v15929_v18  ;;  %v2332_v58 = vsel %vm11319_vm8, 1, %v15929_v18 }
 0x2eb   : > { %v2348_v24 = vmul.u32 %v15940_v9, %v11230_v0  ;;  %v2326_v39 = vmul.u32 %v15941_v59, %v11230_v0  ;;  %v2018_v26 = vshrl.u32 %v11220_v23, 16  ;;  %v2028_v53 = vadd.s32 %v2026_v62, %v2024_v30 }
 0x2ec   : > { %vm2357_vm1 = vc.u32 %v11336_v13, %v2351_v14  ;;  %v2597_v36 = vshll.u32 %v15692_v3, %v11061_v4  ;;  %v2598_v48 = vshrl.u32 %v15910_v54, %v11163_v42  ;;  %vm2613_vm13 = vcmp.lt.s32.totalorder %v11186_v32, 2 }
 0x2ed   : > { %vm2335_vm15 = vc.u32 %v2333_v20, %v2329_v44  ;;  %v2624_v63 = vsel %vm2612_vm7, %v11234_v45, %v11236_v16  ;;  %v2626_v23 = vsel %vm2614_vm4, %v2608_v57, %v2625_v8  ;;  %v11381_v0 = vsub.s32 32, %v11349_v12 }
 0x2ee   : > { %v2356_v47 = vadd.s32 %v2354_v6, %v2348_v24  ;;  %v2334_v40 = vadd.s32 %v2332_v58, %v2326_v39  ;;  %v2042_v4 = vshrl.u32 %v11251_v25, 16  ;;  %v2051_v7 = vadd.s32 %v2050_v56, %v2040_v15 }
 0x2ef   : > { %v2358_v37 = vsel %vm2357_vm1, 1, %v15929_v18  ;;  %v1976_v44 = vshrl.u32 %v15692_v3, %v11053_v11  ;;  %v2020_v31 = vshrl.u32 %v11246_v1, 16  ;;  %v2029_v50 = vadd.s32 %v2028_v53, %v2018_v26  ;;  %v15943_v53 = vld [vmem:[#allocation20_spill] sm:$0xff] }
 0x2f0   : > { %v2336_v30 = vsel %vm2335_vm15, 1, %v15929_v18  ;;  %v11389_v46 = vor.u32 %v2598_v48, %v2597_v36  ;;  %v2621_v61 = vsel %vm2615_vm14, %v2608_v57, 920167782  ;;  %v11395_v20 = vsel %vm2613_vm13, %v2624_v63, %v2626_v23 }
 0x2f1   : > { %v1997_v62 = vsel %vm1995_vm10, %v11112_v49, 2102212464  ;;  %v15499_v11 = vand.u32 2147483647, %v11048_v52  ;;  %v2919_v1 = vshll.u32 %v15907_v22, %v11349_v12  ;;  %v2350_v43 = vshrl.u32 %v11259_v21, 16 }
 0x2f2   : > { %v2360_v51 = vadd.s32 %v2358_v37, %v2356_v47  ;;  %v2920_v8 = vshrl.u32 %v15908_v2, %v11381_v0  ;;  %v2052_v57 = vadd.s32 %v2051_v7, %v2042_v4  ;;  %v2328_v9 = vshrl.u32 %v11242_v60, 16  ;;  %v15944_v47 = vld [vmem:[#allocation25_spill] sm:$0xff] }
 0x2f3   : > { %v2338_v24 = vadd.s32 %v2336_v30, %v2334_v40  ;;  %v1996_v59 = vsel %vm1992_vm0, %v1976_v44, %v11114_v55  ;;  %v1998_v49 = vsel %vm1994_vm3, %v11110_v41, %v1997_v62  ;;  %v11413_v39 = vadd.s32 %v2029_v50, %v2020_v31  ;;  %v15946_v44 = vld [vmem:[#allocation33_spill] sm:$0xff]  ;;  %v15947_v50 = vld [vmem:[#allocation15_spill] sm:$0xff] }
 0x2f4   : > { %v15942_v21 = vshll.u32 %v11251_v25, 16  ;;  %v11421_v56 = vshrl.u32 %v11244_v35, 5  ;;  %v2910_v60 = vshll.u32 %v15910_v54, %v11349_v12  ;;  %v2911_v55 = vshrl.u32 %v15911_v33, %v11381_v0 }
 0x2f5   : > { %v2913_v6 = vshll.u32 %v15911_v33, %v11349_v12  ;;  %v2914_v41 = vshrl.u32 %v15909_v29, %v11381_v0  ;;  %v2286_v25 = vshrl.u32 %v15692_v3, %v11055_v19  ;;  %v2361_v58 = vadd.s32 %v2360_v51, %v2350_v43 }
 0x2f6   : > { %v11418_v15 = vadd.s32 %v11279_v38, %v15942_v21  ;;  %v2352_v38 = vshrl.u32 %v11266_v34, 16  ;;  %v1999_v35 = vsel %vm1993_vm5, %v1996_v59, %v1998_v49  ;;  %v2056_v26 = vadd.s32 1, %v2052_v57  ;;  %v15949_v49 = vld [vmem:[#allocation28_spill] sm:$0xff] }
 0x2f7   : > { %v2330_v36 = vshrl.u32 %v15943_v53, 16  ;;  %v2339_v48 = vadd.s32 %v2338_v24, %v2328_v9  ;;  %v2897_v63 = vand.u32 8388607, %v15499_v11  ;;  %v2921_v23 = vor.u32 %v2920_v8, %v2919_v1  ;;  %v15948_v1 = vld [vmem:[#allocation37_spill] sm:$0xff]  ;;  %v15957_v11 = vld [vmem:[#allocation32_spill] sm:$0xff] }
 0x2f8   : > { %v2307_v4 = vsel %vm2305_vm9, %v15944_v47, 2102212464  ;;  %vm2055_vm10 = vc.u32 %v11413_v39, %v11418_v15  ;;  %v11444_v19 = vor.u32 %v2911_v55, %v2910_v60  ;;  %v2916_v10 = vshll.u32 %v15909_v29, %v11349_v12 }
 0x2f9   : > { %v2917_v7 = vshrl.u32 %v15907_v22, %v11381_v0  ;;  %vm2925_vm0 = vcmp.lt.s32.totalorder %v11421_v56, 4  ;;  %v11451_v37 = vor.u32 %v2914_v41, %v2913_v6  ;;  %v2306_v31 = vsel %vm2302_vm11, %v2286_v25, %v15946_v44 }
 0x2fa   : > { %v2053_v30 = vmul.u32 %v15947_v50, %v1999_v35  ;;  %v2362_v62 = vadd.s32 %v2361_v58, %v2352_v38  ;;  %v2308_v43 = vsel %vm2304_vm12, %v15948_v1, %v2307_v4  ;;  %v2057_v51 = vsel %vm2055_vm10, %v2056_v26, %v2052_v57  ;;  %v15950_v38 = vld [vmem:[#allocation43_spill] sm:$0xff] }
 0x2fb   : > { %v11460_v8 = vadd.s32 %v2339_v48, %v2330_v36  ;;  %v11465_v9 = vadd.s32 %v11336_v13, %v2351_v14  ;;  %v2632_v24 = vshrl.u32 %v11395_v20, 16  ;;  %vm2922_vm9 = vcmp.lt.s32.totalorder %v11421_v56, 1  ;;  %v15951_v36 = vld [vmem:[#allocation30_spill] sm:$0xff] }
 0x2fc   : > { %vm2924_vm3 = vcmp.lt.s32.totalorder %v11421_v56, 3  ;;  %v2935_v59 = vsel %vm2925_vm0, %v2921_v23, 1326507024  ;;  %v2620_v57 = vsel %vm2612_vm7, %v11389_v46, %v11234_v45  ;;  %v11477_v21 = vshrl.u32 %v15949_v49, 16 }
 0x2fd   : > { %v2898_v34 = vor.u32 8388608, %v2897_v63  ;;  %v2918_v14 = vor.u32 %v2917_v7, %v2916_v10  ;;  %v2622_v13 = vsel %vm2614_vm4, %v11236_v16, %v2621_v61  ;;  %v2309_v60 = vsel %vm2303_vm2, %v2306_v31, %v2308_v43 }
 0x2fe   : > { %v2058_v55 = vadd.s32 %v2057_v51, %v2053_v30  ;;  %v2366_v6 = vadd.s32 1, %v2362_v62  ;;  %vm2923_vm11 = vcmp.lt.s32.totalorder %v11421_v56, 2  ;;  %v2934_v41 = vsel %vm2922_vm9, %v11444_v19, %v11451_v37 }
 0x2ff   : > { %v2936_v25 = vsel %vm2924_vm3, %v2918_v14, %v2935_v59  ;;  %vm2365_vm12 = vc.u32 %v11460_v8, %v11465_v9  ;;  %v2631_v61 = vand.u32 65535, %v11395_v20  ;;  %v11495_v58 = vmul.u32 %v2632_v24, %v15950_v38 }
 0x300   : > { %v2907_v35 = vshll.u32 %v15692_v3, %v11349_v12  ;;  %v2908_v26 = vshrl.u32 %v15910_v54, %v11381_v0  ;;  %v11501_v53 = vshll.u32 %v2898_v34, 8  ;;  %v2363_v48 = vmul.u32 %v15951_v36, %v2309_v60 }
 0x301   : > { %v2937_v63 = vsel %vm2923_vm11, %v2934_v41, %v2936_v25  ;;  %v2059_v23 = vadd.s32 536870912, %v2058_v55  ;;  %v2367_v47 = vsel %vm2365_vm12, %v2366_v6, %v2362_v62  ;;  %v2596_v20 = vshrl.u32 %v15692_v3, %v11163_v42 }
 0x302   : > { %v2617_v40 = vsel %vm2615_vm14, %v11236_v16, 2102212464  ;;  %v2623_v12 = vsel %vm2613_vm13, %v2620_v57, %v2622_v13  ;;  %v2633_v4 = vmul.u32 %v2631_v61, %v15950_v38  ;;  %v11515_v10 = vmul.u32 %v2631_v61, %v11477_v21 }
 0x303   : > { %v2637_v7 = vshll.u32 %v11495_v58, 16  ;;  %v11518_v44 = vor.u32 %v2908_v26, %v2907_v35  ;;  %v2931_v31 = vsel %vm2925_vm0, %v2918_v14, 920167782  ;;  %v2939_v42 = vand.u32 65535, %v11501_v53 }
 0x304   : > { %v2942_v50 = vshrl.u32 %v2937_v63, 16  ;;  %v2368_v30 = vadd.s32 %v2367_v47, %v2363_v48  ;;  %v11523_v16 = vshrl.u32 %v2059_v23, 30  ;;  %v2616_v62 = vsel %vm2612_vm7, %v2596_v20, %v11389_v46 }
 0x305   : > { %v2618_v1 = vsel %vm2614_vm4, %v11234_v45, %v2617_v40  ;;  %v2653_v43 = vand.u32 65535, %v2623_v12  ;;  %v2654_v51 = vshrl.u32 %v2623_v12, 16  ;;  %v2639_v59 = vshll.u32 %v11515_v10, 16  ;;  %v15952_v40 = vld [vmem:[#allocation36_spill] sm:$0xff] }
 0x306   : > { %vm2641_vm5 = vc.u32 %v2633_v4, %v2637_v7  ;;  %v2930_v57 = vsel %vm2922_vm9, %v11518_v44, %v11444_v19  ;;  %v2932_v34 = vsel %vm2924_vm3, %v11451_v37, %v2931_v31  ;;  %v2643_v14 = vadd.s32 %v2637_v7, %v2633_v4  ;;  %v11564_v4 = vld [vmem:[#allocation5 + $0xa8] sm:$0xff] }
 0x307   : > { %v2941_v46 = vand.u32 65535, %v2937_v63  ;;  %v11539_v13 = vmul.u32 %v2942_v50, %v2939_v42  ;;  %v2369_v60 = vadd.s32 536870912, %v2368_v30  ;;  %v2061_v45 = vshll.u32 %v11523_v16, 30 }
 0x308   : > { %v11544_v6 = vsel %vm2613_vm13, %v2616_v62, %v2618_v1  ;;  %v2636_v41 = vmul.u32 %v2632_v24, %v11477_v21  ;;  %v2933_v25 = vsel %vm2923_vm11, %v2930_v57, %v2932_v34  ;;  %v2940_v61 = vshrl.u32 %v11501_v53, 16 }
 0x309   : > { %v2642_v35 = vsel %vm2641_vm5, 1, %v15929_v18  ;;  %v2655_v26 = vmul.u32 %v2653_v43, %v15950_v38  ;;  %v11553_v36 = vmul.u32 %v2654_v51, %v15950_v38  ;;  %v2963_v48 = vand.u32 65535, %v2933_v25 }
 0x30a   : > { %v2943_v63 = vmul.u32 %v2941_v46, %v2939_v42  ;;  %v2947_v32 = vshll.u32 %v11539_v13, 16  ;;  %v11556_v23 = vshrl.u32 %v2369_v60, 30  ;;  %vm2645_vm2 = vc.u32 %v2643_v14, %v2639_v59 }
 0x30b   : > { %v11559_v24 = vmul.u32 %v2653_v43, %v11477_v21  ;;  %v2964_v47 = vshrl.u32 %v2933_v25, 16  ;;  %v11561_v20 = vsub.s32 %v2058_v55, %v2061_v45  ;;  %v6239_v12 = vand.u32 4294901760, %v15952_v40 }
 0x30c   : > { %v2644_v7 = vadd.s32 %v2642_v35, %v2636_v41  ;;  %v2658_v38 = vmul.u32 %v2654_v51, %v11477_v21  ;;  %v11567_v31 = vmul.u32 %v2941_v46, %v2940_v61  ;;  %v6148_v62 = vsel %vm15592_vm6, %v11564_v4, 0 }
 0x30d   : > { %v2946_v1 = vmul.u32 %v2942_v50, %v2940_v61  ;;  %6377 = vmatpush.msra.mxu0 %v6239_v12  ;;  %v6240_v43 = vsub.f32 %v15952_v40, %v6239_v12  ;;  %v11572_v59 = vand.u32 4294901760, %v6148_v62  ;;  %v2646_v55 = vsel %vm2645_vm2, 1, %v15929_v18 }
 0x30e   : > { %vm2951_vm14 = vc.u32 %v2943_v63, %v2947_v32  ;;  %v2965_v57 = vmul.u32 %v2963_v48, %v2939_v42  ;;  %v2371_v34 = vshll.u32 %v11556_v23, 30  ;;  %v2659_v14 = vshll.u32 %v11553_v36, 16 }
 0x30f   : > { %v11577_v21 = vmul.u32 %v2964_v47, %v2939_v42  ;;  %v2064_v51 = vsub.s32 0, %v11561_v20  ;;  %v6241_v46 = vand.u32 4294901760, %v6240_v43  ;;  %v11581_v50 = vsub.f32 %v6148_v62, %v11572_v59 }
 0x310   : > { %v11583_v60 = vmul.u32 %v2963_v48, %v2940_v61  ;;  %vm2063_vm7 = vcmp.lt.s32.totalorder %v11561_v20, 0  ;;  %v2638_v45 = vshrl.u32 %v11495_v58, 16  ;;  %v2648_v41 = vadd.s32 %v2646_v55, %v2644_v7  ;;  %v15955_v48 = vld [vmem:[#allocation44_spill] sm:$0xff] }
 0x311   : > { %15953 = vst [vmem:[#allocation20_spill] sm:$0xff] %v11581_v50  ;;  %v2949_v25 = vshll.u32 %v11567_v31, 16  ;;  %v2952_v35 = vsel %vm2951_vm14, 1, %v15929_v18  ;;  %v2953_v40 = vadd.s32 %v2947_v32, %v2943_v63  ;;  %6242 = vmatpush.msrb.mxu1 %v6241_v46  ;;  %v11590_v42 = vand.u32 4294901760, %v11581_v50  ;;  %6291 = vmatmul.f32.gmra.mxu2 %v11581_v50  ;;  %v15956_v63 = vld [vmem:[#allocation16_spill] sm:$0xff] }
 0x312   : > { %v2968_v12 = vmul.u32 %v2964_v47, %v2940_v61  ;;  %v11593_v62 = vsub.s32 %v2368_v30, %v2371_v34  ;;  %6244 = vmatmul.f32.vlgmr.msrb.gmra.mxu1 %v15955_v48  ;;  %v2661_v43 = vshll.u32 %v11559_v24, 16  ;;  %vm2663_vm4 = vc.u32 %v2655_v26, %v2659_v14 }
 0x313   : > { %15954 = vst [vmem:[#allocation25_spill] sm:$0xff] %v11590_v42  ;;  %v2065_v58 = vsel %vm2063_vm7, %v2064_v51, %v11561_v20  ;;  %v6185_v7 = vsub.f32 %v11581_v50, %v11590_v42  ;;  %6408 = vmatpush.msra.mxu1 %v15956_v63  ;;  %v2664_v32 = vsel %vm2663_vm4, 1, %v15929_v18  ;;  %v2665_v55 = vadd.s32 %v2659_v14, %v2655_v26 }
 0x314   : > { %6334 = vmatmul.f32.gmra.mxu3 %v11590_v42  ;;  %v2954_v61 = vadd.s32 %v2952_v35, %v2946_v1  ;;  %v2640_v30 = vshrl.u32 %v11515_v10, 16  ;;  %v2649_v47 = vadd.s32 %v2648_v41, %v2638_v45  ;;  %v2666_v34 = vadd.s32 %v2664_v32, %v2658_v38  ;;  %v15958_v10 = vld [vmem:[#allocation19_spill] sm:$0xff] }
 0x315   : > { %v11604_v46 = vand.u32 4294901760, %v6185_v7  ;;  %6410 = vmatpush.msra.mxu1 %v15957_v11  ;;  %v2660_v51 = vshrl.u32 %v11553_v36, 16  ;;  %vm2667_vm8 = vc.u32 %v2665_v55, %v2661_v43  ;;  %vm2955_vm1 = vc.u32 %v2953_v40, %v2949_v25  ;;  %v15959_v40 = vld [vmem:[#allocation18_spill] sm:$0xff] }
 0x316   : > { %v2066_v27 = vclz %v2065_v58  ;;  %v2374_v63 = vsub.s32 0, %v11593_v62  ;;  %v2668_v26 = vsel %vm2667_vm8, 1, %v15929_v18  ;;  %v2956_v14 = vsel %vm2955_vm1, 1, %v15929_v18 }
 0x317   : > { %vm2373_vm13 = vcmp.lt.s32.totalorder %v11593_v62, 0  ;;  %6187 = vmatmul.f32.gmra.mxu0 %v11604_v46  ;;  %6412 = vmatpush.msra.mxu1 %v15958_v10  ;;  %v2662_v38 = vshrl.u32 %v11559_v24, 16  ;;  %v2670_v11 = vadd.s32 %v2668_v26, %v2666_v34  ;;  %v2969_v36 = vshll.u32 %v11577_v21, 16 }
 0x318   : > { %v11616_v1 = vadd.s32 %v2649_v47, %v2640_v30  ;;  %v11618_v45 = vadd.s32 %v2665_v55, %v2661_v43  ;;  %v2948_v41 = vshrl.u32 %v11539_v13, 16  ;;  %v2958_v25 = vadd.s32 %v2956_v14, %v2954_v61 }
 0x319   : > { %v2671_v35 = vadd.s32 %v2670_v11, %v2660_v51  ;;  %6414 = vmatpush.msra.mxu1 %v15959_v40  ;;  %v2971_v58 = vshll.u32 %v11583_v60, 16  ;;  %vm2973_vm15 = vc.u32 %v2965_v57, %v2969_v36  ;;  %v2673_v7 = vmul.u32 %v15949_v49, %v11544_v6 }
 0x31a   : > { %v2906_v24 = vshrl.u32 %v15692_v3, %v11381_v0  ;;  %v2375_v43 = vsel %vm2373_vm13, %v2374_v63, %v11593_v62  ;;  %6248 = vmatmul.f32.gmra.mxu1 %v11572_v59  ;;  %v2974_v13 = vsel %vm2973_vm15, 1, %v15929_v18  ;;  %v2927_v32 = vsel %vm2925_vm0, %v11451_v37, 2102212464 }
 0x31b   : > { %v2672_v55 = vadd.s32 %v2671_v35, %v2662_v38  ;;  %v2975_v61 = vadd.s32 %v2969_v36, %v2965_v57  ;;  %v2976_v30 = vadd.s32 %v2974_v13, %v2968_v12  ;;  %v7852_v47 = vadd.s32 4294967294, %v2066_v27 }
 0x31c   : > { %vm2675_vm10 = vc.u32 %v11616_v1, %v11618_v45  ;;  %v2950_v0 = vshrl.u32 %v11567_v31, 16  ;;  %v2959_v49 = vadd.s32 %v2958_v25, %v2948_v41  ;;  %v2376_v6 = vclz %v2375_v43 }
 0x31d   : > { %v2676_v34 = vadd.s32 1, %v2672_v55  ;;  %v2970_v51 = vshrl.u32 %v11577_v21, 16  ;;  %vm2977_vm12 = vc.u32 %v2975_v61, %v2971_v58  ;;  %v2926_v63 = vsel %vm2922_vm9, %v2906_v24, %v11518_v44 }
 0x31e   : > { %v2928_v37 = vsel %vm2924_vm3, %v11444_v19, %v2927_v32  ;;  %v2978_v27 = vsel %vm2977_vm12, 1, %v15929_v18  ;;  %v2972_v12 = vshrl.u32 %v11583_v60, 16  ;;  %vm7853_vm0 = vcmp.lt.s32.totalorder %v7852_v47, 0 }
 0x31f   : > { %v2677_v57 = vsel %vm2675_vm10, %v2676_v34, %v2672_v55  ;;  %v2980_v31 = vadd.s32 %v2978_v27, %v2976_v30  ;;  %v11647_v14 = vadd.s32 %v2959_v49, %v2950_v0  ;;  %v11649_v21 = vadd.s32 %v2975_v61, %v2971_v58 }
 0x320   : > { %v2678_v26 = vadd.s32 %v2677_v57, %v2673_v7  ;;  %v2929_v10 = vsel %vm2923_vm11, %v2926_v63, %v2928_v37  ;;  %v7858_v44 = vadd.s32 4294967294, %v2376_v6  ;;  %v2069_v36 = vsel %vm7853_vm0, 0, %v7852_v47  ;;  %v11661_v47 = vpop.permute.xlu0 %376  ;;  %v11666_v37 = vpop.f32.mrf.mxu2 }
 0x321   : > { %v2981_v38 = vadd.s32 %v2980_v31, %v2970_v51  ;;  %v2983_v41 = vmul.u32 %v11501_v53, %v2929_v10  ;;  %vm2985_vm9 = vc.u32 %v11647_v14, %v11649_v21  ;;  %v2074_v35 = vsub.s32 4294967266, %v2069_v36  ;;  %15960 = vst [vmem:[#allocation21_spill] sm:$0xff] %v11661_v47 }
 0x322   : > { %v2679_v11 = vadd.s32 536870912, %v2678_v26  ;;  %vm7859_vm3 = vcmp.lt.s32.totalorder %v7858_v44, 0  ;;  %v2054_v43 = vadd.s32 %v11418_v15, %v11413_v39  ;;  %v2070_v13 = vsub.s32 32, %v2069_v36 }
 0x323   : > { %v2982_v19 = vadd.s32 %v2981_v38, %v2972_v12  ;;  %v2379_v56 = vsel %vm7859_vm3, 0, %v7858_v44  ;;  %v2075_v32 = vadd.s32 127, %v2074_v35  ;;  %v2071_v0 = vshll.u32 %v11561_v20, %v2069_v36  ;;  %v11673_v44 = vpop.f32.mrf.mxu3 }
 0x324   : > { %v11654_v25 = vshrl.u32 %v2679_v11, 30  ;;  %v2384_v55 = vsub.s32 4294967266, %v2379_v56  ;;  %v2072_v49 = vshrl.u32 %v2054_v43, %v2070_v13  ;;  %v2364_v51 = vadd.s32 %v11465_v9, %v11460_v8 }
 0x325   : > { %v2986_v60 = vadd.s32 1, %v2982_v19  ;;  %v2076_v34 = vshll.u32 %v2075_v32, 23  ;;  %v2380_v63 = vsub.s32 32, %v2379_v56  ;;  %v2674_v12 = vadd.s32 %v11618_v45, %v11616_v1  ;;  %v15961_v45 = vld [vmem:[#allocation11_spill] sm:$0xff] }
 0x326   : > { %v2681_v40 = vshll.u32 %v11654_v25, 30  ;;  %v2385_v39 = vadd.s32 127, %v2384_v55  ;;  %v2073_v57 = vor.u32 %v2072_v49, %v2071_v0  ;;  %v2381_v20 = vshll.u32 %v11593_v62, %v2379_v56  ;;  %v6124_v49 = vld [vmem:[#allocation5 + $0xb0] sm:$0xff] }
 0x327   : > { %v2987_v58 = vsel %vm2985_vm9, %v2986_v60, %v2982_v19  ;;  %v2077_v31 = vor.u32 4788187, %v2076_v34  ;;  %v11676_v19 = vpop.permute.xlu2 %258  ;;  %6138 = vperm.xlu2 %8045, %v6124_v49   ;;  %v2704_v42 = vsub.s32 4, %v11654_v25  ;;  %vm2892_vm10 = vcmp.lt.s32.totalorder %v11048_v52, 0 }
 0x328   : > { %v2682_v7 = vsub.s32 %v2678_v26, %v2681_v40  ;;  %v2988_v24 = vadd.s32 %v2987_v58, %v2983_v41  ;;  %v2382_v26 = vshrl.u32 %v2364_v51, %v2380_v63  ;;  %v2386_v8 = vshll.u32 %v2385_v39, 23  ;;  %v11678_v41 = vpop.permute.xlu0 %368  ;;  %v15962_v58 = vld [vmem:[#allocation12_spill] sm:$0xff]  ;;  %v11686_v55 = vpop.f32.mrf.mxu2 }
 0x329   : > { %v320_v35 = vmul.f32 %v15961_v45, %v11676_v19  ;;  %v2078_v62 = vand.u32 2147483647, %v2077_v31  ;;  %v2080_v40 = vcvt.s32.f32 %v2073_v57  ;;  %v422_v56 = vmul.f32 %v15962_v58, %v11678_v41 }
 0x32a   : > { %vm2683_vm11 = vcmp.lt.s32.totalorder %v2682_v7, 0  ;;  %v2684_v53 = vsub.s32 0, %v2682_v7  ;;  %v2989_v30 = vadd.s32 536870912, %v2988_v24  ;;  %v2383_v43 = vor.u32 %v2382_v26, %v2381_v20 }
 0x32b   : > { %v2387_v13 = vor.u32 4788187, %v2386_v8  ;;  %v2081_v0 = vmul.f32 %v2080_v40, %v2078_v62  ;;  %v6150_v39 = vsel %vm15592_vm6, %v6124_v49, 0  ;;  %v2984_v45 = vadd.s32 %v11649_v21, %v11647_v14 }
 0x32c   : > { %v2685_v61 = vsel %vm2683_vm11, %v2684_v53, %v2682_v7  ;;  %v11668_v27 = vshrl.u32 %v2989_v30, 30  ;;  %v2390_v51 = vcvt.s32.f32 %v2383_v43  ;;  %v15971_v43 = vld [vmem:[#allocation34_spill] sm:$0xff] }
 0x32d   : > { %v2686_v6 = vclz %v2685_v61  ;;  %v2388_v34 = vand.u32 2147483647, %v2387_v13  ;;  %v2082_v20 = vxor.u32 2147483648, %v2081_v0  ;;  %v15972_v13 = vld [vmem:[#allocation39_spill] sm:$0xff] }
 0x32e   : > { %v2991_v36 = vshll.u32 %v11668_v27, 30  ;;  %vm2272_vm8 = vcmp.lt.s32.totalorder %v15972_v13, 0 }
 0x32f   : > { %v7864_v15 = vadd.s32 4294967294, %v2686_v6  ;;  %v11688_v6 = vadd.f32 %v422_v56, %v320_v35  ;;  %v2391_v26 = vmul.f32 %v2390_v51, %v2388_v34  ;;  %6128 = vperm.xlu2 %8045, %v15971_v43   ;;  %v15977_v34 = vand.u32 2147483647, %v15972_v13 }
 0x330   : > { %v11684_v53 = vsub.s32 %v2988_v24, %v2991_v36  ;;  %v11694_v24 = vpop.f32.mrf.mxu3 }
 0x331   : > { %vm7865_vm5 = vcmp.lt.s32.totalorder %v7864_v15, 0  ;;  %15963 = vst [vmem:[#allocation33_spill] sm:$0xff] %v11688_v6  ;;  %v2392_v40 = vxor.u32 2147483648, %v2391_v26  ;;  %vm11743_vm13 = vcmp.le.f32.partialorder %v15977_v34, 0.7853982 }
 0x332   : > { %v2689_v10 = vsel %vm7865_vm5, 0, %v7864_v15  ;;  %v11691_v15 = vand.u32 4294901760, %v6150_v39  ;;  %v2994_v57 = vsub.s32 0, %v11684_v53  ;;  %vm2993_vm2 = vcmp.lt.s32.totalorder %v11684_v53, 0 }
 0x333   : > { %v2690_v9 = vsub.s32 32, %v2689_v10  ;;  %v2691_v38 = vshll.u32 %v2682_v7, %v2689_v10  ;;  %v2694_v11 = vsub.s32 4294967266, %v2689_v10  ;;  %v15965_v10 = vld [vmem:[#allocation24_spill] sm:$0xff] }
 0x334   : > { %v11698_v31 = vsub.f32 %v6150_v39, %v11691_v15  ;;  %6252 = vmatmul.f32.gmra.mxu1 %v11691_v15  ;;  %vm1962_vm14 = vcmp.lt.s32.totalorder %v15965_v10, 0 }
 0x335   : > { %v2692_v60 = vshrl.u32 %v2674_v12, %v2690_v9  ;;  %v2695_v1 = vadd.s32 127, %v2694_v11  ;;  %v15967_v11 = vld [vmem:[#allocation42_spill] sm:$0xff]  ;;  %v2083_v62 = vsel %vm1962_vm14, %v2082_v20, %v2081_v0 }
 0x336   : > { %15964 = vst [vmem:[#allocation15_spill] sm:$0xff] %v11698_v31  ;;  %v11703_v9 = vand.u32 4294901760, %v11698_v31  ;;  %6296 = vmatmul.f32.gmra.mxu2 %v11698_v31  ;;  %vm2582_vm7 = vcmp.lt.s32.totalorder %v15967_v11, 0 }
 0x337   : > { %v2693_v7 = vor.u32 %v2692_v60, %v2691_v38  ;;  %v2696_v32 = vshll.u32 %v2695_v1, 23  ;;  %v2995_v38 = vsel %vm2993_vm2, %v2994_v57, %v11684_v53  ;;  %v11711_v60 = vpop.f32.mrf.mxu2  ;;  %v15968_v1 = vand.u32 2147483647, %v15965_v10  ;;  %8048 = vset.pattern.permute.xlu2 %v15929_v18 }
 0x338   : > { %15966 = vst [vmem:[#allocation37_spill] sm:$0xff] %v11703_v9  ;;  %v6193_v36 = vsub.f32 %v11698_v31, %v11703_v9  ;;  %6340 = vmatmul.f32.gmra.mxu3 %v11703_v9  ;;  %v2996_v56 = vclz %v2995_v38  ;;  %v11739_v49 = vpop.f32.mrf.mxu3  ;;  %v15980_v9 = vld [vmem:[#allocation27_spill] sm:$0xff] }
 0x339   : > { %v2697_v61 = vor.u32 4788187, %v2696_v32  ;;  %v2700_v30 = vcvt.s32.f32 %v2693_v7  ;;  %vm11715_vm4 = vcmp.le.f32.partialorder %v15968_v1, 0.7853982  ;;  %v15973_v7 = vand.u32 2147483647, %v15967_v11 }
 0x33a   : > { %v11736_v0 = vsel %vm11715_vm4, %v15965_v10, %v2083_v62  ;;  %v7870_v57 = vadd.s32 4294967294, %v2996_v56  ;;  %v6011_v56 = vpop.f32.mrf.mxu1 }
 0x33b   : > { %v2698_v63 = vand.u32 2147483647, %v2697_v61  ;;  %vm11725_vm1 = vcmp.le.f32.partialorder %v15973_v7, 0.7853982 }
 0x33c   : > { %vm7871_vm15 = vcmp.lt.s32.totalorder %v7870_v57, 0 }
 0x33d   : > { %v2701_v12 = vmul.f32 %v2700_v30, %v2698_v63  ;;  %v11731_v30 = vand.u32 4294901760, %v6193_v36  ;;  %v2393_v63 = vsel %vm2272_vm8, %v2392_v40, %v2391_v26  ;;  %v5969_v26 = vpop.f32.mrf.mxu0  ;;  %v2999_v40 = vsel %vm7871_vm15, 0, %v7870_v57 }
 0x33e   : > { %v11761_v20 = vsel %vm11743_vm13, %v15972_v13, %v2393_v63  ;;  %v3004_v63 = vsub.s32 4294967266, %v2999_v40  ;;  %v3000_v18 = vsub.s32 32, %v2999_v40  ;;  %v2084_v57 = vsub.s32 4, %v11523_v16 }
 0x33f   : > { %v2702_v8 = vxor.u32 2147483648, %v2701_v12  ;;  %15976 = vst [vmem:[#allocation28_spill] sm:$0xff] %v11731_v30  ;;  %6195 = vmatmul.f32.gmra.mxu0 %v11731_v30  ;;  %v5886_v38 = vpop.f32.mrf.mxu2  ;;  %v11771_v1 = vmul.f32 %v11761_v20, %v11761_v20  ;;  %v3001_v14 = vshll.u32 %v11684_v53, %v2999_v40  ;;  %v15981_v30 = vld [vmem:[#allocation40_spill] sm:$0xff] }
 0x340   : > { %v5939_v7 = vpop.f32.mrf.mxu3  ;;  %v3002_v21 = vshrl.u32 %v2984_v45, %v3000_v18  ;;  %v2394_v18 = vsub.s32 4, %v11556_v23 }
 0x341   : > { %v2703_v61 = vsel %vm2582_vm7, %v2702_v8, %v2701_v12  ;;  %v11756_v12 = vmul.f32 %v11736_v0, %v11736_v0  ;;  %v2406_v34 = vmul.f32 -0.00019511016, %v11771_v1  ;;  %v2399_v29 = vmul.f32 -0.001358992, %v11771_v1 }
 0x342   : > { %v11752_v39 = vsel %vm11725_vm1, %v15967_v11, %v2703_v61  ;;  %v6017_v53 = vpop.f32.mrf.mxu1 }
 0x343   : > { %v11765_v8 = vmul.f32 %v11752_v39, %v11752_v39  ;;  %v2096_v36 = vmul.f32 -0.00019511016, %v11756_v12  ;;  %v2089_v43 = vmul.f32 -0.001358992, %v11756_v12  ;;  %v2407_v2 = vadd.f32 0.008332121, %v2406_v34 }
 0x344   : > { %v2400_v17 = vadd.f32 0.041655596, %v2399_v29 }
 0x345   : > { %v2716_v62 = vmul.f32 -0.00019511016, %v11765_v8  ;;  %v2097_v61 = vadd.f32 0.008332121, %v2096_v36  ;;  %v2709_v6 = vmul.f32 -0.001358992, %v11765_v8  ;;  %v5974_v22 = vpop.f32.mrf.mxu0 }
 0x346   : > { %v2090_v3 = vadd.f32 0.041655596, %v2089_v43  ;;  %v3005_v36 = vadd.s32 127, %v3004_v63 }
 0x347   : > { %v2717_v58 = vadd.f32 0.008332121, %v2716_v62  ;;  %v6062_v31 = vpop.f32.mrf.mxu2  ;;  %v2098_v33 = vmul.f32 %v2097_v61, %v11756_v12  ;;  %v2710_v54 = vadd.f32 0.041655596, %v2709_v6  ;;  %v5863_v62 = vadd.f32 %v11666_v37, %v15980_v9  ;;  %v15982_v9 = vld [vmem:[#allocation22_spill] sm:$0xff] }
 0x348   : > { %v2091_v43 = vmul.f32 %v2090_v3, %v11756_v12  ;;  %v2085_v61 = vsel %vm1962_vm14, %v2084_v57, %v11523_v16  ;;  %v11791_v63 = vpop.f32.mrf.mxu3  ;;  %v3006_v6 = vshll.u32 %v3005_v36, 23  ;;  %v5871_v37 = vadd.f32 %v11686_v55, %v15981_v30 }
 0x349   : > { %v2718_v50 = vmul.f32 %v2717_v58, %v11765_v8  ;;  %v2099_v34 = vadd.f32 -0.16666654, %v2098_v33  ;;  %v2408_v58 = vmul.f32 %v2407_v2, %v11771_v1  ;;  %v2711_v3 = vmul.f32 %v2710_v54, %v11765_v8  ;;  %v15983_v33 = vld [vmem:[#allocation26_spill] sm:$0xff] }
 0x34a   : > { %v5928_v45 = vadd.f32 %v11673_v44, %v5863_v62  ;;  %v5879_v16 = vadd.f32 %v11711_v60, %v15982_v9  ;;  %v5887_v40 = vadd.f32 %v5886_v38, %v15983_v33  ;;  %v3003_v57 = vor.u32 %v3002_v21, %v3001_v14 }
 0x34b   : > { %v2719_v29 = vadd.f32 -0.16666654, %v2718_v50  ;;  %v2087_v2 = vsel %vm11715_vm4, 0, %v2085_v61  ;;  %v2092_v55 = vadd.f32 -0.4999988, %v2091_v43  ;;  %v2401_v30 = vmul.f32 %v2400_v17, %v11771_v1 }
 0x34c   : > { %v2705_v54 = vsel %vm2582_vm7, %v2704_v42, %v11654_v25  ;;  %v5970_v50 = vadd.f32 %v5969_v26, %v5928_v45  ;;  %v2100_v44 = vmul.f32 %v2099_v34, %v11756_v12  ;;  %v2409_v36 = vadd.f32 -0.16666654, %v2408_v58  ;;  %v6125_v45 = vld [vmem:[#allocation5 + $0xb8] sm:$0xff] }
 0x34d   : > { %v3007_v60 = vor.u32 4788187, %v3006_v6  ;;  %v5932_v38 = vadd.f32 %v11694_v24, %v5871_v37  ;;  %v2395_v62 = vsel %vm2272_vm8, %v2394_v18, %v11556_v23  ;;  %v2712_v35 = vadd.f32 -0.4999988, %v2711_v3  ;;  %v5979_v34 = vpop.f32.mrf.mxu0  ;;  %6143 = vperm.xlu1 %8044, %v6125_v45  }
 0x34e   : > { %v2720_v14 = vmul.f32 %v2719_v29, %v11765_v8  ;;  %v6012_v21 = vadd.f32 %v6011_v56, %v5970_v50  ;;  %v2104_v17 = vadd.s32 3, %v2087_v2  ;;  %v2707_v42 = vsel %vm11725_vm1, 0, %v2705_v54 }
 0x34f   : > { %v11815_v43 = vpop.f32.mrf.mxu2  ;;  %v3010_v25 = vcvt.s32.f32 %v3003_v57  ;;  %v5936_v26 = vadd.f32 %v11739_v49, %v5879_v16  ;;  %v11820_v61 = vadd.f32 %v5939_v7, %v5887_v40  ;;  %v2093_v24 = vmul.f32 %v2092_v55, %v11756_v12 }
 0x350   : > { %v2402_v58 = vadd.f32 -0.4999988, %v2401_v30  ;;  %v2101_v23 = vadd.f32 1.0, %v2100_v44  ;;  %v2397_v6 = vsel %vm11743_vm13, 0, %v2395_v62  ;;  %v2410_v56 = vmul.f32 %v2409_v36, %v11771_v1  ;;  %v11831_v9 = vpop.f32.mrf.mxu3 }
 0x351   : > { %v3008_v37 = vand.u32 2147483647, %v3007_v60  ;;  %v5975_v18 = vadd.f32 %v5974_v22, %v5932_v38  ;;  %v2713_v32 = vmul.f32 %v2712_v35, %v11765_v8  ;;  %v2721_v3 = vadd.f32 1.0, %v2720_v14  ;;  %v6023_v22 = vpop.f32.mrf.mxu1 }
 0x352   : > { %v2724_v29 = vadd.s32 3, %v2707_v42  ;;  %v11827_v49 = vadd.f32 %v6062_v31, %v6012_v21  ;;  %v11829_v7 = vand.u32 3, %v2104_v17  ;;  %v5980_v12 = vadd.f32 %v5979_v34, %v5936_v26 }
 0x353   : > { %v3011_v16 = vmul.f32 %v3010_v25, %v3008_v37  ;;  %v11833_v51 = vadd.f32 1.0, %v2093_v24  ;;  %v2403_v33 = vmul.f32 %v2402_v58, %v11771_v1  ;;  %v2414_v40 = vadd.s32 3, %v2397_v6 }
 0x354   : > { %v3014_v8 = vsub.s32 4, %v11668_v27  ;;  %v11838_v57 = vmul.f32 %v2101_v23, %v11736_v0  ;;  %v2411_v31 = vadd.f32 1.0, %v2410_v56  ;;  %v15984_v2 = vand.u32 2147483647, %v11048_v52 }
 0x355   : > { %v3012_v30 = vxor.u32 2147483648, %v3011_v16  ;;  %v2714_v54 = vadd.f32 1.0, %v2713_v32  ;;  %v2722_v50 = vmul.f32 %v2721_v3, %v11752_v39  ;;  %v2725_v44 = vand.u32 3, %v2724_v29  ;;  %6133 = vperm.xlu1 %8044, %v11564_v4  }
 0x356   : > { %vm11842_vm12 = vcmp.le.f32.partialorder %v15984_v2, 0.7853982  ;;  %v6152_v1 = vsel %vm15592_vm6, %v6125_v45, 0  ;;  %v6018_v36 = vadd.f32 %v6017_v53, %v5975_v18  ;;  %v6024_v60 = vadd.f32 %v6023_v22, %v5980_v12  ;;  %v5984_v18 = vpop.f32.mrf.mxu0 }
 0x357   : > { %v3013_v0 = vsel %vm2892_vm10, %v3012_v30, %v3011_v16  ;;  %v11850_v38 = vand.u32 4294901760, %v6152_v1  ;;  %vm2107_vm0 = vcmp.eq.s32.totalorder %v11829_v7, 0  ;;  %vm2110_vm9 = vcmp.eq.s32.totalorder %v11829_v7, 2  ;;  %v6070_v17 = vpop.f32.mrf.mxu2 }
 0x358   : > { %v2404_v62 = vadd.f32 1.0, %v2403_v33  ;;  %v11854_v35 = vand.u32 3, %v2414_v40  ;;  %v3015_v39 = vsel %vm2892_vm10, %v3014_v8, %v11668_v27  ;;  %v11862_v53 = vsel %vm11842_vm12, %v11048_v52, %v3013_v0  ;;  %v6107_v32 = vpop.f32.mrf.mxu3 }
 0x359   : > { %v2111_v14 = vxor.u32 2147483648, %v11833_v51  ;;  %v2412_v21 = vmul.f32 %v2411_v31, %v11761_v20  ;;  %v3018_v42 = vmul.f32 %v11862_v53, %v11862_v53  ;;  %v11869_v25 = vsub.f32 %v6152_v1, %v11850_v38  ;;  %6256 = vmatmul.f32.gmra.mxu1 %v11850_v38  ;;  %v6029_v33 = vpop.f32.mrf.mxu1 }
 0x35a   : > { %v2108_v27 = vxor.u32 2147483648, %v11838_v57  ;;  %v2728_v26 = vxor.u32 2147483648, %v2722_v50  ;;  %vm2730_vm3 = vcmp.eq.s32.totalorder %v2725_v44, 2  ;;  %v2731_v24 = vxor.u32 2147483648, %v2714_v54 }
 0x35b   : > { %vm2106_vm11 = vcmp.lt.s32.totalorder %v11829_v7, 2  ;;  %v3017_v34 = vsel %vm11842_vm12, 0, %v3015_v39  ;;  %v3019_v20 = vmul.f32 -0.001358992, %v3018_v42  ;;  %v3026_v58 = vmul.f32 -0.00019511016, %v3018_v42  ;;  %6301 = vmatmul.f32.gmra.mxu2 %v11869_v25 }
 0x35c   : > { %v11877_v23 = vand.u32 4294901760, %v11869_v25  ;;  %vm2420_vm5 = vcmp.eq.s32.totalorder %v11854_v35, 2  ;;  %v2421_v6 = vxor.u32 2147483648, %v2404_v62  ;;  %v6071_v56 = vadd.f32 %v6070_v17, %v6024_v60 }
 0x35d   : > { %vm2727_vm2 = vcmp.eq.s32.totalorder %v2725_v44, 0  ;;  %v2418_v37 = vxor.u32 2147483648, %v2412_v21  ;;  %v3020_v3 = vadd.f32 0.041655596, %v3019_v20  ;;  %v3027_v29 = vadd.f32 0.008332121, %v3026_v58 }
 0x35e   : > { %v6201_v45 = vsub.f32 %v11869_v25, %v11877_v23  ;;  %6346 = vmatmul.f32.gmra.mxu3 %v11877_v23  ;;  %vm2417_vm14 = vcmp.eq.s32.totalorder %v11854_v35, 0  ;;  %vm2726_vm7 = vcmp.lt.s32.totalorder %v2725_v44, 2  ;;  %v2732_v4 = vsel %vm2730_vm3, %v2731_v24, %v2722_v50 }
 0x35f   : > { %v3034_v12 = vadd.s32 3, %v3017_v34  ;;  %v2729_v16 = vsel %vm2727_vm2, %v2714_v54, %v2728_v26  ;;  %v3021_v40 = vmul.f32 %v3020_v3, %v3018_v42  ;;  %v3028_v22 = vmul.f32 %v3027_v29, %v3018_v42 }
 0x360   : > { %v11887_v8 = vand.u32 4294901760, %v6201_v45  ;;  %v6067_v31 = vadd.f32 %v11815_v43, %v6018_v36  ;;  %vm2416_vm4 = vcmp.lt.s32.totalorder %v11854_v35, 2  ;;  %v2422_v2 = vsel %vm2420_vm5, %v2421_v6, %v2412_v21  ;;  %v6111_v58 = vpop.f32.mrf.mxu3 }
 0x361   : > { %v5985_v55 = vadd.f32 %v5984_v18, %v11820_v61  ;;  %v2419_v30 = vsel %vm2417_vm14, %v2404_v62, %v2418_v37  ;;  %vm2723_vm8 = vweird.f32 %v15967_v11  ;;  %v3022_v50 = vadd.f32 -0.4999988, %v3021_v40  ;;  %6416 = vmatmul.f32.vlgmr.msra.gmra.mxu1 %v15955_v48  ;;  %v6074_v62 = vpop.f32.mrf.mxu2  ;;  %v15991_v40 = vld [vmem:[#allocation13_spill] sm:$0xff] }
 0x362   : > { %v3029_v1 = vadd.f32 -0.16666654, %v3028_v22  ;;  %6203 = vmatmul.f32.gmra.mxu0 %v11887_v8  ;;  %v2733_v54 = vsel %vm2726_vm7, %v2729_v16, %v2732_v4  ;;  %v6108_v60 = vadd.f32 %v6107_v32, %v6071_v56  ;;  %v3035_v36 = vand.u32 3, %v3034_v12  ;;  %v15988_v12 = vld [vmem:[#allocation23_spill] sm:$0xff]  ;;  %v15989_v16 = vld [vmem:[#allocation14_spill] sm:$0xff] }
 0x363   : > { %v6030_v43 = vadd.f32 %v6029_v33, %v5985_v55  ;;  %v2109_v0 = vsel %vm2107_vm0, %v11833_v51, %v2108_v27  ;;  %v2112_v61 = vsel %vm2110_vm9, %v2111_v14, %v11838_v57  ;;  %v3023_v39 = vmul.f32 %v3022_v50, %v3018_v42 }
 0x364   : > { %v3030_v21 = vmul.f32 %v3029_v1, %v3018_v42  ;;  %v15987_v17 = vmov 1   ;;  %vm2103_vm1 = vweird.f32 %v15965_v10  ;;  %vm2413_vm13 = vweird.f32 %v15972_v13 }
 0x365   : > { %8047 = vset.pattern.permute.xlu1 %v15987_v17  ;;  %v2423_v44 = vsel %vm2416_vm4, %v2419_v30, %v2422_v2  ;;  %v6104_v26 = vadd.f32 %v11831_v9, %v6067_v31  ;;  %v6100_v51 = vadd.f32 %v11791_v63, %v11827_v49  ;;  %v2734_v57 = vsel %vm2723_vm8, nan, %v2733_v54 }
 0x366   : > { %v3024_v14 = vadd.f32 1.0, %v3023_v39  ;;  %v3031_v27 = vadd.f32 1.0, %v3030_v21  ;;  %v2113_v42 = vsel %vm2106_vm11, %v2109_v0, %v2112_v61  ;;  %v6119_v24 = vmul.f32 %v6108_v60, %v2734_v57  ;;  %v15992_v61 = vld [vmem:[#allocation17_spill] sm:$0xff] }
 0x367   : > { %v6075_v34 = vadd.f32 %v6074_v62, %v6030_v43  ;;  %vm3040_vm15 = vcmp.eq.s32.totalorder %v3035_v36, 2  ;;  %v2424_v13 = vsel %vm2413_vm13, nan, %v2423_v44  ;;  %vm3037_vm10 = vcmp.eq.s32.totalorder %v3035_v36, 0 }
 0x368   : > { %v3032_v35 = vmul.f32 %v3031_v27, %v11862_v53  ;;  %v3041_v20 = vxor.u32 2147483648, %v3024_v14  ;;  %v6117_v9 = vmul.f32 %v6104_v26, %v2424_v13  ;;  %v2114_v63 = vsel %vm2103_vm1, nan, %v2113_v42  ;;  %v215_v27 = vld [vmem:[#allocation5 + $0x78] sm:$0xff] }
 0x369   : > { %vm3036_vm12 = vcmp.lt.s32.totalorder %v3035_v36, 2  ;;  %6420 = vmatmul.f32.gmra.mxu1 %v11572_v59  ;;  %v6115_v7 = vmul.f32 %v6100_v51, %v2114_v63  ;;  %v11921_v6 = vand.u32 4294901760, %v6119_v24  ;;  %vm3033_vm0 = vweird.f32 %v11048_v52  ;;  %v15990_v52 = vld [vmem:[#allocation41_spill] sm:$0xff]  ;;  %v15994_v51 = vld [vmem:[#allocation35_spill] sm:$0xff]  ;;  %396 = vperm.xlu1 %8047, %v215_v27  }
 0x36a   : > { %v3038_v11 = vxor.u32 2147483648, %v3032_v35  ;;  %v3042_v49 = vsel %vm3040_vm15, %v3041_v20, %v3032_v35  ;;  %6379 = vmatmul.f32.vlgmr.msra.gmra.mxu0 %v15955_v48  ;;  %v6112_v53 = vadd.f32 %v6111_v58, %v6075_v34  ;;  %v11924_v37 = vand.u32 4294901760, %v6117_v9  ;;  %293 = vperm.xlu0 %8046, %v215_v27   ;;  %v11963_v35 = vpop.permute.xlu1 %510  ;;  %v15997_v58 = vld [vmem:[#allocation28_spill] sm:$0xff]  ;;  %v15999_v63 = vld [vmem:[#allocation25_spill] sm:$0xff] }
 0x36b   : > { %v11926_v10 = vand.u32 4294901760, %v6115_v7  ;;  %v6504_v29 = vsub.f32 %v6119_v24, %v11921_v6  ;;  %v427_v33 = vmul.f32 %v15989_v16, %v15988_v12  ;;  %v325_v22 = vmul.f32 %v15991_v40, %v15990_v52  ;;  %15995 = vst [vmem:[#allocation30_spill] sm:$0xff] %v11963_v35  ;;  %v16005_v52 = vld [vmem:[#allocation31_spill] sm:$0xff] }
 0x36c   : > { %v3039_v56 = vsel %vm3037_vm10, %v3024_v14, %v3038_v11  ;;  %v6510_v4 = vsub.f32 %v6117_v9, %v11924_v37  ;;  %v323_v57 = vmul.f32 %v15991_v40, %v15994_v51  ;;  %v425_v14 = vmul.f32 %v15989_v16, %v11661_v47  ;;  %v11974_v9 = vpop.permute.xlu0 %502 }
 0x36d   : > { %v3043_v18 = vsel %vm3036_vm12, %v3039_v56, %v3042_v49  ;;  %v6516_v2 = vsub.f32 %v6115_v7, %v11926_v10  ;;  %v6505_v55 = vand.u32 4294901760, %v6504_v29  ;;  %v459_v1 = vadd.f32 %v427_v33, %v325_v22  ;;  %15998 = vst [vmem:[#allocation44_spill] sm:$0xff] %v11974_v9  ;;  %v16001_v7 = vld [vmem:[#allocation45_spill] sm:$0xff] }
 0x36e   : > { %v3044_v32 = vsel %vm3033_vm0, nan, %v3043_v18  ;;  %v6511_v50 = vand.u32 4294901760, %v6510_v4  ;;  %v457_v24 = vadd.f32 %v425_v14, %v323_v57  ;;  %v319_v34 = vmul.f32 %v15991_v40, %v11676_v19  ;;  %v11972_v19 = vld [vmem:[#allocation5 + $0x70] sm:$0xff]  ;;  %v16003_v18 = vld [vmem:[#allocation37_spill] sm:$0xff] }
 0x36f   : > { %v6121_v3 = vmul.f32 %v6112_v53, %v3044_v32  ;;  %v6506_v60 = vsub.f32 %v6504_v29, %v6505_v55  ;;  %v6517_v43 = vand.u32 4294901760, %v6516_v2  ;;  %v11945_v62 = vadd.f32 %v15992_v61, %v459_v1  ;;  %288 = vperm.xlu2 %8048, %v11972_v19   ;;  %v213_v33 = vld [vmem:[#allocation5 + $0x68] sm:$0xff] }
 0x370   : > { %v6512_v0 = vsub.f32 %v6510_v4, %v6511_v50  ;;  %v421_v13 = vmul.f32 %v15989_v16, %v11678_v41  ;;  %v321_v22 = vmul.f32 %v15991_v40, %v16005_v52  ;;  %v16014_v14 = vmov 683565275  }
 0x371   : > { %v6444_v45 = vand.u32 4294901760, %v6121_v3  ;;  %6424 = vmatmul.f32.gmra.mxu1 %v11691_v15  ;;  %15993 = vst [vmem:[#allocation43_spill] sm:$0xff] %v11945_v62  ;;  %v6507_v39 = vand.u32 4294901760, %v6506_v60  ;;  %v6518_v21 = vsub.f32 %v6516_v2, %v6517_v43  ;;  %v3978_v26 = vand.u32 2139095040, %v11945_v62  ;;  %392 = vperm.xlu1 %8047, %v11972_v19  }
 0x372   : > { %6383 = vmatmul.f32.gmra.mxu0 %v11572_v59  ;;  %v6513_v44 = vand.u32 4294901760, %v6512_v0  ;;  %v453_v20 = vadd.f32 %v421_v13, %v319_v34  ;;  %8049 = vset.pattern.permute.xlu0 %v15987_v17  ;;  %v16011_v0 = vld [vmem:[#allocation29_spill] sm:$0xff] }
 0x373   : > { %v6498_v31 = vsub.f32 %v6121_v3, %v6444_v45  ;;  %6445 = vmatpush.msra.mxu2 %v6444_v45  ;;  %6596 = vmatpush.msrb.mxu1 %v6444_v45  ;;  %v3979_v42 = vshrl.u32 %v3978_v26, 23  ;;  %v423_v61 = vmul.f32 %v15989_v16, %v16011_v0 }
 0x374   : > { %v11982_v49 = vadd.f32 %v11974_v9, %v453_v20  ;;  %388 = vperm.xlu0 %8049, %v213_v33  }
 0x375   : > { %6447 = vmatpush.msra.mxu2 %v11921_v6  ;;  %6552 = vmatpush.msrb.mxu0 %v6498_v31  ;;  %v6499_v30 = vand.u32 4294901760, %v6498_v31  ;;  %v455_v13 = vadd.f32 %v423_v61, %v321_v22 }
 0x376   : > { %6598 = vmatpush.msrb.mxu1 %v11921_v6  ;;  %16000 = vst [vmem:[#allocation16_spill] sm:$0xff] %v11982_v49  ;;  %v3048_v56 = vand.u32 2139095040, %v11982_v49 }
 0x377   : > { %6449 = vmatpush.msra.mxu2 %v11924_v37  ;;  %6555 = vmatpush.msrb.mxu0 %v6504_v29  ;;  %v6500_v54 = vsub.f32 %v6498_v31, %v6499_v30  ;;  %v16004_v29 = vld [vmem:[#allocation20_spill] sm:$0xff]  ;;  %v15513_v31 = vand.u32 2147483647, %v11945_v62 }
 0x378   : > { %6600 = vmatpush.msrb.mxu1 %v11924_v37  ;;  %v3049_v3 = vshrl.u32 %v3048_v56, 23  ;;  %283 = vperm.xlu2 %8048, %v213_v33  }
 0x379   : > { %6451 = vmatpush.msra.mxu2 %v11926_v10  ;;  %6558 = vmatpush.msrb.mxu0 %v6510_v4  ;;  %v6501_v36 = vand.u32 4294901760, %v6500_v54  ;;  %v16009_v54 = vmov 1326507024   ;;  %v3982_v57 = vand.u32 8388607, %v15513_v31 }
 0x37a   : > { %6602 = vmatpush.msrb.mxu1 %v11926_v10  ;;  %6457 = vmatmul.f32.vlgmr.msra.gmra.mxu2 %v11339_v28  ;;  %v6519_v28 = vand.u32 4294901760, %v6518_v21  ;;  %v7872_v12 = vadd.s32 4294967169, %v3049_v3  ;;  %v16013_v21 = vmov 2102212464  }
 0x37b   : > { %6643 = vmatpush.msrb.mxu2 %v6499_v30  ;;  %6502 = vmatpush.msra.mxu3 %v6501_v36 }
 0x37c   : > { %6561 = vmatpush.msrb.mxu0 %v6516_v2  ;;  %6428 = vmatmul.f32.gmra.mxu1 %v11850_v38 }
 0x37d   : > { %6647 = vmatpush.msrb.mxu2 %v6505_v55  ;;  %6508 = vmatpush.msra.mxu3 %v6507_v39  ;;  %v16007_v55 = vmov 2475754826   ;;  %v3055_v39 = vadd.s32 1, %v7872_v12 }
 0x37e   : > { %6387 = vmatmul.f32.gmra.mxu0 %v11691_v15 }
 0x37f   : > { %6651 = vmatpush.msrb.mxu2 %v6511_v50  ;;  %6514 = vmatpush.msra.mxu3 %v6513_v44  ;;  %v16008_v50 = vmov 920167782   ;;  %vm3056_vm5 = vcmp.gt.s32.totalorder %v3055_v39, 0 }
 0x381   : > { %6655 = vmatpush.msrb.mxu2 %v6517_v43  ;;  %6520 = vmatpush.msra.mxu3 %v6519_v28  ;;  %v16010_v43 = vmov 2131351028  }
 0x382   : > { %6465 = vmatmul.f32.gmra.mxu2 %v11604_v46  ;;  %6522 = vmatmul.f32.vlgmr.msra.gmra.mxu3 %v15955_v48  ;;  %v7890_v46 = vadd.s32 4294967169, %v3979_v42 }
 0x383   : > { %6686 = vmatpush.msrb.mxu3 %v6444_v45 }
 0x384   : > { %6606 = vmatmul.f32.vlgmr.msrb.gmra.mxu1 %v11315_v5  ;;  %v11968_v5 = vadd.f32 %v11963_v35, %v457_v24  ;;  %v3985_v41 = vadd.s32 1, %v7890_v46 }
 0x385   : > { %6688 = vmatpush.msrb.mxu3 %v11921_v6 }
 0x386   : > { %6391 = vmatmul.f32.gmra.mxu0 %v11850_v38  ;;  %15996 = vst [vmem:[#allocation36_spill] sm:$0xff] %v11968_v5  ;;  %v3668_v11 = vand.u32 2139095040, %v11968_v5  ;;  %vm3986_vm9 = vcmp.gt.s32.totalorder %v3985_v41, 0 }
 0x387   : > { %6690 = vmatpush.msrb.mxu3 %v11924_v37  ;;  %v3987_v6 = vsel %vm3986_vm9, %v3985_v41, 0  ;;  %v16002_v37 = vmov 2   ;;  %v12029_v41 = vpop.permute.xlu2 %506 }
 0x388   : > { %v3669_v53 = vshrl.u32 %v3668_v11, 23  ;;  %8050 = vset.pattern.permute.xlu1 %v16002_v37  ;;  %v3989_v32 = vand.u32 31, %v3987_v6  ;;  %v12000_v2 = vshrl.u32 %v3987_v6, 5  ;;  %16015 = vst [vmem:[#allocation19_spill] sm:$0xff] %v12029_v41  ;;  %8053 = vset.pattern.permute.xlu0 %v16002_v37  ;;  %v3057_v11 = vsel %vm3056_vm5, %v3055_v39, 0 }
 0x389   : > { %6692 = vmatpush.msrb.mxu3 %v11926_v10  ;;  %530 = vperm.xlu1 %8050, %v215_v27   ;;  %v12040_v6 = vadd.f32 %v12029_v41, %v455_v13  ;;  %v12058_v3 = vand.u32 31, %v3057_v11  ;;  %v15514_v13 = vand.u32 2147483647, %v11982_v49 }
 0x38a   : > { %6473 = vmatmul.f32.gmra.mxu2 %v15997_v58  ;;  %6526 = vmatmul.f32.gmra.mxu3 %v11572_v59  ;;  %v7884_v10 = vadd.s32 4294967169, %v3669_v53  ;;  %v11991_v45 = vsub.s32 32, %v3989_v32  ;;  %16006 = vst [vmem:[#allocation32_spill] sm:$0xff] %v12000_v2  ;;  %v3995_v30 = vshll.u32 %v16007_v55, %v3989_v32  ;;  %v4004_v1 = vshll.u32 %v16008_v50, %v3989_v32 }
 0x38b   : > { %v3998_v36 = vshll.u32 %v16010_v43, %v3989_v32  ;;  %v4001_v26 = vshll.u32 %v16013_v21, %v3989_v32  ;;  %v3992_v27 = vshll.u32 %v16014_v14, %v3989_v32  ;;  %vm4010_vm11 = vcmp.lt.s32.totalorder %v12000_v2, 4  ;;  %522 = vperm.xlu0 %8053, %v213_v33   ;;  %16016 = vst [vmem:[#allocation18_spill] sm:$0xff] %v12040_v6 }
 0x38c   : > { %6612 = vmatmul.f32.gmra.mxu1 %v15999_v63  ;;  %v3675_v4 = vadd.s32 1, %v7884_v10  ;;  %v4005_v60 = vshrl.u32 %v16009_v54, %v11991_v45  ;;  %v3999_v44 = vshrl.u32 %v16013_v21, %v11991_v45  ;;  %v4002_v28 = vshrl.u32 %v16008_v50, %v11991_v45 }
 0x38d   : > { %v3993_v34 = vshrl.u32 %v16007_v55, %v11991_v45  ;;  %vm4007_vm2 = vcmp.lt.s32.totalorder %v12000_v2, 1  ;;  %vm4009_vm14 = vcmp.lt.s32.totalorder %v12000_v2, 3  ;;  %vm4008_vm7 = vcmp.lt.s32.totalorder %v12000_v2, 2 }
 0x38e   : > { %6564 = vmatmul.f32.vlgmr.msrb.gmra.mxu0 %v16001_v7  ;;  %vm3676_vm3 = vcmp.gt.s32.totalorder %v3675_v4, 0  ;;  %v4006_v42 = vor.u32 %v4005_v60, %v4004_v1  ;;  %v12027_v20 = vor.u32 %v3999_v44, %v3998_v36  ;;  %v4003_v58 = vor.u32 %v4002_v28, %v4001_v26 }
 0x38f   : > { %v3677_v24 = vsel %vm3676_vm3, %v3675_v4, 0  ;;  %v3983_v7 = vor.u32 8388608, %v3982_v57  ;;  %v12043_v53 = vor.u32 %v3993_v34, %v3992_v27  ;;  %v15515_v10 = vand.u32 2147483647, %v11968_v5 }
 0x390   : > { %v12033_v63 = vand.u32 31, %v3677_v24  ;;  %v4016_v56 = vsel %vm4010_vm11, %v4003_v58, 920167782  ;;  %v3358_v12 = vand.u32 2139095040, %v12040_v6  ;;  %v12087_v60 = vsub.s32 32, %v12058_v3 }
 0x391   : > { %8051 = vset.pattern.permute.xlu1 %v15987_v17  ;;  %v3996_v17 = vshrl.u32 %v16010_v43, %v11991_v45  ;;  %v4017_v33 = vsel %vm4009_vm14, %v12027_v20, %v4016_v56  ;;  %v12075_v22 = vshll.u32 %v3983_v7, 8  ;;  %v16019_v36 = vmov 32  }
 0x392   : > { %6481 = vmatmul.f32.gmra.mxu2 %v11887_v8  ;;  %6530 = vmatmul.f32.gmra.mxu3 %v11691_v15  ;;  %v212_v8 = vld [vmem:[#allocation5 + $0x60] sm:$0xff]  ;;  %v3685_v61 = vshll.u32 %v16007_v55, %v12033_v63  ;;  %v3359_v44 = vshrl.u32 %v3358_v12, 23  ;;  %v3075_v34 = vshrl.u32 %v16009_v54, %v12087_v60  ;;  %v3069_v12 = vshrl.u32 %v16013_v21, %v12087_v60 }
 0x393   : > { %384 = vperm.xlu1 %8051, %v212_v8   ;;  %v12025_v46 = vor.u32 %v3996_v17, %v3995_v30  ;;  %278 = vperm.xlu2 %8048, %v212_v8   ;;  %16018 = vst [vmem:[#allocation24_spill] sm:$0xff] %v12075_v22  ;;  %v3694_v30 = vshll.u32 %v16008_v50, %v12033_v63  ;;  %v12111_v28 = vand.u32 65535, %v12075_v22 }
 0x394   : > { %6618 = vmatmul.f32.gmra.mxu1 %v16003_v18  ;;  %8057 = vset.pattern.permute.xlu0 %v16019_v36 }
 0x395   : > { %v4019_v18 = vsel %vm4007_vm2, %v12025_v46, %v12027_v20 }
 0x396   : > { %6569 = vmatmul.f32.gmra.mxu0 %v16004_v29  ;;  %v16017_v29 = vld [vmem:[#allocation38_spill] sm:$0xff] }
 0x397   : > { %v4133_v4 = vand.u32 2139095040, %v16017_v29 }
 0x399   : > { %v12091_v0 = vshrl.u32 %v4133_v4, 23  ;;  %v3066_v4 = vshrl.u32 %v16010_v43, %v12087_v60 }
 0x39a   : > { %6534 = vmatmul.f32.gmra.mxu3 %v11850_v38  ;;  %6657 = vmatmul.f32.vlgmr.msrb.gmra.mxu2 %v15955_v48 }
 0x39b   : > { %8054 = vset.pattern.permute.xlu1 %v16002_v37  ;;  %8052 = vset.pattern.permute.xlu2 %v16002_v37  ;;  %16020 = vst [vmem:[#allocation42_spill] sm:$0xff] %v12091_v0  ;;  %v12093_v37 = vshrl.u32 %v3677_v24, 5  ;;  %v3074_v24 = vshll.u32 %v16008_v50, %v12058_v3 }
 0x39c   : > { %6624 = vmatmul.f32.gmra.mxu1 %v11877_v23  ;;  %v16012_v23 = vld [vmem:[#allocation15_spill] sm:$0xff]  ;;  %518 = vperm.xlu1 %8054, %v212_v8   ;;  %v4015_v8 = vsel %vm4007_vm2, %v12043_v53, %v12025_v46 }
 0x39d   : > { %526 = vperm.xlu2 %8052, %v11972_v19   ;;  %v3991_v19 = vshrl.u32 %v16014_v14, %v11991_v45  ;;  %v12108_v26 = vsel %vm4008_vm7, %v4015_v8, %v4017_v33  ;;  %v3691_v45 = vshll.u32 %v16013_v21, %v12033_v63  ;;  %vm3700_vm4 = vcmp.lt.s32.totalorder %v12093_v37, 4 }
 0x39e   : > { %6574 = vmatmul.f32.gmra.mxu0 %v16012_v23  ;;  %v3688_v23 = vshll.u32 %v16010_v43, %v12033_v63  ;;  %vm3697_vm8 = vcmp.lt.s32.totalorder %v12093_v37, 1  ;;  %vm3699_vm1 = vcmp.lt.s32.totalorder %v12093_v37, 3  ;;  %v3052_v33 = vand.u32 8388607, %v15514_v13 }
 0x39f   : > { %vm3698_vm15 = vcmp.lt.s32.totalorder %v12093_v37, 2 }
 0x3a2   : > { %6661 = vmatmul.f32.gmra.mxu2 %v11572_v59  ;;  %6694 = vmatmul.f32.vlgmr.msrb.gmra.mxu3 %v15955_v48  ;;  %v4020_v48 = vsel %vm4010_vm11, %v4006_v42, 1326507024 }
 0x3a3   : > { %v4021_v32 = vsel %vm4009_vm14, %v4003_v58, %v4020_v48  ;;  %v12123_v58 = vshrl.u32 %v3057_v11, 5  ;;  %v3068_v11 = vshll.u32 %v16010_v43, %v12058_v3 }
 0x3a4   : > { %v12073_v52 = vsel %vm4008_vm7, %v4019_v18, %v4021_v32  ;;  %8056 = vset.pattern.permute.xlu1 %v16019_v36  ;;  %v7878_v18 = vadd.s32 4294967169, %v3359_v44  ;;  %v3065_v32 = vshll.u32 %v16007_v55, %v12058_v3 }
 0x3a5   : > { %v4027_v57 = vshrl.u32 %v12073_v52, 16  ;;  %8055 = vset.pattern.permute.xlu2 %v16019_v36  ;;  %vm3080_vm13 = vcmp.lt.s32.totalorder %v12123_v58, 4  ;;  %v12164_v44 = vor.u32 %v3069_v12, %v3068_v11  ;;  %vm3077_vm10 = vcmp.lt.s32.totalorder %v12123_v58, 1 }
 0x3a6   : > { %6579 = vmatmul.f32.gmra.mxu0 %v11869_v25  ;;  %v12056_v25 = vsub.s32 32, %v12033_v63  ;;  %vm3079_vm12 = vcmp.lt.s32.totalorder %v12123_v58, 3  ;;  %vm3078_vm9 = vcmp.lt.s32.totalorder %v12123_v58, 2 }
 0x3a8   : > { %v3695_v1 = vshrl.u32 %v16009_v54, %v12056_v25  ;;  %v3686_v39 = vshrl.u32 %v16010_v43, %v12056_v25  ;;  %v3689_v17 = vshrl.u32 %v16013_v21, %v12056_v25  ;;  %v3692_v56 = vshrl.u32 %v16008_v50, %v12056_v25 }
 0x3a9   : > { %v3683_v36 = vshrl.u32 %v16007_v55, %v12056_v25  ;;  %v3681_v31 = vshrl.u32 %v16014_v14, %v12056_v25 }
 0x3aa   : > { %6665 = vmatmul.f32.gmra.mxu2 %v11691_v15  ;;  %6698 = vmatmul.f32.gmra.mxu3 %v11572_v59  ;;  %v12080_v59 = vand.u32 8388607, %v15515_v10  ;;  %v3696_v42 = vor.u32 %v3695_v1, %v3694_v30  ;;  %v12125_v48 = vor.u32 %v3686_v39, %v3685_v61  ;;  %v12127_v7 = vor.u32 %v3689_v17, %v3688_v23 }
 0x3ab   : > { %v3072_v30 = vshrl.u32 %v16008_v50, %v12087_v60  ;;  %v3682_v1 = vshll.u32 %v16014_v14, %v12033_v63  ;;  %v3693_v61 = vor.u32 %v3692_v56, %v3691_v45  ;;  %v3365_v39 = vadd.s32 1, %v7878_v18 }
 0x3ac   : > { %v3673_v27 = vor.u32 8388608, %v12080_v59  ;;  %v3710_v8 = vsel %vm3700_vm4, %v3696_v42, 1326507024  ;;  %v3071_v59 = vshll.u32 %v16013_v21, %v12058_v3  ;;  %v3709_v23 = vsel %vm3697_vm8, %v12125_v48, %v12127_v7 }
 0x3ad   : > { %v12162_v17 = vor.u32 %v3066_v4, %v3065_v32  ;;  %v3711_v42 = vsel %vm3699_vm1, %v3693_v61, %v3710_v8  ;;  %v3053_v45 = vor.u32 8388608, %v3052_v33  ;;  %v15516_v18 = vand.u32 65535, %v12073_v52 }
 0x3ae   : > { %v3073_v56 = vor.u32 %v3072_v30, %v3071_v59  ;;  %v12180_v32 = vmul.u32 %v4027_v57, %v12111_v28  ;;  %v12182_v4 = vshll.u32 %v3673_v27, 8  ;;  %vm3366_vm0 = vcmp.gt.s32.totalorder %v3365_v39, 0 }
 0x3af   : > { %v12187_v11 = vsel %vm3698_vm15, %v3709_v23, %v3711_v42  ;;  %v3089_v12 = vsel %vm3077_vm10, %v12162_v17, %v12164_v44  ;;  %v12199_v27 = vsel %vm4007_vm2, %v3991_v19, %v12043_v53  ;;  %v3063_v33 = vshrl.u32 %v16007_v55, %v12087_v60 }
 0x3b0   : > { %16021 = vst [vmem:[#allocation34_spill] sm:$0xff] %v12199_v27  ;;  %v12208_v59 = vsel %vm4010_vm11, %v12027_v20, 2102212464  ;;  %v3706_v30 = vsel %vm3700_vm4, %v3693_v61, 920167782  ;;  %v3367_v23 = vsel %vm3366_vm0, %v3365_v39, 0  ;;  %v12226_v20 = vmul.u32 %v15516_v18, %v12111_v28 }
 0x3b1   : > { %v12212_v42 = vshll.u32 %v3053_v45, 8  ;;  %v12216_v19 = vand.u32 65535, %v12182_v4  ;;  %v15518_v61 = vshll.u32 %v12180_v32, 16  ;;  %v3707_v45 = vsel %vm3699_vm1, %v12127_v7, %v3706_v30 }
 0x3b2   : > { %6669 = vmatmul.f32.gmra.mxu2 %v11850_v38  ;;  %6702 = vmatmul.f32.gmra.mxu3 %v11691_v15  ;;  %v3076_v15 = vor.u32 %v3075_v34, %v3074_v24  ;;  %v12173_v24 = vshrl.u32 %v12075_v22, 16  ;;  %v4049_v34 = vshrl.u32 %v12108_v26, 16  ;;  %v3086_v13 = vsel %vm3080_vm13, %v3073_v56, 920167782 }
 0x3b3   : > { %v12246_v10 = vand.u32 65535, %v12212_v42  ;;  %v3702_v30 = vsel %vm3700_vm4, %v12127_v7, 2102212464  ;;  %v16023_v62 = vand.u32 65535, %v12187_v11  ;;  %v3095_v51 = vshrl.u32 %v12212_v42, 16 }
 0x3b4   : > { %v3090_v63 = vsel %vm3080_vm13, %v3076_v15, 1326507024  ;;  %v3062_v15 = vshll.u32 %v16014_v14, %v12058_v3  ;;  %v3717_v3 = vshrl.u32 %v12187_v11, 16  ;;  %v12230_v39 = vmul.u32 %v4049_v34, %v12111_v28 }
 0x3b5   : > { %v3091_v8 = vsel %vm3079_vm12, %v3073_v56, %v3090_v63  ;;  %v12250_v18 = vmul.u32 %v4049_v34, %v12173_v24  ;;  %v12262_v25 = vmul.u32 %v4027_v57, %v12173_v24  ;;  %v12267_v56 = vadd.s32 %v15518_v61, %v12226_v20 }
 0x3b6   : > { %v3087_v61 = vsel %vm3079_vm12, %v12164_v44, %v3086_v13  ;;  %v3718_v9 = vmul.u32 %v16023_v62, %v12216_v19 }
 0x3b7   : > { %16022 = vst [vmem:[#allocation39_spill] sm:$0xff] %v12250_v18 }
 0x3ba   : > { %6706 = vmatmul.f32.gmra.mxu3 %v11850_v38  ;;  %v3684_v38 = vor.u32 %v3683_v36, %v3682_v1  ;;  %v12221_v1 = vsel %vm3078_vm9, %v3089_v12, %v3091_v8  ;;  %v15519_v36 = vand.u32 2147483647, %v12040_v6  ;;  %v3369_v12 = vand.u32 31, %v3367_v23 }
 0x3bb   : > { %v12239_v8 = vor.u32 %v3063_v33, %v3062_v15  ;;  %v3097_v53 = vshrl.u32 %v12221_v1, 16  ;;  %v12257_v33 = vmul.u32 %v3717_v3, %v12216_v19  ;;  %v12276_v15 = vshrl.u32 %v12182_v4, 16 }
 0x3bc   : > { %v3705_v63 = vsel %vm3697_vm8, %v3684_v38, %v12125_v48  ;;  %v3362_v7 = vand.u32 8388607, %v15519_v36  ;;  %v12278_v40 = vsub.s32 32, %v3369_v12  ;;  %v3096_v36 = vand.u32 65535, %v12221_v1 }
 0x3bd   : > { %v12271_v34 = vsel %vm3698_vm15, %v3705_v63, %v3707_v45  ;;  %v3085_v57 = vsel %vm3077_vm10, %v12239_v8, %v12162_v17  ;;  %v12289_v63 = vsel %vm3697_vm8, %v3681_v31, %v3684_v38  ;;  %v12294_v45 = vsel %vm3699_vm1, %v12125_v48, %v3702_v30 }
 0x3be   : > { %v12298_v16 = vmul.u32 %v3097_v53, %v12246_v10  ;;  %v3722_v13 = vshll.u32 %v12257_v33, 16  ;;  %v3739_v31 = vshrl.u32 %v12271_v34, 16  ;;  %v12307_v38 = vmul.u32 %v3717_v3, %v12276_v15 }
 0x3bf   : > { %v3363_v48 = vor.u32 8388608, %v3362_v7  ;;  %v12309_v30 = vshrl.u32 %v3367_v23, 5  ;;  %v3088_v1 = vsel %vm3078_vm9, %v3085_v57, %v3087_v61  ;;  %v3375_v41 = vshll.u32 %v16007_v55, %v3369_v12 }
 0x3c0   : > { %v3378_v49 = vshll.u32 %v16010_v43, %v3369_v12  ;;  %v3384_v62 = vshll.u32 %v16008_v50, %v3369_v12  ;;  %v3385_v6 = vshrl.u32 %v16009_v54, %v12278_v40  ;;  %v3376_v29 = vshrl.u32 %v16010_v43, %v12278_v40 }
 0x3c1   : > { %v3379_v3 = vshrl.u32 %v16013_v21, %v12278_v40  ;;  %v3098_v23 = vmul.u32 %v3096_v36, %v12246_v10  ;;  %v3102_v7 = vshll.u32 %v12298_v16, 16  ;;  %v12324_v61 = vadd.s32 %v3722_v13, %v3718_v9 }
 0x3c2   : > { %v12327_v57 = vmul.u32 %v3739_v31, %v12216_v19  ;;  %v12330_v5 = vmul.u32 %v3739_v31, %v12276_v15  ;;  %v3119_v35 = vshrl.u32 %v3088_v1, 16  ;;  %v3372_v54 = vshll.u32 %v16014_v14, %v3369_v12 }
 0x3c3   : > { %v3373_v43 = vshrl.u32 %v16007_v55, %v12278_v40  ;;  %v3381_v22 = vshll.u32 %v16013_v21, %v3369_v12  ;;  %v3382_v0 = vshrl.u32 %v16008_v50, %v12278_v40  ;;  %v3386_v27 = vor.u32 %v3385_v6, %v3384_v62 }
 0x3c4   : > { %vm3390_vm3 = vcmp.lt.s32.totalorder %v12309_v30, 4  ;;  %v12339_v47 = vshll.u32 %v3363_v48, 8  ;;  %v12342_v31 = vor.u32 %v3376_v29, %v3375_v41  ;;  %v12344_v18 = vor.u32 %v3379_v3, %v3378_v49 }
 0x3c5   : > { %vm3106_vm11 = vc.u32 %v3098_v23, %v3102_v7  ;;  %v3118_v2 = vand.u32 65535, %v3088_v1  ;;  %vm3387_vm5 = vcmp.lt.s32.totalorder %v12309_v30, 1  ;;  %vm3388_vm2 = vcmp.lt.s32.totalorder %v12309_v30, 2 }
 0x3c6   : > { %v3101_v12 = vmul.u32 %v3097_v53, %v3095_v51  ;;  %v3121_v50 = vmul.u32 %v3119_v35, %v12246_v10  ;;  %v12349_v6 = vor.u32 %v3373_v43, %v3372_v54  ;;  %v3383_v62 = vor.u32 %v3382_v0, %v3381_v22 }
 0x3c7   : > { %vm3389_vm4 = vcmp.lt.s32.totalorder %v12309_v30, 3  ;;  %v3061_v41 = vshrl.u32 %v16014_v14, %v12087_v60  ;;  %v3400_v49 = vsel %vm3390_vm3, %v3386_v27, 1326507024  ;;  %v3108_v29 = vadd.s32 %v3102_v7, %v3098_v23 }
 0x3c8   : > { %v3100_v48 = vmul.u32 %v3096_v36, %v3095_v51  ;;  %v16024_v1 = vmov 0   ;;  %v3399_v53 = vsel %vm3387_vm5, %v12342_v31, %v12344_v18  ;;  %v3082_v54 = vsel %vm3080_vm13, %v12164_v44, 2102212464 }
 0x3c9   : > { %v3107_v3 = vsel %vm3106_vm11, 1, %v16024_v1  ;;  %v3120_v43 = vmul.u32 %v3118_v2, %v12246_v10  ;;  %v3122_v22 = vmul.u32 %v3118_v2, %v3095_v51  ;;  %vm12365_vm8 = vc.u32 %v3718_v9, %v3722_v13 }
 0x3ca   : > { %v3123_v0 = vmul.u32 %v3119_v35, %v3095_v51  ;;  %v3104_v27 = vshll.u32 %v3100_v48, 16  ;;  %v3109_v36 = vadd.s32 %v3107_v3, %v3101_v12  ;;  %v3124_v23 = vshll.u32 %v3121_v50, 16 }
 0x3cb   : > { %v3396_v7 = vsel %vm3390_vm3, %v3383_v62, 920167782  ;;  %v3401_v21 = vsel %vm3389_vm4, %v3383_v62, %v3400_v49  ;;  %v3081_v44 = vsel %vm3077_vm10, %v3061_v41, %v12239_v8  ;;  %v3126_v10 = vshll.u32 %v3122_v22, 16 }
 0x3cc   : > { %v3103_v9 = vshrl.u32 %v12298_v16, 16  ;;  %vm3110_vm1 = vc.u32 %v3108_v29, %v3104_v27  ;;  %vm3128_vm13 = vc.u32 %v3120_v43, %v3124_v23  ;;  %v3130_v2 = vadd.s32 %v3124_v23, %v3120_v43 }
 0x3cd   : > { %v3083_v51 = vsel %vm3079_vm12, %v12162_v17, %v3082_v54  ;;  %v3105_v35 = vshrl.u32 %v3100_v48, 16  ;;  %v3111_v13 = vsel %vm3110_vm1, 1, %v16024_v1  ;;  %v3129_v12 = vsel %vm3128_vm13, 1, %v16024_v1 }
 0x3ce   : > { %v3113_v62 = vadd.s32 %v3111_v13, %v3109_v36  ;;  %v3125_v49 = vshrl.u32 %v3121_v50, 16  ;;  %v3131_v3 = vadd.s32 %v3129_v12, %v3123_v0  ;;  %vm3132_vm0 = vc.u32 %v3130_v2, %v3126_v10 }
 0x3cf   : > { %v3395_v16 = vsel %vm3387_vm5, %v12349_v6, %v12342_v31  ;;  %v3397_v8 = vsel %vm3389_vm4, %v12344_v18, %v3396_v7  ;;  %v12391_v17 = vsel %vm3388_vm2, %v3399_v53, %v3401_v21  ;;  %v3133_v41 = vsel %vm3132_vm0, 1, %v16024_v1 }
 0x3d0   : > { %v3084_v50 = vsel %vm3078_vm9, %v3081_v44, %v3083_v51  ;;  %v3114_v29 = vadd.s32 %v3113_v62, %v3103_v9  ;;  %v3127_v48 = vshrl.u32 %v3122_v22, 16  ;;  %v3135_v54 = vadd.s32 %v3133_v41, %v3131_v3 }
 0x3d1   : > { %v12396_v43 = vadd.s32 %v3130_v2, %v3126_v10  ;;  %v16027_v0 = vand.u32 65535, %v12271_v34  ;;  %v3744_v21 = vshll.u32 %v12327_v57, 16  ;;  %v3404_v53 = vand.u32 65535, %v12339_v47 }
 0x3d2   : > { %v12406_v7 = vadd.s32 %v3114_v29, %v3105_v35  ;;  %v3136_v58 = vadd.s32 %v3135_v54, %v3125_v49  ;;  %v16029_v22 = vand.u32 65535, %v12187_v11  ;;  %v3398_v10 = vsel %vm3388_vm2, %v3395_v16, %v3397_v8 }
 0x3d3   : > { %v3740_v27 = vmul.u32 %v16027_v0, %v12216_v19  ;;  %v16028_v36 = vmov %v16027_v0  ;;  %v3407_v34 = vshrl.u32 %v12391_v17, 16  ;;  %v3138_v2 = vmul.u32 %v12212_v42, %v3084_v50 }
 0x3d4   : > { %v3742_v23 = vmul.u32 %v16028_v36, %v12276_v15  ;;  %v3720_v44 = vmul.u32 %v16029_v22, %v12276_v15  ;;  %v3137_v51 = vadd.s32 %v3136_v58, %v3127_v48  ;;  %vm3140_vm12 = vc.u32 %v12406_v7, %v12396_v43 }
 0x3d5   : > { %vm3748_vm10 = vc.u32 %v3740_v27, %v3744_v21  ;;  %v3750_v19 = vadd.s32 %v3744_v21, %v3740_v27  ;;  %v3727_v11 = vsel %vm12365_vm8, 1, %v16024_v1  ;;  %v16030_v42 = vshll.u32 %v12180_v32, 16 }
 0x3d6   : > { %v3746_v9 = vshll.u32 %v3742_v23, 16  ;;  %v3724_v13 = vshll.u32 %v3720_v44, 16  ;;  %v3749_v15 = vsel %vm3748_vm10, 1, %v16024_v1  ;;  %v3141_v35 = vadd.s32 1, %v3137_v51 }
 0x3d7   : > { %v3729_v12 = vadd.s32 %v3727_v11, %v12307_v38  ;;  %v3751_v62 = vadd.s32 %v3749_v15, %v12330_v5  ;;  %vm12427_vm1 = vc.u32 %v12226_v20, %v16030_v42  ;;  %v3406_v60 = vand.u32 65535, %v12391_v17 }
 0x3d8   : > { %vm3752_vm9 = vc.u32 %v3750_v19, %v3746_v9  ;;  %vm3730_vm11 = vc.u32 %v12324_v61, %v3724_v13  ;;  %v3745_v16 = vshrl.u32 %v12327_v57, 16  ;;  %v12435_v38 = vmul.u32 %v3407_v34, %v3404_v53 }
 0x3d9   : > { %v3731_v3 = vsel %vm3730_vm11, 1, %v16024_v1  ;;  %v3753_v8 = vsel %vm3752_vm9, 1, %v16024_v1  ;;  %v3142_v61 = vsel %vm3140_vm12, %v3141_v35, %v3137_v51  ;;  %v3723_v5 = vshrl.u32 %v12257_v33, 16 }
 0x3da   : > { %v3733_v41 = vadd.s32 %v3731_v3, %v3729_v12  ;;  %v3704_v20 = vsel %vm3698_vm15, %v12289_v63, %v12294_v45  ;;  %v3143_v50 = vadd.s32 %v3142_v61, %v3138_v2  ;;  %v3747_v29 = vshrl.u32 %v3742_v23, 16 }
 0x3db   : > { %v3755_v17 = vadd.s32 %v3753_v8, %v3751_v62  ;;  %v3371_v48 = vshrl.u32 %v16014_v14, %v12278_v40  ;;  %v3429_v57 = vshrl.u32 %v3398_v10, 16  ;;  %v3725_v54 = vshrl.u32 %v3720_v44, 16 }
 0x3dc   : > { %v3734_v0 = vadd.s32 %v3733_v41, %v3723_v5  ;;  %v3392_v27 = vsel %vm3390_vm3, %v12344_v18, 2102212464  ;;  %v3408_v33 = vmul.u32 %v3406_v60, %v3404_v53  ;;  %v3144_v36 = vadd.s32 536870912, %v3143_v50 }
 0x3dd   : > { %v3756_v21 = vadd.s32 %v3755_v17, %v3745_v16  ;;  %v3412_v58 = vshll.u32 %v12435_v38, 16  ;;  %v12450_v63 = vadd.s32 %v3750_v19, %v3746_v9  ;;  %v16033_v45 = vand.u32 65535, %v12073_v52 }
 0x3de   : > { %v12448_v37 = vadd.s32 %v3734_v0, %v3725_v54  ;;  %v3405_v23 = vshrl.u32 %v12339_v47, 16  ;;  %v3428_v22 = vand.u32 65535, %v3398_v10  ;;  %v12458_v44 = vshrl.u32 %v3144_v36, 30 }
 0x3df   : > { %v12455_v40 = vmul.u32 %v16033_v45, %v12173_v24  ;;  %v3757_v18 = vadd.s32 %v3756_v21, %v3747_v29  ;;  %v3758_v2 = vmul.u32 %v12182_v4, %v3704_v20  ;;  %v3391_v51 = vsel %vm3387_vm5, %v3371_v48, %v12349_v6 }
 0x3e0   : > { %v3393_v9 = vsel %vm3389_vm4, %v12342_v31, %v3392_v27  ;;  %v3431_v19 = vmul.u32 %v3429_v57, %v3404_v53  ;;  %v3411_v52 = vmul.u32 %v3407_v34, %v3405_v23  ;;  %v3146_v13 = vshll.u32 %v12458_v44, 30 }
 0x3e1   : > { %vm3760_vm15 = vc.u32 %v12448_v37, %v12450_v63  ;;  %v3761_v10 = vadd.s32 1, %v3757_v18  ;;  %vm12470_vm3 = vc.u32 %v3408_v33, %v3412_v58  ;;  %v3418_v4 = vadd.s32 %v3412_v58, %v3408_v33 }
 0x3e2   : > { %v3433_v15 = vmul.u32 %v3429_v57, %v3405_v23  ;;  %v4034_v6 = vshll.u32 %v12455_v40, 16  ;;  %v12475_v35 = vsub.s32 %v3143_v50, %v3146_v13  ;;  %v3430_v12 = vmul.u32 %v3428_v22, %v3404_v53 }
 0x3e3   : > { %v3432_v31 = vmul.u32 %v3428_v22, %v3405_v23  ;;  %v16036_v34 = vand.u32 65535, %v12108_v26  ;;  %v3410_v42 = vmul.u32 %v3406_v60, %v3405_v23  ;;  %v3434_v3 = vshll.u32 %v3431_v19, 16 }
 0x3e4   : > { %v3762_v16 = vsel %vm3760_vm15, %v3761_v10, %v3757_v18  ;;  %v4037_v8 = vsel %vm12427_vm1, 1, %v16024_v1  ;;  %vm3148_vm5 = vcmp.lt.s32.totalorder %v12475_v35, 0  ;;  %v3149_v61 = vsub.s32 0, %v12475_v35 }
 0x3e5   : > { %v4050_v62 = vmul.u32 %v16036_v34, %v12111_v28  ;;  %v3436_v5 = vshll.u32 %v3432_v31, 16  ;;  %v3763_v41 = vadd.s32 %v3762_v16, %v3758_v2  ;;  %v3414_v20 = vshll.u32 %v3410_v42, 16 }
 0x3e6   : > { %vm3438_vm4 = vc.u32 %v3430_v12, %v3434_v3  ;;  %v3440_v53 = vadd.s32 %v3434_v3, %v3430_v12  ;;  %vm12486_vm8 = vc.u32 %v12267_v56, %v4034_v6  ;;  %v3150_v28 = vsel %vm3148_vm5, %v3149_v61, %v12475_v35  ;;  %v12528_v3 = vpop.f32.mrf.mxu0 }
 0x3e7   : > { %v3417_v49 = vsel %vm12470_vm3, 1, %v16024_v1  ;;  %v3439_v60 = vsel %vm3438_vm4, 1, %v16024_v1  ;;  %v3764_v29 = vadd.s32 536870912, %v3763_v41  ;;  %v3151_v17 = vclz %v3150_v28  ;;  %v12539_v28 = vpop.f32.mrf.mxu1 }
 0x3e8   : > { %v3419_v48 = vadd.s32 %v3417_v49, %v3411_v52  ;;  %vm3420_vm13 = vc.u32 %v3418_v4, %v3414_v20  ;;  %v4054_v57 = vshll.u32 %v12230_v39, 16  ;;  %v3441_v56 = vadd.s32 %v3439_v60, %v3433_v15  ;;  %v16043_v20 = vld [vmem:[#allocation11_spill] sm:$0xff]  ;;  %v16046_v60 = vld [vmem:[#allocation34_spill] sm:$0xff] }
 0x3e9   : > { %v3421_v54 = vsel %vm3420_vm13, 1, %v16024_v1  ;;  %vm3442_vm0 = vc.u32 %v3440_v53, %v3436_v5  ;;  %v12497_v0 = vshrl.u32 %v3764_v29, 30  ;;  %v3413_v27 = vshrl.u32 %v12435_v38, 16 }
 0x3ea   : > { %v3423_v33 = vadd.s32 %v3421_v54, %v3419_v48  ;;  %v4039_v36 = vadd.s32 %v4037_v8, %v12262_v25  ;;  %v16039_v21 = vmov %v16036_v34  ;;  %v3435_v45 = vshrl.u32 %v3431_v19, 16  ;;  %v16041_v8 = vld [vmem:[#allocation39_spill] sm:$0xff] }
 0x3eb   : > { %v4052_v58 = vmul.u32 %v16039_v21, %v12173_v24  ;;  %v3443_v23 = vsel %vm3442_vm0, 1, %v16024_v1  ;;  %v3766_v22 = vshll.u32 %v12497_v0, 30  ;;  %v4041_v18 = vsel %vm12486_vm8, 1, %v16024_v1 }
 0x3ec   : > { %v3394_v2 = vsel %vm3388_vm2, %v3391_v51, %v3393_v9  ;;  %v7873_v38 = vadd.s32 4294967294, %v3151_v17  ;;  %v3415_v52 = vshrl.u32 %v3410_v42, 16  ;;  %vm4058_vm10 = vc.u32 %v4050_v62, %v4054_v57 }
 0x3ed   : > { %v3424_v25 = vadd.s32 %v3423_v33, %v3413_v27  ;;  %v3437_v13 = vshrl.u32 %v3432_v31, 16  ;;  %v3445_v10 = vadd.s32 %v3443_v23, %v3441_v56  ;;  %v12511_v26 = vsub.s32 %v3763_v41, %v3766_v22  ;;  %v16042_v41 = vld [vmem:[#allocation35_spill] sm:$0xff]  ;;  %v16048_v22 = vld [vmem:[#allocation24_spill] sm:$0xff] }
 0x3ee   : > { %v4033_v24 = vshrl.u32 %v12180_v32, 16  ;;  %v4043_v19 = vadd.s32 %v4041_v18, %v4039_v36  ;;  %v4056_v11 = vshll.u32 %v4052_v58, 16  ;;  %v4060_v4 = vadd.s32 %v4054_v57, %v4050_v62  ;;  %v16047_v36 = vld [vmem:[#allocation42_spill] sm:$0xff] }
 0x3ef   : > { %v12514_v15 = vadd.s32 %v3424_v25, %v3415_v52  ;;  %v12516_v6 = vadd.s32 %v3440_v53, %v3436_v5  ;;  %v3446_v12 = vadd.s32 %v3445_v10, %v3435_v45  ;;  %v4059_v30 = vsel %vm4058_vm10, 1, %v16024_v1  ;;  %v16044_v53 = vld [vmem:[#allocation21_spill] sm:$0xff] }
 0x3f0   : > { %v4013_v9 = vsel %vm4009_vm14, %v12025_v46, %v12208_v59  ;;  %v3448_v31 = vmul.u32 %v12339_v47, %v3394_v2  ;;  %vm7874_vm2 = vcmp.lt.s32.totalorder %v7873_v38, 0  ;;  %vm3768_vm12 = vcmp.lt.s32.totalorder %v12511_v26, 0 }
 0x3f1   : > { %v3447_v32 = vadd.s32 %v3446_v12, %v3437_v13  ;;  %v3769_v34 = vsub.s32 0, %v12511_v26  ;;  %v4035_v62 = vshrl.u32 %v12455_v40, 16  ;;  %v4055_v42 = vshrl.u32 %v12230_v39, 16  ;;  %v16045_v39 = vld [vmem:[#allocation12_spill] sm:$0xff] }
 0x3f2   : > { %vm3450_vm9 = vc.u32 %v12514_v15, %v12516_v6  ;;  %v4044_v16 = vadd.s32 %v4043_v19, %v4033_v24  ;;  %v4061_v46 = vadd.s32 %v4059_v30, %v16041_v8  ;;  %vm4062_vm14 = vc.u32 %v4060_v4, %v4056_v11  ;;  %v16049_v8 = vld [vmem:[#allocation30_spill] sm:$0xff] }
 0x3f3   : > { %v3154_v47 = vsel %vm7874_vm2, 0, %v7873_v38  ;;  %v3451_v59 = vadd.s32 1, %v3447_v32  ;;  %v3770_v61 = vsel %vm3768_vm12, %v3769_v34, %v12511_v26  ;;  %v4063_v5 = vsel %vm4062_vm14, 1, %v16024_v1 }
 0x3f4   : > { %v324_v40 = vmul.f32 %v16043_v20, %v16042_v41  ;;  %v426_v50 = vmul.f32 %v16045_v39, %v16044_v53  ;;  %v3771_v49 = vclz %v3770_v61  ;;  %v4014_v29 = vsel %vm4008_vm7, %v16046_v60, %v4013_v9 }
 0x3f5   : > { %v3452_v17 = vsel %vm3450_vm9, %v3451_v59, %v3447_v32  ;;  %v4057_v48 = vshrl.u32 %v4052_v58, 16  ;;  %v4065_v57 = vadd.s32 %v4063_v5, %v4061_v46  ;;  %v3159_v54 = vsub.s32 4294967266, %v3154_v47  ;;  %v12563_v32 = vpop.f32.mrf.mxu1 }
 0x3f6   : > { %v3453_v56 = vadd.s32 %v3452_v17, %v3448_v31  ;;  %v12544_v27 = vadd.s32 %v4044_v16, %v4035_v62  ;;  %v12546_v33 = vadd.s32 %v4060_v4, %v4056_v11  ;;  %v7893_v21 = vadd.s32 4294967169, %v16047_v36 }
 0x3f7   : > { %v7885_v45 = vadd.s32 4294967294, %v3771_v49  ;;  %v4066_v23 = vadd.s32 %v4065_v57, %v4055_v42  ;;  %v4068_v18 = vmul.u32 %v16048_v22, %v4014_v29  ;;  %v458_v2 = vadd.f32 %v426_v50, %v324_v40 }
 0x3f8   : > { %v3139_v38 = vadd.s32 %v12396_v43, %v12406_v7  ;;  %v3454_v52 = vadd.s32 536870912, %v3453_v56  ;;  %v3155_v25 = vsub.s32 32, %v3154_v47  ;;  %v3759_v58 = vadd.s32 %v12450_v63, %v12448_v37  ;;  %v12559_v7 = vpop.f32.mrf.mxu0 }
 0x3f9   : > { %vm7886_vm7 = vcmp.lt.s32.totalorder %v7885_v45, 0  ;;  %v4067_v13 = vadd.s32 %v4066_v23, %v4057_v48  ;;  %v3160_v10 = vadd.s32 127, %v3159_v54  ;;  %vm4070_vm11 = vc.u32 %v12544_v27, %v12546_v33  ;;  %v16051_v54 = vld [vmem:[#allocation36_spill] sm:$0xff] }
 0x3fa   : > { %v12554_v24 = vshrl.u32 %v3454_v52, 30  ;;  %v3774_v19 = vsel %vm7886_vm7, 0, %v7885_v45  ;;  %v4140_v43 = vadd.s32 1, %v7893_v21  ;;  %v3156_v37 = vshll.u32 %v12475_v35, %v3154_v47 }
 0x3fb   : > { %v3775_v11 = vsub.s32 32, %v3774_v19  ;;  %v3776_v4 = vshll.u32 %v12511_v26, %v3774_v19  ;;  %v3779_v12 = vsub.s32 4294967266, %v3774_v19  ;;  %v4071_v30 = vadd.s32 1, %v4067_v13 }
 0x3fc   : > { %v3456_v51 = vshll.u32 %v12554_v24, 30  ;;  %v3157_v34 = vshrl.u32 %v3139_v38, %v3155_v25  ;;  %v3161_v62 = vshll.u32 %v3160_v10, 23  ;;  %v12566_v26 = vadd.f32 %v16049_v8, %v458_v2 }
 0x3fd   : > { %v3777_v63 = vshrl.u32 %v3759_v58, %v3775_v11  ;;  %v3780_v9 = vadd.s32 127, %v3779_v12  ;;  %v4072_v31 = vsel %vm4070_vm11, %v4071_v30, %v4067_v13  ;;  %vm4141_vm15 = vcmp.gt.s32.totalorder %v4140_v43, 0  ;;  %v12577_v2 = vpop.f32.mrf.mxu1 }
 0x3fe   : > { %v3457_v42 = vsub.s32 %v3453_v56, %v3456_v51  ;;  %v4073_v16 = vadd.s32 %v4072_v31, %v4068_v18  ;;  %16050 = vst [vmem:[#allocation27_spill] sm:$0xff] %v12566_v26  ;;  %v3158_v35 = vor.u32 %v3157_v34, %v3156_v37  ;;  %v3162_v47 = vor.u32 4788187, %v3161_v62  ;;  %v16056_v51 = vld [vmem:[#allocation38_spill] sm:$0xff] }
 0x3ff   : > { %v3778_v46 = vor.u32 %v3777_v63, %v3776_v4  ;;  %v3781_v59 = vshll.u32 %v3780_v9, 23  ;;  %v3823_v50 = vand.u32 2139095040, %v12566_v26  ;;  %v4142_v17 = vsel %vm4141_vm15, %v4140_v43, 0  ;;  %v12589_v4 = vpop.permute.xlu2 %6138  ;;  %v12594_v63 = vpop.f32.mrf.mxu2 }
 0x400   : > { %vm3458_vm1 = vcmp.lt.s32.totalorder %v3457_v42, 0  ;;  %v3459_v61 = vsub.s32 0, %v3457_v42  ;;  %v4074_v40 = vadd.s32 536870912, %v4073_v16  ;;  %vm3667_vm3 = vcmp.lt.s32.totalorder %v16051_v54, 0  ;;  %v12572_v56 = vpop.f32.mrf.mxu0  ;;  %16055 = vst [vmem:[#allocation40_spill] sm:$0xff] %v12589_v4 }
 0x401   : > { %v3782_v5 = vor.u32 4788187, %v3781_v59  ;;  %v3785_v41 = vcvt.s32.f32 %v3778_v46  ;;  %v3163_v36 = vand.u32 2147483647, %v3162_v47  ;;  %v3165_v21 = vcvt.s32.f32 %v3158_v35  ;;  %v16058_v59 = vld [vmem:[#allocation16_spill] sm:$0xff] }
 0x402   : > { %v3460_v53 = vsel %vm3458_vm1, %v3459_v61, %v3457_v42  ;;  %v12569_v29 = vshrl.u32 %v4074_v40, 30  ;;  %v3824_v23 = vshrl.u32 %v3823_v50, 23  ;;  %v3449_v22 = vadd.s32 %v12516_v6, %v12514_v15  ;;  %v12611_v61 = vpop.f32.mrf.mxu3  ;;  %v12613_v40 = vpop.permute.xlu1 %6143 }
 0x403   : > { %v3461_v49 = vclz %v3460_v53  ;;  %v3783_v60 = vand.u32 2147483647, %v3782_v5  ;;  %v16052_v52 = vand.u32 2147483647, %v16051_v54  ;;  %v12587_v11 = vand.u32 31, %v4142_v17  ;;  %16059 = vst [vmem:[#allocation26_spill] sm:$0xff] %v12613_v40 }
 0x404   : > { %v4076_v45 = vshll.u32 %v12569_v29, 30  ;;  %v3166_v15 = vmul.f32 %v3165_v21, %v3163_v36  ;;  %v7887_v12 = vadd.s32 4294967169, %v3824_v23  ;;  %v15540_v37 = vand.u32 2147483647, %v16056_v51 }
 0x405   : > { %v7879_v48 = vadd.s32 4294967294, %v3461_v49  ;;  %v3786_v57 = vmul.f32 %v3785_v41, %v3783_v60  ;;  %vm12581_vm4 = vcmp.le.f32.partialorder %v16052_v52, 0.7853982  ;;  %vm3047_vm13 = vcmp.lt.s32.totalorder %v16058_v59, 0  ;;  %v16066_v52 = vld [vmem:[#allocation19_spill] sm:$0xff] }
 0x406   : > { %v12585_v19 = vsub.s32 %v4073_v16, %v4076_v45  ;;  %v12607_v16 = vsub.s32 32, %v12587_v11  ;;  %v3167_v8 = vxor.u32 2147483648, %v3166_v15  ;;  %v3830_v46 = vadd.s32 1, %v7887_v12 }
 0x407   : > { %vm7880_vm5 = vcmp.lt.s32.totalorder %v7879_v48, 0  ;;  %v3787_v18 = vxor.u32 2147483648, %v3786_v57  ;;  %v12619_v47 = vand.u32 8388607, %v15540_v37  ;;  %v4147_v60 = vshll.u32 %v16014_v14, %v12587_v11  ;;  %v16078_v37 = vld [vmem:[#allocation44_spill] sm:$0xff] }
 0x408   : > { %v3464_v38 = vsel %vm7880_vm5, 0, %v7879_v48  ;;  %16057 = vst [vmem:[#allocation22_spill] sm:$0xff] %v12607_v16  ;;  %vm4078_vm8 = vcmp.lt.s32.totalorder %v12585_v19, 0  ;;  %v12615_v35 = vpop.f32.mrf.mxu0  ;;  %v4148_v48 = vshrl.u32 %v16007_v55, %v12607_v16  ;;  %v16061_v36 = vand.u32 2147483647, %v16058_v59 }
 0x409   : > { %v3465_v58 = vsub.s32 32, %v3464_v38  ;;  %v3466_v13 = vshll.u32 %v3457_v42, %v3464_v38  ;;  %v3469_v10 = vsub.s32 4294967266, %v3464_v38  ;;  %v3788_v6 = vsel %vm3667_vm3, %v3787_v18, %v3786_v57  ;;  %16060 = vst [vmem:[#allocation23_spill] sm:$0xff] %v12619_v47  ;;  %v12627_v57 = vpop.f32.mrf.mxu1  ;;  %v16065_v38 = vld [vmem:[#allocation46_spill] sm:$0xff] }
 0x40a   : > { %v12599_v9 = vsel %vm12581_vm4, %v16051_v54, %v3788_v6  ;;  %v4079_v42 = vsub.s32 0, %v12585_v19  ;;  %vm12631_vm0 = vcmp.le.f32.partialorder %v16061_v36, 0.7853982  ;;  %v3168_v45 = vsel %vm3047_vm13, %v3167_v8, %v3166_v15 }
 0x40b   : > { %v3467_v30 = vshrl.u32 %v3449_v22, %v3465_v58  ;;  %v3470_v43 = vadd.s32 127, %v3469_v10  ;;  %v12603_v62 = vmul.f32 %v12599_v9, %v12599_v9  ;;  %v12637_v23 = vshrl.u32 %v4142_v17, 5  ;;  %v12648_v10 = vpop.permute.xlu2 %6128 }
 0x40c   : > { %v4080_v49 = vsel %vm4078_vm8, %v4079_v42, %v12585_v19  ;;  %v12641_v22 = vshll.u32 %v16007_v55, %v12587_v11  ;;  %vm3831_vm10 = vcmp.gt.s32.totalorder %v3830_v46, 0  ;;  %v12645_v58 = vadd.f32 %v16066_v52, %v16065_v38  ;;  %16069 = vst [vmem:[#allocation28_spill] sm:$0xff] %v12648_v10 }
 0x40d   : > { %v3468_v31 = vor.u32 %v3467_v30, %v3466_v13  ;;  %v3471_v34 = vshll.u32 %v3470_v43, 23  ;;  %v3801_v50 = vmul.f32 -0.00019511016, %v12603_v62  ;;  %16064 = vst [vmem:[#allocation41_spill] sm:$0xff] %v12637_v23  ;;  %v16068_v13 = vld [vmem:[#allocation18_spill] sm:$0xff]  ;;  %v4081_v17 = vclz %v4080_v49  ;;  %v12708_v49 = vpop.permute.xlu1 %6133  ;;  %v16081_v23 = vld [vmem:[#allocation43_spill] sm:$0xff] }
 0x40e   : > { %16067 = vst [vmem:[#allocation17_spill] sm:$0xff] %v12645_v58  ;;  %vm3357_vm2 = vcmp.lt.s32.totalorder %v16068_v13, 0  ;;  %v16070_v6 = vand.u32 2147483647, %v16068_v13  ;;  %v12659_v12 = vsel %vm12631_vm0, %v16058_v59, %v3168_v45  ;;  %v3794_v43 = vmul.f32 -0.001358992, %v12603_v62 }
 0x40f   : > { %v3472_v5 = vor.u32 4788187, %v3471_v34  ;;  %v3475_v41 = vcvt.s32.f32 %v3468_v31  ;;  %v3802_v31 = vadd.f32 0.008332121, %v3801_v50  ;;  %v12662_v34 = vor.u32 %v4148_v48, %v4147_v60  ;;  %16080 = vst [vmem:[#allocation31_spill] sm:$0xff] %v12708_v49 }
 0x410   : > { %vm12652_vm12 = vcmp.le.f32.partialorder %v16070_v6, 0.7853982  ;;  %v16074_v42 = vmov 2131351028   ;;  %v12676_v36 = vsel %vm3831_vm10, %v3830_v46, 0  ;;  %v6181_v50 = vadd.f32 %v12528_v3, %v12648_v10  ;;  %v12692_v46 = vpop.f32.mrf.mxu3  ;;  %v12710_v51 = vpop.f32.mrf.mxu0 }
 0x411   : > { %v3473_v53 = vand.u32 2147483647, %v3472_v5  ;;  %16073 = vst [vmem:[#allocation25_spill] sm:$0xff] %v12662_v34  ;;  %v12666_v8 = vshrl.u32 %v16074_v42, %v12607_v16  ;;  %v12670_v5 = vshll.u32 %v16074_v42, %v12587_v11  ;;  %v3513_v48 = vand.u32 2139095040, %v12645_v58 }
 0x412   : > { %v12685_v45 = vmul.f32 %v12659_v12, %v12659_v12  ;;  %v3795_v52 = vadd.f32 0.041655596, %v3794_v43  ;;  %v4069_v6 = vadd.s32 %v12546_v33, %v12544_v27  ;;  %v3789_v10 = vsub.s32 4, %v12497_v0 }
 0x413   : > { %v3476_v18 = vmul.f32 %v3475_v41, %v3473_v53  ;;  %16075 = vst [vmem:[#allocation45_spill] sm:$0xff] %v12666_v8  ;;  %v12672_v41 = vpop.f32.mrf.mxu2  ;;  %v7891_v53 = vadd.s32 4294967294, %v4081_v17  ;;  %v12702_v17 = vand.u32 31, %v12676_v36  ;;  %v6246_v43 = vadd.f32 %v12539_v28, %v6181_v50 }
 0x414   : > { %16076 = vst [vmem:[#allocation37_spill] sm:$0xff] %v12670_v5  ;;  %v12717_v20 = vshrl.u32 %v3513_v48, 23  ;;  %v3796_v28 = vmul.f32 %v3795_v52, %v12603_v62  ;;  %v3790_v48 = vsel %vm3667_vm3, %v3789_v10, %v12497_v0  ;;  %vm3977_vm14 = vcmp.lt.s32.totalorder %v16081_v23, 0 }
 0x415   : > { %v3477_v30 = vxor.u32 2147483648, %v3476_v18  ;;  %vm7892_vm9 = vcmp.lt.s32.totalorder %v7891_v53, 0  ;;  %v3174_v52 = vmul.f32 -0.001358992, %v12685_v45  ;;  %v3792_v0 = vsel %vm12581_vm4, 0, %v3790_v48 }
 0x416   : > { %v4084_v1 = vsel %vm7892_vm9, 0, %v7891_v53  ;;  %v6189_v53 = vadd.f32 %v12559_v7, %v12708_v49  ;;  %v3797_v10 = vadd.f32 -0.4999988, %v3796_v28  ;;  %v3809_v28 = vadd.s32 3, %v3792_v0 }
 0x417   : > { %v3478_v60 = vsel %vm3357_vm2, %v3477_v30, %v3476_v18  ;;  %v3803_v18 = vmul.f32 %v3802_v31, %v12603_v62  ;;  %v16077_v30 = vld [vmem:[#allocation33_spill] sm:$0xff]  ;;  %v6197_v31 = vadd.f32 %v12572_v56, %v12589_v4  ;;  %v4085_v33 = vsub.s32 32, %v4084_v1 }
 0x418   : > { %v12690_v38 = vsel %vm12652_vm12, %v16068_v13, %v3478_v60  ;;  %v12706_v60 = vadd.f32 %v16078_v37, %v16077_v30  ;;  %v3181_v37 = vmul.f32 -0.00019511016, %v12685_v45  ;;  %v12720_v30 = vpop.f32.mrf.mxu1  ;;  %v4086_v39 = vshll.u32 %v12585_v19, %v4084_v1 }
 0x419   : > { %v12696_v3 = vmul.f32 %v12690_v38, %v12690_v38  ;;  %v4089_v34 = vsub.s32 4294967266, %v4084_v1  ;;  %v3804_v50 = vadd.f32 -0.16666654, %v3803_v18  ;;  %v4087_v5 = vshrl.u32 %v4069_v6, %v4085_v33 }
 0x41a   : > { %16079 = vst [vmem:[#allocation20_spill] sm:$0xff] %v12706_v60  ;;  %v6288_v1 = vadd.f32 %v12594_v63, %v6246_v43  ;;  %v6254_v7 = vadd.f32 %v12577_v2, %v6197_v31  ;;  %v3169_v6 = vsub.s32 4, %v12458_v44  ;;  %v3182_v33 = vadd.f32 0.008332121, %v3181_v37 }
 0x41b   : > { %v3491_v27 = vmul.f32 -0.00019511016, %v12696_v3  ;;  %v3484_v56 = vmul.f32 -0.001358992, %v12696_v3  ;;  %v4090_v47 = vadd.s32 127, %v4089_v34  ;;  %v6297_v18 = vpop.f32.mrf.mxu2  ;;  %v6250_v8 = vadd.f32 %v12563_v32, %v6189_v53  ;;  %v6384_v32 = vpop.f32.mrf.mxu0 }
 0x41c   : > { %v3805_v34 = vmul.f32 %v3804_v50, %v12603_v62  ;;  %v6330_v31 = vadd.f32 %v12611_v61, %v6288_v1  ;;  %v6205_v37 = vadd.f32 %v12615_v35, %v12613_v40  ;;  %v3170_v25 = vsel %vm3047_vm13, %v3169_v6, %v12458_v44 }
 0x41d   : > { %v3492_v4 = vadd.f32 0.008332121, %v3491_v27  ;;  %v4088_v27 = vor.u32 %v4087_v5, %v4086_v39  ;;  %v4091_v49 = vshll.u32 %v4090_v47, 23  ;;  %v3485_v19 = vadd.f32 0.041655596, %v3484_v56  ;;  %v6341_v5 = vpop.f32.mrf.mxu3 }
 0x41e   : > { %v6298_v39 = vadd.f32 %v6297_v18, %v6254_v7  ;;  %v3175_v47 = vadd.f32 0.041655596, %v3174_v52  ;;  %v3183_v53 = vmul.f32 %v3182_v33, %v12685_v45  ;;  %v3798_v61 = vmul.f32 %v3797_v10, %v12603_v62 }
 0x41f   : > { %v3493_v63 = vmul.f32 %v3492_v4, %v12696_v3  ;;  %v4092_v2 = vor.u32 4788187, %v4091_v49  ;;  %v4095_v43 = vcvt.s32.f32 %v4088_v27  ;;  %v6293_v4 = vadd.f32 %v12672_v41, %v6250_v8 }
 0x420   : > { %v3479_v49 = vsub.s32 4, %v12554_v24  ;;  %v3806_v56 = vadd.f32 1.0, %v3805_v34  ;;  %v3486_v35 = vmul.f32 %v3485_v19, %v12696_v3  ;;  %v12752_v1 = vpop.f32.mrf.mxu1  ;;  %v4099_v52 = vsub.s32 4, %v12569_v29 }
 0x421   : > { %v4093_v50 = vand.u32 2147483647, %v4092_v2  ;;  %v3494_v48 = vadd.f32 -0.16666654, %v3493_v63  ;;  %v6258_v44 = vadd.f32 %v12627_v57, %v6205_v37  ;;  %v6342_v18 = vadd.f32 %v6341_v5, %v6298_v39 }
 0x422   : > { %v3172_v6 = vsel %vm12631_vm0, 0, %v3170_v25  ;;  %v3176_v8 = vmul.f32 %v3175_v47, %v12685_v45  ;;  %v3184_v41 = vadd.f32 -0.16666654, %v3183_v53  ;;  %v3810_v33 = vand.u32 3, %v3809_v28 }
 0x423   : > { %v4096_v7 = vmul.f32 %v4095_v43, %v4093_v50  ;;  %v16082_v62 = vand.u32 2147483647, %v16081_v23  ;;  %v6336_v0 = vadd.f32 %v12692_v46, %v6293_v4  ;;  %v3480_v57 = vsel %vm3357_vm2, %v3479_v49, %v12554_v24  ;;  %v6302_v34 = vpop.f32.mrf.mxu2  ;;  %v6388_v50 = vpop.f32.mrf.mxu0 }
 0x424   : > { %v3799_v10 = vadd.f32 1.0, %v3798_v61  ;;  %v3807_v21 = vmul.f32 %v3806_v56, %v12599_v9  ;;  %v3487_v63 = vadd.f32 -0.4999988, %v3486_v35  ;;  %v3495_v2 = vmul.f32 %v3494_v48, %v12696_v3 }
 0x425   : > { %vm12761_vm7 = vcmp.le.f32.partialorder %v16082_v62, 0.7853982  ;;  %v4097_v27 = vxor.u32 2147483648, %v4096_v7  ;;  %v4100_v37 = vsel %vm3977_vm14, %v4099_v52, %v12569_v29  ;;  %v6303_v39 = vadd.f32 %v6302_v34, %v6258_v44 }
 0x426   : > { %v3177_v46 = vadd.f32 -0.4999988, %v3176_v8  ;;  %v3189_v47 = vadd.s32 3, %v3172_v6  ;;  %v3185_v9 = vmul.f32 %v3184_v41, %v12685_v45  ;;  %v3482_v5 = vsel %vm12652_vm12, 0, %v3480_v57 }
 0x427   : > { %v4098_v43 = vsel %vm3977_vm14, %v4097_v27, %v4096_v7  ;;  %vm3812_vm11 = vcmp.eq.s32.totalorder %v3810_v33, 0  ;;  %v3813_v53 = vxor.u32 2147483648, %v3807_v21  ;;  %vm3815_vm1 = vcmp.eq.s32.totalorder %v3810_v33, 2 }
 0x428   : > { %v12779_v24 = vsel %vm12761_vm7, %v16081_v23, %v4098_v43  ;;  %v3816_v29 = vxor.u32 2147483648, %v3799_v10  ;;  %v4102_v28 = vsel %vm12761_vm7, 0, %v4100_v37  ;;  %v3488_v4 = vmul.f32 %v3487_v63, %v12696_v3  ;;  %v6425_v6 = vpop.f32.mrf.mxu1 }
 0x429   : > { %v4103_v25 = vmul.f32 %v12779_v24, %v12779_v24  ;;  %v3496_v49 = vadd.f32 1.0, %v3495_v2  ;;  %v12790_v35 = vadd.f32 %v12710_v51, %v6330_v31  ;;  %v3178_v15 = vmul.f32 %v3177_v46, %v12685_v45 }
 0x42a   : > { %v12793_v48 = vand.u32 3, %v3189_v47  ;;  %v3499_v7 = vadd.s32 3, %v3482_v5  ;;  %v6385_v52 = vadd.f32 %v6384_v32, %v6336_v0  ;;  %v3186_v44 = vadd.f32 1.0, %v3185_v9 }
 0x42b   : > { %v4104_v61 = vmul.f32 -0.001358992, %v4103_v25  ;;  %v4111_v56 = vmul.f32 -0.00019511016, %v4103_v25  ;;  %vm3811_vm15 = vcmp.lt.s32.totalorder %v3810_v33, 2  ;;  %v3814_v62 = vsel %vm3812_vm11, %v3799_v10, %v3813_v53  ;;  %v6347_v10 = vpop.f32.mrf.mxu3  ;;  %v6392_v53 = vpop.f32.mrf.mxu0 }
 0x42c   : > { %v3817_v3 = vsel %vm3815_vm1, %v3816_v29, %v3807_v21  ;;  %v4119_v19 = vadd.s32 3, %v4102_v28  ;;  %v3489_v27 = vadd.f32 1.0, %v3488_v4  ;;  %v3497_v51 = vmul.f32 %v3496_v49, %v12690_v38 }
 0x42d   : > { %v4105_v8 = vadd.f32 0.041655596, %v4104_v61  ;;  %v4112_v41 = vadd.f32 0.008332121, %v4111_v56  ;;  %v3179_v45 = vadd.f32 1.0, %v3178_v15  ;;  %vm3192_vm3 = vcmp.eq.s32.totalorder %v12793_v48, 0 }
 0x42e   : > { %v6389_v34 = vadd.f32 %v6388_v50, %v6342_v18  ;;  %v3500_v32 = vand.u32 3, %v3499_v7  ;;  %v3187_v0 = vmul.f32 %v3186_v44, %v12659_v12  ;;  %vm3191_vm5 = vcmp.lt.s32.totalorder %v12793_v48, 2 }
 0x42f   : > { %v4106_v31 = vmul.f32 %v4105_v8, %v4103_v25  ;;  %v4113_v57 = vmul.f32 %v4112_v41, %v4103_v25  ;;  %vm3195_vm4 = vcmp.eq.s32.totalorder %v12793_v48, 2  ;;  %vm3808_vm8 = vweird.f32 %v16051_v54 }
 0x430   : > { %v3818_v38 = vsel %vm3811_vm15, %v3814_v62, %v3817_v3  ;;  %v6426_v2 = vadd.f32 %v6425_v6, %v6389_v34  ;;  %v4120_v43 = vand.u32 3, %v4119_v19  ;;  %v3503_v37 = vxor.u32 2147483648, %v3497_v51 }
 0x431   : > { %v4107_v63 = vadd.f32 -0.4999988, %v4106_v31  ;;  %v4114_v21 = vadd.f32 -0.16666654, %v4113_v57  ;;  %v3506_v46 = vxor.u32 2147483648, %v3489_v27  ;;  %v3196_v9 = vxor.u32 2147483648, %v3179_v45 }
 0x432   : > { %v6348_v5 = vadd.f32 %v6347_v10, %v6303_v39  ;;  %vm3502_vm13 = vcmp.eq.s32.totalorder %v3500_v32, 0  ;;  %vm3505_vm0 = vcmp.eq.s32.totalorder %v3500_v32, 2  ;;  %v3193_v12 = vxor.u32 2147483648, %v3187_v0 }
 0x433   : > { %v4108_v47 = vmul.f32 %v4107_v63, %v4103_v25  ;;  %v4115_v18 = vmul.f32 %v4114_v21, %v4103_v25  ;;  %v3819_v29 = vsel %vm3808_vm8, nan, %v3818_v38  ;;  %vm3498_vm10 = vweird.f32 %v16068_v13  ;;  %v6429_v25 = vpop.f32.mrf.mxu1 }
 0x434   : > { %vm3501_vm2 = vcmp.lt.s32.totalorder %v3500_v32, 2  ;;  %v6714_v54 = vmul.f32 %v6426_v2, %v3819_v29  ;;  %vm4125_vm12 = vcmp.eq.s32.totalorder %v4120_v43, 2  ;;  %v3504_v33 = vsel %vm3502_vm13, %v3489_v27, %v3503_v37 }
 0x435   : > { %v4109_v28 = vadd.f32 1.0, %v4108_v47  ;;  %v4116_v50 = vadd.f32 1.0, %v4115_v18  ;;  %v3507_v4 = vsel %vm3505_vm0, %v3506_v46, %v3497_v51  ;;  %v3197_v39 = vsel %vm3195_vm4, %v3196_v9, %v3187_v0 }
 0x436   : > { %v6422_v56 = vadd.f32 %v12752_v1, %v6385_v52  ;;  %v6393_v15 = vadd.f32 %v6392_v53, %v6348_v5  ;;  %vm4122_vm9 = vcmp.eq.s32.totalorder %v4120_v43, 0  ;;  %v3194_v7 = vsel %vm3192_vm3, %v3179_v45, %v3193_v12  ;;  %v12858_v5 = vpop.permute.xlu1 %396 }
 0x437   : > { %v4117_v49 = vmul.f32 %v4116_v50, %v12779_v24  ;;  %v4126_v61 = vxor.u32 2147483648, %v4109_v28  ;;  %vm4121_vm14 = vcmp.lt.s32.totalorder %v4120_v43, 2  ;;  %v3508_v8 = vsel %vm3501_vm2, %v3504_v33, %v3507_v4  ;;  %16090 = vst [vmem:[#allocation29_spill] sm:$0xff] %v12858_v5 }
 0x438   : > { %v12812_v41 = vand.u32 4294901760, %v6714_v54  ;;  %vm4118_vm7 = vweird.f32 %v16081_v23  ;;  %v6430_v24 = vadd.f32 %v6429_v25, %v6393_v15  ;;  %v12816_v62 = vsub.s32 32, %v12702_v17 }
 0x439   : > { %v4123_v44 = vxor.u32 2147483648, %v4117_v49  ;;  %v4127_v6 = vsel %vm4125_vm12, %v4126_v61, %v4117_v49  ;;  %v7881_v1 = vadd.s32 4294967169, %v12717_v20  ;;  %v16085_v52 = vand.u32 2139095040, %v12706_v60 }
 0x43a   : > { %vm3188_vm11 = vweird.f32 %v16058_v59  ;;  %v3198_v27 = vsel %vm3191_vm5, %v3194_v7, %v3197_v39  ;;  %v6418_v51 = vadd.f32 %v12720_v30, %v12790_v35  ;;  %v16086_v23 = vmov 2102212464  }
 0x43b   : > { %v3204_v3 = vshrl.u32 %v16085_v52, 23  ;;  %v4124_v19 = vsel %vm4122_vm9, %v4109_v28, %v4123_v44  ;;  %v12828_v57 = vshrl.u32 %v16086_v23, %v12607_v16  ;;  %v12832_v20 = vshll.u32 %v16086_v23, %v12587_v11 }
 0x43c   : > { %v4128_v31 = vsel %vm4121_vm14, %v4124_v19, %v4127_v6  ;;  %v3509_v45 = vsel %vm3498_vm10, nan, %v3508_v8  ;;  %v16087_v59 = vand.u32 2147483647, %v12566_v26  ;;  %v12839_v30 = vsub.f32 %v6714_v54, %v12812_v41  ;;  %v16091_v19 = vld [vmem:[#allocation45_spill] sm:$0xff] }
 0x43d   : > { %v4129_v34 = vsel %vm4118_vm7, nan, %v4128_v31  ;;  %v6712_v32 = vmul.f32 %v6422_v56, %v3509_v45  ;;  %v12842_v35 = vshrl.u32 %v12676_v36, 5  ;;  %v16088_v10 = vmov 920167782  }
 0x43e   : > { %v3827_v48 = vand.u32 8388607, %v16087_v59  ;;  %v6716_v0 = vmul.f32 %v6430_v24, %v4129_v34  ;;  %v3849_v63 = vshll.u32 %v16088_v10, %v12702_v17  ;;  %v16089_v21 = vmov 1326507024  }
 0x43f   : > { %v3850_v38 = vshrl.u32 %v16089_v21, %v12816_v62  ;;  %v3199_v13 = vsel %vm3188_vm11, nan, %v3198_v27  ;;  %v3520_v2 = vadd.s32 1, %v7881_v1  ;;  %v7875_v43 = vadd.s32 4294967169, %v3204_v3 }
 0x440   : > { %v6710_v37 = vmul.f32 %v6418_v51, %v3199_v13  ;;  %v12848_v46 = vand.u32 4294901760, %v6716_v0  ;;  %v3840_v47 = vshll.u32 %v16007_v55, %v12702_v17  ;;  %v3841_v18 = vshrl.u32 %v16074_v42, %v12816_v62  ;;  %v16097_v13 = vld [vmem:[#allocation37_spill] sm:$0xff] }
 0x441   : > { %v3843_v36 = vshll.u32 %v16074_v42, %v12702_v17  ;;  %v3844_v9 = vshrl.u32 %v16086_v23, %v12816_v62  ;;  %v3828_v12 = vor.u32 8388608, %v3827_v48  ;;  %v12860_v53 = vand.u32 4294901760, %v6712_v32  ;;  %v16094_v48 = vld [vmem:[#allocation41_spill] sm:$0xff] }
 0x442   : > { %v6816_v29 = vsub.f32 %v6716_v0, %v12848_v46  ;;  %6763 = vmatpush.msra.mxu0 %v12848_v46  ;;  %6914 = vmatpush.msra.mxu3 %v12848_v46  ;;  %v6823_v28 = vand.u32 4294901760, %v12839_v30  ;;  %v3846_v50 = vshll.u32 %v16086_v23, %v12702_v17  ;;  %v3847_v54 = vshrl.u32 %v16088_v10, %v12816_v62 }
 0x443   : > { %v3851_v33 = vor.u32 %v3850_v38, %v3849_v63  ;;  %vm3855_vm1 = vcmp.lt.s32.totalorder %v12842_v35, 4  ;;  %vm3521_vm15 = vcmp.gt.s32.totalorder %v3520_v2, 0  ;;  %v3210_v4 = vadd.s32 1, %v7875_v43  ;;  %v16096_v63 = vld [vmem:[#allocation23_spill] sm:$0xff] }
 0x444   : > { %v12871_v49 = vand.u32 4294901760, %v6710_v37  ;;  %6765 = vmatpush.msra.mxu0 %v12812_v41  ;;  %6870 = vmatpush.msra.mxu2 %v6816_v29  ;;  %v6817_v61 = vand.u32 4294901760, %v6816_v29  ;;  %v3837_v25 = vshll.u32 %v16014_v14, %v12702_v17  ;;  %v3838_v39 = vshrl.u32 %v16007_v55, %v12816_v62 }
 0x445   : > { %v12878_v56 = vor.u32 %v3841_v18, %v3840_v47  ;;  %v12880_v15 = vor.u32 %v3844_v9, %v3843_v36  ;;  %6916 = vmatpush.msra.mxu3 %v12812_v41  ;;  %vm3852_vm3 = vcmp.lt.s32.totalorder %v12842_v35, 1  ;;  %v6828_v7 = vsub.f32 %v6712_v32, %v12860_v53  ;;  %v16099_v9 = vld [vmem:[#allocation25_spill] sm:$0xff] }
 0x446   : > { %6767 = vmatpush.msra.mxu0 %v12860_v53  ;;  %6873 = vmatpush.msra.mxu2 %v12839_v30  ;;  %v6818_v44 = vsub.f32 %v6816_v29, %v6817_v61  ;;  %v6824_v17 = vsub.f32 %v12839_v30, %v6823_v28  ;;  %v3848_v6 = vor.u32 %v3847_v54, %v3846_v50  ;;  %vm3854_vm5 = vcmp.lt.s32.totalorder %v12842_v35, 3  ;;  %v12916_v30 = vpop.permute.xlu1 %392 }
 0x447   : > { %v3865_v8 = vsel %vm3855_vm1, %v3851_v33, 1326507024  ;;  %v3522_v24 = vsel %vm3521_vm15, %v3520_v2, 0  ;;  %6918 = vmatpush.msra.mxu3 %v12860_v53  ;;  %v15549_v1 = vand.u32 2147483647, %v12645_v58  ;;  %vm3211_vm4 = vcmp.gt.s32.totalorder %v3210_v4, 0 }
 0x448   : > { %6769 = vmatpush.msra.mxu0 %v12871_v49  ;;  %6876 = vmatpush.msra.mxu2 %v6828_v7  ;;  %v6819_v52 = vand.u32 4294901760, %v6818_v44  ;;  %v6834_v3 = vsub.f32 %v6710_v37, %v12871_v49  ;;  %v12898_v27 = vor.u32 %v16091_v19, %v12641_v22  ;;  %v4157_v51 = vshrl.u32 %v16088_v10, %v12607_v16  ;;  %v6718_v33 = vld [vmem:[#allocation5 + $0xc0] sm:$0xff] }
 0x449   : > { %vm3853_vm8 = vcmp.lt.s32.totalorder %v12842_v35, 2  ;;  %v12903_v31 = vshll.u32 %v3828_v12, 8  ;;  %6920 = vmatpush.msra.mxu3 %v12871_v49  ;;  %v3864_v45 = vsel %vm3852_vm3, %v12878_v56, %v12880_v15  ;;  %v3866_v34 = vsel %vm3854_vm5, %v3848_v6, %v3865_v8  ;;  %16095 = vst [vmem:[#allocation39_spill] sm:$0xff] %v12916_v30  ;;  %6724 = vperm.xlu0 %8057, %v6718_v33  }
 0x44a   : > { %16092 = vst [vmem:[#allocation15_spill] sm:$0xff] %v12898_v27  ;;  %6961 = vmatpush.msrb.mxu0 %v6817_v61  ;;  %v3524_v22 = vand.u32 31, %v3522_v24  ;;  %6820 = vmatpush.msra.mxu1 %v6819_v52  ;;  %v6825_v59 = vand.u32 4294901760, %v6824_v17  ;;  %vm15569_vm13 = vcmp.lt.s32.totalorder %v16094_v48, 1  ;;  %v12913_v32 = vor.u32 %v3838_v39, %v3837_v25  ;;  %v16100_v39 = vld [vmem:[#allocation12_spill] sm:$0xff] }
 0x44b   : > { %16093 = vst [vmem:[#allocation32_spill] sm:$0xff] %v12903_v31  ;;  %6879 = vmatpush.msra.mxu2 %v6834_v3  ;;  %v3212_v0 = vsel %vm3211_vm4, %v3210_v4, 0  ;;  %v12921_v2 = vor.u32 %v12828_v57, %v16097_v13  ;;  %v3861_v43 = vsel %vm3855_vm1, %v3848_v6, 920167782  ;;  %v12927_v37 = vand.u32 8388607, %v15549_v1 }
 0x44c   : > { %6965 = vmatpush.msrb.mxu0 %v6823_v28  ;;  %6826 = vmatpush.msra.mxu1 %v6825_v59  ;;  %v12930_v47 = vor.u32 %v4157_v51, %v12832_v20  ;;  %v12934_v18 = vshll.u32 %v16088_v10, %v12587_v11  ;;  %v12938_v36 = vshrl.u32 %v16089_v21, %v12607_v16  ;;  %v12951_v20 = vand.u32 65535, %v12903_v31  ;;  %v12975_v51 = vpop.permute.xlu0 %293  ;;  %v16103_v13 = vld [vmem:[#allocation11_spill] sm:$0xff] }
 0x44d   : > { %16098 = vst [vmem:[#allocation35_spill] sm:$0xff] %v12921_v2  ;;  %v12942_v57 = vsel %vm3853_vm8, %v3864_v45, %v3866_v34  ;;  %v12948_v12 = vsel %vm15569_vm13, %v16099_v9, %v12898_v27  ;;  %v12953_v29 = vsub.s32 32, %v3524_v22  ;;  %v3214_v11 = vand.u32 31, %v3212_v0 }
 0x44e   : > { %v12959_v28 = vsel %vm3852_vm3, %v12913_v32, %v12878_v56  ;;  %v12964_v50 = vsel %vm3854_vm5, %v12880_v15, %v3861_v43  ;;  %v6829_v54 = vand.u32 4294901760, %v6828_v7  ;;  %v6835_v4 = vand.u32 4294901760, %v6834_v3  ;;  %16102 = vst [vmem:[#allocation34_spill] sm:$0xff] %v12975_v51 }
 0x44f   : > { %v436_v44 = vmul.f32 %v16100_v39, %v12858_v5  ;;  %v6742_v17 = vsel %vm15592_vm6, %v6718_v33, 0  ;;  %v12971_v6 = vshrl.u32 %v3522_v24, 5  ;;  %v3527_v45 = vshll.u32 %v16014_v14, %v3524_v22 }
 0x450   : > { %6969 = vmatpush.msrb.mxu0 %v6829_v54  ;;  %v6830_v8 = vsub.f32 %v6828_v7, %v6829_v54  ;;  %v12973_v52 = vand.u32 4294901760, %v6742_v17  ;;  %v6836_v19 = vsub.f32 %v6834_v3, %v6835_v4  ;;  %v3528_v34 = vshrl.u32 %v16007_v55, %v12953_v29 }
 0x451   : > { %v12980_v59 = vsub.s32 32, %v3214_v11  ;;  %v334_v43 = vmul.f32 %v16103_v13, %v12975_v51  ;;  %v3530_v24 = vshll.u32 %v16007_v55, %v3524_v22  ;;  %v3531_v7 = vshrl.u32 %v16074_v42, %v12953_v29 }
 0x452   : > { %16101 = vst [vmem:[#allocation21_spill] sm:$0xff] %v12973_v52  ;;  %v6831_v54 = vand.u32 4294901760, %v6830_v8  ;;  %v12988_v3 = vsub.f32 %v6742_v17, %v12973_v52  ;;  %6973 = vmatpush.msrb.mxu0 %v6835_v4  ;;  %v3533_v33 = vshll.u32 %v16074_v42, %v3524_v22  ;;  %v3539_v1 = vshll.u32 %v16088_v10, %v3524_v22  ;;  %v13002_v8 = vpop.permute.xlu1 %530 }
 0x453   : > { %v3540_v38 = vshrl.u32 %v16089_v21, %v12953_v29  ;;  %v468_v61 = vadd.f32 %v436_v44, %v334_v43  ;;  %vm15585_vm0 = vcmp.lt.s32.totalorder %v16094_v48, 4  ;;  %v3534_v25 = vshrl.u32 %v16086_v23, %v12953_v29  ;;  %16106 = vst [vmem:[#allocation30_spill] sm:$0xff] %v13002_v8 }
 0x454   : > { %16104 = vst [vmem:[#allocation42_spill] sm:$0xff] %v12988_v3  ;;  %v3536_v51 = vshll.u32 %v16086_v23, %v3524_v22  ;;  %6832 = vmatpush.msra.mxu1 %v6831_v54  ;;  %v12999_v17 = vand.u32 4294901760, %v12988_v3  ;;  %v6837_v4 = vand.u32 4294901760, %v6836_v19  ;;  %6882 = vmatmul.f32.vlgmr.msra.gmra.mxu2 %v12988_v3  ;;  %v3229_v44 = vshll.u32 %v16088_v10, %v3214_v11 }
 0x455   : > { %v3230_v43 = vshrl.u32 %v16089_v21, %v12980_v59  ;;  %v13009_v40 = vadd.f32 %v13002_v8, %v468_v61  ;;  %v13011_v22 = vshrl.u32 %v3212_v0, 5  ;;  %v3226_v54 = vshll.u32 %v16086_v23, %v3214_v11 }
 0x456   : > { %16105 = vst [vmem:[#allocation24_spill] sm:$0xff] %v12999_v17  ;;  %v3227_v19 = vshrl.u32 %v16088_v10, %v12980_v59  ;;  %v6773_v58 = vsub.f32 %v12988_v3, %v12999_v17  ;;  %6838 = vmatpush.msra.mxu1 %v6837_v4  ;;  %6924 = vmatmul.f32.vlgmr.msra.gmra.mxu3 %v12999_v17  ;;  %vm3545_vm10 = vcmp.lt.s32.totalorder %v12971_v6, 4  ;;  %vm4164_vm2 = vcmp.lt.s32.totalorder %v16094_v48, 3 }
 0x457   : > { %16107 = vst [vmem:[#allocation36_spill] sm:$0xff] %v13009_v40  ;;  %v3537_v5 = vshrl.u32 %v16088_v10, %v12953_v29  ;;  %v3541_v21 = vor.u32 %v3540_v38, %v3539_v1  ;;  %v3220_v0 = vshll.u32 %v16007_v55, %v3214_v11  ;;  %6840 = vmatmul.f32.vlgmr.msra.gmra.mxu1 %v12973_v52  ;;  %v16109_v52 = vand.u32 2147483647, %v12706_v60 }
 0x458   : > { %v3221_v61 = vshrl.u32 %v16074_v42, %v12980_v59  ;;  %v3223_v40 = vshll.u32 %v16074_v42, %v3214_v11  ;;  %v3224_v4 = vshrl.u32 %v16086_v23, %v12980_v59  ;;  %v13030_v3 = vand.u32 4294901760, %v6773_v58  ;;  %7004 = vmatpush.msrb.mxu1 %v12848_v46 }
 0x459   : > { %v13033_v1 = vor.u32 %v3531_v7, %v3530_v24  ;;  %v3217_v38 = vshll.u32 %v16014_v14, %v3214_v11  ;;  %v3218_v10 = vshrl.u32 %v16007_v55, %v12980_v59  ;;  %v3231_v17 = vor.u32 %v3230_v43, %v3229_v44  ;;  %v13111_v43 = vld [vmem:[#allocation5 + $0xc8] sm:$0xff] }
 0x45a   : > { %16108 = vst [vmem:[#allocation16_spill] sm:$0xff] %v13030_v3  ;;  %v13038_v8 = vor.u32 %v3534_v25, %v3533_v33  ;;  %v3207_v42 = vand.u32 8388607, %v16109_v52  ;;  %v3228_v26 = vor.u32 %v3227_v19, %v3226_v54  ;;  %vm3235_vm12 = vcmp.lt.s32.totalorder %v13011_v22, 4  ;;  %6775 = vmatmul.f32.vlgmr.msra.gmra.mxu0 %v13030_v3  ;;  %7006 = vmatpush.msrb.mxu1 %v12812_v41 }
 0x45b   : > { %v3538_v58 = vor.u32 %v3537_v5, %v3536_v51  ;;  %vm15593_vm9 = vcmp.lt.s32.totalorder %v12971_v6, 1  ;;  %vm15591_vm14 = vcmp.lt.s32.totalorder %v12971_v6, 3  ;;  %v3555_v46 = vsel %vm3545_vm10, %v3541_v21, 1326507024  ;;  %16113 = vst [vmem:[#allocation19_spill] sm:$0xff] %v13111_v43 }
 0x45c   : > { %v13049_v11 = vor.u32 %v3528_v34, %v3527_v45  ;;  %vm15588_vm7 = vcmp.lt.s32.totalorder %v12971_v6, 2  ;;  %v13052_v25 = vor.u32 %v3221_v61, %v3220_v0  ;;  %v13054_v52 = vor.u32 %v3224_v4, %v3223_v40  ;;  %7008 = vmatpush.msrb.mxu1 %v12860_v53 }
 0x45d   : > { %v13057_v24 = vor.u32 %v3218_v10, %v3217_v38  ;;  %vm15590_vm11 = vcmp.lt.s32.totalorder %v13011_v22, 1  ;;  %vm15589_vm15 = vcmp.lt.s32.totalorder %v13011_v22, 3  ;;  %v3245_v41 = vsel %vm3235_vm12, %v3231_v17, 1326507024 }
 0x45e   : > { %v3554_v21 = vsel %vm15593_vm9, %v13033_v1, %v13038_v8  ;;  %v3556_v40 = vsel %vm15591_vm14, %v3538_v58, %v3555_v46  ;;  %v3208_v5 = vor.u32 8388608, %v3207_v42  ;;  %v3241_v10 = vsel %vm3235_vm12, %v3228_v26, 920167782  ;;  %7010 = vmatpush.msrb.mxu1 %v12871_v49 }
 0x45f   : > { %v4171_v53 = vsel %vm15585_vm0, %v12930_v47, 920167782  ;;  %v13079_v51 = vsel %vm3853_vm8, %v12959_v28, %v12964_v50  ;;  %v15566_v45 = vand.u32 65535, %v12942_v57  ;;  %v3551_v42 = vsel %vm3545_vm10, %v3538_v58, 920167782 }
 0x460   : > { %v16110_v34 = vor.u32 8388608, %v12927_v37  ;;  %vm15586_vm4 = vcmp.lt.s32.totalorder %v13011_v22, 2  ;;  %v3244_v49 = vsel %vm15590_vm11, %v13052_v25, %v13054_v52  ;;  %v3246_v28 = vsel %vm15589_vm15, %v3228_v26, %v3245_v41 }
 0x461   : > { %v16112_v50 = vshrl.u32 %v12942_v57, 16  ;;  %v13102_v37 = vsel %vm15588_vm7, %v3554_v21, %v3556_v40  ;;  %v3240_v17 = vsel %vm15590_vm11, %v13057_v24, %v13052_v25  ;;  %v3242_v44 = vsel %vm15589_vm15, %v13054_v52, %v3241_v10 }
 0x462   : > { %v13086_v7 = vshll.u32 %v16110_v34, 8  ;;  %v4161_v26 = vor.u32 %v12938_v36, %v12934_v18  ;;  %v3550_v54 = vsel %vm15593_vm9, %v13049_v11, %v13033_v1  ;;  %v3552_v19 = vsel %vm15591_vm14, %v13038_v8, %v3551_v42 }
 0x463   : > { %v13098_v33 = vmul.u32 %v16112_v50, %v12951_v20  ;;  %v13122_v0 = vshll.u32 %v3208_v5, 8  ;;  %v13127_v61 = vsel %vm4164_vm2, %v12921_v2, %v4171_v53  ;;  %v13133_v18 = vsel %vm15569_vm13, %v12898_v27, %v12921_v2 }
 0x464   : > { %16111 = vst [vmem:[#allocation46_spill] sm:$0xff] %v13086_v7  ;;  %v3894_v36 = vshrl.u32 %v13079_v51, 16  ;;  %v13138_v4 = vsel %vm15586_vm4, %v3244_v49, %v3246_v28  ;;  %v3559_v38 = vand.u32 65535, %v13086_v7  ;;  %v3562_v58 = vshrl.u32 %v13102_v37, 16 }
 0x465   : > { %16114 = vst [vmem:[#allocation18_spill] sm:$0xff] %v13122_v0  ;;  %v13144_v46 = vsel %vm15586_vm4, %v3240_v17, %v3242_v44  ;;  %v6744_v41 = vsel %vm15592_vm6, %v13111_v43, 0  ;;  %v3873_v21 = vmul.u32 %v15566_v45, %v12951_v20  ;;  %v3877_v40 = vshll.u32 %v13098_v33, 16 }
 0x466   : > { %16115 = vst [vmem:[#allocation33_spill] sm:$0xff] %v13133_v18  ;;  %v3553_v5 = vsel %vm15588_vm7, %v3550_v54, %v3552_v19  ;;  %v13154_v10 = vand.u32 4294901760, %v6744_v41  ;;  %v13158_v53 = vsel %vm15585_vm0, %v4161_v26, 1326507024  ;;  %v3870_v42 = vshrl.u32 %v12903_v31, 16 }
 0x467   : > { %v3249_v34 = vand.u32 65535, %v13122_v0  ;;  %v3252_v49 = vshrl.u32 %v13138_v4, 16  ;;  %v13165_v28 = vshrl.u32 %v16014_v14, %v12816_v62  ;;  %v3893_v50 = vand.u32 65535, %v13079_v51 }
 0x468   : > { %16116 = vst [vmem:[#allocation44_spill] sm:$0xff] %v13154_v10  ;;  %v13170_v44 = vsub.f32 %v6744_v41, %v13154_v10  ;;  %6844 = vmatmul.f32.gmra.mxu1 %v13154_v10  ;;  %v13174_v26 = vmul.u32 %v3894_v36, %v12951_v20  ;;  %v3561_v54 = vand.u32 65535, %v13102_v37  ;;  %v13177_v19 = vmul.u32 %v3562_v58, %v3559_v38 }
 0x469   : > { %v3584_v45 = vshrl.u32 %v3553_v5, 16  ;;  %v16118_v62 = vshrl.u32 %v12942_v57, 16  ;;  %v3883_v51 = vadd.s32 %v3877_v40, %v3873_v21  ;;  %v3898_v55 = vmul.u32 %v3894_v36, %v3870_v42 }
 0x46a   : > { %16117 = vst [vmem:[#allocation43_spill] sm:$0xff] %v13170_v44  ;;  %v13184_v17 = vand.u32 4294901760, %v13170_v44  ;;  %6887 = vmatmul.f32.gmra.mxu2 %v13170_v44  ;;  %vm13187_vm13 = vc.u32 %v3873_v21, %v3877_v40  ;;  %v3560_v37 = vshrl.u32 %v13086_v7, 16  ;;  %v3250_v3 = vshrl.u32 %v13122_v0, 16 }
 0x46b   : > { %v13181_v23 = vmul.u32 %v16118_v62, %v3870_v42  ;;  %v3251_v10 = vand.u32 65535, %v13138_v4  ;;  %v13194_v43 = vmul.u32 %v3252_v49, %v3249_v34  ;;  %v3583_v62 = vand.u32 65535, %v3553_v5 }
 0x46c   : > { %16119 = vst [vmem:[#allocation45_spill] sm:$0xff] %v13184_v17  ;;  %v3273_v36 = vand.u32 65535, %v13144_v46  ;;  %v16122_v60 = vshrl.u32 %v13144_v46, 16  ;;  %v6781_v21 = vsub.f32 %v13170_v44, %v13184_v17  ;;  %6930 = vmatmul.f32.gmra.mxu3 %v13184_v17  ;;  %v3563_v40 = vmul.u32 %v3561_v54, %v3559_v38 }
 0x46d   : > { %v3567_v27 = vshll.u32 %v13177_v19, 16  ;;  %v13205_v9 = vmul.u32 %v3584_v45, %v3559_v38  ;;  %v3588_v4 = vmul.u32 %v3584_v45, %v3560_v37  ;;  %v3895_v5 = vmul.u32 %v3893_v50, %v12951_v20 }
 0x46e   : > { %v13199_v30 = vmul.u32 %v16122_v60, %v3249_v34  ;;  %v13207_v2 = vand.u32 4294901760, %v6781_v21  ;;  %v13210_v16 = vmul.u32 %v3893_v50, %v3870_v42  ;;  %v3899_v60 = vshll.u32 %v13174_v26, 16 }
 0x46f   : > { %v3253_v39 = vmul.u32 %v3251_v10, %v3249_v34  ;;  %v3257_v13 = vshll.u32 %v13194_v43, 16  ;;  %v13214_v44 = vmul.u32 %v3251_v10, %v3250_v3  ;;  %v16124_v17 = vand.u32 65535, %v12942_v57 }
 0x470   : > { %16123 = vst [vmem:[#allocation41_spill] sm:$0xff] %v13207_v2  ;;  %v3566_v7 = vmul.u32 %v3562_v58, %v3560_v37  ;;  %v3275_v31 = vmul.u32 %v3273_v36, %v3249_v34  ;;  %v13220_v45 = vmul.u32 %v3273_v36, %v3250_v3  ;;  %v3279_v21 = vshll.u32 %v13199_v30, 16  ;;  %6783 = vmatmul.f32.gmra.mxu0 %v13207_v2 }
 0x471   : > { %v13218_v0 = vmul.u32 %v16124_v17, %v3870_v42  ;;  %vm13224_vm0 = vc.u32 %v3563_v40, %v3567_v27  ;;  %v3585_v50 = vmul.u32 %v3583_v62, %v3559_v38  ;;  %v13228_v18 = vmul.u32 %v3583_v62, %v3560_v37 }
 0x472   : > { %v3589_v10 = vshll.u32 %v13205_v9, 16  ;;  %v13231_v57 = vmul.u32 %v3561_v54, %v3560_v37  ;;  %vm3903_vm4 = vc.u32 %v3895_v5, %v3899_v60  ;;  %v13234_v42 = vadd.s32 %v3899_v60, %v3895_v5 }
 0x473   : > { %v3573_v34 = vadd.s32 %v3567_v27, %v3563_v40  ;;  %v3263_v17 = vadd.s32 %v3257_v13, %v3253_v39  ;;  %v3259_v36 = vshll.u32 %v13214_v44, 16  ;;  %v3879_v2 = vshll.u32 %v13218_v0, 16 }
 0x474   : > { %vm3261_vm7 = vc.u32 %v3253_v39, %v3257_v13  ;;  %v3281_v38 = vshll.u32 %v13220_v45, 16  ;;  %vm3283_vm15 = vc.u32 %v3275_v31, %v3279_v21  ;;  %v13239_v62 = vadd.s32 %v3279_v21, %v3275_v31 }
 0x475   : > { %v3591_v54 = vshll.u32 %v13228_v18, 16  ;;  %vm3593_vm11 = vc.u32 %v3585_v50, %v3589_v10  ;;  %v13242_v37 = vadd.s32 %v3589_v10, %v3585_v50  ;;  %v16127_v58 = vmov 0  }
 0x476   : > { %v3904_v5 = vsel %vm3903_vm4, 1, %v16127_v58  ;;  %v3256_v60 = vmul.u32 %v3252_v49, %v3250_v3  ;;  %v3569_v27 = vshll.u32 %v13231_v57, 16  ;;  %v3882_v40 = vsel %vm13187_vm13, 1, %v16127_v58 }
 0x477   : > { %v16128_v39 = vshll.u32 %v13210_v16, 16  ;;  %v16129_v31 = vshrl.u32 %v13144_v46, 16  ;;  %v3262_v21 = vsel %vm3261_vm7, 1, %v16127_v58  ;;  %vm3265_vm6 = vc.u32 %v3263_v17, %v3259_v36 }
 0x478   : > { %vm3885_vm9 = vc.u32 %v3883_v51, %v3879_v2  ;;  %v3284_v50 = vsel %vm3283_vm15, 1, %v16127_v58  ;;  %vm3287_vm4 = vc.u32 %v13239_v62, %v3281_v38  ;;  %v3594_v49 = vsel %vm3593_vm11, 1, %v16127_v58 }
 0x479   : > { %vm3907_vm14 = vc.u32 %v13234_v42, %v16128_v39  ;;  %v3278_v13 = vmul.u32 %v16129_v31, %v3250_v3  ;;  %v3906_v41 = vadd.s32 %v3904_v5, %v3898_v55  ;;  %v3572_v10 = vsel %vm13224_vm0, 1, %v16127_v58 }
 0x47a   : > { %vm3597_vm13 = vc.u32 %v13242_v37, %v3591_v54  ;;  %v3884_v3 = vadd.s32 %v3882_v40, %v13181_v23  ;;  %v3908_v2 = vsel %vm3907_vm14, 1, %v16127_v58  ;;  %v3857_v46 = vsel %vm3855_vm1, %v12880_v15, 2102212464 }
 0x47b   : > { %v3264_v51 = vadd.s32 %v3262_v21, %v3256_v60  ;;  %vm3575_vm7 = vc.u32 %v3573_v34, %v3569_v27  ;;  %v3886_v55 = vsel %vm3885_vm9, 1, %v16127_v58  ;;  %v3266_v17 = vsel %vm3265_vm6, 1, %v16127_v58 }
 0x47c   : > { %v3286_v20 = vadd.s32 %v3284_v50, %v3278_v13  ;;  %v3288_v36 = vsel %vm3287_vm4, 1, %v16127_v58  ;;  %v3596_v5 = vadd.s32 %v3594_v49, %v3588_v4  ;;  %v3574_v39 = vadd.s32 %v3572_v10, %v3566_v7 }
 0x47d   : > { %v3598_v31 = vsel %vm3597_vm13, 1, %v16127_v58  ;;  %v3900_v23 = vshrl.u32 %v13174_v26, 16  ;;  %v3910_v40 = vadd.s32 %v3908_v2, %v3906_v41  ;;  %v4176_v15 = vsel %vm4164_vm2, %v12930_v47, %v13158_v53 }
 0x47e   : > { %v3576_v34 = vsel %vm3575_vm7, 1, %v16127_v58  ;;  %v3878_v60 = vshrl.u32 %v13098_v33, 16  ;;  %v3888_v27 = vadd.s32 %v3886_v55, %v3884_v3  ;;  %v3856_v7 = vsel %vm3852_vm3, %v13165_v28, %v12913_v32 }
 0x47f   : > { %v3858_v26 = vsel %vm3854_vm5, %v12878_v56, %v3857_v46  ;;  %v3258_v4 = vshrl.u32 %v13194_v43, 16  ;;  %v3268_v13 = vadd.s32 %v3266_v17, %v3264_v51  ;;  %vm4163_vm6 = vcmp.lt.s32.totalorder %v16094_v48, 2  ;;  %v6720_v17 = vld [vmem:[#allocation5 + $0xd0] sm:$0xff] }
 0x480   : > { %v3280_v47 = vshrl.u32 %v13199_v30, 16  ;;  %v3290_v53 = vadd.s32 %v3288_v36, %v3286_v20  ;;  %v3590_v33 = vshrl.u32 %v13205_v9, 16  ;;  %v3600_v21 = vadd.s32 %v3598_v31, %v3596_v5  ;;  %6734 = vperm.xlu1 %8056, %v6720_v17  }
 0x481   : > { %v3568_v50 = vshrl.u32 %v13177_v19, 16  ;;  %v3578_v49 = vadd.s32 %v3576_v34, %v3574_v39  ;;  %v3902_v32 = vshrl.u32 %v13210_v16, 16  ;;  %v3911_v28 = vadd.s32 %v3910_v40, %v3900_v23 }
 0x482   : > { %v3526_v56 = vshrl.u32 %v16014_v14, %v12953_v29  ;;  %v3547_v43 = vsel %vm3545_vm10, %v13038_v8, 2102212464  ;;  %v3880_v41 = vshrl.u32 %v13218_v0, 16  ;;  %v3889_v30 = vadd.s32 %v3888_v27, %v3878_v60 }
 0x483   : > { %v3216_v9 = vshrl.u32 %v16014_v14, %v12980_v59  ;;  %v3237_v19 = vsel %vm3235_vm12, %v13054_v52, 2102212464  ;;  %v3260_v10 = vshrl.u32 %v13214_v44, 16  ;;  %v3269_v3 = vadd.s32 %v3268_v13, %v3258_v4 }
 0x484   : > { %v3282_v2 = vshrl.u32 %v13220_v45, 16  ;;  %v3291_v29 = vadd.s32 %v3290_v53, %v3280_v47  ;;  %v3592_v46 = vshrl.u32 %v13228_v18, 16  ;;  %v3601_v51 = vadd.s32 %v3600_v21, %v3590_v33  ;;  %v16142_v47 = vld [vmem:[#allocation18_spill] sm:$0xff] }
 0x485   : > { %v3859_v8 = vsel %vm3853_vm8, %v3856_v7, %v3858_v26  ;;  %v3570_v0 = vshrl.u32 %v13231_v57, 16  ;;  %v3579_v55 = vadd.s32 %v3578_v49, %v3568_v50  ;;  %v3912_v59 = vadd.s32 %v3911_v28, %v3902_v32 }
 0x486   : > { %vm16130_vm1 = vcmp.lt.s32.totalorder %v12971_v6, 1  ;;  %v13315_v44 = vadd.s32 %v3889_v30, %v3880_v41  ;;  %v16131_v20 = vshll.u32 %v13210_v16, 16  ;;  %vm16132_vm3 = vcmask 261120  }
 0x487   : > { %v3546_v52 = vsel %vm16130_vm1, %v3526_v56, %v13049_v11  ;;  %v6746_v5 = vsel %vm16132_vm3, %v6720_v17, 0  ;;  %vm16133_vm5 = vcmp.lt.s32.totalorder %v12971_v6, 3  ;;  %vm16134_vm8 = vcmp.lt.s32.totalorder %v13011_v22, 1 }
 0x488   : > { %v13320_v36 = vadd.s32 %v13234_v42, %v16131_v20  ;;  %v3548_v35 = vsel %vm16133_vm5, %v13033_v1, %v3547_v43  ;;  %v3236_v57 = vsel %vm16134_vm8, %v3216_v9, %v13057_v24  ;;  %vm16135_vm0 = vcmp.lt.s32.totalorder %v13011_v22, 3 }
 0x489   : > { %v3238_v11 = vsel %vm16135_vm0, %v13052_v25, %v3237_v19  ;;  %v13332_v39 = vand.u32 4294901760, %v6746_v5  ;;  %v13334_v16 = vadd.s32 %v3269_v3, %v3260_v10  ;;  %v13339_v42 = vadd.s32 %v13239_v62, %v3281_v38  ;;  %v16137_v38 = vld [vmem:[#allocation33_spill] sm:$0xff] }
 0x48a   : > { %v3292_v31 = vadd.s32 %v3291_v29, %v3282_v2  ;;  %v3602_v23 = vadd.s32 %v3601_v51, %v3592_v46  ;;  %v13341_v1 = vadd.s32 %v3579_v55, %v3570_v0  ;;  %v13346_v24 = vadd.s32 %v13242_v37, %v3591_v54  ;;  %v16138_v54 = vld [vmem:[#allocation32_spill] sm:$0xff] }
 0x48b   : > { %v3916_v40 = vadd.s32 1, %v3912_v59  ;;  %v13349_v25 = vsub.f32 %v6746_v5, %v13332_v39  ;;  %6848 = vmatmul.f32.gmra.mxu1 %v13332_v39  ;;  %v16136_v45 = vor.u32 8388608, %v16096_v63  ;;  %vm3915_vm10 = vc.u32 %v13315_v44, %v13320_v36 }
 0x48c   : > { %v4173_v18 = vsel %vm4163_vm6, %v12948_v12, %v13127_v61  ;;  %v4177_v62 = vsel %vm4163_vm6, %v16137_v38, %v4176_v15  ;;  %v3913_v37 = vmul.u32 %v16138_v54, %v3859_v8  ;;  %vm16139_vm12 = vcmp.lt.s32.totalorder %v12971_v6, 2 }
 0x48d   : > { %v13354_v34 = vshll.u32 %v16136_v45, 8  ;;  %v13367_v60 = vand.u32 4294901760, %v13349_v25  ;;  %6892 = vmatmul.f32.gmra.mxu2 %v13349_v25  ;;  %v3549_v63 = vsel %vm16139_vm12, %v3546_v52, %v3548_v35  ;;  %vm16140_vm9 = vcmp.lt.s32.totalorder %v13011_v22, 2  ;;  %v16141_v22 = vld [vmem:[#allocation46_spill] sm:$0xff] }
 0x48e   : > { %v3239_v27 = vsel %vm16140_vm9, %v3236_v57, %v3238_v11  ;;  %v3296_v7 = vadd.s32 1, %v3292_v31  ;;  %v3606_v26 = vadd.s32 1, %v3602_v23  ;;  %vm3295_vm14 = vc.u32 %v13334_v16, %v13339_v42  ;;  %v13394_v11 = vpop.permute.xlu2 %288 }
 0x48f   : > { %vm3605_vm11 = vc.u32 %v13341_v1, %v13346_v24  ;;  %v3917_v12 = vsel %vm3915_vm10, %v3916_v40, %v3912_v59  ;;  %v6789_v61 = vsub.f32 %v13349_v25, %v13367_v60  ;;  %6936 = vmatmul.f32.gmra.mxu3 %v13367_v60  ;;  %v4179_v6 = vand.u32 65535, %v13354_v34  ;;  %16143 = vst [vmem:[#allocation23_spill] sm:$0xff] %v13394_v11 }
 0x490   : > { %v4182_v15 = vshrl.u32 %v4177_v62, 16  ;;  %v4204_v4 = vshrl.u32 %v4173_v18, 16  ;;  %v3603_v13 = vmul.u32 %v16141_v22, %v3549_v63  ;;  %v3293_v53 = vmul.u32 %v16142_v47, %v3239_v27  ;;  %v16144_v47 = vld [vmem:[#allocation11_spill] sm:$0xff] }
 0x491   : > { %v13384_v33 = vand.u32 4294901760, %v6789_v61  ;;  %v3297_v21 = vsel %vm3295_vm14, %v3296_v7, %v3292_v31  ;;  %v3607_v50 = vsel %vm3605_vm11, %v3606_v26, %v3602_v23  ;;  %v3918_v49 = vadd.s32 %v3917_v12, %v3913_v37 }
 0x492   : > { %v4181_v32 = vand.u32 65535, %v4177_v62  ;;  %v4180_v28 = vshrl.u32 %v13354_v34, 16  ;;  %v4184_v56 = vmul.u32 %v4182_v15, %v4179_v6  ;;  %v4203_v43 = vand.u32 65535, %v4173_v18 }
 0x493   : > { %6791 = vmatmul.f32.gmra.mxu0 %v13384_v33  ;;  %v4206_v41 = vmul.u32 %v4204_v4, %v4179_v6  ;;  %v3298_v30 = vadd.s32 %v3297_v21, %v3293_v53  ;;  %v3608_v9 = vadd.s32 %v3607_v50, %v3603_v13  ;;  %v3919_v19 = vadd.s32 536870912, %v3918_v49  ;;  %v13418_v50 = vpop.permute.xlu0 %388 }
 0x494   : > { %v4183_v10 = vmul.u32 %v4181_v32, %v4179_v6  ;;  %v4187_v3 = vshll.u32 %v4184_v56, 16  ;;  %v4205_v2 = vmul.u32 %v4203_v43, %v4179_v6  ;;  %v4207_v29 = vmul.u32 %v4203_v43, %v4180_v28 }
 0x495   : > { %v4209_v46 = vshll.u32 %v4206_v41, 16  ;;  %v3299_v51 = vadd.s32 536870912, %v3298_v30  ;;  %v3609_v8 = vadd.s32 536870912, %v3608_v9  ;;  %v4185_v0 = vmul.u32 %v4181_v32, %v4180_v28 }
 0x496   : > { %v13388_v55 = vshrl.u32 %v3919_v19, 30  ;;  %vm4191_vm15 = vc.u32 %v4183_v10, %v4187_v3  ;;  %v4211_v59 = vshll.u32 %v4207_v29, 16  ;;  %v4193_v52 = vadd.s32 %v4187_v3, %v4183_v10  ;;  %v13411_v22 = vpop.permute.xlu2 %283  ;;  %v16147_v10 = vld [vmem:[#allocation35_spill] sm:$0xff] }
 0x497   : > { %vm4213_vm4 = vc.u32 %v4205_v2, %v4209_v46  ;;  %v4215_v17 = vadd.s32 %v4209_v46, %v4205_v2  ;;  %v13390_v20 = vshrl.u32 %v3299_v51, 30  ;;  %v13392_v5 = vshrl.u32 %v3609_v8, 30 }
 0x498   : > { %v4189_v35 = vshll.u32 %v4185_v0, 16  ;;  %v4208_v57 = vmul.u32 %v4204_v4, %v4180_v28  ;;  %v3921_v31 = vshll.u32 %v13388_v55, 30  ;;  %v4186_v23 = vmul.u32 %v4182_v15, %v4180_v28 }
 0x499   : > { %v4214_v40 = vsel %vm4213_vm4, 1, %v16127_v58  ;;  %v4192_v45 = vsel %vm4191_vm15, 1, %v16127_v58  ;;  %vm4217_vm13 = vc.u32 %v4215_v17, %v4211_v59  ;;  %v3301_v18 = vshll.u32 %v13390_v20, 30 }
 0x49a   : > { %v3611_v38 = vshll.u32 %v13392_v5, 30  ;;  %vm4195_vm7 = vc.u32 %v4193_v52, %v4189_v35  ;;  %v13401_v62 = vsub.s32 %v3918_v49, %v3921_v31  ;;  %v4216_v54 = vadd.s32 %v4214_v40, %v4208_v57  ;;  %v16145_v49 = vld [vmem:[#allocation12_spill] sm:$0xff]  ;;  %v16150_v52 = vld [vmem:[#allocation25_spill] sm:$0xff]  ;;  %v16152_v57 = vld [vmem:[#allocation15_spill] sm:$0xff] }
 0x49b   : > { %v4194_v37 = vadd.s32 %v4192_v45, %v4186_v23  ;;  %v4218_v63 = vsel %vm4217_vm13, 1, %v16127_v58  ;;  %v4196_v27 = vsel %vm4195_vm7, 1, %v16127_v58  ;;  %v13405_v7 = vsub.s32 %v3298_v30, %v3301_v18 }
 0x49c   : > { %v13407_v26 = vsub.s32 %v3608_v9, %v3611_v38  ;;  %v3924_v12 = vsub.s32 0, %v13401_v62  ;;  %v4210_v61 = vshrl.u32 %v4206_v41, 16  ;;  %v4220_v6 = vadd.s32 %v4218_v63, %v4216_v54  ;;  %v16146_v41 = vld [vmem:[#allocation22_spill] sm:$0xff] }
 0x49d   : > { %vm3923_vm1 = vcmp.lt.s32.totalorder %v13401_v62, 0  ;;  %v4188_v15 = vshrl.u32 %v4184_v56, 16  ;;  %v4198_v4 = vadd.s32 %v4196_v27, %v4194_v37  ;;  %v3304_v13 = vsub.s32 0, %v13405_v7 }
 0x49e   : > { %v330_v53 = vmul.f32 %v16144_v47, %v13411_v22  ;;  %vm3613_vm3 = vcmp.lt.s32.totalorder %v13407_v26, 0  ;;  %v3614_v21 = vsub.s32 0, %v13407_v26  ;;  %v432_v32 = vmul.f32 %v16145_v49, %v13418_v50 }
 0x49f   : > { %v3925_v28 = vsel %vm3923_vm1, %v3924_v12, %v13401_v62  ;;  %v4212_v56 = vshrl.u32 %v4207_v29, 16  ;;  %v4221_v43 = vadd.s32 %v4220_v6, %v4210_v61  ;;  %v4146_v30 = vshrl.u32 %v16014_v14, %v16146_v41  ;;  %v16153_v61 = vld [vmem:[#allocation39_spill] sm:$0xff]  ;;  %v16171_v14 = vld [vmem:[#allocation38_spill] sm:$0xff] }
 0x4a0   : > { %vm3303_vm5 = vcmp.lt.s32.totalorder %v13405_v7, 0  ;;  %v4190_v9 = vshrl.u32 %v4185_v0, 16  ;;  %v4199_v19 = vadd.s32 %v4198_v4, %v4188_v15  ;;  %vm16148_vm8 = vcmp.lt.s32.totalorder %v16094_v48, 4 }
 0x4a1   : > { %v4167_v3 = vsel %vm16148_vm8, %v16147_v10, 2102212464  ;;  %v3615_v2 = vsel %vm3613_vm3, %v3614_v21, %v13407_v26  ;;  %v3926_v46 = vclz %v3925_v28  ;;  %v3305_v51 = vsel %vm3303_vm5, %v3304_v13, %v13405_v7 }
 0x4a2   : > { %v13431_v8 = vadd.f32 %v432_v32, %v330_v53  ;;  %v4222_v29 = vadd.s32 %v4221_v43, %v4212_v56  ;;  %vm16151_vm0 = vcmp.lt.s32.totalorder %v16094_v48, 1  ;;  %v4168_v0 = vsel %vm4164_vm2, %v16152_v57, %v4167_v3 }
 0x4a3   : > { %v4166_v35 = vsel %vm16151_vm0, %v4146_v30, %v16150_v52  ;;  %v13439_v31 = vadd.s32 %v4199_v19, %v4190_v9  ;;  %v13441_v23 = vadd.s32 %v4215_v17, %v4211_v59  ;;  %v3616_v40 = vclz %v3615_v2  ;;  %v13460_v9 = vpop.f32.mrf.mxu2 }
 0x4a4   : > { %16149 = vst [vmem:[#allocation37_spill] sm:$0xff] %v13431_v8  ;;  %v3306_v45 = vclz %v3305_v51  ;;  %v7888_v18 = vadd.s32 4294967294, %v3926_v46  ;;  %v4169_v38 = vsel %vm4163_vm6, %v4166_v35, %v4168_v0  ;;  %v4226_v54 = vadd.s32 1, %v4222_v29  ;;  %v16170_v8 = vld [vmem:[#allocation26_spill] sm:$0xff] }
 0x4a5   : > { %vm4225_vm10 = vc.u32 %v13439_v31, %v13441_v23  ;;  %v7882_v37 = vadd.s32 4294967294, %v3616_v40  ;;  %v4223_v63 = vmul.u32 %v13354_v34, %v4169_v38  ;;  %v434_v59 = vmul.f32 %v16145_v49, %v16153_v61 }
 0x4a6   : > { %v7876_v27 = vadd.s32 4294967294, %v3306_v45  ;;  %vm7889_vm12 = vcmp.lt.s32.totalorder %v7888_v18, 0  ;;  %v4227_v12 = vsel %vm4225_vm10, %v4226_v54, %v4222_v29  ;;  %v332_v17 = vmul.f32 %v16144_v47, %v13394_v11 }
 0x4a7   : > { %vm7883_vm2 = vcmp.lt.s32.totalorder %v7882_v37, 0  ;;  %v3929_v6 = vsel %vm7889_vm12, 0, %v7888_v18  ;;  %v4228_v48 = vadd.s32 %v4227_v12, %v4223_v63  ;;  %v3914_v28 = vadd.s32 %v13320_v36, %v13315_v44  ;;  %v13465_v36 = vpop.f32.mrf.mxu3 }
 0x4a8   : > { %vm7877_vm9 = vcmp.lt.s32.totalorder %v7876_v27, 0  ;;  %v3619_v15 = vsel %vm7883_vm2, 0, %v7882_v37  ;;  %v3934_v4 = vsub.s32 4294967266, %v3929_v6  ;;  %v13452_v13 = vadd.f32 %v434_v59, %v332_v17 }
 0x4a9   : > { %v3309_v53 = vsel %vm7877_vm9, 0, %v7876_v27  ;;  %v4229_v21 = vadd.s32 536870912, %v4228_v48  ;;  %v3624_v34 = vsub.s32 4294967266, %v3619_v15  ;;  %v3930_v56 = vsub.s32 32, %v3929_v6 }
 0x4aa   : > { %16154 = vst [vmem:[#allocation33_spill] sm:$0xff] %v13452_v13  ;;  %v3314_v32 = vsub.s32 4294967266, %v3309_v53  ;;  %v3935_v43 = vadd.s32 127, %v3934_v4  ;;  %v3294_v41 = vadd.s32 %v13339_v42, %v13334_v16  ;;  %v3310_v19 = vsub.s32 32, %v3309_v53 }
 0x4ab   : > { %v13458_v30 = vshrl.u32 %v4229_v21, 30  ;;  %v3604_v10 = vadd.s32 %v13346_v24, %v13341_v1  ;;  %v3620_v3 = vsub.s32 32, %v3619_v15  ;;  %v3625_v2 = vadd.s32 127, %v3624_v34  ;;  %v6466_v27 = vpop.f32.mrf.mxu2  ;;  %v16155_v34 = vld [vmem:[#allocation27_spill] sm:$0xff] }
 0x4ac   : > { %v3315_v46 = vadd.s32 127, %v3314_v32  ;;  %v3931_v51 = vshll.u32 %v13401_v62, %v3929_v6  ;;  %v3932_v29 = vshrl.u32 %v3914_v28, %v3930_v56  ;;  %v3936_v44 = vshll.u32 %v3935_v43, 23  ;;  %v16156_v43 = vld [vmem:[#allocation17_spill] sm:$0xff] }
 0x4ad   : > { %v4231_v52 = vshll.u32 %v13458_v30, 30  ;;  %v3311_v16 = vshll.u32 %v13405_v7, %v3309_v53  ;;  %v3621_v42 = vshll.u32 %v13407_v26, %v3619_v15  ;;  %v3622_v35 = vshrl.u32 %v3604_v10, %v3620_v3 }
 0x4ae   : > { %v3626_v57 = vshll.u32 %v3625_v2, 23  ;;  %v3312_v0 = vshrl.u32 %v3294_v41, %v3310_v19  ;;  %v3316_v40 = vshll.u32 %v3315_v46, 23  ;;  %v3933_v1 = vor.u32 %v3932_v29, %v3931_v51  ;;  %v16160_v2 = vld [vmem:[#allocation20_spill] sm:$0xff] }
 0x4af   : > { %v3937_v24 = vor.u32 4788187, %v3936_v44  ;;  %v13470_v45 = vsub.s32 %v4228_v48, %v4231_v52  ;;  %v3623_v18 = vor.u32 %v3622_v35, %v3621_v42  ;;  %v13473_v7 = vpop.f32.mrf.mxu3  ;;  %vm3822_vm14 = vcmp.lt.s32.totalorder %v16155_v34, 0 }
 0x4b0   : > { %v3627_v62 = vor.u32 4788187, %v3626_v57  ;;  %v3313_v38 = vor.u32 %v3312_v0, %v3311_v16  ;;  %v3317_v54 = vor.u32 4788187, %v3316_v40  ;;  %v3940_v63 = vcvt.s32.f32 %v3933_v1 }
 0x4b1   : > { %v3938_v37 = vand.u32 2147483647, %v3937_v24  ;;  %v4234_v12 = vsub.s32 0, %v13470_v45  ;;  %v3630_v59 = vcvt.s32.f32 %v3623_v18  ;;  %vm4233_vm6 = vcmp.lt.s32.totalorder %v13470_v45, 0  ;;  %v6565_v24 = vpop.f32.mrf.mxu0 }
 0x4b2   : > { %v3628_v26 = vand.u32 2147483647, %v3627_v62  ;;  %v3318_v17 = vand.u32 2147483647, %v3317_v54  ;;  %v3320_v6 = vcvt.s32.f32 %v3313_v38  ;;  %vm3512_vm11 = vcmp.lt.s32.totalorder %v16156_v43, 0 }
 0x4b3   : > { %v3941_v15 = vmul.f32 %v3940_v63, %v3938_v37  ;;  %v4235_v48 = vsel %vm4233_vm6, %v4234_v12, %v13470_v45  ;;  %v6474_v28 = vpop.f32.mrf.mxu2  ;;  %v16157_v19 = vand.u32 2147483647, %v16155_v34  ;;  %vm3202_vm4 = vcmp.lt.s32.totalorder %v16160_v2, 0 }
 0x4b4   : > { %v3631_v4 = vmul.f32 %v3630_v59, %v3628_v26  ;;  %v3321_v53 = vmul.f32 %v3320_v6, %v3318_v17  ;;  %v4236_v32 = vclz %v4235_v48  ;;  %v16161_v29 = vand.u32 2147483647, %v16156_v43  ;;  %v6607_v26 = vpop.f32.mrf.mxu1  ;;  %v16167_v48 = vld [vmem:[#allocation28_spill] sm:$0xff] }
 0x4b5   : > { %v3942_v21 = vxor.u32 2147483648, %v3941_v15  ;;  %vm13481_vm15 = vcmp.le.f32.partialorder %v16157_v19, 0.7853982  ;;  %v16164_v42 = vand.u32 2147483647, %v16160_v2  ;;  %v4224_v19 = vadd.s32 %v13441_v23, %v13439_v31 }
 0x4b6   : > { %v3632_v56 = vxor.u32 2147483648, %v3631_v4  ;;  %v3322_v41 = vxor.u32 2147483648, %v3321_v53  ;;  %v7894_v51 = vadd.s32 4294967294, %v4236_v32  ;;  %vm13492_vm13 = vcmp.le.f32.partialorder %v16161_v29, 0.7853982 }
 0x4b7   : > { %v3943_v3 = vsel %vm3822_vm14, %v3942_v21, %v3941_v15  ;;  %v13488_v46 = vpop.f32.mrf.mxu3  ;;  %vm13505_vm7 = vcmp.le.f32.partialorder %v16164_v42, 0.7853982  ;;  %v3324_v21 = vsub.s32 4, %v13390_v20  ;;  %v3944_v31 = vsub.s32 4, %v13388_v55 }
 0x4b8   : > { %v3633_v52 = vsel %vm3512_vm11, %v3632_v56, %v3631_v4  ;;  %v13501_v16 = vsel %vm13481_vm15, %v16155_v34, %v3943_v3  ;;  %v3323_v57 = vsel %vm3202_vm4, %v3322_v41, %v3321_v53  ;;  %vm7895_vm1 = vcmp.lt.s32.totalorder %v7894_v51, 0 }
 0x4b9   : > { %v13514_v0 = vsel %vm13492_vm13, %v16156_v43, %v3633_v52  ;;  %v13518_v40 = vmul.f32 %v13501_v16, %v13501_v16  ;;  %v13523_v1 = vsel %vm13505_vm7, %v16160_v2, %v3323_v57  ;;  %v4239_v18 = vsel %vm7895_vm1, 0, %v7894_v51  ;;  %v6570_v51 = vpop.f32.mrf.mxu0  ;;  %v16168_v57 = vld [vmem:[#allocation31_spill] sm:$0xff] }
 0x4ba   : > { %v13527_v38 = vmul.f32 %v13514_v0, %v13514_v0  ;;  %v13531_v54 = vmul.f32 %v13523_v1, %v13523_v1  ;;  %v4244_v12 = vsub.s32 4294967266, %v4239_v18  ;;  %v6459_v4 = vadd.f32 %v13460_v9, %v16167_v48 }
 0x4bb   : > { %v6482_v62 = vpop.f32.mrf.mxu2  ;;  %v3956_v37 = vmul.f32 -0.00019511016, %v13518_v40  ;;  %v3949_v6 = vmul.f32 -0.001358992, %v13518_v40  ;;  %v4240_v3 = vsub.s32 32, %v4239_v18  ;;  %v3325_v58 = vsel %vm3202_vm4, %v3324_v21, %v13390_v20 }
 0x4bc   : > { %v3646_v59 = vmul.f32 -0.00019511016, %v13527_v38  ;;  %v3336_v17 = vmul.f32 -0.00019511016, %v13531_v54  ;;  %v4245_v53 = vadd.s32 127, %v4244_v12  ;;  %v6524_v9 = vadd.f32 %v13465_v36, %v6459_v4  ;;  %v16169_v36 = vld [vmem:[#allocation40_spill] sm:$0xff] }
 0x4bd   : > { %v3957_v15 = vadd.f32 0.008332121, %v3956_v37  ;;  %v3329_v32 = vmul.f32 -0.001358992, %v13531_v54  ;;  %v3639_v56 = vmul.f32 -0.001358992, %v13527_v38  ;;  %v6467_v37 = vadd.f32 %v6466_v27, %v16168_v57 }
 0x4be   : > { %v3647_v41 = vadd.f32 0.008332121, %v3646_v59  ;;  %v3337_v29 = vadd.f32 0.008332121, %v3336_v17  ;;  %v3950_v52 = vadd.f32 0.041655596, %v3949_v6  ;;  %v4241_v27 = vshll.u32 %v13470_v45, %v4239_v18 }
 0x4bf   : > { %v6535_v63 = vpop.f32.mrf.mxu3  ;;  %v3958_v42 = vmul.f32 %v3957_v15, %v13518_v40  ;;  %v4246_v48 = vshll.u32 %v4245_v53, 23  ;;  %v3330_v59 = vadd.f32 0.041655596, %v3329_v32  ;;  %v3640_v13 = vadd.f32 0.041655596, %v3639_v56  ;;  %v6613_v53 = vpop.f32.mrf.mxu1 }
 0x4c0   : > { %v3634_v17 = vsub.s32 4, %v13392_v5  ;;  %v3648_v6 = vmul.f32 %v3647_v41, %v13527_v38  ;;  %v4242_v15 = vshrl.u32 %v4224_v19, %v4240_v3  ;;  %v6475_v4 = vadd.f32 %v6474_v28, %v16169_v36 }
 0x4c1   : > { %v3338_v57 = vmul.f32 %v3337_v29, %v13531_v54  ;;  %v3951_v20 = vmul.f32 %v3950_v52, %v13518_v40  ;;  %v3959_v21 = vadd.f32 -0.16666654, %v3958_v42  ;;  %v6528_v32 = vadd.f32 %v13473_v7, %v6467_v37 }
 0x4c2   : > { %v6566_v56 = vadd.f32 %v6565_v24, %v6524_v9  ;;  %v6483_v61 = vadd.f32 %v6482_v62, %v16170_v8  ;;  %v4247_v11 = vor.u32 4788187, %v4246_v48  ;;  %vm4132_vm3 = vcmp.lt.s32.totalorder %v16171_v14, 0 }
 0x4c3   : > { %v6658_v12 = vpop.f32.mrf.mxu2  ;;  %v3327_v45 = vsel %vm13505_vm7, 0, %v3325_v58  ;;  %v3331_v18 = vmul.f32 %v3330_v59, %v13531_v54  ;;  %v3641_v28 = vmul.f32 %v3640_v13, %v13527_v38  ;;  %v3945_v41 = vsel %vm3822_vm14, %v3944_v31, %v13388_v55 }
 0x4c4   : > { %v6608_v19 = vadd.f32 %v6607_v26, %v6566_v56  ;;  %v3635_v7 = vsel %vm3512_vm11, %v3634_v17, %v13392_v5  ;;  %v3649_v8 = vadd.f32 -0.16666654, %v3648_v6  ;;  %v4243_v24 = vor.u32 %v4242_v15, %v4241_v27  ;;  %v6575_v26 = vpop.f32.mrf.mxu0 }
 0x4c5   : > { %v6532_v62 = vadd.f32 %v13488_v46, %v6475_v4  ;;  %v3339_v3 = vadd.f32 -0.16666654, %v3338_v57  ;;  %v3952_v35 = vadd.f32 -0.4999988, %v3951_v20  ;;  %v3960_v58 = vmul.f32 %v3959_v21, %v13518_v40 }
 0x4c6   : > { %v6571_v29 = vadd.f32 %v6570_v51, %v6528_v32  ;;  %v3344_v52 = vadd.s32 3, %v3327_v45  ;;  %v3947_v13 = vsel %vm13481_vm15, 0, %v3945_v41  ;;  %v4248_v42 = vand.u32 2147483647, %v4247_v11 }
 0x4c7   : > { %v13551_v23 = vpop.f32.mrf.mxu3  ;;  %v13576_v55 = vadd.f32 %v6535_v63, %v6483_v61  ;;  %v3332_v37 = vadd.f32 -0.4999988, %v3331_v18  ;;  %v3637_v5 = vsel %vm13492_vm13, 0, %v3635_v7  ;;  %v3642_v9 = vadd.f32 -0.4999988, %v3641_v28  ;;  %v6721_v63 = vld [vmem:[#allocation5 + $0xd8] sm:$0xff]  ;;  %v6619_v4 = vpop.f32.mrf.mxu1 }
 0x4c8   : > { %v13580_v48 = vadd.f32 %v6658_v12, %v6608_v19  ;;  %v6614_v46 = vadd.f32 %v6613_v53, %v6571_v29  ;;  %v3650_v31 = vmul.f32 %v3649_v8, %v13527_v38  ;;  %v4250_v51 = vcvt.s32.f32 %v4243_v24  ;;  %6739 = vperm.xlu2 %8055, %v6721_v63  }
 0x4c9   : > { %v3340_v17 = vmul.f32 %v3339_v3, %v13531_v54  ;;  %v3953_v10 = vmul.f32 %v3952_v35, %v13518_v40  ;;  %v3961_v11 = vadd.f32 1.0, %v3960_v58  ;;  %v3964_v61 = vadd.s32 3, %v3947_v13 }
 0x4ca   : > { %v6576_v6 = vadd.f32 %v6575_v26, %v6532_v62  ;;  %v13585_v27 = vand.u32 3, %v3344_v52  ;;  %v3654_v44 = vadd.s32 3, %v3637_v5  ;;  %v4251_v12 = vmul.f32 %v4250_v51, %v4248_v42 }
 0x4cb   : > { %v6662_v59 = vpop.f32.mrf.mxu2  ;;  %v3333_v36 = vmul.f32 %v3332_v37, %v13531_v54  ;;  %v3643_v53 = vmul.f32 %v3642_v9, %v13527_v38  ;;  %v4254_v57 = vsub.s32 4, %v13458_v30  ;;  %vm16172_vm5 = vcmask 261120  }
 0x4cc   : > { %v6748_v40 = vsel %vm16172_vm5, %v6721_v63, 0  ;;  %v3651_v20 = vadd.f32 1.0, %v3650_v31  ;;  %v16173_v21 = vand.u32 2147483647, %v16171_v14  ;;  %v4252_v56 = vxor.u32 2147483648, %v4251_v12 }
 0x4cd   : > { %v13599_v45 = vand.u32 4294901760, %v6748_v40  ;;  %v3341_v18 = vadd.f32 1.0, %v3340_v17  ;;  %v3954_v28 = vadd.f32 1.0, %v3953_v10  ;;  %v3962_v54 = vmul.f32 %v3961_v11, %v13501_v16 }
 0x4ce   : > { %vm13595_vm8 = vcmp.le.f32.partialorder %v16173_v21, 0.7853982  ;;  %v3965_v41 = vand.u32 3, %v3964_v61  ;;  %v13602_v38 = vadd.f32 %v6662_v59, %v6614_v46  ;;  %v6620_v19 = vadd.f32 %v6619_v4, %v6576_v6  ;;  %v16176_v46 = vld [vmem:[#allocation19_spill] sm:$0xff]  ;;  %v6580_v59 = vpop.f32.mrf.mxu0 }
 0x4cf   : > { %v13587_v15 = vpop.f32.mrf.mxu3  ;;  %v4253_v7 = vsel %vm4132_vm3, %v4252_v56, %v4251_v12  ;;  %v13607_v8 = vsub.f32 %v6748_v40, %v13599_v45  ;;  %6852 = vmatmul.f32.gmra.mxu1 %v13599_v45  ;;  %vm3347_vm0 = vcmp.eq.s32.totalorder %v13585_v27, 0  ;;  %v3644_v24 = vadd.f32 1.0, %v3643_v53  ;;  %v16177_v53 = vld [vmem:[#allocation21_spill] sm:$0xff]  ;;  %v6625_v32 = vpop.f32.mrf.mxu1 }
 0x4d0   : > { %v3655_v62 = vand.u32 3, %v3654_v44  ;;  %v4255_v16 = vsel %vm4132_vm3, %v4254_v57, %v13458_v30  ;;  %v13617_v3 = vsel %vm13595_vm8, %v16171_v14, %v4253_v7  ;;  %v3334_v35 = vadd.f32 1.0, %v3333_v36  ;;  %6729 = vperm.xlu2 %8055, %v16176_v46  }
 0x4d1   : > { %v3652_v58 = vmul.f32 %v3651_v20, %v13514_v0  ;;  %v4258_v29 = vmul.f32 %v13617_v3, %v13617_v3  ;;  %v13623_v52 = vand.u32 4294901760, %v13607_v8  ;;  %6897 = vmatmul.f32.gmra.mxu2 %v13607_v8  ;;  %v3342_v13 = vmul.f32 %v3341_v18, %v13523_v1 }
 0x4d2   : > { %v3968_v42 = vxor.u32 2147483648, %v3962_v54  ;;  %vm3970_vm10 = vcmp.eq.s32.totalorder %v3965_v41, 2  ;;  %v3971_v30 = vxor.u32 2147483648, %v3954_v28  ;;  %vm3346_vm12 = vcmp.lt.s32.totalorder %v13585_v27, 2 }
 0x4d3   : > { %v6666_v26 = vpop.f32.mrf.mxu2  ;;  %v4257_v37 = vsel %vm13595_vm8, 0, %v4255_v16  ;;  %v4259_v0 = vmul.f32 -0.001358992, %v4258_v29  ;;  %v4266_v5 = vmul.f32 -0.00019511016, %v4258_v29  ;;  %v6797_v9 = vsub.f32 %v13607_v8, %v13623_v52  ;;  %6942 = vmatmul.f32.gmra.mxu3 %v13623_v52 }
 0x4d4   : > { %vm3657_vm2 = vcmp.eq.s32.totalorder %v3655_v62, 0  ;;  %vm3660_vm9 = vcmp.eq.s32.totalorder %v3655_v62, 2  ;;  %v3661_v1 = vxor.u32 2147483648, %v3644_v24  ;;  %vm3967_vm6 = vcmp.eq.s32.totalorder %v3965_v41, 0 }
 0x4d5   : > { %v3658_v31 = vxor.u32 2147483648, %v3652_v58  ;;  %v4260_v17 = vadd.f32 0.041655596, %v4259_v0  ;;  %v4267_v10 = vadd.f32 0.008332121, %v4266_v5  ;;  %v13634_v11 = vand.u32 4294901760, %v6797_v9 }
 0x4d6   : > { %v3348_v61 = vxor.u32 2147483648, %v3342_v13  ;;  %v3351_v63 = vxor.u32 2147483648, %v3334_v35  ;;  %v3972_v6 = vsel %vm3970_vm10, %v3971_v30, %v3962_v54  ;;  %v4274_v44 = vadd.s32 3, %v4257_v37  ;;  %v16178_v5 = vld [vmem:[#allocation44_spill] sm:$0xff] }
 0x4d7   : > { %v6703_v51 = vpop.f32.mrf.mxu3  ;;  %vm3966_vm14 = vcmp.lt.s32.totalorder %v3965_v41, 2  ;;  %v3969_v12 = vsel %vm3967_vm6, %v3954_v28, %v3968_v42  ;;  %v4261_v36 = vmul.f32 %v4260_v17, %v4258_v29  ;;  %v4268_v4 = vmul.f32 %v4267_v10, %v4258_v29  ;;  %6799 = vmatmul.f32.gmra.mxu0 %v13634_v11  ;;  %7012 = vmatmul.f32.vlgmr.msrb.gmra.mxu1 %v16177_v53  ;;  %v16179_v10 = vld [vmem:[#allocation14_spill] sm:$0xff] }
 0x4d8   : > { %vm3350_vm11 = vcmp.eq.s32.totalorder %v13585_v27, 2  ;;  %v6581_v57 = vadd.f32 %v6580_v59, %v13576_v55  ;;  %v6667_v40 = vadd.f32 %v6666_v26, %v6620_v19  ;;  %vm3656_vm15 = vcmp.lt.s32.totalorder %v3655_v62, 2 }
 0x4d9   : > { %v3659_v20 = vsel %vm3657_vm2, %v3644_v24, %v3658_v31  ;;  %v3662_v21 = vsel %vm3660_vm9, %v3661_v1, %v3652_v58  ;;  %v4262_v56 = vadd.f32 -0.4999988, %v4261_v36  ;;  %v4269_v18 = vadd.f32 -0.16666654, %v4268_v4  ;;  %v279_v31 = vpop.permute.xlu2 %278 }
 0x4da   : > { %vm3963_vm4 = vweird.f32 %v16155_v34  ;;  %v3973_v28 = vsel %vm3966_vm14, %v3969_v12, %v3972_v6  ;;  %v6704_v54 = vadd.f32 %v6703_v51, %v6667_v40  ;;  %v4275_v7 = vand.u32 3, %v4274_v44 }
 0x4db   : > { %v3349_v16 = vsel %vm3347_vm0, %v3334_v35, %v3348_v61  ;;  %v3352_v42 = vsel %vm3350_vm11, %v3351_v63, %v3342_v13  ;;  %v4263_v55 = vmul.f32 %v4262_v56, %v4258_v29  ;;  %v4270_v19 = vmul.f32 %v4269_v18, %v4258_v29  ;;  %v6670_v34 = vpop.f32.mrf.mxu2  ;;  %v385_v13 = vpop.permute.xlu1 %384  ;;  %v16180_v63 = vld [vmem:[#allocation13_spill] sm:$0xff] }
 0x4dc   : > { %vm3653_vm13 = vweird.f32 %v16156_v43  ;;  %v3663_v24 = vsel %vm3656_vm15, %v3659_v20, %v3662_v21  ;;  %v6700_v62 = vadd.f32 %v13587_v15, %v13602_v38  ;;  %v6626_v58 = vadd.f32 %v6625_v32, %v6581_v57 }
 0x4dd   : > { %vm3343_vm7 = vweird.f32 %v16160_v2  ;;  %v3974_v41 = vsel %vm3963_vm4, nan, %v3973_v28  ;;  %v4264_v30 = vadd.f32 1.0, %v4263_v55  ;;  %v4271_v26 = vadd.f32 1.0, %v4270_v19  ;;  %v16181_v55 = vld [vmem:[#allocation29_spill] sm:$0xff] }
 0x4de   : > { %v3353_v37 = vsel %vm3346_vm12, %v3349_v16, %v3352_v42  ;;  %v6696_v35 = vadd.f32 %v13551_v23, %v13580_v48  ;;  %v6715_v29 = vmul.f32 %v6704_v54, %v3974_v41  ;;  %vm4280_vm1 = vcmp.eq.s32.totalorder %v4275_v7, 2 }
 0x4df   : > { %v3664_v43 = vsel %vm3653_vm13, nan, %v3663_v24  ;;  %v4272_v0 = vmul.f32 %v4271_v26, %v13617_v3  ;;  %v4281_v15 = vxor.u32 2147483648, %v4264_v30  ;;  %v6707_v38 = vpop.f32.mrf.mxu3  ;;  %6975 = vmatmul.f32.vlgmr.msrb.gmra.mxu0 %v16177_v53  ;;  %7016 = vmatmul.f32.gmra.mxu1 %v16178_v5  ;;  %v6671_v46 = vadd.f32 %v6670_v34, %v6626_v58  ;;  %v16182_v24 = vld [vmem:[#allocation34_spill] sm:$0xff] }
 0x4e0   : > { %v6713_v9 = vmul.f32 %v6700_v62, %v3664_v43  ;;  %vm4277_vm3 = vcmp.eq.s32.totalorder %v4275_v7, 0  ;;  %v3354_v27 = vsel %vm3343_vm7, nan, %v3353_v37  ;;  %vm4276_vm5 = vcmp.lt.s32.totalorder %v4275_v7, 2  ;;  %v16183_v37 = vld [vmem:[#allocation16_spill] sm:$0xff] }
 0x4e1   : > { %v4278_v23 = vxor.u32 2147483648, %v4272_v0  ;;  %v4282_v48 = vsel %vm4280_vm1, %v4281_v15, %v4272_v0  ;;  %v6711_v1 = vmul.f32 %v6696_v35, %v3354_v27  ;;  %v13660_v59 = vand.u32 4294901760, %v6715_v29  ;;  %v16184_v15 = vld [vmem:[#allocation30_spill] sm:$0xff]  ;;  %v16186_v27 = vld [vmem:[#allocation41_spill] sm:$0xff] }
 0x4e2   : > { %vm4273_vm8 = vweird.f32 %v16171_v14  ;;  %v6708_v3 = vadd.f32 %v6707_v38, %v6671_v46  ;;  %v13663_v17 = vand.u32 4294901760, %v6713_v9  ;;  %v429_v61 = vmul.f32 %v16179_v10, %v385_v13 }
 0x4e3   : > { %v4279_v51 = vsel %vm4277_vm3, %v4264_v30, %v4278_v23  ;;  %v327_v6 = vmul.f32 %v16180_v63, %v279_v31  ;;  %v13667_v12 = vand.u32 4294901760, %v6711_v1  ;;  %v7100_v4 = vsub.f32 %v6715_v29, %v13660_v59  ;;  %v519_v20 = vpop.permute.xlu1 %518 }
 0x4e4   : > { %v4283_v44 = vsel %vm4276_vm5, %v4279_v51, %v4282_v48  ;;  %v7106_v40 = vsub.f32 %v6713_v9, %v13663_v17  ;;  %v435_v19 = vmul.f32 %v16179_v10, %v16181_v55  ;;  %v333_v62 = vmul.f32 %v16180_v63, %v16182_v24  ;;  %v16187_v48 = vld [vmem:[#allocation24_spill] sm:$0xff]  ;;  %v16188_v51 = vld [vmem:[#allocation42_spill] sm:$0xff] }
 0x4e5   : > { %v4284_v2 = vsel %vm4273_vm8, nan, %v4283_v44  ;;  %v461_v14 = vadd.f32 %v429_v61, %v327_v6  ;;  %v7112_v32 = vsub.f32 %v6711_v1, %v13667_v12  ;;  %v7101_v56 = vand.u32 4294901760, %v7100_v4 }
 0x4e6   : > { %v6717_v36 = vmul.f32 %v6708_v3, %v4284_v2  ;;  %v7107_v54 = vand.u32 4294901760, %v7106_v40  ;;  %v430_v58 = vmul.f32 %v16145_v49, %v385_v13  ;;  %v328_v34 = vmul.f32 %v16144_v47, %v279_v31  ;;  %v16189_v2 = vld [vmem:[#allocation45_spill] sm:$0xff] }
 0x4e7   : > { %6979 = vmatmul.f32.gmra.mxu0 %v16178_v5  ;;  %7020 = vmatmul.f32.gmra.mxu1 %v13332_v39  ;;  %v13674_v18 = vadd.f32 %v519_v20, %v461_v14  ;;  %v7102_v16 = vsub.f32 %v7100_v4, %v7101_v56  ;;  %v7113_v42 = vand.u32 4294901760, %v7112_v32  ;;  %v467_v29 = vadd.f32 %v435_v19, %v333_v62 }
 0x4e8   : > { %v7040_v57 = vand.u32 4294901760, %v6717_v36  ;;  %v7108_v26 = vsub.f32 %v7106_v40, %v7107_v54  ;;  %v462_v47 = vadd.f32 %v430_v58, %v328_v34  ;;  %v16196_v34 = vmov 2131351028  }
 0x4e9   : > { %v4288_v41 = vand.u32 2139095040, %v13674_v18  ;;  %v7103_v49 = vand.u32 4294901760, %v7102_v16  ;;  %v7114_v35 = vsub.f32 %v7112_v32, %v7113_v42  ;;  %v13693_v38 = vadd.f32 %v16184_v15, %v467_v29 }
 0x4ea   : > { %v7094_v21 = vsub.f32 %v6717_v36, %v7040_v57  ;;  %7041 = vmatpush.msrb.mxu2 %v7040_v57  ;;  %7192 = vmatpush.msra.mxu1 %v7040_v57  ;;  %v7109_v13 = vand.u32 4294901760, %v7108_v26  ;;  %v13696_v9 = vadd.f32 %v519_v20, %v462_v47  ;;  %v16191_v20 = vld [vmem:[#allocation36_spill] sm:$0xff]  ;;  %v16194_v16 = vmov 1326507024  }
 0x4eb   : > { %v4289_v43 = vshrl.u32 %v4288_v41, 23  ;;  %v7115_v0 = vand.u32 4294901760, %v7114_v35  ;;  %v5218_v23 = vand.u32 2139095040, %v13693_v38  ;;  %v7314_v47 = vld [vmem:[#allocation5 + $0xe0] sm:$0xf] }
 0x4ec   : > { %7043 = vmatpush.msrb.mxu2 %v13660_v59  ;;  %7148 = vmatpush.msra.mxu0 %v7094_v21  ;;  %v7095_v28 = vand.u32 4294901760, %v7094_v21  ;;  %16185 = vst [vmem:[#allocation32_spill] sm:$0xff] %v13696_v9  ;;  %v4443_v3 = vand.u32 2139095040, %v13696_v9  ;;  %v16198_v15 = vmov 683565275  }
 0x4ed   : > { %7194 = vmatpush.msra.mxu1 %v13660_v59  ;;  %v7896_v46 = vadd.s32 4294967169, %v4289_v43  ;;  %v5219_v31 = vshrl.u32 %v5218_v23, 23  ;;  %7317 = vperm.xlu1 %8056, %v7314_v47   ;;  %v16199_v23 = vld [vmem:[#allocation23_spill] sm:$0xff] }
 0x4ee   : > { %7045 = vmatpush.msrb.mxu2 %v13663_v17  ;;  %7151 = vmatpush.msra.mxu0 %v7100_v4  ;;  %v7096_v7 = vsub.f32 %v7094_v21, %v7095_v28  ;;  %v4444_v61 = vshrl.u32 %v4443_v3, 23  ;;  %v5373_v21 = vand.u32 2139095040, %v16191_v20 }
 0x4ef   : > { %7196 = vmatpush.msra.mxu1 %v13663_v17  ;;  %6983 = vmatmul.f32.gmra.mxu0 %v13332_v39  ;;  %v4295_v1 = vadd.s32 1, %v7896_v46  ;;  %v7914_v6 = vadd.s32 4294967169, %v5219_v31 }
 0x4f0   : > { %7047 = vmatpush.msrb.mxu2 %v13667_v12  ;;  %7154 = vmatpush.msra.mxu0 %v7106_v40  ;;  %v7097_v30 = vand.u32 4294901760, %v7096_v7  ;;  %v7899_v36 = vadd.s32 4294967169, %v4444_v61  ;;  %v16193_v7 = vmov 920167782  }
 0x4f1   : > { %7198 = vmatpush.msra.mxu1 %v13667_v12  ;;  %7053 = vmatmul.f32.vlgmr.msrb.gmra.mxu2 %v16183_v37  ;;  %vm4296_vm0 = vcmp.gt.s32.totalorder %v4295_v1, 0  ;;  %v5225_v14 = vadd.s32 1, %v7914_v6 }
 0x4f2   : > { %7239 = vmatpush.msra.mxu2 %v7095_v28  ;;  %7098 = vmatpush.msrb.mxu3 %v7097_v30  ;;  %v4297_v44 = vsel %vm4296_vm0, %v4295_v1, 0  ;;  %v16197_v30 = vmov 2102212464  }
 0x4f3   : > { %7157 = vmatpush.msra.mxu0 %v7112_v32  ;;  %7024 = vmatmul.f32.gmra.mxu1 %v13599_v45  ;;  %v4299_v4 = vand.u32 31, %v4297_v44  ;;  %vm5226_vm10 = vcmp.gt.s32.totalorder %v5225_v14, 0  ;;  %v13730_v19 = vshrl.u32 %v4297_v44, 5 }
 0x4f4   : > { %7243 = vmatpush.msra.mxu2 %v7101_v56  ;;  %7104 = vmatpush.msrb.mxu3 %v7103_v49  ;;  %v5227_v28 = vsel %vm5226_vm10, %v5225_v14, 0 }
 0x4f5   : > { %v4300_v32 = vsub.s32 32, %v4299_v4  ;;  %v4308_v41 = vshll.u32 %v16196_v34, %v4299_v4  ;;  %v4311_v26 = vshll.u32 %v16197_v30, %v4299_v4  ;;  %v4302_v46 = vshll.u32 %v16198_v15, %v4299_v4 }
 0x4f6   : > { %7247 = vmatpush.msra.mxu2 %v7107_v54  ;;  %7110 = vmatpush.msrb.mxu3 %v7109_v13  ;;  %v5374_v54 = vshrl.u32 %v5373_v21, 23  ;;  %vm4320_vm2 = vcmp.lt.s32.totalorder %v13730_v19, 4  ;;  %vm4317_vm9 = vcmp.lt.s32.totalorder %v13730_v19, 1  ;;  %vm4319_vm6 = vcmp.lt.s32.totalorder %v13730_v19, 3 }
 0x4f7   : > { %6987 = vmatmul.f32.gmra.mxu0 %v13599_v45  ;;  %v4306_v49 = vshrl.u32 %v16196_v34, %v4300_v32  ;;  %v4309_v35 = vshrl.u32 %v16197_v30, %v4300_v32  ;;  %v4312_v29 = vshrl.u32 %v16193_v7, %v4300_v32  ;;  %vm4318_vm14 = vcmp.lt.s32.totalorder %v13730_v19, 2 }
 0x4f8   : > { %7251 = vmatpush.msra.mxu2 %v7113_v42  ;;  %7116 = vmatpush.msrb.mxu3 %v7115_v0  ;;  %v4315_v42 = vshrl.u32 %v16194_v16, %v4300_v32  ;;  %v13744_v0 = vand.u32 31, %v5227_v28 }
 0x4f9   : > { %7061 = vmatmul.f32.gmra.mxu2 %v16186_v27  ;;  %7118 = vmatmul.f32.vlgmr.msrb.gmra.mxu3 %v16177_v53  ;;  %v4310_v44 = vor.u32 %v4309_v35, %v4308_v41 }
 0x4fa   : > { %7282 = vmatpush.msra.mxu3 %v7040_v57  ;;  %v16190_v57 = vld [vmem:[#allocation43_spill] sm:$0xff] }
 0x4fb   : > { %7202 = vmatmul.f32.vlgmr.msra.gmra.mxu1 %v16187_v48  ;;  %v13752_v48 = vmul.f32 %v16180_v63, %v16199_v23 }
 0x4fc   : > { %7284 = vmatpush.msra.mxu3 %v13660_v59  ;;  %v329_v59 = vmul.f32 %v16180_v63, %v13411_v22  ;;  %v15600_v22 = vand.u32 2147483647, %v13674_v18  ;;  %v13762_v63 = vshrl.u32 %v5227_v28, 5  ;;  %v16203_v28 = vld [vmem:[#allocation37_spill] sm:$0xff] }
 0x4fe   : > { %7286 = vmatpush.msra.mxu3 %v13663_v17  ;;  %v431_v17 = vmul.f32 %v16179_v10, %v13418_v50  ;;  %v15597_v50 = vand.u32 2147483647, %v13696_v9  ;;  %v4292_v55 = vand.u32 8388607, %v15600_v22 }
 0x4ff   : > { %7160 = vmatmul.f32.vlgmr.msra.gmra.mxu0 %v16188_v51  ;;  %v16200_v51 = vld [vmem:[#allocation39_spill] sm:$0xff] }
 0x500   : > { %7288 = vmatpush.msra.mxu3 %v13667_v12  ;;  %v4450_v12 = vadd.s32 1, %v7899_v36  ;;  %v463_v40 = vadd.f32 %v431_v17, %v329_v59  ;;  %v4447_v24 = vand.u32 8388607, %v15597_v50  ;;  %v4293_v1 = vor.u32 8388608, %v4292_v55 }
 0x501   : > { %7069 = vmatmul.f32.gmra.mxu2 %v13384_v33  ;;  %7122 = vmatmul.f32.gmra.mxu3 %v16178_v5  ;;  %v13715_v33 = vpop.permute.xlu0 %522  ;;  %v13756_v61 = vmul.f32 %v16179_v10, %v16200_v51  ;;  %v13765_v17 = vsub.s32 32, %v13744_v0 }
 0x502   : > { %vm4451_vm12 = vcmp.gt.s32.totalorder %v4450_v12, 0  ;;  %v13724_v56 = vadd.f32 %v13715_v33, %v463_v40  ;;  %v4448_v3 = vor.u32 8388608, %v4447_v24  ;;  %v4322_v24 = vsel %vm4320_vm2, %v4310_v44, 2102212464 }
 0x503   : > { %7208 = vmatmul.f32.gmra.mxu1 %v16189_v2  ;;  %v4452_v62 = vsel %vm4451_vm12, %v4450_v12, 0  ;;  %v4313_v2 = vor.u32 %v4312_v29, %v4311_v26 }
 0x504   : > { %16192 = vst [vmem:[#allocation46_spill] sm:$0xff] %v13724_v56  ;;  %v4598_v37 = vand.u32 2139095040, %v13724_v56  ;;  %v4454_v13 = vand.u32 31, %v4452_v62  ;;  %v13773_v14 = vshll.u32 %v4448_v3, 8 }
 0x505   : > { %v4326_v12 = vsel %vm4320_vm2, %v4313_v2, 920167782 }
 0x506   : > { %v4599_v31 = vshrl.u32 %v4598_v37, 23  ;;  %v4455_v59 = vsub.s32 32, %v4454_v13  ;;  %16202 = vst [vmem:[#allocation11_spill] sm:$0xff] %v13773_v14 }
 0x507   : > { %7165 = vmatmul.f32.gmra.mxu0 %v16190_v57 }
 0x508   : > { %v7902_v57 = vadd.s32 4294967169, %v4599_v31  ;;  %v4470_v55 = vshrl.u32 %v16194_v16, %v4455_v59  ;;  %v4467_v41 = vshrl.u32 %v16193_v7, %v4455_v59  ;;  %v4461_v37 = vshrl.u32 %v16196_v34, %v4455_v59 }
 0x509   : > { %7077 = vmatmul.f32.gmra.mxu2 %v13634_v11  ;;  %7126 = vmatmul.f32.gmra.mxu3 %v13332_v39  ;;  %v4314_v11 = vshll.u32 %v16193_v7, %v4299_v4  ;;  %v4464_v35 = vshrl.u32 %v16197_v30, %v4455_v59 }
 0x50a   : > { %v4605_v26 = vadd.s32 1, %v7902_v57 }
 0x50b   : > { %7214 = vmatmul.f32.gmra.mxu1 %v13367_v60  ;;  %v16195_v60 = vmov 2475754826   ;;  %v4316_v43 = vor.u32 %v4315_v42, %v4314_v11  ;;  %v13788_v11 = vshrl.u32 %v4452_v62, 5  ;;  %v4469_v42 = vshll.u32 %v16193_v7, %v4454_v13 }
 0x50c   : > { %v4305_v58 = vshll.u32 %v16195_v60, %v4299_v4  ;;  %v4303_v27 = vshrl.u32 %v16195_v60, %v4300_v32  ;;  %v13771_v4 = vshll.u32 %v4293_v1, 8  ;;  %v4460_v62 = vshll.u32 %v16195_v60, %v4454_v13 }
 0x50d   : > { %vm4475_vm11 = vcmp.lt.s32.totalorder %v13788_v11, 4  ;;  %vm4606_vm15 = vcmp.gt.s32.totalorder %v4605_v26, 0  ;;  %vm4472_vm4 = vcmp.lt.s32.totalorder %v13788_v11, 1  ;;  %vm4474_vm13 = vcmp.lt.s32.totalorder %v13788_v11, 3 }
 0x50e   : > { %v4307_v6 = vor.u32 %v4306_v49, %v4305_v58  ;;  %v4304_v10 = vor.u32 %v4303_v27, %v4302_v46  ;;  %v4463_v49 = vshll.u32 %v16196_v34, %v4454_v13  ;;  %v13810_v47 = vand.u32 65535, %v13771_v4 }
 0x50f   : > { %7170 = vmatmul.f32.gmra.mxu0 %v13349_v25  ;;  %v7917_v25 = vadd.s32 4294967169, %v5374_v54  ;;  %v13783_v54 = vadd.f32 %v13715_v33, %v16203_v28  ;;  %v4466_v33 = vshll.u32 %v16197_v30, %v4454_v13  ;;  %v4471_v46 = vor.u32 %v4470_v55, %v4469_v42 }
 0x510   : > { %v4329_v40 = vsel %vm4317_vm9, %v4307_v6, %v4310_v44  ;;  %v4325_v58 = vsel %vm4317_vm9, %v4304_v10, %v4307_v6  ;;  %v13815_v27 = vshrl.u32 %v13771_v4, 16  ;;  %v4323_v31 = vsel %vm4319_vm6, %v4307_v6, %v4322_v24 }
 0x511   : > { %7130 = vmatmul.f32.gmra.mxu3 %v13599_v45  ;;  %7253 = vmatmul.f32.vlgmr.msra.gmra.mxu2 %v16177_v53  ;;  %v13767_v36 = vadd.s32 1, %v7917_v25  ;;  %16204 = vst [vmem:[#allocation12_spill] sm:$0xff] %v13783_v54  ;;  %v4753_v29 = vand.u32 2139095040, %v13783_v54  ;;  %v4457_v25 = vshll.u32 %v16198_v15, %v4454_v13  ;;  %v4468_v1 = vor.u32 %v4467_v41, %v4466_v33 }
 0x512   : > { %v4485_v6 = vsel %vm4475_vm11, %v4471_v46, 1326507024  ;;  %v13848_v42 = vand.u32 65535, %v13773_v14  ;;  %vm4473_vm7 = vcmp.lt.s32.totalorder %v13788_v11, 2  ;;  %v465_v41 = vadd.f32 %v13756_v61, %v13752_v48 }
 0x513   : > { %7220 = vmatmul.f32.gmra.mxu1 %v13623_v52  ;;  %v4330_v52 = vsel %vm4320_vm2, %v4316_v43, 1326507024  ;;  %16201 = vst [vmem:[#allocation18_spill] sm:$0xff] %v13767_v36  ;;  %v4458_v43 = vshrl.u32 %v16195_v60, %v4455_v59  ;;  %v4486_v55 = vsel %vm4474_vm13, %v4468_v1, %v4485_v6  ;;  %v15599_v61 = vand.u32 2147483647, %v13724_v56 }
 0x514   : > { %v4331_v21 = vsel %vm4319_vm6, %v4313_v2, %v4330_v52  ;;  %v4465_v2 = vor.u32 %v4464_v35, %v4463_v49  ;;  %v4754_v52 = vshrl.u32 %v4753_v29, 23  ;;  %16205 = vst [vmem:[#allocation22_spill] sm:$0xff] %v13848_v42  ;;  %v13869_v49 = vpop.permute.xlu2 %526  ;;  %v15598_v29 = vand.u32 2147483647, %v13783_v54 }
 0x515   : > { %v4459_v57 = vor.u32 %v4458_v43, %v4457_v25  ;;  %v13905_v6 = vshrl.u32 %v13773_v14, 16  ;;  %v16222_v14 = vld [vmem:[#allocation33_spill] sm:$0xff] }
 0x516   : > { %v7905_v24 = vadd.s32 4294967169, %v4754_v52 }
 0x517   : > { %7175 = vmatmul.f32.gmra.mxu0 %v13607_v8  ;;  %v4301_v8 = vshrl.u32 %v16198_v15, %v4300_v32  ;;  %v13802_v32 = vsel %vm4318_vm14, %v4329_v40, %v4331_v21  ;;  %v4481_v40 = vsel %vm4475_vm11, %v4468_v1, 920167782  ;;  %v4607_v21 = vsel %vm4606_vm15, %v4605_v26, 0  ;;  %16210 = vst [vmem:[#allocation17_spill] sm:$0xff] %v13905_v6 }
 0x518   : > { %v4337_v23 = vshrl.u32 %v13802_v32, 16  ;;  %v15601_v51 = vand.u32 65535, %v13802_v32  ;;  %v4609_v33 = vand.u32 31, %v4607_v21  ;;  %v4760_v1 = vadd.s32 1, %v7905_v24 }
 0x519   : > { %7257 = vmatmul.f32.gmra.mxu2 %v16178_v5  ;;  %7290 = vmatmul.f32.vlgmr.msra.gmra.mxu3 %v16177_v53  ;;  %v4327_v53 = vsel %vm4319_vm6, %v4310_v44, %v4326_v12  ;;  %v4321_v3 = vsel %vm4317_vm9, %v4301_v8, %v4304_v10  ;;  %v4462_v44 = vor.u32 %v4461_v37, %v4460_v62  ;;  %v4477_v8 = vsel %vm4475_vm11, %v4465_v2, 2102212464 }
 0x51a   : > { %v13825_v13 = vsel %vm4318_vm14, %v4325_v58, %v4327_v53  ;;  %v13835_v10 = vmul.u32 %v4337_v23, %v13810_v47  ;;  %v4456_v12 = vshrl.u32 %v16198_v15, %v4455_v59  ;;  %v4482_v58 = vsel %vm4474_vm13, %v4465_v2, %v4481_v40 }
 0x51b   : > { %v4359_v28 = vshrl.u32 %v13825_v13, 16  ;;  %v4484_v59 = vsel %vm4472_vm4, %v4462_v44, %v4465_v2  ;;  %v4480_v19 = vsel %vm4472_vm4, %v4459_v57, %v4462_v44  ;;  %v4338_v53 = vmul.u32 %v15601_v51, %v13810_v47 }
 0x51c   : > { %v4342_v62 = vshll.u32 %v13835_v10, 16  ;;  %v4476_v26 = vsel %vm4472_vm4, %v4456_v12, %v4459_v57  ;;  %v4478_v37 = vsel %vm4474_vm13, %v4462_v44, %v4477_v8  ;;  %v13875_v48 = vsel %vm4473_vm7, %v4484_v59, %v4486_v55 }
 0x51d   : > { %16206 = vst [vmem:[#allocation35_spill] sm:$0xff] %v13875_v48  ;;  %v13881_v43 = vmul.u32 %v4359_v28, %v13810_v47  ;;  %v13885_v46 = vsel %vm4473_vm7, %v4480_v19, %v4482_v58  ;;  %v4610_v44 = vsub.s32 32, %v4609_v33  ;;  %v13897_v2 = vadd.f32 %v13869_v49, %v465_v41 }
 0x51e   : > { %16207 = vst [vmem:[#allocation25_spill] sm:$0xff] %v13885_v46  ;;  %v13900_v52 = vmul.u32 %v4337_v23, %v13815_v27  ;;  %v13902_v57 = vadd.s32 %v4342_v62, %v4338_v53  ;;  %v4514_v11 = vshrl.u32 %v13885_v46, 16  ;;  %v4602_v40 = vand.u32 8388607, %v15599_v61 }
 0x51f   : > { %16209 = vst [vmem:[#allocation27_spill] sm:$0xff] %v13897_v2  ;;  %v15607_v23 = vand.u32 65535, %v13875_v48  ;;  %v4618_v59 = vshll.u32 %v16196_v34, %v4609_v33  ;;  %vm4761_vm1 = vcmp.gt.s32.totalorder %v4760_v1, 0  ;;  %v4619_v55 = vshrl.u32 %v16197_v30, %v4610_v44 }
 0x520   : > { %v4621_v24 = vshll.u32 %v16197_v30, %v4609_v33  ;;  %v4622_v19 = vshrl.u32 %v16193_v7, %v4610_v44  ;;  %v4908_v58 = vand.u32 2139095040, %v13897_v2  ;;  %v4625_v50 = vshrl.u32 %v16194_v16, %v4610_v44 }
 0x521   : > { %7261 = vmatmul.f32.gmra.mxu2 %v13332_v39  ;;  %7294 = vmatmul.f32.gmra.mxu3 %v16178_v5  ;;  %v13842_v5 = vsel %vm4318_vm14, %v4321_v3, %v4323_v31  ;;  %v13890_v3 = vmul.u32 %v4359_v28, %v13815_v27  ;;  %v13894_v31 = vsel %vm4473_vm7, %v4476_v26, %v4478_v37  ;;  %v4757_v28 = vand.u32 8388607, %v15598_v29 }
 0x522   : > { %16208 = vst [vmem:[#allocation15_spill] sm:$0xff] %v13894_v31  ;;  %v4608_v26 = vshrl.u32 %v4607_v21, 5  ;;  %v4624_v37 = vshll.u32 %v16193_v7, %v4609_v33  ;;  %v13928_v29 = vmul.u32 %v4514_v11, %v13848_v42  ;;  %v4603_v8 = vor.u32 8388608, %v4602_v40 }
 0x523   : > { %v4758_v12 = vor.u32 8388608, %v4757_v28  ;;  %v4762_v61 = vsel %vm4761_vm1, %v4760_v1, 0  ;;  %v4612_v22 = vshll.u32 %v16198_v15, %v4609_v33  ;;  %v4613_v35 = vshrl.u32 %v16195_v60, %v4610_v44 }
 0x524   : > { %16212 = vst [vmem:[#allocation28_spill] sm:$0xff] %v13928_v29  ;;  %v4615_v25 = vshll.u32 %v16195_v60, %v4609_v33  ;;  %v4616_v51 = vshrl.u32 %v16196_v34, %v4610_v44  ;;  %vm13935_vm3 = vc.u32 %v4338_v53, %v4342_v62  ;;  %v13942_v40 = vmul.u32 %v15607_v23, %v13848_v42 }
 0x525   : > { %v4620_v1 = vor.u32 %v4619_v55, %v4618_v59  ;;  %v4623_v28 = vor.u32 %v4622_v19, %v4621_v24  ;;  %v4909_v9 = vshrl.u32 %v4908_v58, 23  ;;  %v4611_v33 = vshrl.u32 %v16198_v15, %v4610_v44 }
 0x526   : > { %16215 = vst [vmem:[#allocation31_spill] sm:$0xff] %v13942_v40  ;;  %v4626_v20 = vor.u32 %v4625_v50, %v4624_v37  ;;  %vm4630_vm5 = vcmp.lt.s32.totalorder %v4608_v26, 4  ;;  %v13947_v53 = vshll.u32 %v4603_v8, 8  ;;  %v13949_v62 = vand.u32 31, %v4762_v61 }
 0x527   : > { %v13951_v36 = vshll.u32 %v4758_v12, 8  ;;  %v13957_v59 = vmul.u32 %v4514_v11, %v13905_v6  ;;  %v4614_v55 = vor.u32 %v4613_v35, %v4612_v22  ;;  %v4617_v24 = vor.u32 %v4616_v51, %v4615_v25 }
 0x528   : > { %vm4627_vm8 = vcmp.lt.s32.totalorder %v4608_v26, 1  ;;  %vm4629_vm0 = vcmp.lt.s32.totalorder %v4608_v26, 3  ;;  %v4636_v50 = vsel %vm4630_vm5, %v4623_v28, 920167782  ;;  %v7908_v44 = vadd.s32 4294967169, %v4909_v9 }
 0x529   : > { %7265 = vmatmul.f32.gmra.mxu2 %v13599_v45  ;;  %7298 = vmatmul.f32.gmra.mxu3 %v13332_v39  ;;  %v4492_v39 = vshrl.u32 %v13875_v48, 16  ;;  %16216 = vst [vmem:[#allocation40_spill] sm:$0xff] %v13951_v36  ;;  %v4631_v12 = vsel %vm4627_vm8, %v4611_v33, %v4614_v55  ;;  %v4640_v19 = vsel %vm4630_vm5, %v4626_v20, 1326507024  ;;  %v13969_v11 = vand.u32 65535, %v13947_v53 }
 0x52a   : > { %16218 = vst [vmem:[#allocation38_spill] sm:$0xff] %v13957_v59  ;;  %v13972_v22 = vshrl.u32 %v13947_v53, 16  ;;  %v4765_v51 = vsub.s32 32, %v13949_v62  ;;  %v13976_v9 = vand.u32 65535, %v13951_v36  ;;  %vm4628_vm10 = vcmp.lt.s32.totalorder %v4608_v26, 2 }
 0x52b   : > { %v13923_v41 = vmul.u32 %v4492_v39, %v13848_v42  ;;  %v13954_v23 = vmul.u32 %v4492_v39, %v13905_v6  ;;  %v4635_v35 = vsel %vm4627_vm8, %v4614_v55, %v4617_v24  ;;  %v4637_v25 = vsel %vm4629_vm0, %v4620_v1, %v4636_v50 }
 0x52c   : > { %16220 = vst [vmem:[#allocation21_spill] sm:$0xff] %v13976_v9  ;;  %v13981_v58 = vshrl.u32 %v13951_v36, 16  ;;  %v4639_v37 = vsel %vm4627_vm8, %v4617_v24, %v4620_v1  ;;  %v4641_v33 = vsel %vm4629_vm0, %v4623_v28, %v4640_v19  ;;  %v4767_v31 = vshll.u32 %v16198_v15, %v13949_v62 }
 0x52d   : > { %16211 = vst [vmem:[#allocation20_spill] sm:$0xff] %v13923_v41  ;;  %v15608_v54 = vshll.u32 %v13923_v41, 16  ;;  %v13994_v55 = vadd.f32 %v13869_v49, %v16222_v14  ;;  %v13998_v59 = vsel %vm4628_vm10, %v4635_v35, %v4637_v25  ;;  %v14007_v28 = vsel %vm4628_vm10, %v4639_v37, %v4641_v33 }
 0x52e   : > { %16217 = vst [vmem:[#allocation26_spill] sm:$0xff] %v13954_v23  ;;  %v16224_v49 = vand.u32 65535, %v13802_v32  ;;  %v16226_v19 = vand.u32 65535, %v13825_v13  ;;  %v4364_v37 = vshll.u32 %v13881_v43, 16  ;;  %v4771_v32 = vshrl.u32 %v16196_v34, %v4765_v51 }
 0x52f   : > { %v13963_v8 = vadd.s32 %v15608_v54, %v13942_v40  ;;  %16221 = vst [vmem:[#allocation44_spill] sm:$0xff] %v13981_v58  ;;  %v13988_v54 = vshrl.u32 %v4762_v61, 5  ;;  %v4770_v61 = vshll.u32 %v16195_v60, %v13949_v62  ;;  %v4647_v21 = vshrl.u32 %v14007_v28, 16 }
 0x530   : > { %16223 = vst [vmem:[#allocation14_spill] sm:$0xff] %v13994_v55  ;;  %v4360_v35 = vmul.u32 %v16226_v19, %v13810_v47  ;;  %v16227_v26 = vmov %v16226_v19  ;;  %v4343_v47 = vshrl.u32 %v13835_v10, 16  ;;  %v4365_v19 = vshrl.u32 %v13881_v43, 16 }
 0x531   : > { %7302 = vmatmul.f32.gmra.mxu3 %v13599_v45  ;;  %v4632_v45 = vsel %vm4630_vm5, %v4620_v1, 2102212464  ;;  %16219 = vst [vmem:[#allocation19_spill] sm:$0xff] %v13963_v8  ;;  %v4768_v1 = vshrl.u32 %v16195_v60, %v4765_v51  ;;  %v4362_v25 = vmul.u32 %v16227_v26, %v13815_v27  ;;  %v4779_v10 = vshll.u32 %v16193_v7, %v13949_v62 }
 0x532   : > { %v4633_v39 = vsel %vm4629_vm0, %v4617_v24, %v4632_v45  ;;  %v4915_v45 = vadd.s32 1, %v7908_v44  ;;  %v4340_v24 = vmul.u32 %v16224_v49, %v13815_v27  ;;  %v16225_v44 = vmov 0  }
 0x533   : > { %v13984_v20 = vsel %vm4628_vm10, %v4631_v12, %v4633_v39  ;;  %v14001_v12 = vshrl.u32 %v16198_v15, %v4765_v51  ;;  %v4347_v39 = vsel %vm13935_vm3, 1, %v16225_v44  ;;  %v4366_v50 = vshll.u32 %v4362_v25, 16 }
 0x534   : > { %vm4916_vm12 = vcmp.gt.s32.totalorder %v4915_v45, 0  ;;  %v4344_v49 = vshll.u32 %v4340_v24, 16  ;;  %v4349_v14 = vadd.s32 %v4347_v39, %v13900_v52  ;;  %vm4368_vm2 = vc.u32 %v4360_v35, %v4364_v37 }
 0x535   : > { %v4370_v23 = vadd.s32 %v4364_v37, %v4360_v35  ;;  %v4917_v8 = vsel %vm4916_vm12, %v4915_v45, 0  ;;  %v4369_v27 = vsel %vm4368_vm2, 1, %v16225_v44  ;;  %v4773_v52 = vshll.u32 %v16196_v34, %v13949_v62 }
 0x536   : > { %vm4350_vm9 = vc.u32 %v13902_v57, %v4344_v49  ;;  %v4371_v26 = vadd.s32 %v4369_v27, %v13890_v3  ;;  %v4345_v39 = vshrl.u32 %v4340_v24, 16  ;;  %v4780_v57 = vshrl.u32 %v16194_v16, %v4765_v51 }
 0x537   : > { %v4351_v13 = vsel %vm4350_vm9, 1, %v16225_v44  ;;  %vm4372_vm6 = vc.u32 %v4370_v23, %v4366_v50  ;;  %v4367_v35 = vshrl.u32 %v4362_v25, 16  ;;  %v4774_v49 = vshrl.u32 %v16197_v30, %v4765_v51 }
 0x538   : > { %v4353_v33 = vadd.s32 %v4351_v13, %v4349_v14  ;;  %v4373_v45 = vsel %vm4372_vm6, 1, %v16225_v44  ;;  %v4919_v43 = vand.u32 31, %v4917_v8  ;;  %v14041_v3 = vadd.s32 %v4370_v23, %v4366_v50 }
 0x539   : > { %v4375_v37 = vadd.s32 %v4373_v45, %v4371_v26  ;;  %v4776_v27 = vshll.u32 %v16197_v30, %v13949_v62  ;;  %v4777_v14 = vshrl.u32 %v16193_v7, %v4765_v51  ;;  %v5063_v24 = vand.u32 2139095040, %v13994_v55 }
 0x53a   : > { %v4354_v29 = vadd.s32 %v4353_v33, %v4343_v47  ;;  %v14048_v42 = vmul.u32 %v4647_v21, %v13969_v11  ;;  %v4769_v33 = vor.u32 %v4768_v1, %v4767_v31  ;;  %v4772_v23 = vor.u32 %v4771_v32, %v4770_v61 }
 0x53b   : > { %v4376_v13 = vadd.s32 %v4375_v37, %v4365_v19  ;;  %v4781_v50 = vor.u32 %v4780_v57, %v4779_v10  ;;  %v16228_v62 = vand.u32 65535, %v14007_v28  ;;  %vm4785_vm14 = vcmp.lt.s32.totalorder %v13988_v54, 4 }
 0x53c   : > { %v14052_v45 = vadd.s32 %v4354_v29, %v4345_v39  ;;  %v14060_v19 = vsub.s32 32, %v4919_v43  ;;  %v4775_v37 = vor.u32 %v4774_v49, %v4773_v52  ;;  %v4778_v25 = vor.u32 %v4777_v14, %v4776_v27 }
 0x53d   : > { %v4377_v47 = vadd.s32 %v4376_v13, %v4367_v35  ;;  %v14057_v51 = vmul.u32 %v16228_v62, %v13969_v11  ;;  %v5064_v29 = vshrl.u32 %v5063_v24, 23  ;;  %v14065_v31 = vmul.u32 %v4647_v21, %v13972_v22 }
 0x53e   : > { %vm4380_vm11 = vc.u32 %v14052_v45, %v14041_v3  ;;  %vm4782_vm15 = vcmp.lt.s32.totalorder %v13988_v54, 1  ;;  %vm4783_vm4 = vcmp.lt.s32.totalorder %v13988_v54, 2  ;;  %vm4784_vm13 = vcmp.lt.s32.totalorder %v13988_v54, 3 }
 0x53f   : > { %v4381_v39 = vadd.s32 1, %v4377_v47  ;;  %v4787_v61 = vsel %vm4785_vm14, %v4775_v37, 2102212464  ;;  %v4795_v32 = vsel %vm4785_vm14, %v4781_v50, 1326507024  ;;  %v14076_v10 = vsel %vm4782_vm15, %v14001_v12, %v4769_v33 }
 0x540   : > { %v4934_v21 = vshll.u32 %v16193_v7, %v4919_v43  ;;  %v4935_v57 = vshrl.u32 %v16194_v16, %v14060_v19  ;;  %v16229_v35 = vmul.u32 %v13771_v4, %v13842_v5  ;;  %v4790_v27 = vsel %vm4782_vm15, %v4769_v33, %v4772_v23 }
 0x541   : > { %v4382_v52 = vsel %vm4380_vm11, %v4381_v39, %v4377_v47  ;;  %v4791_v14 = vsel %vm4785_vm14, %v4778_v25, 920167782  ;;  %v14086_v24 = vshrl.u32 %v4917_v8, 5  ;;  %v7911_v13 = vadd.s32 4294967169, %v5064_v29 }
 0x542   : > { %v4383_v49 = vadd.s32 %v4382_v52, %v16229_v35  ;;  %v4788_v12 = vsel %vm4784_vm13, %v4772_v23, %v4787_v61  ;;  %v4794_v50 = vsel %vm4782_vm15, %v4772_v23, %v4775_v37  ;;  %v4796_v47 = vsel %vm4784_vm13, %v4778_v25, %v4795_v32 }
 0x543   : > { %v4925_v39 = vshll.u32 %v16195_v60, %v4919_v43  ;;  %v4926_v4 = vshrl.u32 %v16196_v34, %v14060_v19  ;;  %v4928_v5 = vshll.u32 %v16196_v34, %v4919_v43  ;;  %v4929_v8 = vshrl.u32 %v16197_v30, %v14060_v19 }
 0x544   : > { %v4384_v62 = vadd.s32 536870912, %v4383_v49  ;;  %v4931_v33 = vshll.u32 %v16197_v30, %v4919_v43  ;;  %v4932_v29 = vshrl.u32 %v16193_v7, %v14060_v19  ;;  %v4936_v23 = vor.u32 %v4935_v57, %v4934_v21 }
 0x545   : > { %v4792_v25 = vsel %vm4784_vm13, %v4775_v37, %v4791_v14  ;;  %v16231_v32 = vand.u32 2147483647, %v13897_v2  ;;  %vm4940_vm7 = vcmp.lt.s32.totalorder %v14086_v24, 4  ;;  %v5070_v35 = vadd.s32 1, %v7911_v13 }
 0x546   : > { %v14101_v61 = vshrl.u32 %v4384_v62, 30  ;;  %v14110_v1 = vsel %vm4783_vm4, %v4794_v50, %v4796_v47  ;;  %v4922_v26 = vshll.u32 %v16198_v15, %v4919_v43  ;;  %v15615_v46 = vand.u32 2147483647, %v13994_v55 }
 0x547   : > { %v4912_v52 = vand.u32 8388607, %v16231_v32  ;;  %16232 = vst [vmem:[#allocation29_spill] sm:$0xff] %v14110_v1  ;;  %v4923_v57 = vshrl.u32 %v16195_v60, %v14060_v19  ;;  %v4927_v37 = vor.u32 %v4926_v4, %v4925_v39  ;;  %v4930_v14 = vor.u32 %v4929_v8, %v4928_v5 }
 0x548   : > { %16230 = vst [vmem:[#allocation13_spill] sm:$0xff] %v14101_v61  ;;  %v4386_v21 = vshll.u32 %v14101_v61, 30  ;;  %vm4937_vm1 = vcmp.lt.s32.totalorder %v14086_v24, 1  ;;  %v4933_v62 = vor.u32 %v4932_v29, %v4931_v33  ;;  %vm4939_vm3 = vcmp.lt.s32.totalorder %v14086_v24, 3 }
 0x549   : > { %v4950_v13 = vsel %vm4940_vm7, %v4936_v23, 1326507024  ;;  %v14125_v43 = vsel %vm4783_vm4, %v4790_v27, %v4792_v25  ;;  %v4802_v47 = vshrl.u32 %v14110_v1, 16  ;;  %v4913_v32 = vor.u32 8388608, %v4912_v52 }
 0x54a   : > { %v14121_v50 = vsub.s32 %v4383_v49, %v4386_v21  ;;  %16233 = vst [vmem:[#allocation34_spill] sm:$0xff] %v14125_v43  ;;  %vm5071_vm5 = vcmp.gt.s32.totalorder %v5070_v35, 0  ;;  %v5067_v4 = vand.u32 8388607, %v15615_v46  ;;  %v4924_v8 = vor.u32 %v4923_v57, %v4922_v26 }
 0x54b   : > { %vm4938_vm0 = vcmp.lt.s32.totalorder %v14086_v24, 2  ;;  %v4949_v49 = vsel %vm4937_vm1, %v4927_v37, %v4930_v14  ;;  %v4951_v27 = vsel %vm4939_vm3, %v4933_v62, %v4950_v13  ;;  %v4921_v33 = vshrl.u32 %v16198_v15, %v14060_v19 }
 0x54c   : > { %vm4388_vm8 = vcmp.lt.s32.totalorder %v14121_v50, 0  ;;  %v4389_v5 = vsub.s32 0, %v14121_v50  ;;  %v4946_v29 = vsel %vm4940_vm7, %v4933_v62, 920167782  ;;  %v5072_v23 = vsel %vm5071_vm5, %v5070_v35, 0 }
 0x54d   : > { %v14144_v52 = vmul.u32 %v4802_v47, %v13976_v9  ;;  %v4942_v26 = vsel %vm4940_vm7, %v4930_v14, 2102212464  ;;  %v14148_v21 = vshll.u32 %v4913_v32, 8  ;;  %v16235_v13 = vshrl.u32 %v13998_v59, 16 }
 0x54e   : > { %v4390_v25 = vsel %vm4388_vm8, %v4389_v5, %v14121_v50  ;;  %v14162_v62 = vsel %vm4938_vm0, %v4949_v49, %v4951_v27  ;;  %v5068_v5 = vor.u32 8388608, %v5067_v4  ;;  %v4945_v32 = vsel %vm4937_vm1, %v4924_v8, %v4927_v37 }
 0x54f   : > { %16234 = vst [vmem:[#allocation16_spill] sm:$0xff] %v14144_v52  ;;  %v4391_v57 = vclz %v4390_v25  ;;  %v14153_v46 = vmul.u32 %v16235_v13, %v13969_v11  ;;  %v16236_v19 = vmov %v16235_v13  ;;  %v4947_v25 = vsel %vm4939_vm3, %v4930_v14, %v4946_v29 }
 0x550   : > { %v14158_v35 = vmul.u32 %v16236_v19, %v13972_v22  ;;  %v5074_v39 = vand.u32 31, %v5072_v23  ;;  %v16237_v13 = vshll.u32 %v14048_v42, 16  ;;  %v14178_v49 = vsel %vm4783_vm4, %v14076_v10, %v4788_v12 }
 0x551   : > { %v7897_v55 = vadd.s32 4294967294, %v4391_v57  ;;  %16240 = vst [vmem:[#allocation30_spill] sm:$0xff] %v14178_v49  ;;  %v4824_v4 = vshrl.u32 %v14125_v43, 16  ;;  %v4941_v27 = vsel %vm4937_vm1, %v4921_v33, %v4924_v8  ;;  %v4943_v14 = vsel %vm4939_vm3, %v4927_v37, %v4942_v26 }
 0x552   : > { %vm14171_vm10 = vc.u32 %v14057_v51, %v16237_v13  ;;  %v16241_v29 = vand.u32 65535, %v14110_v1  ;;  %v14192_v13 = vand.u32 65535, %v14148_v21  ;;  %v4957_v54 = vshrl.u32 %v14162_v62, 16 }
 0x553   : > { %v16243_v10 = vshll.u32 %v14048_v42, 16  ;;  %v14201_v37 = vsel %vm4938_vm0, %v4945_v32, %v4947_v25  ;;  %v14203_v33 = vshll.u32 %v5068_v5, 8  ;;  %v14211_v19 = vsub.s32 32, %v5074_v39 }
 0x554   : > { %v14188_v57 = vmul.u32 %v16241_v29, %v13976_v9  ;;  %v14209_v29 = vsel %vm4938_vm0, %v4941_v27, %v4943_v14  ;;  %vm7898_vm12 = vcmp.lt.s32.totalorder %v7897_v55, 0  ;;  %v14220_v32 = vmul.u32 %v4824_v4, %v13981_v58 }
 0x555   : > { %v4658_v12 = vadd.s32 %v16243_v10, %v14057_v51  ;;  %16244 = vst [vmem:[#allocation24_spill] sm:$0xff] %v14203_v33  ;;  %v14214_v51 = vmul.u32 %v4802_v47, %v13981_v58  ;;  %v14217_v10 = vmul.u32 %v4824_v4, %v13976_v9  ;;  %v4956_v5 = vand.u32 65535, %v14162_v62 }
 0x556   : > { %16242 = vst [vmem:[#allocation41_spill] sm:$0xff] %v14188_v57  ;;  %v16248_v25 = vshll.u32 %v14144_v52, 16  ;;  %v14229_v27 = vshrl.u32 %v14148_v21, 16  ;;  %v14232_v14 = vmul.u32 %v4957_v54, %v14192_v13  ;;  %v4979_v47 = vshrl.u32 %v14201_v37, 16 }
 0x557   : > { %16245 = vst [vmem:[#allocation42_spill] sm:$0xff] %v14214_v51  ;;  %v14237_v4 = vshrl.u32 %v5072_v23, 5  ;;  %v14240_v62 = vand.u32 65535, %v14203_v33  ;;  %v4394_v8 = vsel %vm7898_vm12, 0, %v7897_v55  ;;  %v5077_v49 = vshll.u32 %v16198_v15, %v5074_v39 }
 0x558   : > { %16246 = vst [vmem:[#allocation45_spill] sm:$0xff] %v14217_v10  ;;  %v14226_v24 = vadd.s32 %v16248_v25, %v14188_v57  ;;  %v4978_v25 = vand.u32 65535, %v14201_v37  ;;  %v5078_v36 = vshrl.u32 %v16195_v60, %v14211_v19  ;;  %v5080_v51 = vshll.u32 %v16195_v60, %v5074_v39 }
 0x559   : > { %16247 = vst [vmem:[#allocation43_spill] sm:$0xff] %v14220_v32  ;;  %v4958_v32 = vmul.u32 %v4956_v5, %v14192_v13  ;;  %v5081_v23 = vshrl.u32 %v16196_v34, %v14211_v19  ;;  %v5083_v26 = vshll.u32 %v16196_v34, %v5074_v39  ;;  %v4962_v55 = vshll.u32 %v14232_v14, 16 }
 0x55a   : > { %16249 = vst [vmem:[#allocation23_spill] sm:$0xff] %v14226_v24  ;;  %v4961_v24 = vmul.u32 %v4957_v54, %v14229_v27  ;;  %v14254_v37 = vmul.u32 %v4979_v47, %v14192_v13  ;;  %v14257_v10 = vmul.u32 %v4979_v47, %v14229_v27  ;;  %v4399_v43 = vsub.s32 4294967266, %v4394_v8 }
 0x55b   : > { %16250 = vst [vmem:[#allocation39_spill] sm:$0xff] %v14237_v4  ;;  %v5084_v9 = vshrl.u32 %v16197_v30, %v14211_v19  ;;  %v5086_v1 = vshll.u32 %v16197_v30, %v5074_v39  ;;  %v5087_v54 = vshrl.u32 %v16193_v7, %v14211_v19  ;;  %v16252_v58 = vand.u32 65535, %v14007_v28 }
 0x55c   : > { %16251 = vst [vmem:[#allocation37_spill] sm:$0xff] %v14240_v62  ;;  %v14267_v52 = vor.u32 %v5078_v36, %v5077_v49  ;;  %v4379_v6 = vadd.s32 %v14041_v3, %v14052_v45  ;;  %v4395_v47 = vsub.s32 32, %v4394_v8  ;;  %v4657_v40 = vsel %vm14171_vm10, 1, %v16225_v44 }
 0x55d   : > { %v4650_v57 = vmul.u32 %v16252_v58, %v13972_v22  ;;  %v14274_v41 = vor.u32 %v5081_v23, %v5080_v51  ;;  %v14277_v2 = vshll.u32 %v16193_v7, %v5074_v39  ;;  %v16255_v28 = vand.u32 65535, %v13998_v59 }
 0x55e   : > { %16253 = vst [vmem:[#allocation33_spill] sm:$0xff] %v14267_v52  ;;  %vm14282_vm2 = vc.u32 %v4958_v32, %v4962_v55  ;;  %v4400_v3 = vadd.s32 127, %v4399_v43  ;;  %v4659_v45 = vadd.s32 %v4657_v40, %v14065_v31  ;;  %v4968_v51 = vadd.s32 %v4962_v55, %v4958_v32 }
 0x55f   : > { %16254 = vst [vmem:[#allocation47_spill] sm:$0xff] %v14274_v41  ;;  %v4654_v56 = vshll.u32 %v4650_v57, 16  ;;  %v4670_v58 = vmul.u32 %v16255_v28, %v13969_v11  ;;  %v16258_v48 = vmov %v16255_v28  ;;  %v4653_v39 = vshrl.u32 %v14048_v42, 16 }
 0x560   : > { %v4672_v49 = vmul.u32 %v16258_v48, %v13972_v22  ;;  %v4674_v23 = vshll.u32 %v14153_v46, 16  ;;  %v4396_v61 = vshll.u32 %v14121_v50, %v4394_v8  ;;  %v4397_v11 = vshrl.u32 %v4379_v6, %v4395_v47 }
 0x561   : > { %vm4660_vm9 = vc.u32 %v4658_v12, %v4654_v56  ;;  %v4960_v40 = vmul.u32 %v4956_v5, %v14229_v27  ;;  %v4401_v31 = vshll.u32 %v4400_v3, 23  ;;  %v4655_v59 = vshrl.u32 %v4650_v57, 16 }
 0x562   : > { %v4661_v28 = vsel %vm4660_vm9, 1, %v16225_v44  ;;  %v4676_v62 = vshll.u32 %v4672_v49, 16  ;;  %vm4678_vm6 = vc.u32 %v4670_v58, %v4674_v23  ;;  %v4680_v43 = vadd.s32 %v4674_v23, %v4670_v58 }
 0x563   : > { %v4663_v33 = vadd.s32 %v4661_v28, %v4659_v45  ;;  %v4679_v22 = vsel %vm4678_vm6, 1, %v16225_v44  ;;  %v4967_v56 = vsel %vm14282_vm2, 1, %v16225_v44  ;;  %v4675_v50 = vshrl.u32 %v14153_v46, 16 }
 0x564   : > { %v4681_v6 = vadd.s32 %v4679_v22, %v14158_v35  ;;  %vm4682_vm14 = vc.u32 %v4680_v43, %v4676_v62  ;;  %v14303_v12 = vshrl.u32 %v16194_v16, %v14211_v19  ;;  %v4398_v8 = vor.u32 %v4397_v11, %v4396_v61 }
 0x565   : > { %v4664_v42 = vadd.s32 %v4663_v33, %v4653_v39  ;;  %v4683_v32 = vsel %vm4682_vm14, 1, %v16225_v44  ;;  %v4964_v57 = vshll.u32 %v4960_v40, 16  ;;  %v4677_v5 = vshrl.u32 %v4672_v49, 16 }
 0x566   : > { %v4685_v55 = vadd.s32 %v4683_v32, %v4681_v6  ;;  %v4969_v47 = vadd.s32 %v4967_v56, %v4961_v24  ;;  %v4980_v58 = vmul.u32 %v4978_v25, %v14192_v13  ;;  %v14309_v33 = vadd.s32 %v4680_v43, %v4676_v62 }
 0x567   : > { %v14307_v36 = vadd.s32 %v4664_v42, %v4655_v59  ;;  %vm4970_vm11 = vc.u32 %v4968_v51, %v4964_v57  ;;  %v4982_v46 = vmul.u32 %v4978_v25, %v14229_v27  ;;  %v14312_v35 = vor.u32 %v5084_v9, %v5083_v26 }
 0x568   : > { %v14314_v3 = vor.u32 %v5087_v54, %v5086_v1  ;;  %v4402_v61 = vor.u32 4788187, %v4401_v31  ;;  %v4686_v45 = vadd.s32 %v4685_v55, %v4675_v50  ;;  %vm5095_vm15 = vcmp.lt.s32.totalorder %v14237_v4, 4 }
 0x569   : > { %16259 = vst [vmem:[#allocation48_spill] sm:$0xff] %v14312_v35  ;;  %v4963_v48 = vshrl.u32 %v14232_v14, 16  ;;  %v4971_v24 = vsel %vm4970_vm11, 1, %v16225_v44  ;;  %v4984_v13 = vshll.u32 %v14254_v37, 16  ;;  %v4986_v39 = vshll.u32 %v4982_v46, 16 }
 0x56a   : > { %v4687_v49 = vadd.s32 %v4686_v45, %v4677_v5  ;;  %v4973_v62 = vadd.s32 %v4971_v24, %v4969_v47  ;;  %v15645_v51 = vand.u32 2147483647, %v13693_v38  ;;  %v4405_v27 = vcvt.s32.f32 %v4398_v8 }
 0x56b   : > { %vm4690_vm4 = vc.u32 %v14307_v36, %v14309_v33  ;;  %vm4988_vm13 = vc.u32 %v4980_v58, %v4984_v13  ;;  %v5235_v9 = vshll.u32 %v16195_v60, %v13744_v0  ;;  %v4403_v1 = vand.u32 2147483647, %v4402_v61 }
 0x56c   : > { %v4691_v26 = vadd.s32 1, %v4687_v49  ;;  %v4989_v14 = vsel %vm4988_vm13, 1, %v16225_v44  ;;  %v4990_v25 = vadd.s32 %v4984_v13, %v4980_v58  ;;  %v4965_v54 = vshrl.u32 %v4960_v40, 16  ;;  %v14366_v13 = vpop.f32.mrf.mxu0 }
 0x56d   : > { %v4974_v23 = vadd.s32 %v4973_v62, %v4963_v48  ;;  %v4991_v11 = vadd.s32 %v4989_v14, %v14257_v10  ;;  %v5236_v28 = vshrl.u32 %v16196_v34, %v13765_v17  ;;  %vm4287_vm7 = vcmp.lt.s32.totalorder %v13674_v18, 0 }
 0x56e   : > { %v4692_v43 = vsel %vm4690_vm4, %v4691_v26, %v4687_v49  ;;  %v4985_v31 = vshrl.u32 %v14254_v37, 16  ;;  %vm4992_vm1 = vc.u32 %v4990_v25, %v4986_v39  ;;  %v5238_v59 = vshll.u32 %v16196_v34, %v13744_v0 }
 0x56f   : > { %vm5092_vm3 = vcmp.lt.s32.totalorder %v14237_v4, 1  ;;  %v16260_v40 = vmul.u32 %v13947_v53, %v13984_v20  ;;  %v4993_v10 = vsel %vm4992_vm1, 1, %v16225_v44  ;;  %v5239_v56 = vshrl.u32 %v16197_v30, %v13765_v17 }
 0x570   : > { %v5244_v42 = vshll.u32 %v16193_v7, %v13744_v0  ;;  %v4406_v50 = vmul.f32 %v4405_v27, %v4403_v1  ;;  %v4987_v37 = vshrl.u32 %v4982_v46, 16  ;;  %v4995_v6 = vadd.s32 %v4993_v10, %v4991_v11 }
 0x571   : > { %v4693_v22 = vadd.s32 %v4692_v43, %v16260_v40  ;;  %v5245_v8 = vshrl.u32 %v16194_v16, %v13765_v17  ;;  %v5091_v32 = vor.u32 %v14303_v12, %v14277_v2  ;;  %v14346_v53 = vadd.s32 %v4974_v23, %v4965_v54  ;;  %v16271_v16 = vld [vmem:[#allocation13_spill] sm:$0xff] }
 0x572   : > { %v14348_v20 = vadd.s32 %v4990_v25, %v4986_v39  ;;  %vm5094_vm5 = vcmp.lt.s32.totalorder %v14237_v4, 3  ;;  %v5101_v5 = vsel %vm5095_vm15, %v14314_v3, 920167782  ;;  %v4996_v55 = vadd.s32 %v4995_v6, %v4985_v31 }
 0x573   : > { %v4694_v57 = vadd.s32 536870912, %v4693_v22  ;;  %v5222_v47 = vand.u32 8388607, %v15645_v51  ;;  %v14358_v46 = vor.u32 %v5236_v28, %v5235_v9  ;;  %v5241_v2 = vshll.u32 %v16197_v30, %v13744_v0 }
 0x574   : > { %v5242_v12 = vshrl.u32 %v16193_v7, %v13765_v17  ;;  %v4407_v61 = vxor.u32 2147483648, %v4406_v50  ;;  %v4997_v45 = vadd.s32 %v4996_v55, %v4987_v37  ;;  %v14364_v48 = vor.u32 %v5239_v56, %v5238_v59  ;;  %v14412_v56 = vpop.f32.mrf.mxu1 }
 0x575   : > { %v14356_v58 = vshrl.u32 %v4694_v57, 30  ;;  %v5246_v24 = vor.u32 %v5245_v8, %v5244_v42  ;;  %vm5000_vm8 = vc.u32 %v14346_v53, %v14348_v20  ;;  %vm5247_vm0 = vcmp.lt.s32.totalorder %v13762_v63, 1  ;;  %v16265_v57 = vld [vmem:[#allocation24_spill] sm:$0xff] }
 0x576   : > { %vm5250_vm10 = vcmp.lt.s32.totalorder %v13762_v63, 4  ;;  %v16261_v62 = vand.u32 2147483647, %v13674_v18  ;;  %v5001_v27 = vadd.s32 1, %v4997_v45  ;;  %v5223_v9 = vor.u32 8388608, %v5222_v47 }
 0x577   : > { %v4696_v49 = vshll.u32 %v14356_v58, 30  ;;  %v5232_v1 = vshll.u32 %v16198_v15, %v13744_v0  ;;  %v5233_v14 = vshrl.u32 %v16195_v60, %v13765_v17  ;;  %v5243_v25 = vor.u32 %v5242_v12, %v5241_v2 }
 0x578   : > { %vm14375_vm12 = vcmp.le.f32.partialorder %v16261_v62, 0.7853982  ;;  %vm5249_vm2 = vcmp.lt.s32.totalorder %v13762_v63, 3  ;;  %v5002_v54 = vsel %vm5000_vm8, %v5001_v27, %v4997_v45  ;;  %vm5248_vm9 = vcmp.lt.s32.totalorder %v13762_v63, 2  ;;  %v14454_v62 = vpop.f32.mrf.mxu0 }
 0x579   : > { %v14381_v26 = vsub.s32 %v4693_v22, %v4696_v49  ;;  %v5259_v23 = vsel %vm5247_vm0, %v14358_v46, %v14364_v48  ;;  %v5260_v11 = vsel %vm5250_vm10, %v5246_v24, 1326507024  ;;  %v4408_v0 = vsel %vm4287_vm7, %v4407_v61, %v4406_v50 }
 0x57a   : > { %v16264_v43 = vmul.u32 %v14148_v21, %v14209_v29  ;;  %vm5093_vm14 = vcmp.lt.s32.totalorder %v14237_v4, 2  ;;  %v5100_v59 = vsel %vm5092_vm3, %v14267_v52, %v14274_v41  ;;  %v5261_v40 = vsel %vm5249_vm2, %v5243_v25, %v5260_v11 }
 0x57b   : > { %vm4698_vm6 = vcmp.lt.s32.totalorder %v14381_v26, 0  ;;  %v4699_v28 = vsub.s32 0, %v14381_v26  ;;  %v14407_v22 = vshll.u32 %v5223_v9, 8  ;;  %v5102_v10 = vsel %vm5094_vm5, %v14312_v35, %v5101_v5 }
 0x57c   : > { %v5003_v31 = vadd.s32 %v5002_v54, %v16264_v43  ;;  %v14417_v42 = vsel %vm5248_vm9, %v5259_v23, %v5261_v40  ;;  %v5105_v50 = vsel %vm5095_vm15, %v5091_v32, 1326507024  ;;  %v14424_v37 = vsel %vm14375_vm12, %v13674_v18, %v4408_v0 }
 0x57d   : > { %v4700_v21 = vsel %vm4698_vm6, %v4699_v28, %v14381_v26  ;;  %v14427_v8 = vand.u32 65535, %v14407_v22  ;;  %v14430_v5 = vshrl.u32 %v16265_v57, 16  ;;  %v14434_v47 = vor.u32 %v5233_v14, %v5232_v1 }
 0x57e   : > { %v5004_v29 = vadd.s32 536870912, %v5003_v31  ;;  %v4701_v6 = vclz %v4700_v21  ;;  %v5267_v2 = vshrl.u32 %v14417_v42, 16  ;;  %v14439_v32 = vshrl.u32 %v16198_v15, %v14211_v19 }
 0x57f   : > { %v5104_v12 = vsel %vm5092_vm3, %v14274_v41, %v14312_v35  ;;  %v5256_v45 = vsel %vm5250_vm10, %v5243_v25, 920167782  ;;  %v14449_v24 = vsel %vm5093_vm14, %v5100_v59, %v5102_v10  ;;  %v5106_v49 = vsel %vm5094_vm5, %v14314_v3, %v5105_v50  ;;  %v14484_v59 = vpop.f32.mrf.mxu2 }
 0x580   : > { %v14432_v55 = vshrl.u32 %v5004_v29, 30  ;;  %16266 = vst [vmem:[#allocation49_spill] sm:$0xff] %v14439_v32  ;;  %v7903_v61 = vadd.s32 4294967294, %v4701_v6  ;;  %v14458_v19 = vmul.f32 %v14424_v37, %v14424_v37  ;;  %v14462_v9 = vshrl.u32 %v14407_v22, 16  ;;  %v14498_v6 = vpop.f32.mrf.mxu1  ;;  %v14525_v32 = vpop.permute.xlu0 %6724 }
 0x581   : > { %16267 = vst [vmem:[#allocation50_spill] sm:$0xff] %v14449_v24  ;;  %v5266_v1 = vand.u32 65535, %v14417_v42  ;;  %v14466_v14 = vmul.u32 %v5267_v2, %v14427_v8  ;;  %v5255_v3 = vsel %vm5247_vm0, %v14434_v47, %v14358_v46  ;;  %v5257_v23 = vsel %vm5249_vm2, %v14364_v48, %v5256_v45 }
 0x582   : > { %v5006_v27 = vshll.u32 %v14432_v55, 30  ;;  %vm7904_vm11 = vcmp.lt.s32.totalorder %v7903_v61, 0  ;;  %v14479_v11 = vsel %vm5093_vm14, %v5104_v12, %v5106_v49  ;;  %v5134_v28 = vshrl.u32 %v14449_v24, 16  ;;  %v14500_v12 = vpop.f32.mrf.mxu3  ;;  %16273 = vst [vmem:[#allocation52_spill] sm:$0xff] %v14525_v32 }
 0x583   : > { %v4704_v25 = vsel %vm7904_vm11, 0, %v7903_v61  ;;  %v4421_v40 = vmul.f32 -0.00019511016, %v14458_v19  ;;  %v14491_v21 = vsel %vm5248_vm9, %v5255_v3, %v5257_v23  ;;  %v5268_v29 = vmul.u32 %v5266_v1, %v14427_v8  ;;  %v16268_v23 = vld [vmem:[#allocation37_spill] sm:$0xff]  ;;  %v14516_v3 = vpop.f32.mrf.mxu0 }
 0x584   : > { %v14468_v54 = vsub.s32 %v5003_v31, %v5006_v27  ;;  %v4709_v43 = vsub.s32 4294967266, %v4704_v25  ;;  %v14495_v42 = vmul.u32 %v5266_v1, %v14462_v9  ;;  %v5272_v50 = vshll.u32 %v14466_v14, 16 }
 0x585   : > { %v4689_v61 = vadd.s32 %v14309_v33, %v14307_v36  ;;  %v4705_v45 = vsub.s32 32, %v4704_v25  ;;  %v14507_v0 = vmul.u32 %v5134_v28, %v16268_v23  ;;  %v4414_v1 = vmul.f32 -0.001358992, %v14458_v19 }
 0x586   : > { %vm5008_vm4 = vcmp.lt.s32.totalorder %v14468_v54, 0  ;;  %v5009_v10 = vsub.s32 0, %v14468_v54  ;;  %v4710_v49 = vadd.s32 127, %v4709_v43  ;;  %v14511_v31 = vmul.u32 %v5134_v28, %v14430_v5  ;;  %v14520_v28 = vpop.permute.xlu2 %6739 }
 0x587   : > { %16269 = vst [vmem:[#allocation37_spill] sm:$0xff] %v14507_v0  ;;  %v4409_v7 = vsub.s32 4, %v16271_v16  ;;  %v4422_v30 = vadd.f32 0.008332121, %v4421_v40  ;;  %v5289_v36 = vshrl.u32 %v14491_v21, 16  ;;  %v5274_v43 = vshll.u32 %v14495_v42, 16 }
 0x588   : > { %v5010_v27 = vsel %vm5008_vm4, %v5009_v10, %v14468_v54  ;;  %16270 = vst [vmem:[#allocation51_spill] sm:$0xff] %v14511_v31  ;;  %vm5276_vm13 = vc.u32 %v5268_v29, %v5272_v50  ;;  %v5278_v10 = vadd.s32 %v5272_v50, %v5268_v29  ;;  %v4706_v34 = vshll.u32 %v14381_v26, %v4704_v25  ;;  %v16276_v0 = vld [vmem:[#allocation27_spill] sm:$0xff] }
 0x589   : > { %v5011_v51 = vclz %v5010_v27  ;;  %v4707_v60 = vshrl.u32 %v4689_v61, %v4705_v45  ;;  %v4711_v57 = vshll.u32 %v4710_v49, 23  ;;  %v5288_v27 = vand.u32 65535, %v14491_v21  ;;  %16272 = vst [vmem:[#allocation13_spill] sm:$0xff] %v14520_v28 }
 0x58a   : > { %v4415_v41 = vadd.f32 0.041655596, %v4414_v1  ;;  %v4999_v40 = vadd.s32 %v14348_v20, %v14346_v53  ;;  %v4423_v29 = vmul.f32 %v4422_v30, %v14458_v19  ;;  %v5277_v26 = vsel %vm5276_vm13, 1, %v16225_v44 }
 0x58b   : > { %v7909_v33 = vadd.s32 4294967294, %v5011_v51  ;;  %v5271_v51 = vmul.u32 %v5267_v2, %v14462_v9  ;;  %v14530_v25 = vmul.u32 %v5289_v36, %v14427_v8  ;;  %vm5280_vm8 = vc.u32 %v5278_v10, %v5274_v43  ;;  %v14538_v2 = vpop.f32.mrf.mxu2  ;;  %v14547_v43 = vpop.f32.mrf.mxu3 }
 0x58c   : > { %v16274_v53 = vand.u32 65535, %v14479_v11  ;;  %v4708_v49 = vor.u32 %v4707_v60, %v4706_v34  ;;  %v4712_v30 = vor.u32 4788187, %v4711_v57  ;;  %v14541_v1 = vmul.u32 %v5288_v27, %v14462_v9  ;;  %v6800_v24 = vpop.f32.mrf.mxu0 }
 0x58d   : > { %vm7910_vm1 = vcmp.lt.s32.totalorder %v7909_v33, 0  ;;  %v4416_v10 = vmul.f32 %v4415_v41, %v14458_v19  ;;  %v5290_v60 = vmul.u32 %v5288_v27, %v14427_v8  ;;  %v5294_v34 = vshll.u32 %v14530_v25, 16  ;;  %v16275_v41 = vld [vmem:[#allocation46_spill] sm:$0xff] }
 0x58e   : > { %v5014_v50 = vsel %vm7910_vm1, 0, %v7909_v33  ;;  %v14536_v20 = vmul.u32 %v16274_v53, %v16268_v23  ;;  %v6777_v33 = vadd.f32 %v14366_v13, %v14525_v32  ;;  %v5281_v53 = vsel %vm5280_vm8, 1, %v16225_v44 }
 0x58f   : > { %v5015_v21 = vsub.s32 32, %v5014_v50  ;;  %v5016_v61 = vshll.u32 %v14468_v54, %v5014_v50  ;;  %v5019_v45 = vsub.s32 4294967266, %v5014_v50  ;;  %v5279_v54 = vadd.s32 %v5277_v26, %v5271_v51  ;;  %v14545_v50 = vpop.f32.mrf.mxu1 }
 0x590   : > { %v4410_v57 = vsel %vm4287_vm7, %v4409_v7, %v16271_v16  ;;  %v4424_v13 = vadd.f32 -0.16666654, %v4423_v29  ;;  %v4713_v51 = vand.u32 2147483647, %v4712_v30  ;;  %v4715_v26 = vcvt.s32.f32 %v4708_v49 }
 0x591   : > { %v5017_v52 = vshrl.u32 %v4999_v40, %v5015_v21  ;;  %v5020_v31 = vadd.s32 127, %v5019_v45  ;;  %v5273_v45 = vshrl.u32 %v14466_v14, 16  ;;  %v5296_v32 = vshll.u32 %v14541_v1, 16 }
 0x592   : > { %vm4597_vm6 = vcmp.lt.s32.totalorder %v16275_v41, 0  ;;  %v5283_v8 = vadd.s32 %v5281_v53, %v5279_v54  ;;  %v5293_v27 = vmul.u32 %v5289_v36, %v14462_v9  ;;  %vm4907_vm11 = vcmp.lt.s32.totalorder %v16276_v0, 0 }
 0x593   : > { %v5018_v40 = vor.u32 %v5017_v52, %v5016_v61  ;;  %v5021_v21 = vshll.u32 %v5020_v31, 23  ;;  %v4412_v7 = vsel %vm14375_vm12, 0, %v4410_v57  ;;  %v4417_v16 = vadd.f32 -0.4999988, %v4416_v10  ;;  %v14563_v31 = vpop.permute.xlu2 %6729 }
 0x594   : > { %vm5298_vm7 = vc.u32 %v5290_v60, %v5294_v34  ;;  %v5300_v52 = vadd.s32 %v5294_v34, %v5290_v60  ;;  %16277 = vst [vmem:[#allocation46_spill] sm:$0xff] %v14563_v31  ;;  %v4425_v14 = vmul.f32 %v4424_v13, %v14458_v19  ;;  %v5231_v61 = vshrl.u32 %v16198_v15, %v13765_v17  ;;  %v14575_v60 = vpop.f32.mrf.mxu2 }
 0x595   : > { %v5022_v4 = vor.u32 4788187, %v5021_v21  ;;  %v5025_v35 = vcvt.s32.f32 %v5018_v40  ;;  %v5252_v9 = vsel %vm5250_vm10, %v14364_v48, 2102212464  ;;  %v4716_v36 = vmul.f32 %v4715_v26, %v4713_v51  ;;  %v14583_v21 = vpop.f32.mrf.mxu3 }
 0x596   : > { %v5275_v49 = vshrl.u32 %v14495_v42, 16  ;;  %v5299_v39 = vsel %vm5298_vm7, 1, %v16225_v44  ;;  %vm5302_vm12 = vc.u32 %v5300_v52, %v5296_v32  ;;  %v5284_v54 = vadd.s32 %v5283_v8, %v5273_v45 }
 0x597   : > { %v5023_v29 = vand.u32 2147483647, %v5022_v4  ;;  %v5295_v10 = vshrl.u32 %v14530_v25, 16  ;;  %v5301_v53 = vadd.s32 %v5299_v39, %v5293_v27  ;;  %v6842_v4 = vadd.f32 %v14412_v56, %v6777_v33  ;;  %v6853_v25 = vpop.f32.mrf.mxu1 }
 0x598   : > { %v6785_v17 = vadd.f32 %v14454_v62, %v14563_v31  ;;  %v4418_v48 = vmul.f32 %v4417_v16, %v14458_v19  ;;  %v5303_v34 = vsel %vm5302_vm12, 1, %v16225_v44  ;;  %v4426_v42 = vadd.f32 1.0, %v4425_v14  ;;  %v8058_v14 = vld [vmem:[#allocation5 + $0xe0] sm:$0xf] }
 0x599   : > { %v5026_v30 = vmul.f32 %v5025_v35, %v5023_v29  ;;  %v4429_v57 = vadd.s32 3, %v4412_v7  ;;  %v5297_v13 = vshrl.u32 %v14541_v1, 16  ;;  %v5305_v35 = vadd.s32 %v5303_v34, %v5301_v53 }
 0x59a   : > { %v6801_v40 = vadd.f32 %v6800_v24, %v14520_v28  ;;  %v4717_v56 = vxor.u32 2147483648, %v4716_v36  ;;  %v5251_v33 = vsel %vm5247_vm0, %v5231_v61, %v14434_v47  ;;  %v5253_v62 = vsel %vm5249_vm2, %v14358_v46, %v5252_v9  ;;  %v6976_v9 = vpop.f32.mrf.mxu0  ;;  %v16317_v28 = vld [vmem:[#allocation38_spill] sm:$0xff] }
 0x59b   : > { %v5027_v19 = vxor.u32 2147483648, %v5026_v30  ;;  %v14591_v51 = vadd.s32 %v5284_v54, %v5275_v49  ;;  %v14593_v26 = vadd.s32 %v5300_v52, %v5296_v32  ;;  %v5306_v1 = vadd.s32 %v5305_v35, %v5295_v10 }
 0x59c   : > { %v16278_v24 = vshrl.u32 %v14479_v11, 16  ;;  %v6884_v47 = vadd.f32 %v14484_v59, %v6842_v4  ;;  %v4419_v7 = vadd.f32 1.0, %v4418_v48  ;;  %v4427_v46 = vmul.f32 %v4426_v42, %v14424_v37  ;;  %v16287_v42 = vld [vmem:[#allocation20_spill] sm:$0xff] }
 0x59d   : > { %v4430_v16 = vand.u32 3, %v4429_v57  ;;  %v5254_v32 = vsel %vm5248_vm9, %v5251_v33, %v5253_v62  ;;  %v5307_v52 = vadd.s32 %v5306_v1, %v5297_v13  ;;  %vm16280_vm0 = vcmask 261120   ;;  %v16289_v57 = vld [vmem:[#allocation31_spill] sm:$0xff]  ;;  %v14651_v33 = vpop.permute.xlu1 %6734 }
 0x59e   : > { %v14598_v45 = vmul.u32 %v16278_v24, %v16268_v23  ;;  %v16279_v8 = vmov %v16278_v24  ;;  %v7320_v29 = vsel %vm16280_vm0, %v8058_v14, 0  ;;  %v6846_v61 = vadd.f32 %v14498_v6, %v6785_v17  ;;  %16293 = vst [vmem:[#allocation20_spill] sm:$0xff] %v14651_v33  ;;  %v6943_v24 = vpop.f32.mrf.mxu3 }
 0x59f   : > { %v14603_v27 = vmul.u32 %v16279_v8, %v14430_v5  ;;  %v16281_v49 = vand.u32 2147483647, %v16275_v41  ;;  %v4718_v37 = vsel %vm4597_vm6, %v4717_v56, %v4716_v36  ;;  %v6854_v59 = vadd.f32 %v6853_v25, %v6801_v40  ;;  %v7013_v1 = vpop.f32.mrf.mxu1 }
 0x5a0   : > { %v16284_v63 = vand.u32 2147483647, %v16276_v0  ;;  %v5028_v6 = vsel %vm4907_vm11, %v5027_v19, %v5026_v30  ;;  %vm5310_vm9 = vc.u32 %v14591_v51, %v14593_v26  ;;  %v15660_v10 = vshll.u32 %v14598_v45, 16 }
 0x5a1   : > { %vm14613_vm10 = vcmp.le.f32.partialorder %v16281_v49, 0.7853982  ;;  %v4436_v53 = vxor.u32 2147483648, %v4419_v7  ;;  %v5308_v4 = vmul.u32 %v14407_v22, %v5254_v32  ;;  %v5311_v17 = vadd.s32 1, %v5307_v52  ;;  %v6898_v22 = vpop.f32.mrf.mxu2  ;;  %v16294_v49 = vld [vmem:[#allocation17_spill] sm:$0xff] }
 0x5a2   : > { %vm14621_vm2 = vcmp.le.f32.partialorder %v16284_v63, 0.7853982  ;;  %v6926_v36 = vadd.f32 %v14500_v12, %v6884_v47  ;;  %v4433_v48 = vxor.u32 2147483648, %v4427_v46  ;;  %vm4435_vm4 = vcmp.eq.s32.totalorder %v4430_v16, 2 }
 0x5a3   : > { %v14635_v34 = vsel %vm14613_vm10, %v16275_v41, %v4718_v37  ;;  %v16288_v30 = vshll.u32 %v16287_v42, 16  ;;  %v14644_v35 = vand.u32 4294901760, %v7320_v29  ;;  %vm4432_vm1 = vcmp.eq.s32.totalorder %v4430_v16, 0  ;;  %v16295_v37 = vld [vmem:[#allocation35_spill] sm:$0xff] }
 0x5a4   : > { %v14649_v12 = vsel %vm14621_vm2, %v16276_v0, %v5028_v6  ;;  %v5312_v40 = vsel %vm5310_vm9, %v5311_v17, %v5307_v52  ;;  %v6977_v25 = vadd.f32 %v6976_v9, %v6926_v36  ;;  %v6899_v56 = vadd.f32 %v6898_v22, %v6854_v59  ;;  %v6980_v36 = vpop.f32.mrf.mxu0 }
 0x5a5   : > { %vm14640_vm13 = vc.u32 %v16289_v57, %v16288_v30  ;;  %16292 = vst [vmem:[#allocation27_spill] sm:$0xff] %v14644_v35  ;;  %vm4431_vm8 = vcmp.lt.s32.totalorder %v4430_v16, 2  ;;  %v6889_v62 = vadd.f32 %v14538_v2, %v6846_v61  ;;  %v4437_v19 = vsel %vm4435_vm4, %v4436_v53, %v4427_v46  ;;  %v16298_v16 = vld [vmem:[#allocation25_spill] sm:$0xff] }
 0x5a6   : > { %v4719_v8 = vsub.s32 4, %v14356_v58  ;;  %v14657_v47 = vmul.f32 %v14635_v34, %v14635_v34  ;;  %v5313_v32 = vadd.s32 %v5312_v40, %v5308_v4  ;;  %v4434_v14 = vsel %vm4432_vm1, %v4419_v7, %v4433_v48 }
 0x5a7   : > { %v5029_v52 = vsub.s32 4, %v14432_v55  ;;  %v14662_v9 = vmul.f32 %v14649_v12, %v14649_v12  ;;  %v16296_v2 = vand.u32 65535, %v16295_v37  ;;  %v14672_v61 = vadd.s32 %v15660_v10, %v14536_v20 }
 0x5a8   : > { %v14675_v59 = vsub.f32 %v7320_v29, %v14644_v35  ;;  %v6793_v7 = vadd.f32 %v14516_v3, %v14651_v33  ;;  %v5314_v63 = vadd.s32 536870912, %v5313_v32  ;;  %vm4428_vm7 = vweird.f32 %v13674_v18  ;;  %v16308_v18 = vld [vmem:[#allocation19_spill] sm:$0xff]  ;;  %v16321_v35 = vld [vmem:[#allocation42_spill] sm:$0xff] }
 0x5a9   : > { %v14667_v46 = vmul.u32 %v16296_v2, %v16294_v49  ;;  %v14680_v6 = vadd.f32 %v7013_v1, %v6977_v25  ;;  %v6932_v53 = vadd.f32 %v14547_v43, %v6889_v62  ;;  %v14683_v4 = vadd.f32 %v6943_v24, %v6899_v56  ;;  %v16300_v56 = vld [vmem:[#allocation22_spill] sm:$0xff]  ;;  %v16302_v1 = vld [vmem:[#allocation28_spill] sm:$0xff] }
 0x5aa   : > { %16297 = vst [vmem:[#allocation31_spill] sm:$0xff] %v14675_v59  ;;  %v4438_v17 = vsel %vm4431_vm8, %v4434_v14, %v4437_v19  ;;  %v4720_v29 = vsel %vm4597_vm6, %v4719_v8, %v14356_v58  ;;  %v4731_v48 = vmul.f32 -0.00019511016, %v14657_v47  ;;  %v14690_v30 = vshrl.u32 %v5314_v63, 30 }
 0x5ab   : > { %v5030_v3 = vsel %vm4907_vm11, %v5029_v52, %v14432_v55  ;;  %v5041_v57 = vmul.f32 -0.00019511016, %v14662_v9  ;;  %v4499_v43 = vshll.u32 %v14667_v46, 16  ;;  %v16299_v22 = vand.u32 65535, %v16298_v16 }
 0x5ac   : > { %v14703_v25 = vadd.f32 %v14545_v50, %v6793_v7  ;;  %v5316_v58 = vshll.u32 %v14690_v30, 30  ;;  %v4519_v55 = vshll.u32 %v16302_v1, 16  ;;  %v14710_v24 = vadd.f32 %v6980_v36, %v6932_v53  ;;  %v16303_v7 = vld [vmem:[#allocation16_spill] sm:$0xff]  ;;  %v16305_v53 = vld [vmem:[#allocation41_spill] sm:$0xff] }
 0x5ad   : > { %v14700_v40 = vmul.u32 %v16299_v22, %v16294_v49  ;;  %v16301_v62 = vmov %v16299_v22  ;;  %v4722_v8 = vsel %vm14613_vm10, 0, %v4720_v29  ;;  %v4724_v14 = vmul.f32 -0.001358992, %v14657_v47 }
 0x5ae   : > { %v4515_v19 = vmul.u32 %v16301_v62, %v16300_v56  ;;  %v5034_v52 = vmul.f32 -0.001358992, %v14662_v9  ;;  %v14718_v50 = vsel %vm4428_vm7, nan, %v4438_v17  ;;  %v4732_v49 = vadd.f32 0.008332121, %v4731_v48  ;;  %v16309_v56 = vld [vmem:[#allocation26_spill] sm:$0xff] }
 0x5af   : > { %v5032_v37 = vsel %vm14621_vm2, 0, %v5030_v3  ;;  %v5317_v2 = vsub.s32 %v5313_v32, %v5316_v58  ;;  %v16304_v63 = vshll.u32 %v16303_v7, 16  ;;  %v5042_v39 = vadd.f32 0.008332121, %v5041_v57 }
 0x5b0   : > { %v4502_v29 = vsel %vm14640_vm13, 1, %v16225_v44  ;;  %vm4505_vm11 = vc.u32 %v16308_v18, %v4499_v43  ;;  %v15663_v17 = vshll.u32 %v14700_v40, 16  ;;  %vm4523_vm0 = vc.u32 %v4515_v19, %v4519_v55  ;;  %v16310_v18 = vld [vmem:[#allocation44_spill] sm:$0xff] }
 0x5b1   : > { %vm14725_vm6 = vc.u32 %v16305_v53, %v16304_v63  ;;  %vm5318_vm12 = vcmp.lt.s32.totalorder %v5317_v2, 0  ;;  %v5319_v54 = vsub.s32 0, %v5317_v2  ;;  %v14734_v32 = vadd.s32 %v4519_v55, %v4515_v19  ;;  %v16311_v19 = vld [vmem:[#allocation29_spill] sm:$0xff] }
 0x5b2   : > { %v4725_v48 = vadd.f32 0.041655596, %v4724_v14  ;;  %v4739_v3 = vadd.s32 3, %v4722_v8  ;;  %v5035_v16 = vadd.f32 0.041655596, %v5034_v52  ;;  %v14736_v22 = vadd.s32 3, %v5032_v37 }
 0x5b3   : > { %v4733_v57 = vmul.f32 %v4732_v49, %v14657_v47  ;;  %v5320_v58 = vsel %vm5318_vm12, %v5319_v54, %v5317_v2  ;;  %v4498_v13 = vshrl.u32 %v16287_v42, 16  ;;  %v4504_v62 = vadd.s32 %v4502_v29, %v16309_v56  ;;  %v16313_v52 = vld [vmem:[#allocation21_spill] sm:$0xff]  ;;  %v16314_v42 = vld [vmem:[#allocation34_spill] sm:$0xff] }
 0x5b4   : > { %v5321_v43 = vclz %v5320_v58  ;;  %v4506_v63 = vsel %vm4505_vm11, 1, %v16225_v44  ;;  %v4524_v53 = vsel %vm4523_vm0, 1, %v16225_v44  ;;  %v16312_v55 = vand.u32 65535, %v16311_v19  ;;  %v16316_v29 = vld [vmem:[#allocation45_spill] sm:$0xff] }
 0x5b5   : > { %v5043_v8 = vmul.f32 %v5042_v39, %v14662_v9  ;;  %vm4527_vm10 = vc.u32 %v14734_v32, %v15663_v17  ;;  %v16315_v49 = vand.u32 65535, %v16314_v42  ;;  %v4829_v54 = vshll.u32 %v16316_v29, 16 }
 0x5b6   : > { %v14746_v14 = vmul.u32 %v16312_v55, %v16310_v18  ;;  %v4726_v58 = vmul.f32 %v4725_v48, %v14657_v47  ;;  %v5036_v56 = vmul.f32 %v5035_v16, %v14662_v9  ;;  %v5309_v19 = vadd.s32 %v14593_v26, %v14591_v51 }
 0x5b7   : > { %v4825_v37 = vmul.u32 %v16315_v49, %v16313_v52  ;;  %v7915_v55 = vadd.s32 4294967294, %v5321_v43  ;;  %v4734_v10 = vadd.f32 -0.16666654, %v4733_v57  ;;  %v4500_v39 = vshrl.u32 %v14667_v46, 16 }
 0x5b8   : > { %v4526_v33 = vadd.s32 %v4524_v53, %v16317_v28  ;;  %v16318_v17 = vmov %v16315_v49  ;;  %v4508_v52 = vadd.s32 %v4506_v63, %v4504_v62  ;;  %v4528_v48 = vsel %vm4527_vm10, 1, %v16225_v44 }
 0x5b9   : > { %v14765_v31 = vmul.u32 %v16318_v17, %v16310_v18  ;;  %vm7916_vm2 = vcmp.lt.s32.totalorder %v7915_v55, 0  ;;  %v4809_v16 = vshll.u32 %v14746_v14, 16  ;;  %v5044_v49 = vadd.f32 -0.16666654, %v5043_v8  ;;  %v16319_v8 = vld [vmem:[#allocation23_spill] sm:$0xff] }
 0x5ba   : > { %v5324_v15 = vsel %vm7916_vm2, 0, %v7915_v55  ;;  %v4520_v51 = vshrl.u32 %v16302_v1, 16  ;;  %vm4833_vm9 = vc.u32 %v4825_v37, %v4829_v54  ;;  %v5037_v26 = vadd.f32 -0.4999988, %v5036_v56 }
 0x5bb   : > { %v5325_v46 = vsub.s32 32, %v5324_v15  ;;  %v5326_v57 = vshll.u32 %v5317_v2, %v5324_v15  ;;  %v5329_v28 = vsub.s32 4294967266, %v5324_v15  ;;  %v4530_v43 = vadd.s32 %v4528_v48, %v4526_v33  ;;  %v16320_v15 = vld [vmem:[#allocation43_spill] sm:$0xff] }
 0x5bc   : > { %v4812_v17 = vsel %vm14725_vm6, 1, %v16225_v44  ;;  %v4834_v63 = vsel %vm4833_vm9, 1, %v16225_v44  ;;  %vm4815_vm4 = vc.u32 %v16319_v8, %v4809_v16  ;;  %v4835_v42 = vadd.s32 %v4829_v54, %v4825_v37 }
 0x5bd   : > { %v5327_v53 = vshrl.u32 %v5309_v19, %v5325_v46  ;;  %v5330_v18 = vadd.s32 127, %v5329_v28  ;;  %v4727_v1 = vadd.f32 -0.4999988, %v4726_v58  ;;  %v4735_v56 = vmul.f32 %v4734_v10, %v14657_v47 }
 0x5be   : > { %v5045_v2 = vmul.f32 %v5044_v49, %v14662_v9  ;;  %v4836_v33 = vadd.s32 %v4834_v63, %v16320_v15  ;;  %v4509_v36 = vadd.s32 %v4508_v52, %v4498_v13  ;;  %v4814_v59 = vadd.s32 %v4812_v17, %v16321_v35  ;;  %v6984_v15 = vpop.f32.mrf.mxu0 }
 0x5bf   : > { %v5328_v55 = vor.u32 %v5327_v53, %v5326_v57  ;;  %v5331_v48 = vshll.u32 %v5330_v18, 23  ;;  %v5038_v62 = vmul.f32 %v5037_v26, %v14662_v9  ;;  %v4522_v19 = vshrl.u32 %v14700_v40, 16 }
 0x5c0   : > { %v4816_v46 = vsel %vm4815_vm4, 1, %v16225_v44  ;;  %v16322_v37 = vshll.u32 %v14765_v31, 16  ;;  %v4531_v58 = vadd.s32 %v4530_v43, %v4520_v51  ;;  %v14786_v49 = vand.u32 3, %v4739_v3  ;;  %v14795_v43 = vpop.f32.mrf.mxu1 }
 0x5c1   : > { %v5332_v54 = vor.u32 4788187, %v5331_v48  ;;  %v5335_v10 = vcvt.s32.f32 %v5328_v55  ;;  %v5046_v57 = vadd.f32 1.0, %v5045_v2  ;;  %v4830_v13 = vshrl.u32 %v16316_v29, 16 }
 0x5c2   : > { %vm4837_vm13 = vc.u32 %v4835_v42, %v16322_v37  ;;  %vm5217_vm1 = vcmp.lt.s32.totalorder %v13693_v38, 0  ;;  %v4808_v52 = vshrl.u32 %v16303_v7, 16  ;;  %v4818_v26 = vadd.s32 %v4816_v46, %v4814_v59 }
 0x5c3   : > { %v4838_v16 = vsel %vm4837_vm13, 1, %v16225_v44  ;;  %v5333_v9 = vand.u32 2147483647, %v5332_v54  ;;  %v4728_v28 = vmul.f32 %v4727_v1, %v14657_v47  ;;  %v4736_v17 = vadd.f32 1.0, %v4735_v56 }
 0x5c4   : > { %v4840_v35 = vadd.s32 %v4838_v16, %v4836_v33  ;;  %v5050_v63 = vand.u32 3, %v14736_v22  ;;  %v14793_v51 = vadd.s32 %v4509_v36, %v4500_v39  ;;  %v5039_v3 = vadd.f32 1.0, %v5038_v62 }
 0x5c5   : > { %v5336_v53 = vmul.f32 %v5335_v10, %v5333_v9  ;;  %v16323_v29 = vshll.u32 %v14700_v40, 16  ;;  %v4532_v8 = vadd.s32 %v4531_v58, %v4522_v19  ;;  %vm4742_vm8 = vcmp.eq.s32.totalorder %v14786_v49, 0 }
 0x5c6   : > { %v5047_v59 = vmul.f32 %v5046_v57, %v14649_v12  ;;  %v5339_v47 = vsub.s32 4, %v14690_v30  ;;  %v4832_v7 = vshrl.u32 %v14765_v31, 16  ;;  %v4841_v22 = vadd.s32 %v4840_v35, %v4830_v13 }
 0x5c7   : > { %v14800_v18 = vadd.s32 %v14734_v32, %v16323_v29  ;;  %v16324_v39 = vand.u32 2147483647, %v13693_v38  ;;  %v5337_v40 = vxor.u32 2147483648, %v5336_v53  ;;  %v4810_v32 = vshrl.u32 %v14746_v14, 16  ;;  %v16331_v29 = vld [vmem:[#allocation11_spill] sm:$0xff] }
 0x5c8   : > { %v4819_v1 = vadd.s32 %v4818_v26, %v4808_v52  ;;  %v4729_v56 = vadd.f32 1.0, %v4728_v28  ;;  %v4737_v2 = vmul.f32 %v4736_v17, %v14635_v34  ;;  %v6894_v12 = vadd.f32 %v14575_v60, %v14703_v25 }
 0x5c9   : > { %vm14808_vm7 = vcmp.le.f32.partialorder %v16324_v39, 0.7853982  ;;  %vm5052_vm6 = vcmp.eq.s32.totalorder %v5050_v63, 0  ;;  %vm4741_vm11 = vcmp.lt.s32.totalorder %v14786_v49, 2  ;;  %v5056_v33 = vxor.u32 2147483648, %v5039_v3 }
 0x5ca   : > { %v5338_v55 = vsel %vm5217_vm1, %v5337_v40, %v5336_v53  ;;  %vm4535_vm12 = vc.u32 %v14793_v51, %v14800_v18  ;;  %v4536_v48 = vadd.s32 1, %v4532_v8  ;;  %v5053_v14 = vxor.u32 2147483648, %v5047_v59 }
 0x5cb   : > { %v5340_v34 = vsel %vm5217_vm1, %v5339_v47, %v14690_v30  ;;  %v5341_v60 = vsel %vm14808_vm7, %v13693_v38, %v5338_v55  ;;  %v4842_v25 = vadd.s32 %v4841_v22, %v4832_v7  ;;  %vm5055_vm0 = vcmp.eq.s32.totalorder %v5050_v63, 2 }
 0x5cc   : > { %v5343_v36 = vmul.f32 %v5341_v60, %v5341_v60  ;;  %v14827_v19 = vadd.s32 %v4819_v1, %v4810_v32  ;;  %v16327_v46 = vmov %v16322_v37  ;;  %v4743_v54 = vxor.u32 2147483648, %v4737_v2 }
 0x5cd   : > { %v14831_v37 = vadd.s32 %v4835_v42, %v16327_v46  ;;  %vm4745_vm10 = vcmp.eq.s32.totalorder %v14786_v49, 2  ;;  %v4746_v10 = vxor.u32 2147483648, %v4729_v56  ;;  %v6938_v58 = vadd.f32 %v14583_v21, %v6894_v12 }
 0x5ce   : > { %v16328_v30 = vshll.u32 %v14598_v45, 16  ;;  %v5342_v57 = vsel %vm14808_vm7, 0, %v5340_v34  ;;  %v5344_v13 = vmul.f32 -0.001358992, %v5343_v36  ;;  %v5351_v31 = vmul.f32 -0.00019511016, %v5343_v36 }
 0x5cf   : > { %v4537_v42 = vsel %vm4535_vm12, %v4536_v48, %v4532_v8  ;;  %vm5051_vm9 = vcmp.lt.s32.totalorder %v5050_v63, 2  ;;  %v5054_v35 = vsel %vm5052_vm6, %v5039_v3, %v5053_v14  ;;  %v5057_v21 = vsel %vm5055_vm0, %v5056_v33, %v5047_v59  ;;  %v16332_v8 = vld [vmem:[#allocation15_spill] sm:$0xff]  ;;  %v16335_v14 = vld [vmem:[#allocation40_spill] sm:$0xff]  ;;  %v16336_v34 = vld [vmem:[#allocation30_spill] sm:$0xff] }
 0x5d0   : > { %vm14838_vm2 = vc.u32 %v14536_v20, %v16328_v30  ;;  %v4846_v9 = vadd.s32 1, %v4842_v25  ;;  %vm5048_vm4 = vweird.f32 %v16276_v0  ;;  %v7021_v20 = vpop.f32.mrf.mxu1  ;;  %v5345_v52 = vadd.f32 0.041655596, %v5344_v13 }
 0x5d1   : > { %v5352_v26 = vadd.f32 0.008332121, %v5351_v31  ;;  %vm4845_vm13 = vc.u32 %v14827_v19, %v14831_v37  ;;  %v4747_v28 = vsel %vm4745_vm10, %v4746_v10, %v4737_v2  ;;  %v6985_v17 = vadd.f32 %v6984_v15, %v6938_v58  ;;  %v16340_v58 = vld [vmem:[#allocation37_spill] sm:$0xff] }
 0x5d2   : > { %v5359_v53 = vadd.s32 3, %v5342_v57  ;;  %v16333_v47 = vmul.u32 %v16331_v29, %v16332_v8  ;;  %v4744_v3 = vsel %vm4742_vm8, %v4729_v56, %v4743_v54  ;;  %v5058_v59 = vsel %vm5051_vm9, %v5054_v35, %v5057_v21  ;;  %v6988_v56 = vpop.f32.mrf.mxu0 }
 0x5d3   : > { %v5346_v7 = vmul.f32 %v5345_v52, %v5343_v36  ;;  %v5353_v22 = vmul.f32 %v5352_v26, %v5343_v36  ;;  %v14862_v39 = vmul.f32 %v14680_v6, %v14718_v50  ;;  %v7022_v62 = vadd.f32 %v7021_v20, %v6985_v17 }
 0x5d4   : > { %v14856_v63 = vadd.s32 %v4537_v42, %v16333_v47  ;;  %v4847_v40 = vsel %vm4845_vm13, %v4846_v9, %v4842_v25  ;;  %v16334_v32 = vand.u32 65535, %v14479_v11  ;;  %vm4738_vm1 = vweird.f32 %v16275_v41 }
 0x5d5   : > { %v7018_v2 = vadd.f32 %v14795_v43, %v14710_v24  ;;  %v5347_v12 = vadd.f32 -0.4999988, %v5346_v7  ;;  %v5354_v15 = vadd.f32 -0.16666654, %v5353_v22  ;;  %v4748_v33 = vsel %vm4741_vm11, %v4744_v3, %v4747_v28  ;;  %v16338_v24 = vld [vmem:[#allocation50_spill] sm:$0xff]  ;;  %v16344_v22 = vld [vmem:[#allocation31_spill] sm:$0xff] }
 0x5d6   : > { %v14867_v1 = vmul.u32 %v16334_v32, %v14430_v5  ;;  %v5059_v6 = vsel %vm5048_vm4, nan, %v5058_v59  ;;  %v5360_v50 = vand.u32 3, %v5359_v53  ;;  %v4539_v55 = vadd.s32 536870912, %v14856_v63 }
 0x5d7   : > { %v5348_v11 = vmul.f32 %v5347_v12, %v5343_v36  ;;  %v5355_v48 = vmul.f32 %v5354_v15, %v5343_v36  ;;  %v16337_v25 = vmul.u32 %v16335_v14, %v16336_v34  ;;  %v16339_v43 = vand.u32 65535, %v16338_v24  ;;  %v16347_v14 = vld [vmem:[#allocation33_spill] sm:$0xff]  ;;  %v16349_v24 = vld [vmem:[#allocation47_spill] sm:$0xff] }
 0x5d8   : > { %v7310_v10 = vmul.f32 %v7022_v62, %v5059_v6  ;;  %v6989_v49 = vadd.f32 %v6988_v56, %v14683_v4  ;;  %v5119_v0 = vshll.u32 %v14867_v1, 16  ;;  %v5139_v30 = vshll.u32 %v16340_v58, 16  ;;  %v7025_v20 = vpop.f32.mrf.mxu1  ;;  %v16348_v34 = vld [vmem:[#allocation49_spill] sm:$0xff] }
 0x5d9   : > { %v14880_v46 = vadd.s32 %v4847_v40, %v16337_v25  ;;  %v5135_v54 = vmul.u32 %v16339_v43, %v16268_v23  ;;  %v4749_v57 = vsel %vm4738_vm1, nan, %v4748_v33  ;;  %v5349_v36 = vadd.f32 1.0, %v5348_v11 }
 0x5da   : > { %v5356_v13 = vadd.f32 1.0, %v5355_v48  ;;  %v16341_v31 = vmov %v16339_v43  ;;  %v7308_v35 = vmul.f32 %v7018_v2, %v4749_v57  ;;  %vm5365_vm8 = vcmp.eq.s32.totalorder %v5360_v50, 2  ;;  %v16345_v2 = vld [vmem:[#allocation51_spill] sm:$0xff] }
 0x5db   : > { %v14893_v42 = vmul.u32 %v16341_v31, %v14430_v5  ;;  %v14895_v23 = vshrl.u32 %v4539_v55, 30  ;;  %v5122_v4 = vsel %vm14838_vm2, 1, %v16225_v44  ;;  %v5366_v9 = vxor.u32 2147483648, %v5349_v36  ;;  %v16346_v55 = vld [vmem:[#allocation18_spill] sm:$0xff] }
 0x5dc   : > { %v5357_v21 = vmul.f32 %v5356_v13, %v5341_v60  ;;  %v4849_v41 = vadd.s32 536870912, %v14880_v46  ;;  %vm5143_vm7 = vc.u32 %v5135_v54, %v5139_v30  ;;  %v14901_v52 = vand.u32 4294901760, %v7310_v10 }
 0x5dd   : > { %vm5361_vm6 = vcmp.lt.s32.totalorder %v5360_v50, 2  ;;  %vm5362_vm11 = vcmp.eq.s32.totalorder %v5360_v50, 0  ;;  %vm5125_vm12 = vc.u32 %v14672_v61, %v5119_v0  ;;  %v5141_v28 = vshll.u32 %v14893_v42, 16  ;;  %v16342_v61 = vld [vmem:[#allocation48_spill] sm:$0xff] }
 0x5de   : > { %v5363_v5 = vxor.u32 2147483648, %v5357_v21  ;;  %v5367_v26 = vsel %vm5365_vm8, %v5366_v9, %v5357_v21  ;;  %v5145_v17 = vadd.s32 %v5139_v30, %v5135_v54  ;;  %vm5358_vm0 = vweird.f32 %v13693_v38 }
 0x5df   : > { %v7026_v16 = vadd.f32 %v7025_v20, %v6989_v49  ;;  %v5124_v60 = vadd.s32 %v5122_v4, %v14603_v27  ;;  %v5144_v53 = vsel %vm5143_vm7, 1, %v16225_v44  ;;  %v4541_v8 = vshll.u32 %v14895_v23, 30 }
 0x5e0   : > { %v5364_v29 = vsel %vm5362_vm11, %v5349_v36, %v5363_v5  ;;  %v14909_v47 = vshrl.u32 %v4849_v41, 30  ;;  %v5126_v3 = vsel %vm5125_vm12, 1, %v16225_v44  ;;  %v5097_v7 = vsel %vm5095_vm15, %v16342_v61, 2102212464 }
 0x5e1   : > { %v14916_v62 = vand.u32 4294901760, %v16344_v22  ;;  %v14918_v38 = vand.u32 4294901760, %v7308_v35  ;;  %v5368_v27 = vsel %vm5361_vm6, %v5364_v29, %v5367_v26  ;;  %v14922_v32 = vsub.f32 %v7310_v10, %v14901_v52 }
 0x5e2   : > { %v5369_v40 = vsel %vm5358_vm0, nan, %v5368_v27  ;;  %v5146_v56 = vadd.s32 %v5144_v53, %v16345_v2  ;;  %vm5147_vm10 = vc.u32 %v5145_v17, %v5141_v28  ;;  %v14926_v12 = vand.u32 4294901760, %v14862_v39 }
 0x5e3   : > { %v7312_v15 = vmul.f32 %v7026_v16, %v5369_v40  ;;  %v5118_v33 = vshrl.u32 %v14598_v45, 16  ;;  %v5128_v6 = vadd.s32 %v5126_v3, %v5124_v60  ;;  %vm5381_vm15 = vcmp.gt.s32.totalorder %v16346_v55, 0  ;;  %v16350_v3 = vld [vmem:[#allocation24_spill] sm:$0xff] }
 0x5e4   : > { %v14931_v11 = vsub.s32 %v14856_v63, %v4541_v8  ;;  %v4851_v50 = vshll.u32 %v14909_v47, 30  ;;  %v5148_v48 = vsel %vm5147_vm10, 1, %v16225_v44  ;;  %v5096_v25 = vsel %vm5092_vm3, %v16348_v34, %v16347_v14 }
 0x5e5   : > { %v5098_v43 = vsel %vm5094_vm5, %v16349_v24, %v5097_v7  ;;  %v14942_v45 = vand.u32 4294901760, %v7312_v15  ;;  %v7376_v54 = vsub.f32 %v7308_v35, %v14918_v38  ;;  %v7345_v63 = vsub.f32 %v16344_v22, %v14916_v62 }
 0x5e6   : > { %v7371_v10 = vand.u32 4294901760, %v14922_v32  ;;  %v5140_v49 = vshrl.u32 %v16340_v58, 16  ;;  %v5150_v0 = vadd.s32 %v5148_v48, %v5146_v56  ;;  %v14954_v57 = vsub.f32 %v14862_v39, %v14926_v12  ;;  %v16351_v56 = vld [vmem:[#allocation36_spill] sm:$0xff] }
 0x5e7   : > { %v7364_v30 = vsub.f32 %v7312_v15, %v14942_v45  ;;  %7335 = vmatpush.msrb.mxu0 %v14942_v45  ;;  %7435 = vmatpush.msrb.mxu3 %v14942_v45  ;;  %v5120_v36 = vshrl.u32 %v14867_v1, 16  ;;  %v5129_v13 = vadd.s32 %v5128_v6, %v5118_v33  ;;  %v5382_v31 = vsel %vm5381_vm15, %v16346_v55, 0 }
 0x5e8   : > { %v4544_v58 = vsub.s32 0, %v14931_v11  ;;  %v14962_v35 = vsub.s32 %v14880_v46, %v4851_v50  ;;  %v5099_v4 = vsel %vm5093_vm14, %v5096_v25, %v5098_v43  ;;  %v7377_v21 = vand.u32 4294901760, %v7376_v54 }
 0x5e9   : > { %7337 = vmatpush.msrb.mxu0 %v14901_v52  ;;  %7406 = vmatpush.msrb.mxu2 %v7364_v30  ;;  %v7365_v39 = vand.u32 4294901760, %v7364_v30  ;;  %vm4543_vm3 = vcmp.lt.s32.totalorder %v14931_v11, 0  ;;  %v14969_v1 = vand.u32 4294901760, %v7345_v63  ;;  %v7372_v9 = vsub.f32 %v14922_v32, %v7371_v10 }
 0x5ea   : > { %7437 = vmatpush.msrb.mxu3 %v14901_v52  ;;  %v5142_v20 = vshrl.u32 %v14893_v42, 16  ;;  %v5151_v46 = vadd.s32 %v5150_v0, %v5140_v49  ;;  %v7383_v5 = vand.u32 4294901760, %v14954_v57  ;;  %v14976_v26 = vadd.s32 %v5129_v13, %v5120_v36  ;;  %v16356_v36 = vld [vmem:[#allocation27_spill] sm:$0xff] }
 0x5eb   : > { %7339 = vmatpush.msrb.mxu0 %v14918_v38  ;;  %7409 = vmatpush.msrb.mxu2 %v14922_v32  ;;  %v7366_v41 = vsub.f32 %v7364_v30, %v7365_v39  ;;  %v14978_v16 = vadd.s32 %v5145_v17, %v5141_v28  ;;  %v5384_v60 = vand.u32 31, %v5382_v31  ;;  %v4545_v53 = vsel %vm4543_vm3, %v4544_v58, %v14931_v11 }
 0x5ec   : > { %7439 = vmatpush.msrb.mxu3 %v14918_v38  ;;  %v4854_v29 = vsub.s32 0, %v14962_v35  ;;  %v7378_v8 = vsub.f32 %v7376_v54, %v7377_v21  ;;  %vm4853_vm5 = vcmp.lt.s32.totalorder %v14962_v35, 0  ;;  %v5153_v61 = vmul.u32 %v16350_v3, %v5099_v4 }
 0x5ed   : > { %7341 = vmatpush.msrb.mxu0 %v14926_v12  ;;  %7412 = vmatpush.msrb.mxu2 %v7376_v54  ;;  %v7367_v42 = vand.u32 4294901760, %v7366_v41  ;;  %v5152_v28 = vadd.s32 %v5151_v46, %v5142_v20  ;;  %v7373_v17 = vand.u32 4294901760, %v7372_v9  ;;  %v7384_v59 = vsub.f32 %v14954_v57, %v7383_v5 }
 0x5ee   : > { %7441 = vmatpush.msrb.mxu3 %v14926_v12  ;;  %7347 = vmatmul.f32.vlgmr.msrb.gmra.mxu0 %v14969_v1  ;;  %v4546_v7 = vclz %v4545_v53  ;;  %vm5155_vm14 = vc.u32 %v14976_v26, %v14978_v16  ;;  %v14991_v27 = vsub.s32 32, %v5384_v60  ;;  %v4855_v40 = vsel %vm4853_vm5, %v4854_v29, %v14962_v35 }
 0x5ef   : > { %7464 = vmatpush.msra.mxu0 %v7365_v39  ;;  %7368 = vmatpush.msrb.mxu1 %v7367_v42  ;;  %v5156_v32 = vadd.s32 1, %v5152_v28  ;;  %v7379_v2 = vand.u32 4294901760, %v7378_v8  ;;  %v5370_v15 = vand.u32 2147483647, %v16351_v56  ;;  %v7385_v6 = vand.u32 4294901760, %v7384_v59 }
 0x5f0   : > { %7415 = vmatpush.msrb.mxu2 %v14954_v57  ;;  %7445 = vmatmul.f32.vlgmr.msrb.gmra.mxu3 %v14916_v62  ;;  %v7900_v55 = vadd.s32 4294967294, %v4546_v7  ;;  %v4856_v50 = vclz %v4855_v40  ;;  %v16352_v14 = vmov 2475754826   ;;  %v16353_v25 = vmov 2131351028  }
 0x5f1   : > { %7468 = vmatpush.msra.mxu0 %v7371_v10  ;;  %7374 = vmatpush.msrb.mxu1 %v7373_v17  ;;  %v5157_v33 = vsel %vm5155_vm14, %v5156_v32, %v5152_v28  ;;  %v5390_v34 = vshll.u32 %v16352_v14, %v5384_v60  ;;  %v5391_v24 = vshrl.u32 %v16353_v25, %v14991_v27  ;;  %v16354_v54 = vmov 2102212464  }
 0x5f2   : > { %7418 = vmatmul.f32.vlgmr.msrb.gmra.mxu2 %v16344_v22  ;;  %v5158_v48 = vadd.s32 %v5157_v33, %v5153_v61  ;;  %v5393_v43 = vshll.u32 %v16353_v25, %v5384_v60  ;;  %v5394_v63 = vshrl.u32 %v16354_v54, %v14991_v27  ;;  %v15004_v10 = vshrl.u32 %v5382_v31, 5 }
 0x5f3   : > { %7472 = vmatpush.msra.mxu0 %v7377_v21  ;;  %7380 = vmatpush.msrb.mxu1 %v7379_v2  ;;  %v5377_v0 = vand.u32 8388607, %v5370_v15  ;;  %v16355_v30 = vmov 920167782   ;;  %v5396_v13 = vshll.u32 %v16354_v54, %v5384_v60  ;;  %v16357_v31 = vmov 1326507024  }
 0x5f4   : > { %v5159_v49 = vadd.s32 536870912, %v5158_v48  ;;  %v5399_v57 = vshll.u32 %v16355_v30, %v5384_v60  ;;  %v5397_v58 = vshrl.u32 %v16355_v30, %v14991_v27  ;;  %v5400_v4 = vshrl.u32 %v16357_v31, %v14991_v27 }
 0x5f5   : > { %7476 = vmatpush.msra.mxu0 %v7383_v5  ;;  %7386 = vmatpush.msrb.mxu1 %v7385_v6  ;;  %vm7901_vm2 = vcmp.lt.s32.totalorder %v7900_v55, 0  ;;  %v7906_v39 = vadd.s32 4294967294, %v4856_v50  ;;  %v16358_v9 = vmov 683565275   ;;  %v5388_v46 = vshrl.u32 %v16352_v14, %v14991_v27 }
 0x5f6   : > { %7388 = vmatmul.f32.vlgmr.msrb.gmra.mxu1 %v16356_v36  ;;  %7478 = vmatmul.f32.vlgmr.msra.gmra.mxu0 %v16356_v36  ;;  %v15017_v21 = vshrl.u32 %v5159_v49, 30  ;;  %v5387_v20 = vshll.u32 %v16358_v9, %v5384_v60  ;;  %v15022_v41 = vor.u32 %v5391_v24, %v5390_v34  ;;  %v15024_v5 = vor.u32 %v5394_v63, %v5393_v43 }
 0x5f7   : > { %7495 = vmatpush.msra.mxu1 %v14942_v45  ;;  %v5378_v29 = vor.u32 8388608, %v5377_v0  ;;  %v5401_v42 = vor.u32 %v5400_v4, %v5399_v57  ;;  %vm5402_vm9 = vcmp.lt.s32.totalorder %v15004_v10, 1  ;;  %v5398_v45 = vor.u32 %v5397_v58, %v5396_v13  ;;  %v15076_v4 = vpop.f32.mrf.mxu2 }
 0x5f8   : > { %v5161_v53 = vshll.u32 %v15017_v21, 30  ;;  %vm5405_vm4 = vcmp.lt.s32.totalorder %v15004_v10, 4  ;;  %v4534_v60 = vadd.s32 %v14800_v18, %v14793_v51  ;;  %v4549_v8 = vsel %vm7901_vm2, 0, %v7900_v55 }
 0x5f9   : > { %7497 = vmatpush.msra.mxu1 %v14901_v52  ;;  %vm5404_vm13 = vcmp.lt.s32.totalorder %v15004_v10, 3  ;;  %vm7907_vm1 = vcmp.lt.s32.totalorder %v7906_v39, 0  ;;  %v15036_v52 = vor.u32 %v5388_v46, %v5387_v20  ;;  %vm5403_vm8 = vcmp.lt.s32.totalorder %v15004_v10, 2 }
 0x5fa   : > { %v15033_v3 = vsub.s32 %v5158_v48, %v5161_v53  ;;  %v5414_v61 = vsel %vm5402_vm9, %v15022_v41, %v15024_v5  ;;  %v5415_v18 = vsel %vm5405_vm4, %v5401_v42, 1326507024  ;;  %v4550_v28 = vsub.s32 32, %v4549_v8 }
 0x5fb   : > { %7499 = vmatpush.msra.mxu1 %v14918_v38  ;;  %v15048_v38 = vshll.u32 %v5378_v29, 8  ;;  %v4554_v17 = vsub.s32 4294967266, %v4549_v8  ;;  %v5411_v59 = vsel %vm5405_vm4, %v5398_v45, 920167782  ;;  %v5416_v7 = vsel %vm5404_vm13, %v5398_v45, %v5415_v18 }
 0x5fc   : > { %vm5163_vm7 = vcmp.lt.s32.totalorder %v15033_v3, 0  ;;  %v5164_v51 = vsub.s32 0, %v15033_v3  ;;  %v5417_v32 = vsel %vm5403_vm8, %v5414_v61, %v5416_v7  ;;  %v5410_v6 = vsel %vm5402_vm9, %v15036_v52, %v15022_v41 }
 0x5fd   : > { %7501 = vmatpush.msra.mxu1 %v14926_v12  ;;  %v4859_v12 = vsel %vm7907_vm1, 0, %v7906_v39  ;;  %v5419_v2 = vand.u32 65535, %v15048_v38  ;;  %v5412_v55 = vsel %vm5404_vm13, %v15024_v5, %v5411_v59  ;;  %v5420_v50 = vshrl.u32 %v15048_v38, 16 }
 0x5fe   : > { %7503 = vmatmul.f32.vlgmr.msra.gmra.mxu1 %v16356_v36  ;;  %v5165_v40 = vsel %vm5163_vm7, %v5164_v51, %v15033_v3  ;;  %v5421_v48 = vand.u32 65535, %v5417_v32  ;;  %v5422_v14 = vshrl.u32 %v5417_v32, 16  ;;  %v4551_v34 = vshll.u32 %v14931_v11, %v4549_v8 }
 0x5ff   : > { %v5166_v33 = vclz %v5165_v40  ;;  %v4552_v25 = vshrl.u32 %v4534_v60, %v4550_v28  ;;  %v4864_v24 = vsub.s32 4294967266, %v4859_v12  ;;  %v4555_v54 = vadd.s32 127, %v4554_v17 }
 0x600   : > { %v4844_v63 = vadd.s32 %v14831_v37, %v14827_v19  ;;  %v5424_v49 = vmul.u32 %v5422_v14, %v5419_v2  ;;  %v5154_v0 = vadd.s32 %v14978_v16, %v14976_v26  ;;  %v5413_v30 = vsel %vm5403_vm8, %v5410_v6, %v5412_v55  ;;  %v15080_v16 = vpop.f32.mrf.mxu3 }
 0x601   : > { %v7912_v43 = vadd.s32 4294967294, %v5166_v33  ;;  %v5423_v57 = vmul.u32 %v5421_v48, %v5419_v2  ;;  %v4860_v13 = vsub.s32 32, %v4859_v12  ;;  %v15074_v31 = vmul.u32 %v5421_v48, %v5420_v50 }
 0x602   : > { %v5427_v11 = vshll.u32 %v5424_v49, 16  ;;  %v15078_v39 = vor.u32 %v4552_v25, %v4551_v34  ;;  %v4865_v20 = vadd.s32 127, %v4864_v24  ;;  %v4556_v37 = vshll.u32 %v4555_v54, 23 }
 0x603   : > { %vm7913_vm6 = vcmp.lt.s32.totalorder %v7912_v43, 0  ;;  %v5426_v53 = vmul.u32 %v5422_v14, %v5420_v50  ;;  %v5444_v26 = vshrl.u32 %v5413_v30, 16  ;;  %v5443_v45 = vand.u32 65535, %v5413_v30 }
 0x604   : > { %v5169_v58 = vsel %vm7913_vm6, 0, %v7912_v43  ;;  %vm5431_vm11 = vc.u32 %v5423_v57, %v5427_v11  ;;  %v4861_v60 = vshll.u32 %v14962_v35, %v4859_v12  ;;  %v4862_v8 = vshrl.u32 %v4844_v63, %v4860_v13 }
 0x605   : > { %v5170_v19 = vsub.s32 32, %v5169_v58  ;;  %v5174_v46 = vsub.s32 4294967266, %v5169_v58  ;;  %v5171_v29 = vshll.u32 %v15033_v3, %v5169_v58  ;;  %v5429_v51 = vshll.u32 %v15074_v31, 16 }
 0x606   : > { %v4560_v18 = vcvt.s32.f32 %v15078_v39  ;;  %v4866_v28 = vshll.u32 %v4865_v20, 23  ;;  %v5432_v17 = vsel %vm5431_vm11, 1, %v16225_v44  ;;  %v5433_v7 = vadd.s32 %v5427_v11, %v5423_v57 }
 0x607   : > { %v5172_v42 = vshrl.u32 %v5154_v0, %v5170_v19  ;;  %v5175_v61 = vadd.s32 127, %v5174_v46  ;;  %v5434_v40 = vadd.s32 %v5432_v17, %v5426_v53  ;;  %v5446_v32 = vmul.u32 %v5444_v26, %v5419_v2 }
 0x608   : > { %v4557_v33 = vor.u32 4788187, %v4556_v37  ;;  %v5445_v6 = vmul.u32 %v5443_v45, %v5419_v2  ;;  %v5447_v55 = vmul.u32 %v5443_v45, %v5420_v50  ;;  %v4863_v48 = vor.u32 %v4862_v8, %v4861_v60  ;;  %v15093_v2 = vpop.f32.mrf.mxu2  ;;  %v15097_v39 = vpop.f32.mrf.mxu3 }
 0x609   : > { %v5176_v59 = vshll.u32 %v5175_v61, 23  ;;  %v5173_v3 = vor.u32 %v5172_v42, %v5171_v29  ;;  %v5428_v35 = vshrl.u32 %v5424_v49, 16  ;;  %vm5435_vm12 = vc.u32 %v5433_v7, %v5429_v51  ;;  %v16360_v7 = vld [vmem:[#allocation12_spill] sm:$0xff] }
 0x60a   : > { %v4867_v12 = vor.u32 4788187, %v4866_v28  ;;  %v5436_v34 = vsel %vm5435_vm12, 1, %v16225_v44  ;;  %v5448_v25 = vmul.u32 %v5444_v26, %v5420_v50  ;;  %v5449_v24 = vshll.u32 %v5446_v32, 16 }
 0x60b   : > { %v5177_v14 = vor.u32 4788187, %v5176_v59  ;;  %v5386_v43 = vshrl.u32 %v16358_v9, %v14991_v27  ;;  %v5407_v54 = vsel %vm5405_vm4, %v15024_v5, 2102212464  ;;  %v5438_v63 = vadd.s32 %v5436_v34, %v5434_v40 }
 0x60c   : > { %v5451_v0 = vshll.u32 %v5447_v55, 16  ;;  %v5180_v57 = vcvt.s32.f32 %v5173_v3  ;;  %vm5453_vm0 = vc.u32 %v5445_v6, %v5449_v24  ;;  %v5455_v49 = vadd.s32 %v5449_v24, %v5445_v6 }
 0x60d   : > { %v5178_v30 = vand.u32 2147483647, %v5177_v14  ;;  %v4870_v13 = vcvt.s32.f32 %v4863_v48  ;;  %v5430_v58 = vshrl.u32 %v15074_v31, 16  ;;  %v5439_v50 = vadd.s32 %v5438_v63, %v5428_v35 }
 0x60e   : > { %v5454_v11 = vsel %vm5453_vm0, 1, %v16225_v44  ;;  %v4868_v27 = vand.u32 2147483647, %v4867_v12  ;;  %v5450_v9 = vshrl.u32 %v5446_v32, 16  ;;  %vm5457_vm10 = vc.u32 %v5455_v49, %v5451_v0  ;;  %v16361_v32 = vld [vmem:[#allocation32_spill] sm:$0xff] }
 0x60f   : > { %v5456_v20 = vadd.s32 %v5454_v11, %v5448_v25  ;;  %v4558_v5 = vand.u32 2147483647, %v4557_v33  ;;  %v5406_v19 = vsel %vm5402_vm9, %v5386_v43, %v15036_v52  ;;  %v5408_v37 = vsel %vm5404_vm13, %v15022_v41, %v5407_v54  ;;  %v16359_v52 = vld [vmem:[#allocation14_spill] sm:$0xff] }
 0x610   : > { %v5458_v31 = vsel %vm5457_vm10, 1, %v16225_v44  ;;  %v5181_v46 = vmul.f32 %v5180_v57, %v5178_v30  ;;  %v5452_v53 = vshrl.u32 %v5447_v55, 16  ;;  %v5440_v29 = vadd.s32 %v5439_v50, %v5430_v58  ;;  %v15110_v41 = vpop.f32.mrf.mxu2  ;;  %v15114_v10 = vpop.f32.mrf.mxu3 }
 0x611   : > { %v5460_v26 = vadd.s32 %v5458_v31, %v5456_v20  ;;  %v5459_v42 = vadd.s32 %v5455_v49, %v5451_v0  ;;  %v4871_v45 = vmul.f32 %v4870_v13, %v4868_v27  ;;  %v5409_v60 = vsel %vm5403_vm8, %v5406_v19, %v5408_v37  ;;  %v7161_v27 = vpop.f32.mrf.mxu0 }
 0x612   : > { %v4561_v61 = vmul.f32 %v4560_v18, %v4558_v5  ;;  %v5182_v51 = vxor.u32 2147483648, %v5181_v46  ;;  %vm5062_vm15 = vcmp.lt.s32.totalorder %v16359_v52, 0  ;;  %v5463_v17 = vmul.u32 %v15048_v38, %v5409_v60 }
 0x613   : > { %v5461_v8 = vadd.s32 %v5460_v26, %v5450_v9  ;;  %vm5465_vm3 = vc.u32 %v5440_v29, %v5459_v42  ;;  %v4872_v44 = vxor.u32 2147483648, %v4871_v45  ;;  %vm4752_vm5 = vcmp.lt.s32.totalorder %v16360_v7, 0 }
 0x614   : > { %v4562_v40 = vxor.u32 2147483648, %v4561_v61  ;;  %vm4442_vm14 = vcmp.lt.s32.totalorder %v16361_v32, 0  ;;  %v16362_v18 = vand.u32 2147483647, %v16359_v52  ;;  %v5183_v38 = vsel %vm5062_vm15, %v5182_v51, %v5181_v46  ;;  %v7203_v46 = vpop.f32.mrf.mxu1 }
 0x615   : > { %v5462_v28 = vadd.s32 %v5461_v8, %v5452_v53  ;;  %v16365_v55 = vand.u32 2147483647, %v16360_v7  ;;  %v4873_v14 = vsel %vm4752_vm5, %v4872_v44, %v4871_v45  ;;  %v16368_v35 = vand.u32 2147483647, %v16361_v32 }
 0x616   : > { %vm15118_vm2 = vcmp.le.f32.partialorder %v16362_v18, 0.7853982  ;;  %v4563_v34 = vsel %vm4442_vm14, %v4562_v40, %v4561_v61  ;;  %v4564_v5 = vsub.s32 4, %v14895_v23  ;;  %v5464_v18 = vadd.s32 %v5459_v42, %v5440_v29 }
 0x617   : > { %v5466_v59 = vadd.s32 1, %v5462_v28  ;;  %vm15126_vm9 = vcmp.le.f32.partialorder %v16365_v55, 0.7853982  ;;  %vm15134_vm4 = vcmp.le.f32.partialorder %v16368_v35, 0.7853982  ;;  %v15143_v25 = vsel %vm15118_vm2, %v16359_v52, %v5183_v38  ;;  %v16371_v38 = vld [vmem:[#allocation52_spill] sm:$0xff] }
 0x618   : > { %v15148_v43 = vsel %vm15126_vm9, %v16360_v7, %v4873_v14  ;;  %v15155_v63 = vsel %vm15134_vm4, %v16361_v32, %v4563_v34  ;;  %v15159_v0 = vmul.f32 %v15143_v25, %v15143_v25  ;;  %v15162_v57 = vpop.f32.mrf.mxu2  ;;  %v15172_v50 = vpop.f32.mrf.mxu3  ;;  %v4565_v51 = vsel %vm4442_vm14, %v4564_v5, %v14895_v23 }
 0x619   : > { %v5467_v3 = vsel %vm5465_vm3, %v5466_v59, %v5462_v28  ;;  %v15166_v49 = vmul.f32 %v15148_v43, %v15148_v43  ;;  %v15170_v13 = vmul.f32 %v15155_v63, %v15155_v63  ;;  %v5184_v42 = vsub.s32 4, %v15017_v21 }
 0x61a   : > { %v5468_v6 = vadd.s32 %v5467_v3, %v5463_v17  ;;  %v5196_v11 = vmul.f32 -0.00019511016, %v15159_v0  ;;  %v5189_v37 = vmul.f32 -0.001358992, %v15159_v0  ;;  %v7055_v3 = vadd.f32 %v15076_v4, %v16371_v38 }
 0x61b   : > { %v4886_v20 = vmul.f32 -0.00019511016, %v15166_v49  ;;  %v4576_v19 = vmul.f32 -0.00019511016, %v15170_v13  ;;  %v4569_v53 = vmul.f32 -0.001358992, %v15170_v13  ;;  %vm4583_vm3 = vweird.f32 %v16361_v32 }
 0x61c   : > { %v5469_v24 = vadd.s32 536870912, %v5468_v6  ;;  %v5197_v26 = vadd.f32 0.008332121, %v5196_v11  ;;  %v4879_v60 = vmul.f32 -0.001358992, %v15166_v49  ;;  %v7166_v11 = vpop.f32.mrf.mxu0  ;;  %vm5372_vm8 = vcmp.lt.s32.totalorder %v16351_v56, 0 }
 0x61d   : > { %v4887_v8 = vadd.f32 0.008332121, %v4886_v20  ;;  %v4577_v28 = vadd.f32 0.008332121, %v4576_v19  ;;  %v5190_v17 = vadd.f32 0.041655596, %v5189_v37 }
 0x61e   : > { %v15150_v54 = vshrl.u32 %v5469_v24, 30  ;;  %v4570_v59 = vadd.f32 0.041655596, %v4569_v53  ;;  %v5198_v40 = vmul.f32 %v5197_v26, %v15159_v0  ;;  %v4880_v55 = vadd.f32 0.041655596, %v4879_v60  ;;  %v16373_v26 = vld [vmem:[#allocation20_spill] sm:$0xff]  ;;  %v7209_v60 = vpop.f32.mrf.mxu1 }
 0x61f   : > { %v4888_v23 = vmul.f32 %v4887_v8, %v15166_v49  ;;  %v4578_v29 = vmul.f32 %v4577_v28, %v15170_v13  ;;  %v5191_v4 = vmul.f32 %v5190_v17, %v15159_v0  ;;  %v7071_v12 = vadd.f32 %v15110_v41, %v16373_v26 }
 0x620   : > { %v5471_v30 = vshll.u32 %v15150_v54, 30  ;;  %v15184_v44 = vpop.f32.mrf.mxu2  ;;  %v15190_v35 = vpop.f32.mrf.mxu3  ;;  %v4571_v20 = vmul.f32 %v4570_v59, %v15170_v13  ;;  %v5199_v5 = vadd.f32 -0.16666654, %v5198_v40  ;;  %v4881_v8 = vmul.f32 %v4880_v55, %v15166_v49 }
 0x621   : > { %v4579_v17 = vadd.f32 -0.16666654, %v4578_v29  ;;  %v7128_v48 = vadd.f32 %v15114_v10, %v7071_v12  ;;  %vm15235_vm7 = vcmp.le.f32.partialorder %v5370_v15, 0.7853982 }
 0x622   : > { %v5472_v58 = vsub.s32 %v5468_v6, %v5471_v30  ;;  %v4874_v6 = vsub.s32 4, %v14909_v47  ;;  %v4572_v40 = vadd.f32 -0.4999988, %v4571_v20  ;;  %v5200_v41 = vmul.f32 %v5199_v5, %v15159_v0 }
 0x624   : > { %vm5473_vm13 = vcmp.lt.s32.totalorder %v5472_v58, 0  ;;  %v5474_v9 = vsub.s32 0, %v5472_v58  ;;  %v7171_v20 = vpop.f32.mrf.mxu0 }
 0x626   : > { %v5475_v31 = vsel %vm5473_vm13, %v5474_v9, %v5472_v58  ;;  %v4567_v9 = vsel %vm15134_vm4, 0, %v4565_v51  ;;  %vm4893_vm4 = vweird.f32 %v16360_v7 }
 0x627   : > { %v5476_v45 = vclz %v5475_v31  ;;  %v16372_v31 = vld [vmem:[#allocation46_spill] sm:$0xff]  ;;  %v4584_v59 = vadd.s32 3, %v4567_v9 }
 0x628   : > { %v7063_v53 = vadd.f32 %v15093_v2, %v16372_v31  ;;  %v5185_v2 = vsel %vm5062_vm15, %v5184_v42, %v15017_v21  ;;  %v15215_v55 = vpop.f32.mrf.mxu2  ;;  %v15228_v29 = vpop.f32.mrf.mxu3  ;;  %v5201_v42 = vadd.f32 1.0, %v5200_v41 }
 0x629   : > { %v7918_v61 = vadd.s32 4294967294, %v5476_v45  ;;  %v4875_v45 = vsel %vm4752_vm5, %v4874_v6, %v14909_v47  ;;  %v5187_v21 = vsel %vm15118_vm2, 0, %v5185_v2  ;;  %v15223_v9 = vand.u32 3, %v4584_v59 }
 0x62a   : > { %v7124_v47 = vadd.f32 %v15097_v39, %v7063_v53  ;;  %v4877_v6 = vsel %vm15126_vm9, 0, %v4875_v45  ;;  %v5204_v5 = vadd.s32 3, %v5187_v21  ;;  %v7172_v45 = vadd.f32 %v7171_v20, %v7128_v48 }
 0x62b   : > { %vm7919_vm1 = vcmp.lt.s32.totalorder %v7918_v61, 0  ;;  %v4894_v33 = vadd.s32 3, %v4877_v6  ;;  %vm4587_vm6 = vcmp.eq.s32.totalorder %v15223_v9, 0  ;;  %vm4590_vm11 = vcmp.eq.s32.totalorder %v15223_v9, 2 }
 0x62c   : > { %v5479_v14 = vsel %vm7919_vm1, 0, %v7918_v61  ;;  %v4889_v61 = vadd.f32 -0.16666654, %v4888_v23  ;;  %v7167_v53 = vadd.f32 %v7166_v11, %v7124_v47  ;;  %vm4586_vm12 = vcmp.lt.s32.totalorder %v15223_v9, 2 }
 0x62d   : > { %v5480_v34 = vsub.s32 32, %v5479_v14  ;;  %v5481_v24 = vshll.u32 %v5472_v58, %v5479_v14  ;;  %v5484_v30 = vsub.s32 4294967266, %v5479_v14  ;;  %v7120_v58 = vadd.f32 %v15080_v16, %v7055_v3 }
 0x62e   : > { %v5192_v16 = vadd.f32 -0.4999988, %v5191_v4  ;;  %v4882_v14 = vadd.f32 -0.4999988, %v4881_v8  ;;  %v4890_v23 = vmul.f32 %v4889_v61, %v15166_v49  ;;  %v7215_v8 = vpop.f32.mrf.mxu1  ;;  %v5202_v61 = vmul.f32 %v5201_v42, %v15143_v25 }
 0x62f   : > { %v5482_v19 = vshrl.u32 %v5464_v18, %v5480_v34  ;;  %v5485_v37 = vadd.s32 127, %v5484_v30  ;;  %v7162_v3 = vadd.f32 %v7161_v27, %v7120_v58  ;;  %v4580_v30 = vmul.f32 %v4579_v17, %v15170_v13 }
 0x630   : > { %v5193_v39 = vmul.f32 %v5192_v16, %v15159_v0  ;;  %v4573_v27 = vmul.f32 %v4572_v40, %v15170_v13  ;;  %v16376_v13 = vld [vmem:[#allocation13_spill] sm:$0xff]  ;;  %v4895_v15 = vand.u32 3, %v4894_v33  ;;  %v7216_v40 = vadd.f32 %v7215_v8, %v7172_v45 }
 0x631   : > { %v5483_v51 = vor.u32 %v5482_v19, %v5481_v24  ;;  %v5486_v28 = vshll.u32 %v5485_v37, 23  ;;  %v15220_v24 = vadd.f32 %v7203_v46, %v7162_v3  ;;  %v5494_v46 = vsub.s32 4, %v15150_v54 }
 0x632   : > { %v4883_v19 = vmul.f32 %v4882_v14, %v15166_v49  ;;  %v4891_v37 = vadd.f32 1.0, %v4890_v23  ;;  %v7079_v31 = vadd.f32 %v15162_v57, %v16376_v13  ;;  %v4581_v58 = vadd.f32 1.0, %v4580_v30 }
 0x633   : > { %v5487_v18 = vor.u32 4788187, %v5486_v28  ;;  %v5490_v38 = vcvt.s32.f32 %v5483_v51  ;;  %v5194_v26 = vadd.f32 1.0, %v5193_v39  ;;  %v4574_v12 = vadd.f32 1.0, %v4573_v27 }
 0x634   : > { %v5205_v51 = vand.u32 3, %v5204_v5  ;;  %v5495_v57 = vsel %vm5372_vm8, %v5494_v46, %v15150_v54  ;;  %v7210_v28 = vadd.f32 %v7209_v60, %v7167_v53  ;;  %v4884_v25 = vadd.f32 1.0, %v4883_v19  ;;  %v7262_v54 = vpop.f32.mrf.mxu2  ;;  %v7176_v5 = vpop.f32.mrf.mxu0 }
 0x635   : > { %v5488_v34 = vand.u32 2147483647, %v5487_v18  ;;  %v4892_v17 = vmul.f32 %v4891_v37, %v15148_v43  ;;  %v7132_v2 = vadd.f32 %v15172_v50, %v7079_v31  ;;  %v4582_v16 = vmul.f32 %v4581_v58, %v15155_v63  ;;  %v7299_v50 = vpop.f32.mrf.mxu3 }
 0x636   : > { %v5211_v41 = vxor.u32 2147483648, %v5194_v26  ;;  %v5208_v18 = vxor.u32 2147483648, %v5202_v61  ;;  %v4591_v3 = vxor.u32 2147483648, %v4574_v12  ;;  %vm4897_vm0 = vcmp.eq.s32.totalorder %v4895_v15, 0 }
 0x637   : > { %v5491_v4 = vmul.f32 %v5490_v38, %v5488_v34  ;;  %v5497_v38 = vsel %vm15235_vm7, 0, %v5495_v57  ;;  %vm5207_vm10 = vcmp.eq.s32.totalorder %v5205_v51, 0  ;;  %vm5210_vm15 = vcmp.eq.s32.totalorder %v5205_v51, 2 }
 0x638   : > { %v4898_v43 = vxor.u32 2147483648, %v4892_v17  ;;  %v4901_v6 = vxor.u32 2147483648, %v4884_v25  ;;  %v4588_v23 = vxor.u32 2147483648, %v4582_v16  ;;  %vm4900_vm5 = vcmp.eq.s32.totalorder %v4895_v15, 2 }
 0x639   : > { %v5492_v0 = vxor.u32 2147483648, %v5491_v4  ;;  %vm5206_vm14 = vcmp.lt.s32.totalorder %v5205_v51, 2  ;;  %v5514_v21 = vadd.s32 3, %v5497_v38  ;;  %v5209_v34 = vsel %vm5207_vm10, %v5194_v26, %v5208_v18 }
 0x63a   : > { %v5212_v30 = vsel %vm5210_vm15, %v5211_v41, %v5202_v61  ;;  %v7255_v27 = vadd.f32 %v15184_v44, %v15220_v24  ;;  %v7259_v42 = vadd.f32 %v15215_v55, %v7210_v28  ;;  %vm4896_vm2 = vcmp.lt.s32.totalorder %v4895_v15, 2  ;;  %v7221_v55 = vpop.f32.mrf.mxu1 }
 0x63b   : > { %v5493_v49 = vsel %vm5372_vm8, %v5492_v0, %v5491_v4  ;;  %v7263_v4 = vadd.f32 %v7262_v54, %v7216_v40  ;;  %v4899_v20 = vsel %vm4897_vm0, %v4884_v25, %v4898_v43  ;;  %v4902_v33 = vsel %vm4900_vm5, %v4901_v6, %v4892_v17 }
 0x63c   : > { %v15252_v11 = vsel %vm15235_vm7, %v16351_v56, %v5493_v49  ;;  %vm5203_vm9 = vweird.f32 %v16359_v52  ;;  %v5213_v37 = vsel %vm5206_vm14, %v5209_v34, %v5212_v30  ;;  %v5515_v0 = vand.u32 3, %v5514_v21  ;;  %v7266_v45 = vpop.f32.mrf.mxu2 }
 0x63d   : > { %v5498_v59 = vmul.f32 %v15252_v11, %v15252_v11  ;;  %v7300_v10 = vadd.f32 %v7299_v50, %v7263_v4  ;;  %v4589_v13 = vsel %vm4587_vm6, %v4574_v12, %v4588_v23  ;;  %v4592_v44 = vsel %vm4590_vm11, %v4591_v3, %v4582_v16  ;;  %v7303_v25 = vpop.f32.mrf.mxu3 }
 0x63e   : > { %v4903_v53 = vsel %vm4896_vm2, %v4899_v20, %v4902_v33  ;;  %v7296_v58 = vadd.f32 %v15228_v29, %v7259_v42  ;;  %v7177_v52 = vadd.f32 %v7176_v5, %v7132_v2  ;;  %v7292_v26 = vadd.f32 %v15190_v35, %v7255_v27 }
 0x63f   : > { %v5499_v60 = vmul.f32 -0.001358992, %v5498_v59  ;;  %v5506_v47 = vmul.f32 -0.00019511016, %v5498_v59  ;;  %v5214_v8 = vsel %vm5203_vm9, nan, %v5213_v37  ;;  %v4593_v12 = vsel %vm4586_vm12, %v4589_v13, %v4592_v44 }
 0x640   : > { %v7222_v51 = vadd.f32 %v7221_v55, %v7177_v52  ;;  %v7311_v57 = vmul.f32 %v7300_v10, %v5214_v8  ;;  %vm5520_vm13 = vcmp.eq.s32.totalorder %v5515_v0, 2  ;;  %v4904_v28 = vsel %vm4893_vm4, nan, %v4903_v53 }
 0x641   : > { %v5500_v14 = vadd.f32 0.041655596, %v5499_v60  ;;  %v5507_v63 = vadd.f32 0.008332121, %v5506_v47  ;;  %v7309_v17 = vmul.f32 %v7296_v58, %v4904_v28  ;;  %vm5517_vm1 = vcmp.eq.s32.totalorder %v5515_v0, 0 }
 0x642   : > { %v7267_v29 = vadd.f32 %v7266_v45, %v7222_v51  ;;  %v4594_v35 = vsel %vm4583_vm3, nan, %v4593_v12  ;;  %vm5516_vm8 = vcmp.lt.s32.totalorder %v5515_v0, 2  ;;  %v7521_v9 = vand.u32 4294901760, %v7311_v57 }
 0x643   : > { %v5501_v39 = vmul.f32 %v5500_v14, %v5498_v59  ;;  %v5508_v48 = vmul.f32 %v5507_v63, %v5498_v59  ;;  %v7307_v16 = vmul.f32 %v7292_v26, %v4594_v35  ;;  %vm5513_vm7 = vweird.f32 %v16351_v56 }
 0x644   : > { %v7304_v40 = vadd.f32 %v7303_v25, %v7267_v29  ;;  %v7523_v54 = vand.u32 4294901760, %v7309_v17  ;;  %v7555_v47 = vsub.f32 %v7311_v57, %v7521_v9  ;;  %vm7695_vm6 = vcmask 1043456  }
 0x645   : > { %v5502_v46 = vadd.f32 -0.4999988, %v5501_v39  ;;  %v5509_v19 = vadd.f32 -0.16666654, %v5508_v48  ;;  %v7525_v38 = vand.u32 4294901760, %v7307_v16 }
 0x646   : > { %v7561_v43 = vsub.f32 %v7309_v17, %v7523_v54  ;;  %v7556_v50 = vand.u32 4294901760, %v7555_v47 }
 0x647   : > { %v5503_v24 = vmul.f32 %v5502_v46, %v5498_v59  ;;  %v5510_v31 = vmul.f32 %v5509_v19, %v5498_v59  ;;  %v7567_v32 = vsub.f32 %v7307_v16, %v7525_v38 }
 0x648   : > { %v7562_v63 = vand.u32 4294901760, %v7561_v43  ;;  %v7557_v23 = vsub.f32 %v7555_v47, %v7556_v50 }
 0x649   : > { %v5504_v61 = vadd.f32 1.0, %v5503_v24  ;;  %v5511_v49 = vadd.f32 1.0, %v5510_v31  ;;  %v7568_v21 = vand.u32 4294901760, %v7567_v32 }
 0x64a   : > { %v7563_v30 = vsub.f32 %v7561_v43, %v7562_v63  ;;  %v7558_v39 = vand.u32 4294901760, %v7557_v23 }
 0x64b   : > { %v5512_v7 = vmul.f32 %v5511_v49, %v15252_v11  ;;  %v5521_v15 = vxor.u32 2147483648, %v5504_v61  ;;  %v7569_v48 = vsub.f32 %v7567_v32, %v7568_v21 }
 0x64c   : > { %v7564_v27 = vand.u32 4294901760, %v7563_v30 }
 0x64d   : > { %v5518_v59 = vxor.u32 2147483648, %v5512_v7  ;;  %v5522_v2 = vsel %vm5520_vm13, %v5521_v15, %v5512_v7  ;;  %v7570_v42 = vand.u32 4294901760, %v7569_v48 }
 0x64f   : > { %v5519_v41 = vsel %vm5517_vm1, %v5504_v61, %v5518_v59 }
 0x650   : > { %v5523_v18 = vsel %vm5516_vm8, %v5519_v41, %v5522_v2 }
 0x651   : > { %v5524_v11 = vsel %vm5513_vm7, nan, %v5523_v18 }
 0x652   : > { %v7313_v60 = vmul.f32 %v7304_v40, %v5524_v11 }
 0x654   : > { %v7519_v3 = vand.u32 4294901760, %v7313_v60 }
 0x656   : > { %v7549_v6 = vsub.f32 %v7313_v60, %v7519_v3  ;;  %7520 = vmatpush.msra.mxu2 %v7519_v3  ;;  %7620 = vmatpush.msrb.mxu1 %v7519_v3 }
 0x658   : > { %7522 = vmatpush.msra.mxu2 %v7521_v9  ;;  %7591 = vmatpush.msrb.mxu0 %v7549_v6  ;;  %v7550_v14 = vand.u32 4294901760, %v7549_v6 }
 0x659   : > { %7622 = vmatpush.msrb.mxu1 %v7521_v9 }
 0x65a   : > { %7524 = vmatpush.msra.mxu2 %v7523_v54  ;;  %7594 = vmatpush.msrb.mxu0 %v7555_v47  ;;  %v7551_v56 = vsub.f32 %v7549_v6, %v7550_v14 }
 0x65b   : > { %7624 = vmatpush.msrb.mxu1 %v7523_v54 }
 0x65c   : > { %7526 = vmatpush.msra.mxu2 %v7525_v38  ;;  %7597 = vmatpush.msrb.mxu0 %v7561_v43  ;;  %v7552_v34 = vand.u32 4294901760, %v7551_v56 }
 0x65d   : > { %7626 = vmatpush.msrb.mxu1 %v7525_v38  ;;  %7532 = vmatmul.f32.vlgmr.msra.gmra.mxu2 %v14969_v1 }
 0x65e   : > { %7649 = vmatpush.msrb.mxu2 %v7550_v14  ;;  %7553 = vmatpush.msra.mxu3 %v7552_v34 }
 0x65f   : > { %7600 = vmatpush.msrb.mxu0 %v7567_v32  ;;  %7630 = vmatmul.f32.vlgmr.msrb.gmra.mxu1 %v14916_v62 }
 0x660   : > { %7653 = vmatpush.msrb.mxu2 %v7556_v50  ;;  %7559 = vmatpush.msra.mxu3 %v7558_v39 }
 0x661   : > { %7603 = vmatmul.f32.vlgmr.msrb.gmra.mxu0 %v16344_v22  ;;  %v7318_v22 = vpop.permute.xlu1 %7317 }
 0x662   : > { %7657 = vmatpush.msrb.mxu2 %v7562_v63  ;;  %7565 = vmatpush.msra.mxu3 %v7564_v27 }
 0x664   : > { %7661 = vmatpush.msrb.mxu2 %v7568_v21  ;;  %7571 = vmatpush.msra.mxu3 %v7570_v42 }
 0x665   : > { %7573 = vmatmul.f32.vlgmr.msra.gmra.mxu3 %v16356_v36  ;;  %7663 = vmatmul.f32.vlgmr.msrb.gmra.mxu2 %v16356_v36 }
 0x666   : > { %7680 = vmatpush.msrb.mxu3 %v7519_v3 }
 0x668   : > { %7682 = vmatpush.msrb.mxu3 %v7521_v9 }
 0x66a   : > { %7684 = vmatpush.msrb.mxu3 %v7523_v54 }
 0x66b   : > { %v7348_v62 = vpop.f32.mrf.mxu0 }
 0x66c   : > { %7686 = vmatpush.msrb.mxu3 %v7525_v38  ;;  %v7349_v5 = vadd.f32 %v7348_v62, %v7318_v22 }
 0x66d   : > { %7688 = vmatmul.f32.vlgmr.msrb.gmra.mxu3 %v16356_v36 }
 0x673   : > { %v7389_v1 = vpop.f32.mrf.mxu1  ;;  %v7446_v20 = vpop.f32.mrf.mxu3 }
 0x674   : > { %v7479_v33 = vpop.f32.mrf.mxu0  ;;  %v7390_v19 = vadd.f32 %v7389_v1, %v7349_v5 }
 0x675   : > { %v7419_v4 = vpop.f32.mrf.mxu2 }
 0x676   : > { %v7420_v10 = vadd.f32 %v7419_v4, %v7390_v19 }
 0x678   : > { %v7447_v31 = vadd.f32 %v7446_v20, %v7420_v10 }
 0x67a   : > { %v7480_v52 = vadd.f32 %v7479_v33, %v7447_v31 }
 0x67b   : > { %v7504_v46 = vpop.f32.mrf.mxu1 }
 0x67c   : > { %v7505_v61 = vadd.f32 %v7504_v46, %v7480_v52 }
 0x6dc   : > { %v7631_v24 = vpop.f32.mrf.mxu1 }
 0x6de   : > { %v7604_v44 = vpop.f32.mrf.mxu0 }
 0x6e0   : > { %v7533_v37 = vpop.f32.mrf.mxu2 }
 0x6e1   : > { %v7534_v0 = vadd.f32 %v7533_v37, %v7318_v22 }
 0x6e8   : > { %v7574_v13 = vpop.f32.mrf.mxu3  ;;  %v7664_v53 = vpop.f32.mrf.mxu2 }
 0x6e9   : > { %v7575_v55 = vadd.f32 %v7574_v13, %v7534_v0 }
 0x6eb   : > { %v7605_v36 = vadd.f32 %v7604_v44, %v7575_v55 }
 0x6ed   : > { %v7632_v58 = vadd.f32 %v7631_v24, %v7605_v36 }
 0x6ef   : > { %v7665_v26 = vadd.f32 %v7664_v53, %v7632_v58 }
 0x6f0   : > { %v7689_v45 = vpop.f32.mrf.mxu3 }
 0x6f1   : > { %v7690_v8 = vadd.f32 %v7689_v45, %v7665_v26 }
 0x6f3   : > { %v7694_v49 = vrot.slane %v7690_v8, 4 }
 0x6f5   : > { %v7696_v12 = vsel %vm7695_vm6, %v7505_v61, %v7694_v49 }
 0x6f6   : > { %7698 = vst [vmem:[%s196_s7] sm:$0xff] %v7696_v12 }
 0x6f7   : > { %8146 = shalt.err (!%p8143_p13)
}
 0x6f8   : > { %7933 = dma.vmem_to_hbm [thread:$0]  (%p8306_p4), %s7716_s8, 128, %s7718_s17, %s7700_s12  }
 0x6f9 PF: > { %s7729_s24 = sand.u32 1, %s8185_s9   ;;  %p7944_p0 = pnand %p7816_p6, %p8314_p7 }
 0x6fa   : > { %s7730_s27 = scalar_lea.sflag [#allocation4], %s7729_s24 }
 0x6fb   : > { %p7945_p2 = pneg %p7944_p0 }
 0x6fd   : > { %8180 = dma.done.wait (%p7945_p2), %s7730_s27, 128  }
 0x6fe   : > { %8182 = vsyncadd (%p7945_p2), %s7730_s27, 4294967168  ;;  %s19_s14 = sadd.s32 1, %s8205_s14   ;;  %s16377_s9 = smov %s8189_s10 }
 0x6ff   : > { %p16_p5 = scmp.ge.s32.totalorder %s19_s14, 4   ;;  %s16378_s10 = smov %s8193_s11 }
 0x700   : > { %s16379_s11 = smov %s8312_s4  ;;  %s16380_s12 = smov %s8201_s13 }
 0x701   : > { %s16381_s13 = smov %s16383_s26  ;;  %18 = sbr.rel (!%p16_p5) target bundleno = 7 (0x7), region = 77 }
 0x706   :  { %7736 = vsyncpa [#allocation3], 1 }
 0x707   :  { %7738 = vsyncpa [#allocation3 + $0x1], 1 }
 0x708   :  { %7739 = vsyncpa [#allocation6], 1 }
 0x709   :  { %7740 = vsyncpa [#allocation4], 1 }
 0x70a   :  { %7742 = vsyncpa [#allocation4 + $0x1], 1 }

</bundles_post_ra>
